<compile_context>
chip_gen: v6e
topology: v6e:2x2x1
jax: 0.10.0
libtpu: 0.0.40
codegen_flags: <defaults>
</compile_context>

<pallas_src>
import numpy as np
import jax
import jax.numpy as jnp
from jax.experimental import pallas as pl
from jax.experimental.pallas import tpu as pltpu

HIDDEN = 256
NUM_DILATION_LAYERS = 10
SUBLANE_ALIGN = 16  # bf16 packs 16 sublanes per vreg


def _vmem():
    return pl.BlockSpec(memory_space=pltpu.MemorySpace.VMEM)


def _round_up(x, m):
    return ((x + m - 1) // m) * m


# ----------------------------- fused kernel -----------------------------

def aligner_kernel(x_ref, z_ref, s_ref,
                   pre_w_ref, pre_b_ref,
                   conv_w_ref, conv_b_ref,
                   scale_w_ref, scale_b_ref,
                   shift_w_ref, shift_b_ref,
                   post_w1_ref, post_b1_ref, post_w2_ref, post_b2_ref,
                   enc_ref, dur_ref,
                   xpad_ref, ypad_ref):
    b, t, e = x_ref.shape
    c = enc_ref.shape[-1]
    bt = b * t
    lp = (xpad_ref.shape[1] - t) // 2      # pre-conv halo (aligned)
    dpad = (ypad_ref.shape[1] - t) // 2    # dilated-conv halo (aligned)
    num_layers = conv_w_ref.shape[0]

    f32 = jnp.float32
    bf16 = jnp.bfloat16

    # ---- pre_process: Conv1d(E -> 256, k=3, dilation=1, "same" padding) ----
    # Zero only the halos; the interior is overwritten with the bf16 input.
    xpad_ref[:, :lp, :] = jnp.zeros((b, lp, e), bf16)
    xpad_ref[:, lp + t:, :] = jnp.zeros((b, xpad_ref.shape[1] - lp - t, e), bf16)
    xpad_ref[:, lp:lp + t, :] = x_ref[...].astype(bf16)

    taps0 = jnp.concatenate(
        [xpad_ref[:, lp - 1:lp - 1 + t, :],
         xpad_ref[:, lp:lp + t, :],
         xpad_ref[:, lp + 1:lp + 1 + t, :]], axis=-1).reshape(bt, 3 * e)
    y = (jnp.dot(taps0, pre_w_ref[...], preferred_element_type=f32)
         + pre_b_ref[...])                                    # (B*T, 256) f32

    # Resident bf16 activation slab (halo-zeroed once, zero-padded along T).
    ypad_ref[:, :dpad, :] = jnp.zeros((b, dpad, c), bf16)
    ypad_ref[:, dpad + t:, :] = jnp.zeros((b, ypad_ref.shape[1] - dpad - t, c), bf16)
    ypad_ref[:, dpad:dpad + t, :] = y.reshape(b, t, c).astype(bf16)

    # (z, s)-conditioned scale/shift for ALL layers in two small matmuls:
    # weights lane-stacked as (z_ch, L*256) -> (B, L*256), f32.
    scale_all = (jnp.dot(z_ref[...], scale_w_ref[...],
                         preferred_element_type=f32) + scale_b_ref[...])
    shift_all = (jnp.dot(s_ref[...], shift_w_ref[...],
                         preferred_element_type=f32) + shift_b_ref[...])

    # ---- 10 dilated conv blocks (unrolled; dilation = 2**i) ----
    y_last = None
    for i in range(num_layers):
        d = 2 ** i
        center = ypad_ref[:, dpad:dpad + t, :]                # bf16 (B,T,256)
        if d < t:
            # K-stacked taps: one (B*T, 768) @ (768, 256) matmul — the tap
            # accumulation happens inside the MXU f32 accumulator.
            taps = jnp.concatenate(
                [ypad_ref[:, dpad - d:dpad - d + t, :],
                 center,
                 ypad_ref[:, dpad + d:dpad + d + t, :]], axis=-1).reshape(bt, 3 * c)
            conv = jnp.dot(taps, conv_w_ref[i], preferred_element_type=f32)
        else:
            # Off-center taps read only zero padding -> single center tap.
            conv = jnp.dot(center.reshape(bt, c), conv_w_ref[i, c:2 * c, :],
                           preferred_element_type=f32)
        conv = conv + conv_b_ref[i]                           # (B*T, 256) f32

        # BatchNorm1d (training-mode batch stats over B*T, biased var,
        # eps=1e-5, affine=False), f32, single centering pass.
        mean = jnp.mean(conv, axis=0, keepdims=True)
        centered = conv - mean
        var = jnp.mean(centered * centered, axis=0, keepdims=True)
        norm = centered * jax.lax.rsqrt(var + 1e-5)

        scale = scale_all[:, i * c:(i + 1) * c].reshape(b, 1, c)
        shift = shift_all[:, i * c:(i + 1) * c].reshape(b, 1, c)
        act = jnp.maximum(scale * norm.reshape(b, t, c) + shift, 0.0)   # f32

        if i + 1 < num_layers:
            ypad_ref[:, dpad:dpad + t, :] = act.astype(bf16)
        else:
            y_last = act   # keep the final layer's f32 activations live

    enc_ref[...] = y_last                                     # == outputs.transpose(1, 2)

    # ---- post_process: Linear(256,256)+ReLU, Linear(256,1)+ReLU ----
    h = jnp.maximum(
        jnp.dot(y_last.reshape(bt, c).astype(bf16), post_w1_ref[...],
                preferred_element_type=f32) + post_b1_ref[...], 0.0)
    # 256 -> 1 head as a lane reduction: writes the true (B, T, 1) output
    # instead of a 128-wide padded HBM slab.
    dur = jnp.sum(h * post_w2_ref[...], axis=-1, keepdims=True) + post_b2_ref[...]
    dur_ref[...] = jnp.maximum(dur, 0.0).reshape(b, t, 1)


# ----------------------------- wrapper -----------------------------

@jax.jit
def aligner_forward(params, encoder_inputs, z, s):
    """encoder_inputs: (B, E, T) NCW like PyTorch; returns ((B,T,256), (B,T,1))."""
    b, e, t = encoder_inputs.shape
    x = jnp.transpose(encoder_inputs, (0, 2, 1))              # (B, T, E) channels-last

    num_layers = params['conv_w'].shape[0]
    useful = [2 ** i for i in range(num_layers) if 2 ** i < t]
    dpad = _round_up(max(useful + [1]), SUBLANE_ALIGN)        # aligned halo >= max dilation
    lp = SUBLANE_ALIGN                                        # pre-conv halo (dilation 1)

    args = (x, z, s,
            params['pre_w'], params['pre_b'],
            params['conv_w'], params['conv_b'],
            params['scale_w'], params['scale_b'],
            params['shift_w'], params['shift_b'],
            params['post_w1'], params['post_b1'],
            params['post_w2'], params['post_b2'])

    # Explicit VMEM byte budget (weights + I/O + scratch + in-flight f32
    # temporaries), capped at 64 MiB so the limit is valid on every
    # generation including v7x (64 MiB physical VMEM).
    def nbytes(a):
        return int(np.prod(a.shape)) * jnp.dtype(a.dtype).itemsize
    arg_bytes = sum(nbytes(a) for a in args)
    out_bytes = b * t * HIDDEN * 4 + b * t * 4
    scratch_bytes = b * (t + 2 * lp) * e * 2 + b * (t + 2 * dpad) * HIDDEN * 2
    tmp_bytes = 8 * b * t * HIDDEN * 4
    budget = arg_bytes + out_bytes + scratch_bytes + tmp_bytes
    vmem_limit = int(min(64 * 1024 * 1024, max(32 * 1024 * 1024, 2 * budget)))

    enc, dur = pl.pallas_call(
        aligner_kernel,
        out_shape=(jax.ShapeDtypeStruct((b, t, HIDDEN), jnp.float32),
                   jax.ShapeDtypeStruct((b, t, 1), jnp.float32)),
        in_specs=[_vmem()] * len(args),
        out_specs=(_vmem(), _vmem()),
        scratch_shapes=[
            pltpu.VMEM((b, t + 2 * lp, e), jnp.bfloat16),       # padded bf16 input
            pltpu.VMEM((b, t + 2 * dpad, HIDDEN), jnp.bfloat16),  # resident bf16 activation
        ],
        compiler_params=pltpu.CompilerParams(vmem_limit_bytes=vmem_limit),
    )(*args)
    return enc, dur


# ----------------------------- parameters -----------------------------

def spectral_normalize(w):
    # TODO(synk): PyTorch spectral_norm uses a 1-step power-iteration estimate;
    # here we normalise by the exact top singular value.
    sigma = np.linalg.norm(w, 2)
    return (w / sigma).astype(np.float32)


def init_params(encoder_dim, z_channels, s_channels, num_layers=NUM_DILATION_LAYERS):
    rng = np.random.default_rng(0)

    def conv_w_kstacked(cin, cout):
        # PyTorch Conv1d weight (cout, cin, 3) -> K-stacked (3*cin, cout):
        # rows [0:cin] = tap t-d, [cin:2cin] = center tap, [2cin:3cin] = tap t+d.
        w = rng.normal(0.0, 1.0 / np.sqrt(3 * cin), size=(cout, cin, 3)).astype(np.float32)
        return np.concatenate([w[:, :, 0].T, w[:, :, 1].T, w[:, :, 2].T], axis=0)

    conv_ws = np.stack([conv_w_kstacked(HIDDEN, HIDDEN)
                        for _ in range(num_layers)])            # (L, 768, 256)
    conv_bs = np.zeros((num_layers, 1, HIDDEN), np.float32)

    scale_ws, shift_ws = [], []
    for _ in range(num_layers):
        sw = spectral_normalize(rng.normal(1.0, 0.02, (HIDDEN, z_channels)).astype(np.float32))
        hw = spectral_normalize(rng.normal(1.0, 0.02, (HIDDEN, s_channels)).astype(np.float32))
        scale_ws.append(sw.T)                                   # (z_ch, 256)
        shift_ws.append(hw.T)                                   # (s_ch, 256)
    scale_w = np.concatenate(scale_ws, axis=1)                  # (z_ch, L*256) lane-stacked
    shift_w = np.concatenate(shift_ws, axis=1)                  # (s_ch, L*256)

    post_w1 = rng.normal(0.0, 1.0 / np.sqrt(HIDDEN), (HIDDEN, HIDDEN)).astype(np.float32)
    w2 = rng.normal(0.0, 1.0 / np.sqrt(HIDDEN), (HIDDEN, 1)).astype(np.float32)

    return {
        'pre_w': jnp.asarray(conv_w_kstacked(encoder_dim, HIDDEN), jnp.bfloat16),  # (3E,256)
        'pre_b': jnp.zeros((1, HIDDEN), jnp.float32),
        'conv_w': jnp.asarray(conv_ws, jnp.bfloat16),           # (L, 768, 256)
        'conv_b': jnp.asarray(conv_bs),
        'scale_w': jnp.asarray(scale_w),
        'scale_b': jnp.zeros((1, num_layers * HIDDEN), jnp.float32),
        'shift_w': jnp.asarray(shift_w),
        'shift_b': jnp.zeros((1, num_layers * HIDDEN), jnp.float32),
        'post_w1': jnp.asarray(post_w1, jnp.bfloat16),
        'post_b1': jnp.zeros((1, HIDDEN), jnp.float32),
        'post_w2': jnp.asarray(w2.T),                           # (1, 256) f32 head row
        'post_b2': jnp.zeros((1, 1), jnp.float32),
    }


# ----------------------------- main -----------------------------

if __name__ == "__main__":
    B, ENC_DIM, T = 2, 128, 16
    Z_CH, S_CH = 128, 128

    key = jax.random.PRNGKey(0)
    k1, k2, k3 = jax.random.split(key, 3)
    encoder_inputs = jax.random.normal(k1, (B, ENC_DIM, T), jnp.float32)  # NCW like PyTorch
    z = jax.random.normal(k2, (B, Z_CH), jnp.float32)
    speaker_inputs = jax.random.normal(k3, (B, S_CH), jnp.float32)

    params = init_params(ENC_DIM, Z_CH, S_CH)

    encoder_outputs, duration = aligner_forward(params, encoder_inputs, z, speaker_inputs)
    jax.block_until_ready(encoder_outputs)
    jax.block_until_ready(duration)

    assert encoder_outputs.shape == (B, T, HIDDEN)
    assert duration.shape == (B, T, 1)
    assert bool(jnp.all(jnp.isfinite(encoder_outputs)))
    assert bool(jnp.all(duration >= 0.0))
    print("KERNEL_OK")
</pallas_src>

<mosaic_0001>
module attributes {stable_mosaic.version = 11 : i64} {
  func.func @aligner_kernel(%arg0: memref<2x16x128xf32, #tpu.memory_space<vmem>>, %arg1: memref<2x128xf32, #tpu.memory_space<vmem>>, %arg2: memref<2x128xf32, #tpu.memory_space<vmem>>, %arg3: memref<384x256xbf16, #tpu.memory_space<vmem>>, %arg4: memref<1x256xf32, #tpu.memory_space<vmem>>, %arg5: memref<10x768x256xbf16, #tpu.memory_space<vmem>>, %arg6: memref<10x1x256xf32, #tpu.memory_space<vmem>>, %arg7: memref<128x2560xf32, #tpu.memory_space<vmem>>, %arg8: memref<1x2560xf32, #tpu.memory_space<vmem>>, %arg9: memref<128x2560xf32, #tpu.memory_space<vmem>>, %arg10: memref<1x2560xf32, #tpu.memory_space<vmem>>, %arg11: memref<256x256xbf16, #tpu.memory_space<vmem>>, %arg12: memref<1x256xf32, #tpu.memory_space<vmem>>, %arg13: memref<1x256xf32, #tpu.memory_space<vmem>>, %arg14: memref<1x1xf32, #tpu.memory_space<vmem>>, %arg15: memref<2x16x256xf32, #tpu.memory_space<vmem>>, %arg16: memref<2x16x1xf32, #tpu.memory_space<vmem>>, %arg17: memref<2x48x128xbf16, #tpu.memory_space<vmem>>, %arg18: memref<2x48x256xbf16, #tpu.memory_space<vmem>>) attributes {dimension_semantics = [], scalar_prefetch = 0 : i64, scratch_operands = 2 : i64, tpu.core_type = #tpu.core_type<tc>} {
    %cst = arith.constant 0.000000e+00 : bf16
    %0 = vector.broadcast %cst : bf16 to vector<2x16x128xbf16>
    %c0 = arith.constant 0 : index
    %c0_0 = arith.constant 0 : index
    %c0_1 = arith.constant 0 : index
    %1 = vector.load %arg17[%c0, %c0_0, %c0_1] : memref<2x48x128xbf16, #tpu.memory_space<vmem>>, vector<2x16x128xbf16>
    tpu.vector_store %arg17[%c0, %c0_0, %c0_1], %0 {strides = array<i32>} : memref<2x48x128xbf16, #tpu.memory_space<vmem>>, vector<2x16x128xbf16>,
    %cst_2 = arith.constant 0.000000e+00 : bf16
    %2 = vector.broadcast %cst_2 : bf16 to vector<2x16x128xbf16>
    %c0_3 = arith.constant 0 : index
    %c32 = arith.constant 32 : index
    %c0_4 = arith.constant 0 : index
    %3 = vector.load %arg17[%c0_3, %c32, %c0_4] : memref<2x48x128xbf16, #tpu.memory_space<vmem>>, vector<2x16x128xbf16>
    tpu.vector_store %arg17[%c0_3, %c32, %c0_4], %2 {strides = array<i32>} : memref<2x48x128xbf16, #tpu.memory_space<vmem>>, vector<2x16x128xbf16>,
    %c0_5 = arith.constant 0 : index
    %c0_6 = arith.constant 0 : index
    %c0_7 = arith.constant 0 : index
    %4 = vector.load %arg0[%c0_5, %c0_6, %c0_7] : memref<2x16x128xf32, #tpu.memory_space<vmem>>, vector<2x16x128xf32>
    %5 = arith.truncf %4 : vector<2x16x128xf32> to vector<2x16x128xbf16>
    %c0_8 = arith.constant 0 : index
    %c16 = arith.constant 16 : index
    %c0_9 = arith.constant 0 : index
    %6 = vector.load %arg17[%c0_8, %c16, %c0_9] : memref<2x48x128xbf16, #tpu.memory_space<vmem>>, vector<2x16x128xbf16>
    tpu.vector_store %arg17[%c0_8, %c16, %c0_9], %5 {strides = array<i32>} : memref<2x48x128xbf16, #tpu.memory_space<vmem>>, vector<2x16x128xbf16>,
    %c0_10 = arith.constant 0 : index
    %c15 = arith.constant 15 : index
    %c0_11 = arith.constant 0 : index
    %7 = vector.load %arg17[%c0_10, %c15, %c0_11] : memref<2x48x128xbf16, #tpu.memory_space<vmem>>, vector<2x16x128xbf16>
    %c0_12 = arith.constant 0 : index
    %c16_13 = arith.constant 16 : index
    %c0_14 = arith.constant 0 : index
    %8 = vector.load %arg17[%c0_12, %c16_13, %c0_14] : memref<2x48x128xbf16, #tpu.memory_space<vmem>>, vector<2x16x128xbf16>
    %c0_15 = arith.constant 0 : index
    %c17 = arith.constant 17 : index
    %c0_16 = arith.constant 0 : index
    %9 = vector.load %arg17[%c0_15, %c17, %c0_16] : memref<2x48x128xbf16, #tpu.memory_space<vmem>>, vector<2x16x128xbf16>
    %10 = tpu.concatenate %7, %8, %9 in 2 : vector<2x16x128xbf16>, vector<2x16x128xbf16>, vector<2x16x128xbf16> -> vector<2x16x384xbf16>
    %11 = vector.shape_cast %10 : vector<2x16x384xbf16> to vector<32x384xbf16>
    %c0_17 = arith.constant 0 : index
    %c0_18 = arith.constant 0 : index
    %12 = vector.load %arg3[%c0_17, %c0_18] : memref<384x256xbf16, #tpu.memory_space<vmem>>, vector<384x256xbf16>
    %cst_19 = arith.constant dense<0.000000e+00> : vector<32x256xf32>
    %13 = tpu.matmul %11, %12, %cst_19 {dimension_numbers = #tpu.dot_dimension_numbers<[1], [0], [0], [1], [0, 0, 1, 1], [], []>} : vector<32x384xbf16>, vector<384x256xbf16>, vector<32x256xf32> -> vector<32x256xf32>
    %c0_20 = arith.constant 0 : index
    %c0_21 = arith.constant 0 : index
    %14 = vector.load %arg4[%c0_20, %c0_21] : memref<1x256xf32, #tpu.memory_space<vmem>>, vector<1x256xf32>
    %15 = vector.broadcast %14 : vector<1x256xf32> to vector<32x256xf32>
    %16 = arith.addf %13, %15 : vector<32x256xf32>
    %cst_22 = arith.constant 0.000000e+00 : bf16
    %17 = vector.broadcast %cst_22 : bf16 to vector<2x16x256xbf16>
    %c0_23 = arith.constant 0 : index
    %c0_24 = arith.constant 0 : index
    %c0_25 = arith.constant 0 : index
    %18 = vector.load %arg18[%c0_23, %c0_24, %c0_25] : memref<2x48x256xbf16, #tpu.memory_space<vmem>>, vector<2x16x256xbf16>
    tpu.vector_store %arg18[%c0_23, %c0_24, %c0_25], %17 {strides = array<i32>} : memref<2x48x256xbf16, #tpu.memory_space<vmem>>, vector<2x16x256xbf16>,
    %cst_26 = arith.constant 0.000000e+00 : bf16
    %19 = vector.broadcast %cst_26 : bf16 to vector<2x16x256xbf16>
    %c0_27 = arith.constant 0 : index
    %c32_28 = arith.constant 32 : index
    %c0_29 = arith.constant 0 : index
    %20 = vector.load %arg18[%c0_27, %c32_28, %c0_29] : memref<2x48x256xbf16, #tpu.memory_space<vmem>>, vector<2x16x256xbf16>
    tpu.vector_store %arg18[%c0_27, %c32_28, %c0_29], %19 {strides = array<i32>} : memref<2x48x256xbf16, #tpu.memory_space<vmem>>, vector<2x16x256xbf16>,
    %21 = vector.shape_cast %16 : vector<32x256xf32> to vector<2x16x256xf32>
    %22 = arith.truncf %21 : vector<2x16x256xf32> to vector<2x16x256xbf16>
    %c0_30 = arith.constant 0 : index
    %c16_31 = arith.constant 16 : index
    %c0_32 = arith.constant 0 : index
    %23 = vector.load %arg18[%c0_30, %c16_31, %c0_32] : memref<2x48x256xbf16, #tpu.memory_space<vmem>>, vector<2x16x256xbf16>
    tpu.vector_store %arg18[%c0_30, %c16_31, %c0_32], %22 {strides = array<i32>} : memref<2x48x256xbf16, #tpu.memory_space<vmem>>, vector<2x16x256xbf16>,
    %c0_33 = arith.constant 0 : index
    %c0_34 = arith.constant 0 : index
    %24 = vector.load %arg1[%c0_33, %c0_34] : memref<2x128xf32, #tpu.memory_space<vmem>>, vector<2x128xf32>
    %c0_35 = arith.constant 0 : index
    %c0_36 = arith.constant 0 : index
    %25 = vector.load %arg7[%c0_35, %c0_36] : memref<128x2560xf32, #tpu.memory_space<vmem>>, vector<128x2560xf32>
    %cst_37 = arith.constant dense<0.000000e+00> : vector<2x2560xf32>
    %26 = tpu.matmul %24, %25, %cst_37 {dimension_numbers = #tpu.dot_dimension_numbers<[1], [0], [0], [1], [0, 0, 1, 1], [], []>} : vector<2x128xf32>, vector<128x2560xf32>, vector<2x2560xf32> -> vector<2x2560xf32>
    %c0_38 = arith.constant 0 : index
    %c0_39 = arith.constant 0 : index
    %27 = vector.load %arg8[%c0_38, %c0_39] : memref<1x2560xf32, #tpu.memory_space<vmem>>, vector<1x2560xf32>
    %28 = vector.broadcast %27 : vector<1x2560xf32> to vector<2x2560xf32>
    %29 = arith.addf %26, %28 : vector<2x2560xf32>
    %c0_40 = arith.constant 0 : index
    %c0_41 = arith.constant 0 : index
    %30 = vector.load %arg2[%c0_40, %c0_41] : memref<2x128xf32, #tpu.memory_space<vmem>>, vector<2x128xf32>
    %c0_42 = arith.constant 0 : index
    %c0_43 = arith.constant 0 : index
    %31 = vector.load %arg9[%c0_42, %c0_43] : memref<128x2560xf32, #tpu.memory_space<vmem>>, vector<128x2560xf32>
    %cst_44 = arith.constant dense<0.000000e+00> : vector<2x2560xf32>
    %32 = tpu.matmul %30, %31, %cst_44 {dimension_numbers = #tpu.dot_dimension_numbers<[1], [0], [0], [1], [0, 0, 1, 1], [], []>} : vector<2x128xf32>, vector<128x2560xf32>, vector<2x2560xf32> -> vector<2x2560xf32>
    %c0_45 = arith.constant 0 : index
    %c0_46 = arith.constant 0 : index
    %33 = vector.load %arg10[%c0_45, %c0_46] : memref<1x2560xf32, #tpu.memory_space<vmem>>, vector<1x2560xf32>
    %34 = vector.broadcast %33 : vector<1x2560xf32> to vector<2x2560xf32>
    %35 = arith.addf %32, %34 : vector<2x2560xf32>
    %c0_47 = arith.constant 0 : index
    %c16_48 = arith.constant 16 : index
    %c0_49 = arith.constant 0 : index
    %36 = vector.load %arg18[%c0_47, %c16_48, %c0_49] : memref<2x48x256xbf16, #tpu.memory_space<vmem>>, vector<2x16x256xbf16>
    %c0_50 = arith.constant 0 : index
    %c15_51 = arith.constant 15 : index
    %c0_52 = arith.constant 0 : index
    %37 = vector.load %arg18[%c0_50, %c15_51, %c0_52] : memref<2x48x256xbf16, #tpu.memory_space<vmem>>, vector<2x16x256xbf16>
    %c0_53 = arith.constant 0 : index
    %c17_54 = arith.constant 17 : index
    %c0_55 = arith.constant 0 : index
    %38 = vector.load %arg18[%c0_53, %c17_54, %c0_55] : memref<2x48x256xbf16, #tpu.memory_space<vmem>>, vector<2x16x256xbf16>
    %39 = tpu.concatenate %37, %36, %38 in 2 : vector<2x16x256xbf16>, vector<2x16x256xbf16>, vector<2x16x256xbf16> -> vector<2x16x768xbf16>
    %40 = vector.shape_cast %39 : vector<2x16x768xbf16> to vector<32x768xbf16>
    %c0_56 = arith.constant 0 : index
    %c0_57 = arith.constant 0 : index
    %c0_58 = arith.constant 0 : index
    %41 = vector.load %arg5[%c0_56, %c0_57, %c0_58] : memref<10x768x256xbf16, #tpu.memory_space<vmem>>, vector<1x768x256xbf16>
    %42 = vector.shape_cast %41 : vector<1x768x256xbf16> to vector<768x256xbf16>
    %cst_59 = arith.constant dense<0.000000e+00> : vector<32x256xf32>
    %43 = tpu.matmul %40, %42, %cst_59 {dimension_numbers = #tpu.dot_dimension_numbers<[1], [0], [0], [1], [0, 0, 1, 1], [], []>} : vector<32x768xbf16>, vector<768x256xbf16>, vector<32x256xf32> -> vector<32x256xf32>
    %c0_60 = arith.constant 0 : index
    %c0_61 = arith.constant 0 : index
    %c0_62 = arith.constant 0 : index
    %44 = vector.load %arg6[%c0_60, %c0_61, %c0_62] : memref<10x1x256xf32, #tpu.memory_space<vmem>>, vector<1x1x256xf32>
    %45 = vector.shape_cast %44 : vector<1x1x256xf32> to vector<1x256xf32>
    %46 = vector.broadcast %45 : vector<1x256xf32> to vector<32x256xf32>
    %47 = arith.addf %43, %46 : vector<32x256xf32>
    %cst_63 = arith.constant dense<0.000000e+00> : vector<256xf32>
    %48 = vector.multi_reduction <add>, %47, %cst_63 [0] : vector<32x256xf32> to vector<256xf32>
    %49 = vector.shape_cast %48 : vector<256xf32> to vector<1x256xf32>
    %cst_64 = arith.constant 3.200000e+01 : f32
    %50 = vector.broadcast %cst_64 : f32 to vector<1x256xf32>
    %51 = arith.divf %49, %50 : vector<1x256xf32>
    %52 = vector.broadcast %51 : vector<1x256xf32> to vector<32x256xf32>
    %53 = arith.subf %47, %52 : vector<32x256xf32>
    %54 = arith.mulf %53, %53 : vector<32x256xf32>
    %cst_65 = arith.constant dense<0.000000e+00> : vector<256xf32>
    %55 = vector.multi_reduction <add>, %54, %cst_65 [0] : vector<32x256xf32> to vector<256xf32>
    %56 = vector.shape_cast %55 : vector<256xf32> to vector<1x256xf32>
    %cst_66 = arith.constant 3.200000e+01 : f32
    %57 = vector.broadcast %cst_66 : f32 to vector<1x256xf32>
    %58 = arith.divf %56, %57 : vector<1x256xf32>
    %cst_67 = arith.constant 9.99999974E-6 : f32
    %59 = vector.broadcast %cst_67 : f32 to vector<1x256xf32>
    %60 = arith.addf %58, %59 : vector<1x256xf32>
    %61 = math.rsqrt %60 : vector<1x256xf32>
    %62 = vector.broadcast %61 : vector<1x256xf32> to vector<32x256xf32>
    %63 = arith.mulf %53, %62 : vector<32x256xf32>
    %64 = vector.extract_strided_slice %29 {offsets = [0, 0], sizes = [2, 256], strides = [1, 1]} : vector<2x2560xf32> to vector<2x256xf32>
    %65 = vector.shape_cast %64 : vector<2x256xf32> to vector<2x1x256xf32>
    %66 = vector.extract_strided_slice %35 {offsets = [0, 0], sizes = [2, 256], strides = [1, 1]} : vector<2x2560xf32> to vector<2x256xf32>
    %67 = vector.shape_cast %66 : vector<2x256xf32> to vector<2x1x256xf32>
    %68 = vector.shape_cast %63 : vector<32x256xf32> to vector<2x16x256xf32>
    %69 = vector.broadcast %65 : vector<2x1x256xf32> to vector<2x16x256xf32>
    %70 = arith.mulf %69, %68 : vector<2x16x256xf32>
    %71 = vector.broadcast %67 : vector<2x1x256xf32> to vector<2x16x256xf32>
    %72 = arith.addf %70, %71 : vector<2x16x256xf32>
    %cst_68 = arith.constant 0.000000e+00 : f32
    %73 = vector.broadcast %cst_68 : f32 to vector<2x16x256xf32>
    %74 = arith.maximumf %72, %73 : vector<2x16x256xf32>
    %75 = arith.truncf %74 : vector<2x16x256xf32> to vector<2x16x256xbf16>
    %c0_69 = arith.constant 0 : index
    %c16_70 = arith.constant 16 : index
    %c0_71 = arith.constant 0 : index
    %76 = vector.load %arg18[%c0_69, %c16_70, %c0_71] : memref<2x48x256xbf16, #tpu.memory_space<vmem>>, vector<2x16x256xbf16>
    tpu.vector_store %arg18[%c0_69, %c16_70, %c0_71], %75 {strides = array<i32>} : memref<2x48x256xbf16, #tpu.memory_space<vmem>>, vector<2x16x256xbf16>,
    %c0_72 = arith.constant 0 : index
    %c16_73 = arith.constant 16 : index
    %c0_74 = arith.constant 0 : index
    %77 = vector.load %arg18[%c0_72, %c16_73, %c0_74] : memref<2x48x256xbf16, #tpu.memory_space<vmem>>, vector<2x16x256xbf16>
    %c0_75 = arith.constant 0 : index
    %c14 = arith.constant 14 : index
    %c0_76 = arith.constant 0 : index
    %78 = vector.load %arg18[%c0_75, %c14, %c0_76] : memref<2x48x256xbf16, #tpu.memory_space<vmem>>, vector<2x16x256xbf16>
    %c0_77 = arith.constant 0 : index
    %c18 = arith.constant 18 : index
    %c0_78 = arith.constant 0 : index
    %79 = vector.load %arg18[%c0_77, %c18, %c0_78] : memref<2x48x256xbf16, #tpu.memory_space<vmem>>, vector<2x16x256xbf16>
    %80 = tpu.concatenate %78, %77, %79 in 2 : vector<2x16x256xbf16>, vector<2x16x256xbf16>, vector<2x16x256xbf16> -> vector<2x16x768xbf16>
    %81 = vector.shape_cast %80 : vector<2x16x768xbf16> to vector<32x768xbf16>
    %c1 = arith.constant 1 : index
    %c0_79 = arith.constant 0 : index
    %c0_80 = arith.constant 0 : index
    %82 = vector.load %arg5[%c1, %c0_79, %c0_80] : memref<10x768x256xbf16, #tpu.memory_space<vmem>>, vector<1x768x256xbf16>
    %83 = vector.shape_cast %82 : vector<1x768x256xbf16> to vector<768x256xbf16>
    %cst_81 = arith.constant dense<0.000000e+00> : vector<32x256xf32>
    %84 = tpu.matmul %81, %83, %cst_81 {dimension_numbers = #tpu.dot_dimension_numbers<[1], [0], [0], [1], [0, 0, 1, 1], [], []>} : vector<32x768xbf16>, vector<768x256xbf16>, vector<32x256xf32> -> vector<32x256xf32>
    %c1_82 = arith.constant 1 : index
    %c0_83 = arith.constant 0 : index
    %c0_84 = arith.constant 0 : index
    %85 = vector.load %arg6[%c1_82, %c0_83, %c0_84] : memref<10x1x256xf32, #tpu.memory_space<vmem>>, vector<1x1x256xf32>
    %86 = vector.shape_cast %85 : vector<1x1x256xf32> to vector<1x256xf32>
    %87 = vector.broadcast %86 : vector<1x256xf32> to vector<32x256xf32>
    %88 = arith.addf %84, %87 : vector<32x256xf32>
    %cst_85 = arith.constant dense<0.000000e+00> : vector<256xf32>
    %89 = vector.multi_reduction <add>, %88, %cst_85 [0] : vector<32x256xf32> to vector<256xf32>
    %90 = vector.shape_cast %89 : vector<256xf32> to vector<1x256xf32>
    %cst_86 = arith.constant 3.200000e+01 : f32
    %91 = vector.broadcast %cst_86 : f32 to vector<1x256xf32>
    %92 = arith.divf %90, %91 : vector<1x256xf32>
    %93 = vector.broadcast %92 : vector<1x256xf32> to vector<32x256xf32>
    %94 = arith.subf %88, %93 : vector<32x256xf32>
    %95 = arith.mulf %94, %94 : vector<32x256xf32>
    %cst_87 = arith.constant dense<0.000000e+00> : vector<256xf32>
    %96 = vector.multi_reduction <add>, %95, %cst_87 [0] : vector<32x256xf32> to vector<256xf32>
    %97 = vector.shape_cast %96 : vector<256xf32> to vector<1x256xf32>
    %cst_88 = arith.constant 3.200000e+01 : f32
    %98 = vector.broadcast %cst_88 : f32 to vector<1x256xf32>
    %99 = arith.divf %97, %98 : vector<1x256xf32>
    %cst_89 = arith.constant 9.99999974E-6 : f32
    %100 = vector.broadcast %cst_89 : f32 to vector<1x256xf32>
    %101 = arith.addf %99, %100 : vector<1x256xf32>
    %102 = math.rsqrt %101 : vector<1x256xf32>
    %103 = vector.broadcast %102 : vector<1x256xf32> to vector<32x256xf32>
    %104 = arith.mulf %94, %103 : vector<32x256xf32>
    %105 = vector.extract_strided_slice %29 {offsets = [0, 256], sizes = [2, 256], strides = [1, 1]} : vector<2x2560xf32> to vector<2x256xf32>
    %106 = vector.shape_cast %105 : vector<2x256xf32> to vector<2x1x256xf32>
    %107 = vector.extract_strided_slice %35 {offsets = [0, 256], sizes = [2, 256], strides = [1, 1]} : vector<2x2560xf32> to vector<2x256xf32>
    %108 = vector.shape_cast %107 : vector<2x256xf32> to vector<2x1x256xf32>
    %109 = vector.shape_cast %104 : vector<32x256xf32> to vector<2x16x256xf32>
    %110 = vector.broadcast %106 : vector<2x1x256xf32> to vector<2x16x256xf32>
    %111 = arith.mulf %110, %109 : vector<2x16x256xf32>
    %112 = vector.broadcast %108 : vector<2x1x256xf32> to vector<2x16x256xf32>
    %113 = arith.addf %111, %112 : vector<2x16x256xf32>
    %cst_90 = arith.constant 0.000000e+00 : f32
    %114 = vector.broadcast %cst_90 : f32 to vector<2x16x256xf32>
    %115 = arith.maximumf %113, %114 : vector<2x16x256xf32>
    %116 = arith.truncf %115 : vector<2x16x256xf32> to vector<2x16x256xbf16>
    %c0_91 = arith.constant 0 : index
    %c16_92 = arith.constant 16 : index
    %c0_93 = arith.constant 0 : index
    %117 = vector.load %arg18[%c0_91, %c16_92, %c0_93] : memref<2x48x256xbf16, #tpu.memory_space<vmem>>, vector<2x16x256xbf16>
    tpu.vector_store %arg18[%c0_91, %c16_92, %c0_93], %116 {strides = array<i32>} : memref<2x48x256xbf16, #tpu.memory_space<vmem>>, vector<2x16x256xbf16>,
    %c0_94 = arith.constant 0 : index
    %c16_95 = arith.constant 16 : index
    %c0_96 = arith.constant 0 : index
    %118 = vector.load %arg18[%c0_94, %c16_95, %c0_96] : memref<2x48x256xbf16, #tpu.memory_space<vmem>>, vector<2x16x256xbf16>
    %c0_97 = arith.constant 0 : index
    %c12 = arith.constant 12 : index
    %c0_98 = arith.constant 0 : index
    %119 = vector.load %arg18[%c0_97, %c12, %c0_98] : memref<2x48x256xbf16, #tpu.memory_space<vmem>>, vector<2x16x256xbf16>
    %c0_99 = arith.constant 0 : index
    %c20 = arith.constant 20 : index
    %c0_100 = arith.constant 0 : index
    %120 = vector.load %arg18[%c0_99, %c20, %c0_100] : memref<2x48x256xbf16, #tpu.memory_space<vmem>>, vector<2x16x256xbf16>
    %121 = tpu.concatenate %119, %118, %120 in 2 : vector<2x16x256xbf16>, vector<2x16x256xbf16>, vector<2x16x256xbf16> -> vector<2x16x768xbf16>
    %122 = vector.shape_cast %121 : vector<2x16x768xbf16> to vector<32x768xbf16>
    %c2 = arith.constant 2 : index
    %c0_101 = arith.constant 0 : index
    %c0_102 = arith.constant 0 : index
    %123 = vector.load %arg5[%c2, %c0_101, %c0_102] : memref<10x768x256xbf16, #tpu.memory_space<vmem>>, vector<1x768x256xbf16>
    %124 = vector.shape_cast %123 : vector<1x768x256xbf16> to vector<768x256xbf16>
    %cst_103 = arith.constant dense<0.000000e+00> : vector<32x256xf32>
    %125 = tpu.matmul %122, %124, %cst_103 {dimension_numbers = #tpu.dot_dimension_numbers<[1], [0], [0], [1], [0, 0, 1, 1], [], []>} : vector<32x768xbf16>, vector<768x256xbf16>, vector<32x256xf32> -> vector<32x256xf32>
    %c2_104 = arith.constant 2 : index
    %c0_105 = arith.constant 0 : index
    %c0_106 = arith.constant 0 : index
    %126 = vector.load %arg6[%c2_104, %c0_105, %c0_106] : memref<10x1x256xf32, #tpu.memory_space<vmem>>, vector<1x1x256xf32>
    %127 = vector.shape_cast %126 : vector<1x1x256xf32> to vector<1x256xf32>
    %128 = vector.broadcast %127 : vector<1x256xf32> to vector<32x256xf32>
    %129 = arith.addf %125, %128 : vector<32x256xf32>
    %cst_107 = arith.constant dense<0.000000e+00> : vector<256xf32>
    %130 = vector.multi_reduction <add>, %129, %cst_107 [0] : vector<32x256xf32> to vector<256xf32>
    %131 = vector.shape_cast %130 : vector<256xf32> to vector<1x256xf32>
    %cst_108 = arith.constant 3.200000e+01 : f32
    %132 = vector.broadcast %cst_108 : f32 to vector<1x256xf32>
    %133 = arith.divf %131, %132 : vector<1x256xf32>
    %134 = vector.broadcast %133 : vector<1x256xf32> to vector<32x256xf32>
    %135 = arith.subf %129, %134 : vector<32x256xf32>
    %136 = arith.mulf %135, %135 : vector<32x256xf32>
    %cst_109 = arith.constant dense<0.000000e+00> : vector<256xf32>
    %137 = vector.multi_reduction <add>, %136, %cst_109 [0] : vector<32x256xf32> to vector<256xf32>
    %138 = vector.shape_cast %137 : vector<256xf32> to vector<1x256xf32>
    %cst_110 = arith.constant 3.200000e+01 : f32
    %139 = vector.broadcast %cst_110 : f32 to vector<1x256xf32>
    %140 = arith.divf %138, %139 : vector<1x256xf32>
    %cst_111 = arith.constant 9.99999974E-6 : f32
    %141 = vector.broadcast %cst_111 : f32 to vector<1x256xf32>
    %142 = arith.addf %140, %141 : vector<1x256xf32>
    %143 = math.rsqrt %142 : vector<1x256xf32>
    %144 = vector.broadcast %143 : vector<1x256xf32> to vector<32x256xf32>
    %145 = arith.mulf %135, %144 : vector<32x256xf32>
    %146 = vector.extract_strided_slice %29 {offsets = [0, 512], sizes = [2, 256], strides = [1, 1]} : vector<2x2560xf32> to vector<2x256xf32>
    %147 = vector.shape_cast %146 : vector<2x256xf32> to vector<2x1x256xf32>
    %148 = vector.extract_strided_slice %35 {offsets = [0, 512], sizes = [2, 256], strides = [1, 1]} : vector<2x2560xf32> to vector<2x256xf32>
    %149 = vector.shape_cast %148 : vector<2x256xf32> to vector<2x1x256xf32>
    %150 = vector.shape_cast %145 : vector<32x256xf32> to vector<2x16x256xf32>
    %151 = vector.broadcast %147 : vector<2x1x256xf32> to vector<2x16x256xf32>
    %152 = arith.mulf %151, %150 : vector<2x16x256xf32>
    %153 = vector.broadcast %149 : vector<2x1x256xf32> to vector<2x16x256xf32>
    %154 = arith.addf %152, %153 : vector<2x16x256xf32>
    %cst_112 = arith.constant 0.000000e+00 : f32
    %155 = vector.broadcast %cst_112 : f32 to vector<2x16x256xf32>
    %156 = arith.maximumf %154, %155 : vector<2x16x256xf32>
    %157 = arith.truncf %156 : vector<2x16x256xf32> to vector<2x16x256xbf16>
    %c0_113 = arith.constant 0 : index
    %c16_114 = arith.constant 16 : index
    %c0_115 = arith.constant 0 : index
    %158 = vector.load %arg18[%c0_113, %c16_114, %c0_115] : memref<2x48x256xbf16, #tpu.memory_space<vmem>>, vector<2x16x256xbf16>
    tpu.vector_store %arg18[%c0_113, %c16_114, %c0_115], %157 {strides = array<i32>} : memref<2x48x256xbf16, #tpu.memory_space<vmem>>, vector<2x16x256xbf16>,
    %c0_116 = arith.constant 0 : index
    %c16_117 = arith.constant 16 : index
    %c0_118 = arith.constant 0 : index
    %159 = vector.load %arg18[%c0_116, %c16_117, %c0_118] : memref<2x48x256xbf16, #tpu.memory_space<vmem>>, vector<2x16x256xbf16>
    %c0_119 = arith.constant 0 : index
    %c8 = arith.constant 8 : index
    %c0_120 = arith.constant 0 : index
    %160 = vector.load %arg18[%c0_119, %c8, %c0_120] : memref<2x48x256xbf16, #tpu.memory_space<vmem>>, vector<2x16x256xbf16>
    %c0_121 = arith.constant 0 : index
    %c24 = arith.constant 24 : index
    %c0_122 = arith.constant 0 : index
    %161 = vector.load %arg18[%c0_121, %c24, %c0_122] : memref<2x48x256xbf16, #tpu.memory_space<vmem>>, vector<2x16x256xbf16>
    %162 = tpu.concatenate %160, %159, %161 in 2 : vector<2x16x256xbf16>, vector<2x16x256xbf16>, vector<2x16x256xbf16> -> vector<2x16x768xbf16>
    %163 = vector.shape_cast %162 : vector<2x16x768xbf16> to vector<32x768xbf16>
    %c3 = arith.constant 3 : index
    %c0_123 = arith.constant 0 : index
    %c0_124 = arith.constant 0 : index
    %164 = vector.load %arg5[%c3, %c0_123, %c0_124] : memref<10x768x256xbf16, #tpu.memory_space<vmem>>, vector<1x768x256xbf16>
    %165 = vector.shape_cast %164 : vector<1x768x256xbf16> to vector<768x256xbf16>
    %cst_125 = arith.constant dense<0.000000e+00> : vector<32x256xf32>
    %166 = tpu.matmul %163, %165, %cst_125 {dimension_numbers = #tpu.dot_dimension_numbers<[1], [0], [0], [1], [0, 0, 1, 1], [], []>} : vector<32x768xbf16>, vector<768x256xbf16>, vector<32x256xf32> -> vector<32x256xf32>
    %c3_126 = arith.constant 3 : index
    %c0_127 = arith.constant 0 : index
    %c0_128 = arith.constant 0 : index
    %167 = vector.load %arg6[%c3_126, %c0_127, %c0_128] : memref<10x1x256xf32, #tpu.memory_space<vmem>>, vector<1x1x256xf32>
    %168 = vector.shape_cast %167 : vector<1x1x256xf32> to vector<1x256xf32>
    %169 = vector.broadcast %168 : vector<1x256xf32> to vector<32x256xf32>
    %170 = arith.addf %166, %169 : vector<32x256xf32>
    %cst_129 = arith.constant dense<0.000000e+00> : vector<256xf32>
    %171 = vector.multi_reduction <add>, %170, %cst_129 [0] : vector<32x256xf32> to vector<256xf32>
    %172 = vector.shape_cast %171 : vector<256xf32> to vector<1x256xf32>
    %cst_130 = arith.constant 3.200000e+01 : f32
    %173 = vector.broadcast %cst_130 : f32 to vector<1x256xf32>
    %174 = arith.divf %172, %173 : vector<1x256xf32>
    %175 = vector.broadcast %174 : vector<1x256xf32> to vector<32x256xf32>
    %176 = arith.subf %170, %175 : vector<32x256xf32>
    %177 = arith.mulf %176, %176 : vector<32x256xf32>
    %cst_131 = arith.constant dense<0.000000e+00> : vector<256xf32>
    %178 = vector.multi_reduction <add>, %177, %cst_131 [0] : vector<32x256xf32> to vector<256xf32>
    %179 = vector.shape_cast %178 : vector<256xf32> to vector<1x256xf32>
    %cst_132 = arith.constant 3.200000e+01 : f32
    %180 = vector.broadcast %cst_132 : f32 to vector<1x256xf32>
    %181 = arith.divf %179, %180 : vector<1x256xf32>
    %cst_133 = arith.constant 9.99999974E-6 : f32
    %182 = vector.broadcast %cst_133 : f32 to vector<1x256xf32>
    %183 = arith.addf %181, %182 : vector<1x256xf32>
    %184 = math.rsqrt %183 : vector<1x256xf32>
    %185 = vector.broadcast %184 : vector<1x256xf32> to vector<32x256xf32>
    %186 = arith.mulf %176, %185 : vector<32x256xf32>
    %187 = vector.extract_strided_slice %29 {offsets = [0, 768], sizes = [2, 256], strides = [1, 1]} : vector<2x2560xf32> to vector<2x256xf32>
    %188 = vector.shape_cast %187 : vector<2x256xf32> to vector<2x1x256xf32>
    %189 = vector.extract_strided_slice %35 {offsets = [0, 768], sizes = [2, 256], strides = [1, 1]} : vector<2x2560xf32> to vector<2x256xf32>
    %190 = vector.shape_cast %189 : vector<2x256xf32> to vector<2x1x256xf32>
    %191 = vector.shape_cast %186 : vector<32x256xf32> to vector<2x16x256xf32>
    %192 = vector.broadcast %188 : vector<2x1x256xf32> to vector<2x16x256xf32>
    %193 = arith.mulf %192, %191 : vector<2x16x256xf32>
    %194 = vector.broadcast %190 : vector<2x1x256xf32> to vector<2x16x256xf32>
    %195 = arith.addf %193, %194 : vector<2x16x256xf32>
    %cst_134 = arith.constant 0.000000e+00 : f32
    %196 = vector.broadcast %cst_134 : f32 to vector<2x16x256xf32>
    %197 = arith.maximumf %195, %196 : vector<2x16x256xf32>
    %198 = arith.truncf %197 : vector<2x16x256xf32> to vector<2x16x256xbf16>
    %c0_135 = arith.constant 0 : index
    %c16_136 = arith.constant 16 : index
    %c0_137 = arith.constant 0 : index
    %199 = vector.load %arg18[%c0_135, %c16_136, %c0_137] : memref<2x48x256xbf16, #tpu.memory_space<vmem>>, vector<2x16x256xbf16>
    tpu.vector_store %arg18[%c0_135, %c16_136, %c0_137], %198 {strides = array<i32>} : memref<2x48x256xbf16, #tpu.memory_space<vmem>>, vector<2x16x256xbf16>,
    %c0_138 = arith.constant 0 : index
    %c16_139 = arith.constant 16 : index
    %c0_140 = arith.constant 0 : index
    %200 = vector.load %arg18[%c0_138, %c16_139, %c0_140] : memref<2x48x256xbf16, #tpu.memory_space<vmem>>, vector<2x16x256xbf16>
    %201 = vector.shape_cast %200 : vector<2x16x256xbf16> to vector<32x256xbf16>
    %c4 = arith.constant 4 : index
    %c256 = arith.constant 256 : index
    %c0_141 = arith.constant 0 : index
    %202 = vector.load %arg5[%c4, %c256, %c0_141] : memref<10x768x256xbf16, #tpu.memory_space<vmem>>, vector<1x256x256xbf16>
    %203 = vector.shape_cast %202 : vector<1x256x256xbf16> to vector<256x256xbf16>
    %cst_142 = arith.constant dense<0.000000e+00> : vector<32x256xf32>
    %204 = tpu.matmul %201, %203, %cst_142 {dimension_numbers = #tpu.dot_dimension_numbers<[1], [0], [0], [1], [0, 0, 1, 1], [], []>} : vector<32x256xbf16>, vector<256x256xbf16>, vector<32x256xf32> -> vector<32x256xf32>
    %c4_143 = arith.constant 4 : index
    %c0_144 = arith.constant 0 : index
    %c0_145 = arith.constant 0 : index
    %205 = vector.load %arg6[%c4_143, %c0_144, %c0_145] : memref<10x1x256xf32, #tpu.memory_space<vmem>>, vector<1x1x256xf32>
    %206 = vector.shape_cast %205 : vector<1x1x256xf32> to vector<1x256xf32>
    %207 = vector.broadcast %206 : vector<1x256xf32> to vector<32x256xf32>
    %208 = arith.addf %204, %207 : vector<32x256xf32>
    %cst_146 = arith.constant dense<0.000000e+00> : vector<256xf32>
    %209 = vector.multi_reduction <add>, %208, %cst_146 [0] : vector<32x256xf32> to vector<256xf32>
    %210 = vector.shape_cast %209 : vector<256xf32> to vector<1x256xf32>
    %cst_147 = arith.constant 3.200000e+01 : f32
    %211 = vector.broadcast %cst_147 : f32 to vector<1x256xf32>
    %212 = arith.divf %210, %211 : vector<1x256xf32>
    %213 = vector.broadcast %212 : vector<1x256xf32> to vector<32x256xf32>
    %214 = arith.subf %208, %213 : vector<32x256xf32>
    %215 = arith.mulf %214, %214 : vector<32x256xf32>
    %cst_148 = arith.constant dense<0.000000e+00> : vector<256xf32>
    %216 = vector.multi_reduction <add>, %215, %cst_148 [0] : vector<32x256xf32> to vector<256xf32>
    %217 = vector.shape_cast %216 : vector<256xf32> to vector<1x256xf32>
    %cst_149 = arith.constant 3.200000e+01 : f32
    %218 = vector.broadcast %cst_149 : f32 to vector<1x256xf32>
    %219 = arith.divf %217, %218 : vector<1x256xf32>
    %cst_150 = arith.constant 9.99999974E-6 : f32
    %220 = vector.broadcast %cst_150 : f32 to vector<1x256xf32>
    %221 = arith.addf %219, %220 : vector<1x256xf32>
    %222 = math.rsqrt %221 : vector<1x256xf32>
    %223 = vector.broadcast %222 : vector<1x256xf32> to vector<32x256xf32>
    %224 = arith.mulf %214, %223 : vector<32x256xf32>
    %225 = vector.extract_strided_slice %29 {offsets = [0, 1024], sizes = [2, 256], strides = [1, 1]} : vector<2x2560xf32> to vector<2x256xf32>
    %226 = vector.shape_cast %225 : vector<2x256xf32> to vector<2x1x256xf32>
    %227 = vector.extract_strided_slice %35 {offsets = [0, 1024], sizes = [2, 256], strides = [1, 1]} : vector<2x2560xf32> to vector<2x256xf32>
    %228 = vector.shape_cast %227 : vector<2x256xf32> to vector<2x1x256xf32>
    %229 = vector.shape_cast %224 : vector<32x256xf32> to vector<2x16x256xf32>
    %230 = vector.broadcast %226 : vector<2x1x256xf32> to vector<2x16x256xf32>
    %231 = arith.mulf %230, %229 : vector<2x16x256xf32>
    %232 = vector.broadcast %228 : vector<2x1x256xf32> to vector<2x16x256xf32>
    %233 = arith.addf %231, %232 : vector<2x16x256xf32>
    %cst_151 = arith.constant 0.000000e+00 : f32
    %234 = vector.broadcast %cst_151 : f32 to vector<2x16x256xf32>
    %235 = arith.maximumf %233, %234 : vector<2x16x256xf32>
    %236 = arith.truncf %235 : vector<2x16x256xf32> to vector<2x16x256xbf16>
    %c0_152 = arith.constant 0 : index
    %c16_153 = arith.constant 16 : index
    %c0_154 = arith.constant 0 : index
    %237 = vector.load %arg18[%c0_152, %c16_153, %c0_154] : memref<2x48x256xbf16, #tpu.memory_space<vmem>>, vector<2x16x256xbf16>
    tpu.vector_store %arg18[%c0_152, %c16_153, %c0_154], %236 {strides = array<i32>} : memref<2x48x256xbf16, #tpu.memory_space<vmem>>, vector<2x16x256xbf16>,
    %c0_155 = arith.constant 0 : index
    %c16_156 = arith.constant 16 : index
    %c0_157 = arith.constant 0 : index
    %238 = vector.load %arg18[%c0_155, %c16_156, %c0_157] : memref<2x48x256xbf16, #tpu.memory_space<vmem>>, vector<2x16x256xbf16>
    %239 = vector.shape_cast %238 : vector<2x16x256xbf16> to vector<32x256xbf16>
    %c5 = arith.constant 5 : index
    %c256_158 = arith.constant 256 : index
    %c0_159 = arith.constant 0 : index
    %240 = vector.load %arg5[%c5, %c256_158, %c0_159] : memref<10x768x256xbf16, #tpu.memory_space<vmem>>, vector<1x256x256xbf16>
    %241 = vector.shape_cast %240 : vector<1x256x256xbf16> to vector<256x256xbf16>
    %cst_160 = arith.constant dense<0.000000e+00> : vector<32x256xf32>
    %242 = tpu.matmul %239, %241, %cst_160 {dimension_numbers = #tpu.dot_dimension_numbers<[1], [0], [0], [1], [0, 0, 1, 1], [], []>} : vector<32x256xbf16>, vector<256x256xbf16>, vector<32x256xf32> -> vector<32x256xf32>
    %c5_161 = arith.constant 5 : index
    %c0_162 = arith.constant 0 : index
    %c0_163 = arith.constant 0 : index
    %243 = vector.load %arg6[%c5_161, %c0_162, %c0_163] : memref<10x1x256xf32, #tpu.memory_space<vmem>>, vector<1x1x256xf32>
    %244 = vector.shape_cast %243 : vector<1x1x256xf32> to vector<1x256xf32>
    %245 = vector.broadcast %244 : vector<1x256xf32> to vector<32x256xf32>
    %246 = arith.addf %242, %245 : vector<32x256xf32>
    %cst_164 = arith.constant dense<0.000000e+00> : vector<256xf32>
    %247 = vector.multi_reduction <add>, %246, %cst_164 [0] : vector<32x256xf32> to vector<256xf32>
    %248 = vector.shape_cast %247 : vector<256xf32> to vector<1x256xf32>
    %cst_165 = arith.constant 3.200000e+01 : f32
    %249 = vector.broadcast %cst_165 : f32 to vector<1x256xf32>
    %250 = arith.divf %248, %249 : vector<1x256xf32>
    %251 = vector.broadcast %250 : vector<1x256xf32> to vector<32x256xf32>
    %252 = arith.subf %246, %251 : vector<32x256xf32>
    %253 = arith.mulf %252, %252 : vector<32x256xf32>
    %cst_166 = arith.constant dense<0.000000e+00> : vector<256xf32>
    %254 = vector.multi_reduction <add>, %253, %cst_166 [0] : vector<32x256xf32> to vector<256xf32>
    %255 = vector.shape_cast %254 : vector<256xf32> to vector<1x256xf32>
    %cst_167 = arith.constant 3.200000e+01 : f32
    %256 = vector.broadcast %cst_167 : f32 to vector<1x256xf32>
    %257 = arith.divf %255, %256 : vector<1x256xf32>
    %cst_168 = arith.constant 9.99999974E-6 : f32
    %258 = vector.broadcast %cst_168 : f32 to vector<1x256xf32>
    %259 = arith.addf %257, %258 : vector<1x256xf32>
    %260 = math.rsqrt %259 : vector<1x256xf32>
    %261 = vector.broadcast %260 : vector<1x256xf32> to vector<32x256xf32>
    %262 = arith.mulf %252, %261 : vector<32x256xf32>
    %263 = vector.extract_strided_slice %29 {offsets = [0, 1280], sizes = [2, 256], strides = [1, 1]} : vector<2x2560xf32> to vector<2x256xf32>
    %264 = vector.shape_cast %263 : vector<2x256xf32> to vector<2x1x256xf32>
    %265 = vector.extract_strided_slice %35 {offsets = [0, 1280], sizes = [2, 256], strides = [1, 1]} : vector<2x2560xf32> to vector<2x256xf32>
    %266 = vector.shape_cast %265 : vector<2x256xf32> to vector<2x1x256xf32>
    %267 = vector.shape_cast %262 : vector<32x256xf32> to vector<2x16x256xf32>
    %268 = vector.broadcast %264 : vector<2x1x256xf32> to vector<2x16x256xf32>
    %269 = arith.mulf %268, %267 : vector<2x16x256xf32>
    %270 = vector.broadcast %266 : vector<2x1x256xf32> to vector<2x16x256xf32>
    %271 = arith.addf %269, %270 : vector<2x16x256xf32>
    %cst_169 = arith.constant 0.000000e+00 : f32
    %272 = vector.broadcast %cst_169 : f32 to vector<2x16x256xf32>
    %273 = arith.maximumf %271, %272 : vector<2x16x256xf32>
    %274 = arith.truncf %273 : vector<2x16x256xf32> to vector<2x16x256xbf16>
    %c0_170 = arith.constant 0 : index
    %c16_171 = arith.constant 16 : index
    %c0_172 = arith.constant 0 : index
    %275 = vector.load %arg18[%c0_170, %c16_171, %c0_172] : memref<2x48x256xbf16, #tpu.memory_space<vmem>>, vector<2x16x256xbf16>
    tpu.vector_store %arg18[%c0_170, %c16_171, %c0_172], %274 {strides = array<i32>} : memref<2x48x256xbf16, #tpu.memory_space<vmem>>, vector<2x16x256xbf16>,
    %c0_173 = arith.constant 0 : index
    %c16_174 = arith.constant 16 : index
    %c0_175 = arith.constant 0 : index
    %276 = vector.load %arg18[%c0_173, %c16_174, %c0_175] : memref<2x48x256xbf16, #tpu.memory_space<vmem>>, vector<2x16x256xbf16>
    %277 = vector.shape_cast %276 : vector<2x16x256xbf16> to vector<32x256xbf16>
    %c6 = arith.constant 6 : index
    %c256_176 = arith.constant 256 : index
    %c0_177 = arith.constant 0 : index
    %278 = vector.load %arg5[%c6, %c256_176, %c0_177] : memref<10x768x256xbf16, #tpu.memory_space<vmem>>, vector<1x256x256xbf16>
    %279 = vector.shape_cast %278 : vector<1x256x256xbf16> to vector<256x256xbf16>
    %cst_178 = arith.constant dense<0.000000e+00> : vector<32x256xf32>
    %280 = tpu.matmul %277, %279, %cst_178 {dimension_numbers = #tpu.dot_dimension_numbers<[1], [0], [0], [1], [0, 0, 1, 1], [], []>} : vector<32x256xbf16>, vector<256x256xbf16>, vector<32x256xf32> -> vector<32x256xf32>
    %c6_179 = arith.constant 6 : index
    %c0_180 = arith.constant 0 : index
    %c0_181 = arith.constant 0 : index
    %281 = vector.load %arg6[%c6_179, %c0_180, %c0_181] : memref<10x1x256xf32, #tpu.memory_space<vmem>>, vector<1x1x256xf32>
    %282 = vector.shape_cast %281 : vector<1x1x256xf32> to vector<1x256xf32>
    %283 = vector.broadcast %282 : vector<1x256xf32> to vector<32x256xf32>
    %284 = arith.addf %280, %283 : vector<32x256xf32>
    %cst_182 = arith.constant dense<0.000000e+00> : vector<256xf32>
    %285 = vector.multi_reduction <add>, %284, %cst_182 [0] : vector<32x256xf32> to vector<256xf32>
    %286 = vector.shape_cast %285 : vector<256xf32> to vector<1x256xf32>
    %cst_183 = arith.constant 3.200000e+01 : f32
    %287 = vector.broadcast %cst_183 : f32 to vector<1x256xf32>
    %288 = arith.divf %286, %287 : vector<1x256xf32>
    %289 = vector.broadcast %288 : vector<1x256xf32> to vector<32x256xf32>
    %290 = arith.subf %284, %289 : vector<32x256xf32>
    %291 = arith.mulf %290, %290 : vector<32x256xf32>
    %cst_184 = arith.constant dense<0.000000e+00> : vector<256xf32>
    %292 = vector.multi_reduction <add>, %291, %cst_184 [0] : vector<32x256xf32> to vector<256xf32>
    %293 = vector.shape_cast %292 : vector<256xf32> to vector<1x256xf32>
    %cst_185 = arith.constant 3.200000e+01 : f32
    %294 = vector.broadcast %cst_185 : f32 to vector<1x256xf32>
    %295 = arith.divf %293, %294 : vector<1x256xf32>
    %cst_186 = arith.constant 9.99999974E-6 : f32
    %296 = vector.broadcast %cst_186 : f32 to vector<1x256xf32>
    %297 = arith.addf %295, %296 : vector<1x256xf32>
    %298 = math.rsqrt %297 : vector<1x256xf32>
    %299 = vector.broadcast %298 : vector<1x256xf32> to vector<32x256xf32>
    %300 = arith.mulf %290, %299 : vector<32x256xf32>
    %301 = vector.extract_strided_slice %29 {offsets = [0, 1536], sizes = [2, 256], strides = [1, 1]} : vector<2x2560xf32> to vector<2x256xf32>
    %302 = vector.shape_cast %301 : vector<2x256xf32> to vector<2x1x256xf32>
    %303 = vector.extract_strided_slice %35 {offsets = [0, 1536], sizes = [2, 256], strides = [1, 1]} : vector<2x2560xf32> to vector<2x256xf32>
    %304 = vector.shape_cast %303 : vector<2x256xf32> to vector<2x1x256xf32>
    %305 = vector.shape_cast %300 : vector<32x256xf32> to vector<2x16x256xf32>
    %306 = vector.broadcast %302 : vector<2x1x256xf32> to vector<2x16x256xf32>
    %307 = arith.mulf %306, %305 : vector<2x16x256xf32>
    %308 = vector.broadcast %304 : vector<2x1x256xf32> to vector<2x16x256xf32>
    %309 = arith.addf %307, %308 : vector<2x16x256xf32>
    %cst_187 = arith.constant 0.000000e+00 : f32
    %310 = vector.broadcast %cst_187 : f32 to vector<2x16x256xf32>
    %311 = arith.maximumf %309, %310 : vector<2x16x256xf32>
    %312 = arith.truncf %311 : vector<2x16x256xf32> to vector<2x16x256xbf16>
    %c0_188 = arith.constant 0 : index
    %c16_189 = arith.constant 16 : index
    %c0_190 = arith.constant 0 : index
    %313 = vector.load %arg18[%c0_188, %c16_189, %c0_190] : memref<2x48x256xbf16, #tpu.memory_space<vmem>>, vector<2x16x256xbf16>
    tpu.vector_store %arg18[%c0_188, %c16_189, %c0_190], %312 {strides = array<i32>} : memref<2x48x256xbf16, #tpu.memory_space<vmem>>, vector<2x16x256xbf16>,
    %c0_191 = arith.constant 0 : index
    %c16_192 = arith.constant 16 : index
    %c0_193 = arith.constant 0 : index
    %314 = vector.load %arg18[%c0_191, %c16_192, %c0_193] : memref<2x48x256xbf16, #tpu.memory_space<vmem>>, vector<2x16x256xbf16>
    %315 = vector.shape_cast %314 : vector<2x16x256xbf16> to vector<32x256xbf16>
    %c7 = arith.constant 7 : index
    %c256_194 = arith.constant 256 : index
    %c0_195 = arith.constant 0 : index
    %316 = vector.load %arg5[%c7, %c256_194, %c0_195] : memref<10x768x256xbf16, #tpu.memory_space<vmem>>, vector<1x256x256xbf16>
    %317 = vector.shape_cast %316 : vector<1x256x256xbf16> to vector<256x256xbf16>
    %cst_196 = arith.constant dense<0.000000e+00> : vector<32x256xf32>
    %318 = tpu.matmul %315, %317, %cst_196 {dimension_numbers = #tpu.dot_dimension_numbers<[1], [0], [0], [1], [0, 0, 1, 1], [], []>} : vector<32x256xbf16>, vector<256x256xbf16>, vector<32x256xf32> -> vector<32x256xf32>
    %c7_197 = arith.constant 7 : index
    %c0_198 = arith.constant 0 : index
    %c0_199 = arith.constant 0 : index
    %319 = vector.load %arg6[%c7_197, %c0_198, %c0_199] : memref<10x1x256xf32, #tpu.memory_space<vmem>>, vector<1x1x256xf32>
    %320 = vector.shape_cast %319 : vector<1x1x256xf32> to vector<1x256xf32>
    %321 = vector.broadcast %320 : vector<1x256xf32> to vector<32x256xf32>
    %322 = arith.addf %318, %321 : vector<32x256xf32>
    %cst_200 = arith.constant dense<0.000000e+00> : vector<256xf32>
    %323 = vector.multi_reduction <add>, %322, %cst_200 [0] : vector<32x256xf32> to vector<256xf32>
    %324 = vector.shape_cast %323 : vector<256xf32> to vector<1x256xf32>
    %cst_201 = arith.constant 3.200000e+01 : f32
    %325 = vector.broadcast %cst_201 : f32 to vector<1x256xf32>
    %326 = arith.divf %324, %325 : vector<1x256xf32>
    %327 = vector.broadcast %326 : vector<1x256xf32> to vector<32x256xf32>
    %328 = arith.subf %322, %327 : vector<32x256xf32>
    %329 = arith.mulf %328, %328 : vector<32x256xf32>
    %cst_202 = arith.constant dense<0.000000e+00> : vector<256xf32>
    %330 = vector.multi_reduction <add>, %329, %cst_202 [0] : vector<32x256xf32> to vector<256xf32>
    %331 = vector.shape_cast %330 : vector<256xf32> to vector<1x256xf32>
    %cst_203 = arith.constant 3.200000e+01 : f32
    %332 = vector.broadcast %cst_203 : f32 to vector<1x256xf32>
    %333 = arith.divf %331, %332 : vector<1x256xf32>
    %cst_204 = arith.constant 9.99999974E-6 : f32
    %334 = vector.broadcast %cst_204 : f32 to vector<1x256xf32>
    %335 = arith.addf %333, %334 : vector<1x256xf32>
    %336 = math.rsqrt %335 : vector<1x256xf32>
    %337 = vector.broadcast %336 : vector<1x256xf32> to vector<32x256xf32>
    %338 = arith.mulf %328, %337 : vector<32x256xf32>
    %339 = vector.extract_strided_slice %29 {offsets = [0, 1792], sizes = [2, 256], strides = [1, 1]} : vector<2x2560xf32> to vector<2x256xf32>
    %340 = vector.shape_cast %339 : vector<2x256xf32> to vector<2x1x256xf32>
    %341 = vector.extract_strided_slice %35 {offsets = [0, 1792], sizes = [2, 256], strides = [1, 1]} : vector<2x2560xf32> to vector<2x256xf32>
    %342 = vector.shape_cast %341 : vector<2x256xf32> to vector<2x1x256xf32>
    %343 = vector.shape_cast %338 : vector<32x256xf32> to vector<2x16x256xf32>
    %344 = vector.broadcast %340 : vector<2x1x256xf32> to vector<2x16x256xf32>
    %345 = arith.mulf %344, %343 : vector<2x16x256xf32>
    %346 = vector.broadcast %342 : vector<2x1x256xf32> to vector<2x16x256xf32>
    %347 = arith.addf %345, %346 : vector<2x16x256xf32>
    %cst_205 = arith.constant 0.000000e+00 : f32
    %348 = vector.broadcast %cst_205 : f32 to vector<2x16x256xf32>
    %349 = arith.maximumf %347, %348 : vector<2x16x256xf32>
    %350 = arith.truncf %349 : vector<2x16x256xf32> to vector<2x16x256xbf16>
    %c0_206 = arith.constant 0 : index
    %c16_207 = arith.constant 16 : index
    %c0_208 = arith.constant 0 : index
    %351 = vector.load %arg18[%c0_206, %c16_207, %c0_208] : memref<2x48x256xbf16, #tpu.memory_space<vmem>>, vector<2x16x256xbf16>
    tpu.vector_store %arg18[%c0_206, %c16_207, %c0_208], %350 {strides = array<i32>} : memref<2x48x256xbf16, #tpu.memory_space<vmem>>, vector<2x16x256xbf16>,
    %c0_209 = arith.constant 0 : index
    %c16_210 = arith.constant 16 : index
    %c0_211 = arith.constant 0 : index
    %352 = vector.load %arg18[%c0_209, %c16_210, %c0_211] : memref<2x48x256xbf16, #tpu.memory_space<vmem>>, vector<2x16x256xbf16>
    %353 = vector.shape_cast %352 : vector<2x16x256xbf16> to vector<32x256xbf16>
    %c8_212 = arith.constant 8 : index
    %c256_213 = arith.constant 256 : index
    %c0_214 = arith.constant 0 : index
    %354 = vector.load %arg5[%c8_212, %c256_213, %c0_214] : memref<10x768x256xbf16, #tpu.memory_space<vmem>>, vector<1x256x256xbf16>
    %355 = vector.shape_cast %354 : vector<1x256x256xbf16> to vector<256x256xbf16>
    %cst_215 = arith.constant dense<0.000000e+00> : vector<32x256xf32>
    %356 = tpu.matmul %353, %355, %cst_215 {dimension_numbers = #tpu.dot_dimension_numbers<[1], [0], [0], [1], [0, 0, 1, 1], [], []>} : vector<32x256xbf16>, vector<256x256xbf16>, vector<32x256xf32> -> vector<32x256xf32>
    %c8_216 = arith.constant 8 : index
    %c0_217 = arith.constant 0 : index
    %c0_218 = arith.constant 0 : index
    %357 = vector.load %arg6[%c8_216, %c0_217, %c0_218] : memref<10x1x256xf32, #tpu.memory_space<vmem>>, vector<1x1x256xf32>
    %358 = vector.shape_cast %357 : vector<1x1x256xf32> to vector<1x256xf32>
    %359 = vector.broadcast %358 : vector<1x256xf32> to vector<32x256xf32>
    %360 = arith.addf %356, %359 : vector<32x256xf32>
    %cst_219 = arith.constant dense<0.000000e+00> : vector<256xf32>
    %361 = vector.multi_reduction <add>, %360, %cst_219 [0] : vector<32x256xf32> to vector<256xf32>
    %362 = vector.shape_cast %361 : vector<256xf32> to vector<1x256xf32>
    %cst_220 = arith.constant 3.200000e+01 : f32
    %363 = vector.broadcast %cst_220 : f32 to vector<1x256xf32>
    %364 = arith.divf %362, %363 : vector<1x256xf32>
    %365 = vector.broadcast %364 : vector<1x256xf32> to vector<32x256xf32>
    %366 = arith.subf %360, %365 : vector<32x256xf32>
    %367 = arith.mulf %366, %366 : vector<32x256xf32>
    %cst_221 = arith.constant dense<0.000000e+00> : vector<256xf32>
    %368 = vector.multi_reduction <add>, %367, %cst_221 [0] : vector<32x256xf32> to vector<256xf32>
    %369 = vector.shape_cast %368 : vector<256xf32> to vector<1x256xf32>
    %cst_222 = arith.constant 3.200000e+01 : f32
    %370 = vector.broadcast %cst_222 : f32 to vector<1x256xf32>
    %371 = arith.divf %369, %370 : vector<1x256xf32>
    %cst_223 = arith.constant 9.99999974E-6 : f32
    %372 = vector.broadcast %cst_223 : f32 to vector<1x256xf32>
    %373 = arith.addf %371, %372 : vector<1x256xf32>
    %374 = math.rsqrt %373 : vector<1x256xf32>
    %375 = vector.broadcast %374 : vector<1x256xf32> to vector<32x256xf32>
    %376 = arith.mulf %366, %375 : vector<32x256xf32>
    %377 = vector.extract_strided_slice %29 {offsets = [0, 2048], sizes = [2, 256], strides = [1, 1]} : vector<2x2560xf32> to vector<2x256xf32>
    %378 = vector.shape_cast %377 : vector<2x256xf32> to vector<2x1x256xf32>
    %379 = vector.extract_strided_slice %35 {offsets = [0, 2048], sizes = [2, 256], strides = [1, 1]} : vector<2x2560xf32> to vector<2x256xf32>
    %380 = vector.shape_cast %379 : vector<2x256xf32> to vector<2x1x256xf32>
    %381 = vector.shape_cast %376 : vector<32x256xf32> to vector<2x16x256xf32>
    %382 = vector.broadcast %378 : vector<2x1x256xf32> to vector<2x16x256xf32>
    %383 = arith.mulf %382, %381 : vector<2x16x256xf32>
    %384 = vector.broadcast %380 : vector<2x1x256xf32> to vector<2x16x256xf32>
    %385 = arith.addf %383, %384 : vector<2x16x256xf32>
    %cst_224 = arith.constant 0.000000e+00 : f32
    %386 = vector.broadcast %cst_224 : f32 to vector<2x16x256xf32>
    %387 = arith.maximumf %385, %386 : vector<2x16x256xf32>
    %388 = arith.truncf %387 : vector<2x16x256xf32> to vector<2x16x256xbf16>
    %c0_225 = arith.constant 0 : index
    %c16_226 = arith.constant 16 : index
    %c0_227 = arith.constant 0 : index
    %389 = vector.load %arg18[%c0_225, %c16_226, %c0_227] : memref<2x48x256xbf16, #tpu.memory_space<vmem>>, vector<2x16x256xbf16>
    tpu.vector_store %arg18[%c0_225, %c16_226, %c0_227], %388 {strides = array<i32>} : memref<2x48x256xbf16, #tpu.memory_space<vmem>>, vector<2x16x256xbf16>,
    %c0_228 = arith.constant 0 : index
    %c16_229 = arith.constant 16 : index
    %c0_230 = arith.constant 0 : index
    %390 = vector.load %arg18[%c0_228, %c16_229, %c0_230] : memref<2x48x256xbf16, #tpu.memory_space<vmem>>, vector<2x16x256xbf16>
    %391 = vector.shape_cast %390 : vector<2x16x256xbf16> to vector<32x256xbf16>
    %c9 = arith.constant 9 : index
    %c256_231 = arith.constant 256 : index
    %c0_232 = arith.constant 0 : index
    %392 = vector.load %arg5[%c9, %c256_231, %c0_232] : memref<10x768x256xbf16, #tpu.memory_space<vmem>>, vector<1x256x256xbf16>
    %393 = vector.shape_cast %392 : vector<1x256x256xbf16> to vector<256x256xbf16>
    %cst_233 = arith.constant dense<0.000000e+00> : vector<32x256xf32>
    %394 = tpu.matmul %391, %393, %cst_233 {dimension_numbers = #tpu.dot_dimension_numbers<[1], [0], [0], [1], [0, 0, 1, 1], [], []>} : vector<32x256xbf16>, vector<256x256xbf16>, vector<32x256xf32> -> vector<32x256xf32>
    %c9_234 = arith.constant 9 : index
    %c0_235 = arith.constant 0 : index
    %c0_236 = arith.constant 0 : index
    %395 = vector.load %arg6[%c9_234, %c0_235, %c0_236] : memref<10x1x256xf32, #tpu.memory_space<vmem>>, vector<1x1x256xf32>
    %396 = vector.shape_cast %395 : vector<1x1x256xf32> to vector<1x256xf32>
    %397 = vector.broadcast %396 : vector<1x256xf32> to vector<32x256xf32>
    %398 = arith.addf %394, %397 : vector<32x256xf32>
    %cst_237 = arith.constant dense<0.000000e+00> : vector<256xf32>
    %399 = vector.multi_reduction <add>, %398, %cst_237 [0] : vector<32x256xf32> to vector<256xf32>
    %400 = vector.shape_cast %399 : vector<256xf32> to vector<1x256xf32>
    %cst_238 = arith.constant 3.200000e+01 : f32
    %401 = vector.broadcast %cst_238 : f32 to vector<1x256xf32>
    %402 = arith.divf %400, %401 : vector<1x256xf32>
    %403 = vector.broadcast %402 : vector<1x256xf32> to vector<32x256xf32>
    %404 = arith.subf %398, %403 : vector<32x256xf32>
    %405 = arith.mulf %404, %404 : vector<32x256xf32>
    %cst_239 = arith.constant dense<0.000000e+00> : vector<256xf32>
    %406 = vector.multi_reduction <add>, %405, %cst_239 [0] : vector<32x256xf32> to vector<256xf32>
    %407 = vector.shape_cast %406 : vector<256xf32> to vector<1x256xf32>
    %cst_240 = arith.constant 3.200000e+01 : f32
    %408 = vector.broadcast %cst_240 : f32 to vector<1x256xf32>
    %409 = arith.divf %407, %408 : vector<1x256xf32>
    %cst_241 = arith.constant 9.99999974E-6 : f32
    %410 = vector.broadcast %cst_241 : f32 to vector<1x256xf32>
    %411 = arith.addf %409, %410 : vector<1x256xf32>
    %412 = math.rsqrt %411 : vector<1x256xf32>
    %413 = vector.broadcast %412 : vector<1x256xf32> to vector<32x256xf32>
    %414 = arith.mulf %404, %413 : vector<32x256xf32>
    %415 = vector.extract_strided_slice %29 {offsets = [0, 2304], sizes = [2, 256], strides = [1, 1]} : vector<2x2560xf32> to vector<2x256xf32>
    %416 = vector.shape_cast %415 : vector<2x256xf32> to vector<2x1x256xf32>
    %417 = vector.extract_strided_slice %35 {offsets = [0, 2304], sizes = [2, 256], strides = [1, 1]} : vector<2x2560xf32> to vector<2x256xf32>
    %418 = vector.shape_cast %417 : vector<2x256xf32> to vector<2x1x256xf32>
    %419 = vector.shape_cast %414 : vector<32x256xf32> to vector<2x16x256xf32>
    %420 = vector.broadcast %416 : vector<2x1x256xf32> to vector<2x16x256xf32>
    %421 = arith.mulf %420, %419 : vector<2x16x256xf32>
    %422 = vector.broadcast %418 : vector<2x1x256xf32> to vector<2x16x256xf32>
    %423 = arith.addf %421, %422 : vector<2x16x256xf32>
    %cst_242 = arith.constant 0.000000e+00 : f32
    %424 = vector.broadcast %cst_242 : f32 to vector<2x16x256xf32>
    %425 = arith.maximumf %423, %424 : vector<2x16x256xf32>
    %c0_243 = arith.constant 0 : index
    %c0_244 = arith.constant 0 : index
    %c0_245 = arith.constant 0 : index
    %426 = vector.load %arg15[%c0_243, %c0_244, %c0_245] : memref<2x16x256xf32, #tpu.memory_space<vmem>>, vector<2x16x256xf32>
    tpu.vector_store %arg15[%c0_243, %c0_244, %c0_245], %425 {strides = array<i32>} : memref<2x16x256xf32, #tpu.memory_space<vmem>>, vector<2x16x256xf32>,
    %427 = vector.shape_cast %425 : vector<2x16x256xf32> to vector<32x256xf32>
    %428 = arith.truncf %427 : vector<32x256xf32> to vector<32x256xbf16>
    %c0_246 = arith.constant 0 : index
    %c0_247 = arith.constant 0 : index
    %429 = vector.load %arg11[%c0_246, %c0_247] : memref<256x256xbf16, #tpu.memory_space<vmem>>, vector<256x256xbf16>
    %cst_248 = arith.constant dense<0.000000e+00> : vector<32x256xf32>
    %430 = tpu.matmul %428, %429, %cst_248 {dimension_numbers = #tpu.dot_dimension_numbers<[1], [0], [0], [1], [0, 0, 1, 1], [], []>} : vector<32x256xbf16>, vector<256x256xbf16>, vector<32x256xf32> -> vector<32x256xf32>
    %c0_249 = arith.constant 0 : index
    %c0_250 = arith.constant 0 : index
    %431 = vector.load %arg12[%c0_249, %c0_250] : memref<1x256xf32, #tpu.memory_space<vmem>>, vector<1x256xf32>
    %432 = vector.broadcast %431 : vector<1x256xf32> to vector<32x256xf32>
    %433 = arith.addf %430, %432 : vector<32x256xf32>
    %cst_251 = arith.constant 0.000000e+00 : f32
    %434 = vector.broadcast %cst_251 : f32 to vector<32x256xf32>
    %435 = arith.maximumf %433, %434 : vector<32x256xf32>
    %c0_252 = arith.constant 0 : index
    %c0_253 = arith.constant 0 : index
    %436 = vector.load %arg13[%c0_252, %c0_253] : memref<1x256xf32, #tpu.memory_space<vmem>>, vector<1x256xf32>
    %437 = vector.broadcast %436 : vector<1x256xf32> to vector<32x256xf32>
    %438 = arith.mulf %435, %437 : vector<32x256xf32>
    %cst_254 = arith.constant dense<0.000000e+00> : vector<32xf32>
    %439 = vector.multi_reduction <add>, %438, %cst_254 [1] : vector<32x256xf32> to vector<32xf32>
    %440 = vector.shape_cast %439 : vector<32xf32> to vector<32x1xf32>
    %c0_255 = arith.constant 0 : index
    %c0_256 = arith.constant 0 : index
    %441 = vector.load %arg14[%c0_255, %c0_256] : memref<1x1xf32, #tpu.memory_space<vmem>>, vector<1x1xf32>
    %442 = vector.broadcast %441 : vector<1x1xf32> to vector<32x1xf32>
    %443 = arith.addf %440, %442 : vector<32x1xf32>
    %cst_257 = arith.constant 0.000000e+00 : f32
    %444 = vector.broadcast %cst_257 : f32 to vector<32x1xf32>
    %445 = arith.maximumf %443, %444 : vector<32x1xf32>
    %446 = vector.shape_cast %445 : vector<32x1xf32> to vector<2x16x1xf32>
    %c0_258 = arith.constant 0 : index
    %c0_259 = arith.constant 0 : index
    %c0_260 = arith.constant 0 : index
    %447 = vector.load %arg16[%c0_258, %c0_259, %c0_260] : memref<2x16x1xf32, #tpu.memory_space<vmem>>, vector<2x16x1xf32>
    tpu.vector_store %arg16[%c0_258, %c0_259, %c0_260], %446 {strides = array<i32>} : memref<2x16x1xf32, #tpu.memory_space<vmem>>, vector<2x16x1xf32>,
    return
  }
}

</mosaic_0001>

<bundles_post_ra>
// kernel: aligner_forward.1
= control target key start
LH: loop header
LB: loop body
LE: loop exit
PB: predicated region body
PF: predicated region fallthrough
CT: control target
= control target key end

     0   :  { %s14066_s0 = inlined_call_operand.hbm [shape: f32[2,16,128], index: 0, kind: input, shape index: {}]   ;;  %s14067_s1 = inlined_call_operand.hbm [shape: f32[2,128], index: 1, kind: input, shape index: {}]   ;;  %s14068_s2 = inlined_call_operand.hbm [shape: f32[2,128], index: 2, kind: input, shape index: {}]   ;;  %s14069_s3 = inlined_call_operand.hbm [shape: bf16[384,256], index: 3, kind: input, shape index: {}]   ;;  %s14070_s4 = inlined_call_operand.hbm [shape: f32[1,256], index: 4, kind: input, shape index: {}]   ;;  %s14071_s5 = inlined_call_operand.hbm [shape: bf16[10,768,256], index: 5, kind: input, shape index: {}]   ;;  %s14072_s6 = inlined_call_operand.hbm [shape: f32[10,1,256], index: 6, kind: input, shape index: {}]   ;;  %s14073_s7 = inlined_call_operand.hbm [shape: f32[128,2560], index: 7, kind: input, shape index: {}]   ;;  %s14074_s8 = inlined_call_operand.hbm [shape: f32[1,2560], index: 8, kind: input, shape index: {}]   ;;  %s14075_s9 = inlined_call_operand.hbm [shape: f32[128,2560], index: 9, kind: input, shape index: {}]   ;;  %s14076_s10 = inlined_call_operand.hbm [shape: f32[1,2560], index: 10, kind: input, shape index: {}]   ;;  %s14077_s11 = inlined_call_operand.hbm [shape: bf16[256,256], index: 11, kind: input, shape index: {}]   ;;  %s14078_s12 = inlined_call_operand.hbm [shape: f32[1,256], index: 12, kind: input, shape index: {}]   ;;  %s14079_s13 = inlined_call_operand.hbm [shape: f32[1,256], index: 13, kind: input, shape index: {}]   ;;  %s14080_s14 = inlined_call_operand.<no memory space> [shape: f32[1,1], index: 14, kind: input, shape index: {}]   ;;  %s14081_s15 = inlined_call_operand.hbm [shape: f32[2,16,256], index: 15, kind: output, shape index: {0}]   ;;  %s14082_s16 = inlined_call_operand.vmem [shape: f32[2,16,1], index: 16, kind: output, shape index: {1}]  }
   0x1   :  { %14102 = sst [smem:[#allocation57_spill]] %s14066_s0  ;;  %v22_v0 = vstv %s14080_s14 }
   0x2   :  { %23 = vst [vmem:[#allocation4] sm:$0x1] %v22_v0 }
   0x3   :  { %24 = vsyncpa [#allocation6], 0 }
   0x4   :  { %25 = vsyncpa [#allocation9], 0 }
   0x5   :  { %26 = vsyncpa [#allocation12], 0 }
   0x6   :  { %27 = vsyncpa [#allocation15], 0 }
   0x7   :  { %28 = vsyncpa [#allocation18], 0 }
   0x8   :  { %29 = vsyncpa [#allocation21], 0 }
   0x9   :  { %30 = vsyncpa [#allocation24], 0 }
   0xa   :  { %31 = vsyncpa [#allocation27], 0 }
   0xb   :  { %32 = vsyncpa [#allocation7], 0  ;;  %s13137_s23 = smov [#allocation8]  }
   0xc   :  { %s51_s24 = sshll.u32 %s13137_s23, 4  ;;  %s52_s24 = int_to_ptr.vmem [resolvable:$true] %s51_s24 }
   0xd   :  { %s12827_s25 = scalar_lea.vmem %s52_s24, 32  ;;  %p12832_p1 = scmp.lt.s32.totalorder %s52_s24, %s52_s24 }
   0xe   :  { %p12828_p0 = scmp.ne.s32.totalorder %s52_s24, %s12827_s25  ;;  %p12833_p2 = scmp.lt.s32.totalorder %s12827_s25, %s12827_s25 }
  0x10   :  { %p12834_p3 = por %p12833_p2, %p12832_p1 }
  0x12   :  { %p12835_p4 = pnand %p12834_p3, %p12828_p0 }
  0x14   :  { %12838 = shalt.err (!%p12835_p4)
}
  0x15   :  { %54 = dma.hbm_to_vmem [thread:$0]  %s14067_s1, 32, %s52_s24, [#allocation9]  }
  0x16   :  { %s13138_s27 = smov [#allocation11]   ;;  %s13139_s29 = smov [#allocation14]  }
  0x17   :  { %s70_s28 = sshll.u32 %s13138_s27, 4  ;;  %s92_s30 = sshll.u32 %s13139_s29, 4  ;;  %s71_s28 = int_to_ptr.vmem [resolvable:$true] %s70_s28  ;;  %s93_s30 = int_to_ptr.vmem [resolvable:$true] %s92_s30 }
  0x18   :  { %s12847_s0 = scalar_lea.vmem %s71_s28, 6144  ;;  %p12852_p6 = scmp.lt.s32.totalorder %s71_s28, %s71_s28 }
  0x19   :  { %p12848_p5 = scmp.ne.s32.totalorder %s71_s28, %s12847_s0  ;;  %p12853_p7 = scmp.lt.s32.totalorder %s12847_s0, %s12847_s0 }
  0x1b   :  { %p12854_p8 = por %p12853_p7, %p12852_p6 }
  0x1d   :  { %p12855_p9 = pnand %p12854_p8, %p12848_p5 }
  0x1f   :  { %12858 = shalt.err (!%p12855_p9)
}
  0x20   :  { %s13140_s17 = smov 128   ;;  %s13141_s18 = smov 8  }
  0x21   :  { %76 = dma.hbm_to_vmem [thread:$0]  %s14069_s3, 6144, %s71_s28, [#allocation12], %s13140_s17, %s13140_s17, %s13141_s18  }
  0x22   :  { %s12867_s1 = scalar_lea.vmem %s93_s30, 122880  ;;  %p12872_p11 = scmp.lt.s32.totalorder %s93_s30, %s93_s30 }
  0x23   :  { %p12868_p10 = scmp.ne.s32.totalorder %s93_s30, %s12867_s1  ;;  %p12873_p12 = scmp.lt.s32.totalorder %s12867_s1, %s12867_s1 }
  0x25   :  { %p12874_p13 = por %p12873_p12, %p12872_p11 }
  0x27   :  { %p12875_p0 = pnand %p12874_p13, %p12868_p10 }
  0x29   :  { %12878 = shalt.err (!%p12875_p0)
}
  0x2a   :  { %98 = dma.hbm_to_vmem [thread:$0]  %s14071_s5, 122880, %s93_s30, [#allocation15], %s13140_s17, %s13140_s17, %s13141_s18  }
  0x2b   :  { %s13142_s23 = smov [#allocation17]  }
  0x2c   :  { %s116_s24 = sshll.u32 %s13142_s23, 4  ;;  %s117_s24 = int_to_ptr.vmem [resolvable:$true] %s116_s24 }
  0x2d   :  { %s12887_s25 = scalar_lea.vmem %s117_s24, 40960  ;;  %p12892_p2 = scmp.lt.s32.totalorder %s117_s24, %s117_s24 }
  0x2e   :  { %p12888_p1 = scmp.ne.s32.totalorder %s117_s24, %s12887_s25  ;;  %p12893_p3 = scmp.lt.s32.totalorder %s12887_s25, %s12887_s25 }
  0x30   :  { %p12894_p4 = por %p12893_p3, %p12892_p2 }
  0x32   :  { %p12895_p5 = pnand %p12894_p4, %p12888_p1 }
  0x34   :  { %12898 = shalt.err (!%p12895_p5)
}
  0x35   :  { %s13143_s3 = smov 2560   ;;  %s13144_s14 = smov 160  }
  0x36   :  { %122 = dma.hbm_to_vmem [thread:$0]  %s14073_s7, 40960, %s117_s24, [#allocation18], %s13143_s3, %s13143_s3, %s13144_s14  }
  0x37   :  { %s13145_s28 = smov [#allocation20]   ;;  %s13146_s0 = smov [#allocation23]  }
  0x38   :  { %s138_s29 = sshll.u32 %s13145_s28, 4  ;;  %s160_s5 = sshll.u32 %s13146_s0, 4  ;;  %s139_s29 = int_to_ptr.vmem [resolvable:$true] %s138_s29  ;;  %s161_s5 = int_to_ptr.vmem [resolvable:$true] %s160_s5 }
  0x39   :  { %s12907_s30 = scalar_lea.vmem %s139_s29, 40960  ;;  %p12912_p7 = scmp.lt.s32.totalorder %s139_s29, %s139_s29 }
  0x3a   :  { %p12908_p6 = scmp.ne.s32.totalorder %s139_s29, %s12907_s30  ;;  %p12913_p8 = scmp.lt.s32.totalorder %s12907_s30, %s12907_s30 }
  0x3c   :  { %p12914_p9 = por %p12913_p8, %p12912_p7 }
  0x3e   :  { %p12915_p10 = pnand %p12914_p9, %p12908_p6 }
  0x40   :  { %12918 = shalt.err (!%p12915_p10)
}
  0x41   :  { %144 = dma.hbm_to_vmem [thread:$0]  %s14075_s9, 40960, %s139_s29, [#allocation21], %s13143_s3, %s13143_s3, %s13144_s14  }
  0x42   :  { %s12927_s1 = scalar_lea.vmem %s161_s5, 4096  ;;  %p12932_p12 = scmp.lt.s32.totalorder %s161_s5, %s161_s5 }
  0x43   :  { %p12928_p11 = scmp.ne.s32.totalorder %s161_s5, %s12927_s1  ;;  %p12933_p13 = scmp.lt.s32.totalorder %s12927_s1, %s12927_s1 }
  0x45   :  { %p12934_p0 = por %p12933_p13, %p12932_p12 }
  0x47   :  { %p12935_p1 = pnand %p12934_p0, %p12928_p11 }
  0x49   :  { %12938 = shalt.err (!%p12935_p1)
}
  0x4a   :  { %166 = dma.hbm_to_vmem [thread:$0]  %s14077_s11, 4096, %s161_s5, [#allocation24], %s13140_s17, %s13140_s17, %s13141_s18  }
  0x4b   :  { %s13147_s22 = smov [#allocation5]   ;;  %s13148_s24 = smov [#allocation10]  }
  0x4c   :  { %s38_s23 = sshll.u32 %s13147_s22, 4  ;;  %s61_s25 = sshll.u32 %s13148_s24, 4  ;;  %s39_s23 = int_to_ptr.vmem [resolvable:$true] %s38_s23  ;;  %s62_s25 = int_to_ptr.vmem [resolvable:$true] %s61_s25 }
  0x4d   :  { %s12947_s9 = scalar_lea.vmem %s39_s23, 512  ;;  %p12952_p3 = scmp.lt.s32.totalorder %s39_s23, %s39_s23 }
  0x4e   :  { %p12948_p2 = scmp.ne.s32.totalorder %s39_s23, %s12947_s9  ;;  %p12953_p4 = scmp.lt.s32.totalorder %s12947_s9, %s12947_s9 }
  0x50   :  { %p12954_p5 = por %p12953_p4, %p12952_p3 }
  0x52   :  { %p12955_p6 = pnand %p12954_p5, %p12948_p2 }
  0x54   :  { %12958 = shalt.err (!%p12955_p6)
}
  0x55   :  { %s14103_s26 = sld [smem:[#allocation57_spill]]  ;;  %s12967_s11 = scalar_lea.vmem %s62_s25, 32 }
  0x56   :  { %p12968_p7 = scmp.ne.s32.totalorder %s62_s25, %s12967_s11  ;;  %p12972_p8 = scmp.lt.s32.totalorder %s62_s25, %s62_s25 }
  0x57   :  { %p12973_p9 = scmp.lt.s32.totalorder %s12967_s11, %s12967_s11 }
  0x59   :  { %p12974_p10 = por %p12973_p9, %p12972_p8 }
  0x5b   :  { %44 = dma.hbm_to_vmem [thread:$0]  %s14103_s26, 512, %s39_s23, [#allocation6], %s13140_s17, %s13140_s17, %s13141_s18  }
  0x5c   :  { %p12975_p11 = pnand %p12974_p10, %p12968_p7 }
  0x5e   :  { %12978 = shalt.err (!%p12975_p11)
}
  0x5f   :  { %64 = dma.hbm_to_vmem [thread:$0]  %s14068_s2, 32, %s62_s25, [#allocation9]  }
  0x60   :  { %s13149_s29 = smov [#allocation13]   ;;  %s13150_s5 = smov [#allocation16]  }
  0x61   :  { %s83_s0 = sshll.u32 %s13149_s29, 4  ;;  %s104_s30 = sshll.u32 %s13150_s5, 4  ;;  %s84_s0 = int_to_ptr.vmem [resolvable:$true] %s83_s0  ;;  %s105_s30 = int_to_ptr.vmem [resolvable:$true] %s104_s30 }
  0x62   :  { %s12987_s19 = scalar_lea.vmem %s84_s0, 32  ;;  %p12992_p13 = scmp.lt.s32.totalorder %s84_s0, %s84_s0 }
  0x63   :  { %p12988_p12 = scmp.ne.s32.totalorder %s84_s0, %s12987_s19  ;;  %p12993_p0 = scmp.lt.s32.totalorder %s12987_s19, %s12987_s19 }
  0x65   :  { %p12994_p1 = por %p12993_p0, %p12992_p13 }
  0x67   :  { %p12995_p2 = pnand %p12994_p1, %p12988_p12 }
  0x69   :  { %12998 = shalt.err (!%p12995_p2)
}
  0x6a   :  { %86 = dma.hbm_to_vmem [thread:$0]  %s14070_s4, 32, %s84_s0, [#allocation12]  }
  0x6b   :  { %s13007_s20 = scalar_lea.vmem %s105_s30, 320  ;;  %p13012_p4 = scmp.lt.s32.totalorder %s105_s30, %s105_s30 }
  0x6c   :  { %p13008_p3 = scmp.ne.s32.totalorder %s105_s30, %s13007_s20  ;;  %p13013_p5 = scmp.lt.s32.totalorder %s13007_s20, %s13007_s20 }
  0x6e   :  { %p13014_p6 = por %p13013_p5, %p13012_p4 }
  0x70   :  { %p13015_p7 = pnand %p13014_p6, %p13008_p3 }
  0x72   :  { %13018 = shalt.err (!%p13015_p7)
}
  0x73   :  { %s13151_s2 = smov 32   ;;  %s13152_s1 = smov 2  }
  0x74   :  { %110 = dma.hbm_to_vmem [thread:$0]  %s14072_s6, 320, %s105_s30, [#allocation15], %s13151_s2, %s13151_s2, %s13152_s1  }
  0x75   :  { %s13153_s22 = smov [#allocation19]   ;;  %s13154_s24 = smov [#allocation22]  }
  0x76   :  { %s129_s23 = sshll.u32 %s13153_s22, 4  ;;  %s151_s25 = sshll.u32 %s13154_s24, 4  ;;  %s130_s23 = int_to_ptr.vmem [resolvable:$true] %s129_s23  ;;  %s152_s25 = int_to_ptr.vmem [resolvable:$true] %s151_s25 }
  0x77   :  { %s13027_s4 = scalar_lea.vmem %s130_s23, 320  ;;  %p13032_p9 = scmp.lt.s32.totalorder %s130_s23, %s130_s23 }
  0x78   :  { %p13028_p8 = scmp.ne.s32.totalorder %s130_s23, %s13027_s4  ;;  %p13033_p10 = scmp.lt.s32.totalorder %s13027_s4, %s13027_s4 }
  0x7a   :  { %p13034_p11 = por %p13033_p10, %p13032_p9 }
  0x7c   :  { %p13035_p12 = pnand %p13034_p11, %p13028_p8 }
  0x7e   :  { %13038 = shalt.err (!%p13035_p12)
}
  0x7f   :  { %132 = dma.hbm_to_vmem [thread:$0]  %s14074_s8, 320, %s130_s23, [#allocation18]  }
  0x80   :  { %s13047_s14 = scalar_lea.vmem %s152_s25, 320  ;;  %p13052_p0 = scmp.lt.s32.totalorder %s152_s25, %s152_s25 }
  0x81   :  { %p13048_p13 = scmp.ne.s32.totalorder %s152_s25, %s13047_s14  ;;  %p13053_p1 = scmp.lt.s32.totalorder %s13047_s14, %s13047_s14 }
  0x83   :  { %p13054_p2 = por %p13053_p1, %p13052_p0 }
  0x85   :  { %p13055_p3 = pnand %p13054_p2, %p13048_p13 }
  0x87   :  { %13058 = shalt.err (!%p13055_p3)
}
  0x88   :  { %154 = dma.hbm_to_vmem [thread:$0]  %s14076_s10, 320, %s152_s25, [#allocation21]  }
  0x89   :  { %s13155_s11 = smov [#allocation25]   ;;  %s13156_s28 = smov [#allocation26]  }
  0x8a   :  { %s173_s27 = sshll.u32 %s13155_s11, 4  ;;  %s183_s29 = sshll.u32 %s13156_s28, 4  ;;  %s174_s27 = int_to_ptr.vmem [resolvable:$true] %s173_s27  ;;  %s184_s29 = int_to_ptr.vmem [resolvable:$true] %s183_s29 }
  0x8b   :  { %s13067_s0 = scalar_lea.vmem %s174_s27, 32  ;;  %p13072_p5 = scmp.lt.s32.totalorder %s174_s27, %s174_s27 }
  0x8c   :  { %p13068_p4 = scmp.ne.s32.totalorder %s174_s27, %s13067_s0  ;;  %p13073_p6 = scmp.lt.s32.totalorder %s13067_s0, %s13067_s0 }
  0x8e   :  { %p13074_p7 = por %p13073_p6, %p13072_p5 }
  0x90   :  { %p13075_p8 = pnand %p13074_p7, %p13068_p4 }
  0x92   :  { %13078 = shalt.err (!%p13075_p8)
}
  0x93   :  { %176 = dma.hbm_to_vmem [thread:$0]  %s14078_s12, 32, %s174_s27, [#allocation24]  }
  0x94   :  { %s13087_s30 = scalar_lea.vmem %s184_s29, 32  ;;  %p13092_p10 = scmp.lt.s32.totalorder %s184_s29, %s184_s29 }
  0x95   :  { %p13088_p9 = scmp.ne.s32.totalorder %s184_s29, %s13087_s30  ;;  %p13093_p11 = scmp.lt.s32.totalorder %s13087_s30, %s13087_s30 }
  0x97   :  { %p13094_p12 = por %p13093_p11, %p13092_p10 }
  0x99   :  { %p13095_p13 = pnand %p13094_p12, %p13088_p9 }
  0x9b   :  { %13098 = shalt.err (!%p13095_p13)
}
  0x9c   :  { %186 = dma.hbm_to_vmem [thread:$0]  %s14079_s13, 32, %s184_s29, [#allocation27]  }
  0x9d   :  { %13119 = dma.done.wait [#allocation6], 512  }
  0x9e   :  { %13120 = vsyncadd [#allocation6], 4294966784 }
  0x9f   :  { %13121 = dma.done.wait [#allocation9], 64  }
  0xa0   :  { %13122 = vsyncadd [#allocation9], 4294967232 }
  0xa1   :  { %13123 = dma.done.wait [#allocation12], 6176  }
  0xa2   :  { %13124 = vsyncadd [#allocation12], 4294961120 }
  0xa3   :  { %13125 = dma.done.wait [#allocation15], 123200  }
  0xa4   :  { %13126 = vsyncadd [#allocation15], 4294844096 }
  0xa5   :  { %13127 = dma.done.wait [#allocation18], 41280  }
  0xa6   :  { %13128 = vsyncadd [#allocation18], 4294926016 }
  0xa7   :  { %13129 = dma.done.wait [#allocation21], 41280  }
  0xa8   :  { %13130 = vsyncadd [#allocation21], 4294926016 }
  0xa9   :  { %13131 = dma.done.wait [#allocation24], 4128  }
  0xaa   :  { %13132 = vsyncadd [#allocation24], 4294963168 }
  0xab   :  { %13133 = dma.done.wait [#allocation27], 32  }
  0xac   :  { %13134 = vsyncadd [#allocation27], 4294967264  ;;  %v13157_v1 = vmov 0   ;;  %v11720_v2 = vld [vmem:[#allocation11 + $0x74] ss:$8 sps:$4 sm:$0xff]   ;;  %v241_v29 = vld [vmem:[#allocation5 + $0x8] sm:$0xff] }
  0xad   :  { %797 = vmatprep.mubr.bf16.mxu1 %v13157_v1  ;;  %818 = vst [vmem:[#allocation3 + $0x50] sm:$0xff] %v13157_v1  ;;  %233 = vst [vmem:[#allocation2 + $0x4] sm:$0xf] %v13157_v1  ;;  %v11722_v3 = vld [vmem:[#allocation11 + $0x174] ss:$8 sps:$4 sm:$0xff]   ;;  %712 = vmatprep.subr.bf16.mxu0 %v11720_v2  ;;  %vm312_vm0 = vcmask 1042432  }
  0xae   :  { %235 = vst [vmem:[#allocation2 + $0x1c] sm:$0xf] %v13157_v1  ;;  %236 = vst [vmem:[#allocation2 + $0x10] sm:$0xf] %v13157_v1  ;;  %v11724_v4 = vld [vmem:[#allocation11 + $0x70] ss:$8 sps:$4 sm:$0xff]   ;;  %765 = vmatprep.subr.bf16.mxu1 %v11722_v3 }
  0xaf   :  { %238 = vst [vmem:[#allocation2 + $0x28] sm:$0xf] %v13157_v1  ;;  %819 = vst [vmem:[#allocation3] sm:$0xff] %v13157_v1  ;;  %v11725_v5 = vld [vmem:[#allocation11 + $0x170] ss:$8 sps:$4 sm:$0xff]   ;;  %713 = vmatpush1.bf16.msra.mxu0 %v11724_v4  ;;  %v240_v28 = vld [vmem:[#allocation5] sm:$0xff] }
  0xb0   :  { %821 = vst [vmem:[#allocation3 + $0x38] sm:$0xff] %v13157_v1  ;;  %822 = vst [vmem:[#allocation3 + $0x40] sm:$0xff] %v13157_v1  ;;  %v11726_v6 = vld [vmem:[#allocation11 + $0x64] ss:$8 sps:$4 sm:$0xff]   ;;  %766 = vmatpush1.bf16.msra.mxu1 %v11725_v5  ;;  %v11730_v8 = vld [vmem:[#allocation11 + $0x60] ss:$8 sps:$4 sm:$0xff]   ;;  %v11685_v30 = vpack.c.bf16 %v241_v29, %v240_v28 }
  0xb1   :  { %824 = vst [vmem:[#allocation3 + $0x8] sm:$0xff] %v13157_v1  ;;  %v11728_v7 = vld [vmem:[#allocation11 + $0x164] ss:$8 sps:$4 sm:$0xff]   ;;  %714 = vmatprep.subr.bf16.mxu0 %v11726_v6  ;;  %v11731_v9 = vld [vmem:[#allocation11 + $0x160] ss:$8 sps:$4 sm:$0xff]   ;;  %v243_v50 = vld [vmem:[#allocation5 + $0x18] sm:$0xff] }
  0xb2   :  { %767 = vmatprep.subr.bf16.mxu1 %v11728_v7  ;;  %v11732_v10 = vld [vmem:[#allocation11 + $0x54] ss:$8 sps:$4 sm:$0xff]   ;;  %v11736_v12 = vld [vmem:[#allocation11 + $0x50] ss:$8 sps:$4 sm:$0xff]   ;;  %v11738_v14 = vld [vmem:[#allocation11 + $0x44] ss:$8 sps:$4 sm:$0xff]  }
  0xb3   :  { %v11734_v11 = vld [vmem:[#allocation11 + $0x154] ss:$8 sps:$4 sm:$0xff]   ;;  %v11737_v13 = vld [vmem:[#allocation11 + $0x150] ss:$8 sps:$4 sm:$0xff]   ;;  %715 = vmatpush1.bf16.msra.mxu0 %v11730_v8  ;;  %v11740_v15 = vld [vmem:[#allocation11 + $0x144] ss:$8 sps:$4 sm:$0xff]  }
  0xb4   :  { %768 = vmatpush1.bf16.msra.mxu1 %v11731_v9  ;;  %716 = vmatprep.subr.bf16.mxu0 %v11732_v10  ;;  %v11742_v16 = vld [vmem:[#allocation11 + $0x40] ss:$8 sps:$4 sm:$0xff]   ;;  %v11744_v18 = vld [vmem:[#allocation11 + $0x34] ss:$8 sps:$4 sm:$0xff]   ;;  %v11748_v20 = vld [vmem:[#allocation11 + $0x30] ss:$8 sps:$4 sm:$0xff]  }
  0xb5   :  { %769 = vmatprep.subr.bf16.mxu1 %v11734_v11  ;;  %v11743_v17 = vld [vmem:[#allocation11 + $0x140] ss:$8 sps:$4 sm:$0xff]   ;;  %v11746_v19 = vld [vmem:[#allocation11 + $0x134] ss:$8 sps:$4 sm:$0xff]   ;;  %v11749_v21 = vld [vmem:[#allocation11 + $0x130] ss:$8 sps:$4 sm:$0xff]  }
  0xb6   :  { %v11750_v22 = vld [vmem:[#allocation11 + $0x24] ss:$8 sps:$4 sm:$0xff]   ;;  %v11754_v24 = vld [vmem:[#allocation11 + $0x20] ss:$8 sps:$4 sm:$0xff]   ;;  %v11756_v26 = vld [vmem:[#allocation11 + $0x14] ss:$8 sps:$4 sm:$0xff]  }
  0xb7   :  { %717 = vmatpush1.bf16.msra.mxu0 %v11736_v12  ;;  %v11752_v23 = vld [vmem:[#allocation11 + $0x124] ss:$8 sps:$4 sm:$0xff]   ;;  %v11755_v25 = vld [vmem:[#allocation11 + $0x120] ss:$8 sps:$4 sm:$0xff]   ;;  %v11758_v27 = vld [vmem:[#allocation11 + $0x114] ss:$8 sps:$4 sm:$0xff]  }
  0xb8   :  { %770 = vmatpush1.bf16.msra.mxu1 %v11737_v13  ;;  %718 = vmatprep.subr.bf16.mxu0 %v11738_v14  ;;  %v11760_v31 = vld [vmem:[#allocation11 + $0x10] ss:$8 sps:$4 sm:$0xff]   ;;  %v11762_v33 = vld [vmem:[#allocation11 + $0x4] ss:$8 sps:$4 sm:$0xff]   ;;  %11692 = vst [vmem:[#allocation2 + $0x8] sm:$0xff] %v11685_v30   ;;  %vm4447_vm2 = vcmask 1044480  }
  0xb9   :  { %771 = vmatprep.subr.bf16.mxu1 %v11740_v15  ;;  %v11761_v32 = vld [vmem:[#allocation11 + $0x110] ss:$8 sps:$4 sm:$0xff]   ;;  %v11764_v34 = vld [vmem:[#allocation11 + $0x104] ss:$8 sps:$4 sm:$0xff]   ;;  %v11766_v35 = vld [vmem:[#allocation11] ss:$8 sps:$4 sm:$0xff]  }
  0xba   :  { %v11767_v36 = vld [vmem:[#allocation11 + $0x100] ss:$8 sps:$4 sm:$0xff]   ;;  %v11768_v37 = vld [vmem:[#allocation11 + $0xf4] ss:$8 sps:$4 sm:$0xff]   ;;  %v11772_v42 = vld [vmem:[#allocation11 + $0xf0] ss:$8 sps:$4 sm:$0xff]  }
  0xbb   :  { %719 = vmatpush1.bf16.msra.mxu0 %v11742_v16  ;;  %v11771_v38 = vld [vmem:[#allocation2 + $0x10] ss:$0 sps:$4 sm:$0x11]   ;;  %v1156_v39 = vld [vmem:[#allocation17 + $0x968] sm:$0xff]  ;;  %v242_v49 = vld [vmem:[#allocation5 + $0x10] sm:$0xff]  ;;  %vm4434_vm3 = vcmask 1041408  }
  0xbc   :  { %772 = vmatpush1.bf16.msra.mxu1 %v11743_v17  ;;  %720 = vmatprep.subr.bf16.mxu0 %v11744_v18  ;;  %v314_v44 = vrot.slane %v11771_v38, 5  ;;  %v11773_v45 = vld [vmem:[#allocation11 + $0xe4] ss:$8 sps:$4 sm:$0xff]   ;;  %v11775_v47 = vld [vmem:[#allocation11 + $0xe0] ss:$8 sps:$4 sm:$0xff]   ;;  %v11690_v56 = vpack.c.bf16 %v243_v50, %v242_v49  ;;  %v1155_v6 = vld [vmem:[#allocation17 + $0x960] sm:$0xff] }
  0xbd   :  { %773 = vmatprep.subr.bf16.mxu1 %v11746_v19  ;;  %v11776_v48 = vld [vmem:[#allocation11 + $0xd4] ss:$8 sps:$4 sm:$0xff]   ;;  %vm319_vm1 = vsmask.f32 4352  ;;  %v11778_v63 = vld [vmem:[#allocation11 + $0xd0] ss:$8 sps:$4 sm:$0xff]  }
  0xbe   :  { %11693 = vst [vmem:[#allocation2 + $0x20] sm:$0xff] %v11690_v56   ;;  %v11779_v2 = vld [vmem:[#allocation11 + $0xc4] ss:$8 sps:$4 sm:$0xff]   ;;  %v11786_v8 = vld [vmem:[#allocation2 + $0x28] ss:$0 sps:$4 sm:$0x11]  }
  0xbf   :  { %721 = vmatpush1.bf16.msra.mxu0 %v11748_v20  ;;  %v13315_v40 = vld [vmem:[#allocation2 + $0x8] sm:$0xf]  ;;  %v266_v41 = vld [vmem:[#allocation2 + $0xc] sm:$0xf]  ;;  %v1136_v7 = vld [vmem:[#allocation17 + $0x8c8] sm:$0xff]  ;;  %vm5523_vm4 = vcmask 1045504  }
  0xc0   :  { %774 = vmatpush1.bf16.msra.mxu1 %v11749_v21  ;;  %722 = vmatprep.subr.bf16.mxu0 %v11750_v22  ;;  %v10837_v43 = vcombine.low %v13315_v40, %v266_v41  ;;  %v11781_v11 = vld [vmem:[#allocation11 + $0xc0] ss:$8 sps:$4 sm:$0xff]   ;;  %v1135_v12 = vld [vmem:[#allocation17 + $0x8c0] sm:$0xff]  ;;  %v13325_v19 = vcombine.low %v266_v41, %v266_v41  ;;  %v317_v22 = vrot.slane %v11786_v8, 5  ;;  %v11787_v30 = vld [vmem:[#allocation11 + $0xa4] ss:$8 sps:$4 sm:$0xff]  }
  0xc1   :  { %775 = vmatprep.subr.bf16.mxu1 %v11752_v23  ;;  %v11782_v13 = vld [vmem:[#allocation11 + $0xb4] ss:$8 sps:$4 sm:$0xff]   ;;  %v267_v56 = vld [vmem:[#allocation2 + $0x1c] sm:$0x8]  ;;  %s13160_s12 = smov [#allocation28]  }
  0xc2   :  { %v313_v46 = vrot.slane %v10837_v43, 5  ;;  %v291_v51 = vshrl.u32 %v10837_v43, 16  ;;  %v294_v52 = vshll.u32 %v10837_v43, 16  ;;  %v1116_v16 = vld [vmem:[#allocation17 + $0x828] sm:$0xff]  ;;  %v1115_v20 = vld [vmem:[#allocation17 + $0x820] sm:$0xff]  ;;  %s10806_s13 = sshll.u32 %s13160_s12, 4  ;;  %s10807_s13 = int_to_ptr.vmem [resolvable:$true] %s10806_s13 }
  0xc3   :  { %723 = vmatpush1.bf16.msra.mxu0 %v11754_v24  ;;  %v1095_v28 = vld [vmem:[#allocation17 + $0x780] sm:$0xff]  ;;  %s13099_s17 = scalar_lea.vmem %s10807_s13, 1024  ;;  %p13104_p1 = scmp.lt.s32.totalorder %s10807_s13, %s10807_s13 }
  0xc4   :  { %776 = vmatpush1.bf16.msra.mxu1 %v11755_v25  ;;  %724 = vmatprep.subr.bf16.mxu0 %v11756_v26  ;;  %v315_v53 = vsel %vm312_vm0, %v313_v46, %v314_v44  ;;  %v347_v54 = vshrl.u32 %v313_v46, 16  ;;  %v350_v55 = vshll.u32 %v313_v46, 16  ;;  %v293_v3 = vrot.slane %v291_v51, 4  ;;  %v264_v25 = vld [vmem:[#allocation2 + $0x4] sm:$0x8]  ;;  %v1096_v26 = vld [vmem:[#allocation17 + $0x788] sm:$0xff]  ;;  %p13100_p0 = scmp.ne.s32.totalorder %s10807_s13, %s13099_s17  ;;  %p13105_p2 = scmp.lt.s32.totalorder %s13099_s17, %s13099_s17 }
  0xc5   :  { %777 = vmatprep.subr.bf16.mxu1 %v11758_v27  ;;  %v355_v57 = vshrl.u32 %v315_v53, 16  ;;  %v358_v58 = vshll.u32 %v315_v53, 16  ;;  %v296_v4 = vrot.slane %v294_v52, 5  ;;  %v13321_v17 = vld [vmem:[#allocation2 + $0x20] sm:$0xf] }
  0xc6   :  { %v349_v59 = vrot.slane %v347_v54, 3  ;;  %v352_v60 = vrot.slane %v350_v55, 4  ;;  %v13323_v18 = vld [vmem:[#allocation2 + $0x24] sm:$0xf]  ;;  %v11789_v44 = vld [vmem:[#allocation11 + $0xa0] ss:$8 sps:$4 sm:$0xff]   ;;  %p13106_p3 = por %p13105_p2, %p13104_p1 }
  0xc7   :  { %725 = vmatpush1.bf16.msra.mxu0 %v11760_v31  ;;  %v357_v61 = vrot.slane %v355_v57, 3  ;;  %v360_v62 = vrot.slane %v358_v58, 4  ;;  %v297_v9 = vor.u32 %v296_v4, %v293_v3  ;;  %v10838_v21 = vcombine.low %v13321_v17, %v13323_v18  ;;  %v11784_v27 = vld [vmem:[#allocation11 + $0xb0] ss:$8 sps:$4 sm:$0xff]   ;;  %v11790_v51 = vld [vmem:[#allocation11 + $0x94] ss:$8 sps:$4 sm:$0xff]  }
  0xc8   :  { %778 = vmatpush1.bf16.msra.mxu1 %v11761_v32  ;;  %726 = vmatprep.subr.bf16.mxu0 %v11762_v33  ;;  %v353_v0 = vor.u32 %v352_v60, %v349_v59  ;;  %v1076_v32 = vld [vmem:[#allocation17 + $0x6e8] sm:$0xff]  ;;  %v329_v33 = vshrl.u32 %v13325_v19, 16  ;;  %v1035_v57 = vld [vmem:[#allocation17 + $0x5a0] sm:$0xff]  ;;  %p13107_p4 = pnand %p13106_p3, %p13100_p0 }
  0xc9   :  { %779 = vmatprep.subr.bf16.mxu1 %v11764_v34  ;;  %v361_v5 = vor.u32 %v360_v62, %v357_v61  ;;  %v338_v14 = vshrl.u32 %v297_v9, 16  ;;  %v341_v15 = vshll.u32 %v297_v9, 16  ;;  %v316_v29 = vrot.slane %v10838_v21, 5  ;;  %v1016_v60 = vld [vmem:[#allocation17 + $0x508] sm:$0xff]  ;;  %v11792_v62 = vld [vmem:[#allocation11 + $0x90] ss:$8 sps:$4 sm:$0xff]  }
  0xca   :  { %v299_v34 = vshrl.u32 %v10838_v21, 16  ;;  %v331_v59 = vrot.slane %v329_v33, 3  ;;  %v1015_v3 = vld [vmem:[#allocation17 + $0x500] sm:$0xff]  ;;  %v11793_v4 = vld [vmem:[#allocation11 + $0x84] ss:$8 sps:$4 sm:$0xff]  }
  0xcb   :  { %727 = vmatpush1.bf16.msra.mxu0 %v11766_v35  ;;  %v362_v10 = vsel %vm319_vm1, %v353_v0, %v361_v5  ;;  %v340_v23 = vrot.slane %v338_v14, 3  ;;  %v343_v24 = vrot.slane %v341_v15, 4  ;;  %v302_v35 = vshll.u32 %v10838_v21, 16  ;;  %v975_v15 = vld [vmem:[#allocation17 + $0x3c0] sm:$0xff]  ;;  %v916_v33 = vld [vmem:[#allocation17 + $0x1e8] sm:$0xff] }
  0xcc   :  { %780 = vmatpush1.bf16.msra.mxu1 %v11767_v36  ;;  %728 = vmatprep.subr.bf16.mxu0 %v11768_v37  ;;  %v1075_v36 = vld [vmem:[#allocation17 + $0x6e0] sm:$0xff]  ;;  %v1056_v37 = vld [vmem:[#allocation17 + $0x648] sm:$0xff]  ;;  %v318_v38 = vsel %vm312_vm0, %v316_v29, %v317_v22  ;;  %v393_v41 = vshll.u32 %v316_v29, 16  ;;  %v301_v54 = vrot.slane %v299_v34, 4  ;;  %v10835_v5 = vcombine.low %v267_v56, %v13321_v17  ;;  %v1158_v22 = vld [vmem:[#allocation17 + $0x978] sm:$0xff] }
  0xcd   :  { %1281 = vmatprep.subr.mxu1 %v1156_v39  ;;  %v344_v31 = vor.u32 %v343_v24, %v340_v23  ;;  %v390_v39 = vshrl.u32 %v316_v29, 16  ;;  %v401_v43 = vshll.u32 %v318_v38, 16  ;;  %v304_v55 = vrot.slane %v302_v35, 5  ;;  %v1138_v34 = vld [vmem:[#allocation17 + $0x8d8] sm:$0xff] }
  0xce   :  { %v395_v50 = vrot.slane %v393_v41, 4  ;;  %v367_v17 = vshll.u32 %v10835_v5, 16  ;;  %v13158_v21 = vmov 0.0   ;;  %v1118_v41 = vld [vmem:[#allocation17 + $0x838] sm:$0xff] }
  0xcf   :  { %729 = vmatpush2.bf16.msra.mxu0 %v11772_v42  ;;  %798 = vmatmul.mubr.bf16.vlgmr.msra.gmra.mxu1 %v362_v10  ;;  %v398_v42 = vshrl.u32 %v318_v38, 16  ;;  %v392_v49 = vrot.slane %v390_v39, 3  ;;  %v403_v53 = vrot.slane %v401_v43, 4  ;;  %v305_v9 = vor.u32 %v304_v55, %v301_v54  ;;  %v995_v10 = vld [vmem:[#allocation17 + $0x460] sm:$0xff]  ;;  %v1137_v38 = vld [vmem:[#allocation17 + $0x8d0] sm:$0xff]  ;;  %v896_v39 = vld [vmem:[#allocation17 + $0x148] sm:$0xff] }
  0xd0   :  { %730 = vmatprep.subr.bf16.mxu0 %v11773_v45  ;;  %1282 = vmatpush1.msra.mxu1 %v1155_v6  ;;  %v10836_v6 = vcombine.low %v13323_v18, %v13323_v18  ;;  %v1160_v54 = vld [vmem:[#allocation17 + $0x988] sm:$0xff]  ;;  %v1159_v55 = vld [vmem:[#allocation17 + $0x980] sm:$0xff]  ;;  %v1078_v56 = vld [vmem:[#allocation17 + $0x6f8] sm:$0xff] }
  0xd1   :  { %807 = vmatprep.mubr.bf16.mxu1 %v13157_v1  ;;  %1283 = vmatprep.subr.mxu1 %v1136_v7  ;;  %v10833_v1 = vcombine.low %v264_v25, %v13315_v40  ;;  %v332_v40 = vshll.u32 %v13325_v19, 16  ;;  %v400_v52 = vrot.slane %v398_v42, 3  ;;  %v396_v58 = vor.u32 %v395_v50, %v392_v49  ;;  %v996_v7 = vld [vmem:[#allocation17 + $0x468] sm:$0xff]  ;;  %v955_v25 = vld [vmem:[#allocation17 + $0x320] sm:$0xff]  ;;  %v1117_v42 = vld [vmem:[#allocation17 + $0x830] sm:$0xff] }
  0xd2   :  { %1284 = vmatpush1.msra.mxu1 %v1135_v12  ;;  %744 = vmatprep.mubr.bf16.mxu0 %v344_v31  ;;  %v11795_v12 = vld [vmem:[#allocation11 + $0x80] ss:$8 sps:$4 sm:$0xff]   ;;  %v372_v18 = vshrl.u32 %v10836_v6, 16  ;;  %v375_v19 = vshll.u32 %v10836_v6, 16  ;;  %v381_v23 = vshrl.u32 %v305_v9, 16  ;;  %v384_v24 = vshll.u32 %v305_v9, 16 }
  0xd3   :  { %731 = vmatpush2.bf16.msra.mxu0 %v11775_v47  ;;  %1285 = vmatprep.subr.mxu1 %v1116_v16  ;;  %v321_v45 = vshrl.u32 %v10833_v1, 16  ;;  %v324_v46 = vshll.u32 %v10833_v1, 16  ;;  %v1055_v47 = vld [vmem:[#allocation17 + $0x640] sm:$0xff]  ;;  %v404_v61 = vor.u32 %v403_v53, %v400_v52  ;;  %v364_v16 = vshrl.u32 %v10835_v5, 16  ;;  %v856_v49 = vld [vmem:[#allocation17 + $0x8] sm:$0xff]  ;;  %v1097_v50 = vld [vmem:[#allocation17 + $0x790] sm:$0xff] }
  0xd4   :  { %732 = vmatprep.subr.bf16.mxu0 %v11776_v48  ;;  %1286 = vmatpush1.msra.mxu1 %v1115_v20  ;;  %v1036_v48 = vld [vmem:[#allocation17 + $0x5a8] sm:$0xff]  ;;  %v935_v1 = vld [vmem:[#allocation17 + $0x280] sm:$0xff]  ;;  %v374_v31 = vrot.slane %v372_v18, 3  ;;  %v383_v35 = vrot.slane %v381_v23, 3  ;;  %v1018_v5 = vld [vmem:[#allocation17 + $0x518] sm:$0xff] }
  0xd5   :  { %1287 = vmatprep.subr.mxu1 %v1096_v26  ;;  %v326_v0 = vrot.slane %v324_v46, 4  ;;  %v405_v8 = vsel %vm319_vm1, %v396_v58, %v404_v61  ;;  %v956_v20 = vld [vmem:[#allocation17 + $0x328] sm:$0xff]  ;;  %v366_v29 = vrot.slane %v364_v16, 3  ;;  %v1098_v46 = vld [vmem:[#allocation17 + $0x798] sm:$0xff]  ;;  %v13340_v53 = vld [vmem:[#allocation8] sm:$0x3] }
  0xd6   :  { %1288 = vmatpush1.msra.mxu1 %v1095_v28  ;;  %v936_v26 = vld [vmem:[#allocation17 + $0x288] sm:$0xff]  ;;  %v1157_v28 = vld [vmem:[#allocation17 + $0x970] sm:$0xff]  ;;  %v998_v9 = vld [vmem:[#allocation17 + $0x478] sm:$0xff] }
  0xd7   :  { %733 = vmatpush2.bf16.msra.mxu0 %v11778_v63  ;;  %1289 = vmatprep.subr.mxu1 %v1076_v32  ;;  %v323_v63 = vrot.slane %v321_v45, 3  ;;  %v377_v32 = vrot.slane %v375_v19, 4  ;;  %v876_v45 = vld [vmem:[#allocation17 + $0xa8] sm:$0xff]  ;;  %v1077_v58 = vld [vmem:[#allocation17 + $0x6f0] sm:$0xff]  ;;  %v1039_v16 = vld [vmem:[#allocation17 + $0x5c0] sm:$0xff] }
  0xd8   :  { %734 = vmatprep.subr.bf16.mxu0 %v11779_v2  ;;  %1290 = vmatpush1.msra.mxu1 %v1075_v36  ;;  %v334_v2 = vrot.slane %v332_v40, 4  ;;  %v386_v36 = vrot.slane %v384_v24, 4  ;;  %v895_v40 = vld [vmem:[#allocation17 + $0x140] sm:$0xff]  ;;  %v1120_v61 = vld [vmem:[#allocation17 + $0x848] sm:$0xff]  ;;  %v957_v19 = vld [vmem:[#allocation17 + $0x330] sm:$0xff] }
  0xd9   :  { %1291 = vmatprep.subr.mxu1 %v1056_v37  ;;  %808 = vmatmul.mubr.bf16.gmra.mxu1 %v405_v8  ;;  %v915_v37 = vld [vmem:[#allocation17 + $0x1e0] sm:$0xff]  ;;  %v1080_v6 = vld [vmem:[#allocation17 + $0x708] sm:$0xff]  ;;  %v937_v24 = vld [vmem:[#allocation17 + $0x290] sm:$0xff] }
  0xda   :  { %1292 = vmatpush1.msra.mxu1 %v1055_v47  ;;  %v335_v14 = vor.u32 %v334_v2, %v331_v59  ;;  %1345 = vmatprep.mubr.f32.mxu1 %v13158_v21  ;;  %v387_v47 = vor.u32 %v386_v36, %v383_v35  ;;  %v1139_v59 = vld [vmem:[#allocation17 + $0x8e0] sm:$0xff]  ;;  %v1100_v2 = vld [vmem:[#allocation17 + $0x7a8] sm:$0xff]  ;;  %v877_v35 = vld [vmem:[#allocation17 + $0xb0] sm:$0xff] }
  0xdb   :  { %735 = vmatpush2.bf16.msra.mxu0 %v11781_v11  ;;  %1293 = vmatprep.subr.mxu1 %v1036_v48  ;;  %v976_v11 = vld [vmem:[#allocation17 + $0x3c8] sm:$0xff]  ;;  %v875_v48 = vld [vmem:[#allocation17 + $0xa0] sm:$0xff] }
  0xdc   :  { %736 = vmatprep.subr.bf16.mxu0 %v11782_v13  ;;  %1294 = vmatpush1.msra.mxu1 %v1035_v57  ;;  %v327_v13 = vor.u32 %v326_v0, %v323_v63  ;;  %v1140_v57 = vld [vmem:[#allocation17 + $0x8e8] sm:$0xff]  ;;  %v1119_v63 = vld [vmem:[#allocation17 + $0x840] sm:$0xff]  ;;  %v1038_v0 = vld [vmem:[#allocation17 + $0x5b8] sm:$0xff] }
  0xdd   :  { %1295 = vmatprep.subr.mxu1 %v1016_v60  ;;  %v1058_v60 = vld [vmem:[#allocation17 + $0x658] sm:$0xff]  ;;  %v1079_v8 = vld [vmem:[#allocation17 + $0x700] sm:$0xff]  ;;  %v1020_v18 = vld [vmem:[#allocation17 + $0x528] sm:$0xff] }
  0xde   :  { %1296 = vmatpush1.msra.mxu1 %v1015_v3  ;;  %v1037_v3 = vld [vmem:[#allocation17 + $0x5b0] sm:$0xff]  ;;  %v1000_v23 = vld [vmem:[#allocation17 + $0x488] sm:$0xff]  ;;  %v939_v36 = vld [vmem:[#allocation17 + $0x2a0] sm:$0xff] }
  0xdf   :  { %737 = vmatpush2.bf16.msra.mxu0 %v11784_v27  ;;  %1297 = vmatprep.subr.mxu1 %v996_v7  ;;  %v336_v27 = vsel %vm319_vm1, %v327_v13, %v335_v14  ;;  %v1017_v7 = vld [vmem:[#allocation17 + $0x510] sm:$0xff]  ;;  %v978_v13 = vld [vmem:[#allocation17 + $0x3d8] sm:$0xff]  ;;  %v1040_v14 = vld [vmem:[#allocation17 + $0x5c8] sm:$0xff] }
  0xe0   :  { %738 = vmatprep.subr.bf16.mxu0 %v11787_v30  ;;  %1298 = vmatpush1.msra.mxu1 %v995_v10  ;;  %v369_v30 = vrot.slane %v367_v17, 4  ;;  %v1060_v10 = vld [vmem:[#allocation17 + $0x668] sm:$0xff]  ;;  %v958_v17 = vld [vmem:[#allocation17 + $0x338] sm:$0xff] }
  0xe1   :  { %1299 = vmatprep.subr.mxu1 %v976_v11  ;;  %v997_v11 = vld [vmem:[#allocation17 + $0x470] sm:$0xff] }
  0xe2   :  { %1300 = vmatpush1.msra.mxu1 %v975_v15  ;;  %v370_v43 = vor.u32 %v369_v30, %v366_v29  ;;  %v977_v15 = vld [vmem:[#allocation17 + $0x3d0] sm:$0xff]  ;;  %v898_v29 = vld [vmem:[#allocation17 + $0x158] sm:$0xff]  ;;  %v960_v30 = vld [vmem:[#allocation17 + $0x348] sm:$0xff] }
  0xe3   :  { %739 = vmatpush2.bf16.msra.mxu0 %v11789_v44  ;;  %1301 = vmatprep.subr.mxu1 %v956_v20  ;;  %v378_v44 = vor.u32 %v377_v32, %v374_v31  ;;  %v1019_v20 = vld [vmem:[#allocation17 + $0x520] sm:$0xff]  ;;  %v897_v31 = vld [vmem:[#allocation17 + $0x150] sm:$0xff] }
  0xe4   :  { %740 = vmatprep.subr.bf16.mxu0 %v11790_v51  ;;  %1302 = vmatpush1.msra.mxu1 %v955_v25  ;;  %v855_v51 = vld [vmem:[#allocation17] sm:$0xff] }
  0xe5   :  { %1303 = vmatprep.subr.mxu1 %v936_v26  ;;  %v379_v52 = vsel %vm319_vm1, %v370_v43, %v378_v44  ;;  %v999_v25 = vld [vmem:[#allocation17 + $0x480] sm:$0xff]  ;;  %v918_v26 = vld [vmem:[#allocation17 + $0x1f8] sm:$0xff]  ;;  %v880_v44 = vld [vmem:[#allocation17 + $0xc8] sm:$0xff] }
  0xe6   :  { %1304 = vmatpush1.msra.mxu1 %v935_v1  ;;  %v917_v1 = vld [vmem:[#allocation17 + $0x1f0] sm:$0xff]  ;;  %v959_v32 = vld [vmem:[#allocation17 + $0x340] sm:$0xff]  ;;  %v1162_v43 = vld [vmem:[#allocation17 + $0x998] sm:$0xff] }
  0xe7   :  { %741 = vmatpush2.bf16.msra.mxu0 %v11792_v62  ;;  %1305 = vmatprep.subr.mxu1 %v916_v33  ;;  %v1057_v62 = vld [vmem:[#allocation17 + $0x650] sm:$0xff]  ;;  %v878_v33 = vld [vmem:[#allocation17 + $0xb8] sm:$0xff] }
  0xe8   :  { %742 = vmatprep.subr.bf16.mxu0 %v11793_v4  ;;  %1306 = vmatpush1.msra.mxu1 %v915_v37  ;;  %v1099_v4 = vld [vmem:[#allocation17 + $0x7a0] sm:$0xff]  ;;  %v858_v37 = vld [vmem:[#allocation17 + $0x18] sm:$0xff] }
  0xe9   :  { %1307 = vmatprep.subr.mxu1 %v896_v39  ;;  %v857_v39 = vld [vmem:[#allocation17 + $0x10] sm:$0xff] }
  0xea   :  { %1308 = vmatpush1.msra.mxu1 %v895_v40  ;;  %v900_v40 = vld [vmem:[#allocation17 + $0x168] sm:$0xff] }
  0xeb   :  { %743 = vmatpush2.bf16.msra.mxu0 %v11795_v12  ;;  %1309 = vmatprep.subr.mxu1 %v876_v45  ;;  %v1059_v12 = vld [vmem:[#allocation17 + $0x660] sm:$0xff] }
  0xec   :  { %1352 = vmatprep.subr.mxu0 %v1158_v22  ;;  %1310 = vmatpush1.msra.mxu1 %v875_v48  ;;  %v938_v22 = vld [vmem:[#allocation17 + $0x298] sm:$0xff]  ;;  %v879_v45 = vld [vmem:[#allocation17 + $0xc0] sm:$0xff] }
  0xed   :  { %1311 = vmatprep.subr.mxu1 %v856_v49  ;;  %v1142_v48 = vld [vmem:[#allocation17 + $0x8f8] sm:$0xff]  ;;  %v859_v49 = vld [vmem:[#allocation17 + $0x20] sm:$0xff] }
  0xee   :  { %745 = vmatmul.mubr.bf16.vlgmr.msra.gmra.mxu0 %v336_v27  ;;  %1312 = vmatpush1.msra.mxu1 %v855_v51  ;;  %v980_v27 = vld [vmem:[#allocation17 + $0x3e8] sm:$0xff] }
  0xef   :  { %1353 = vmatpush1.msra.mxu0 %v1157_v28  ;;  %754 = vmatprep.mubr.bf16.mxu0 %v387_v47  ;;  %v979_v28 = vld [vmem:[#allocation17 + $0x3e0] sm:$0xff]  ;;  %v860_v47 = vld [vmem:[#allocation17 + $0x28] sm:$0xff] }
  0xf0   :  { %1354 = vmatprep.subr.mxu0 %v1138_v34  ;;  %1346 = vmatmul.mubr.f32.vlgmr.msra.gmra.mxu1 %v13340_v53  ;;  %v940_v34 = vld [vmem:[#allocation17 + $0x2a8] sm:$0xff] }
  0xf1   :  { %1355 = vmatpush1.msra.mxu0 %v1137_v38  ;;  %1423 = vmatprep.subr.mxu1 %v1160_v54  ;;  %v920_v38 = vld [vmem:[#allocation17 + $0x208] sm:$0xff]  ;;  %v1122_v54 = vld [vmem:[#allocation17 + $0x858] sm:$0xff] }
  0xf2   :  { %1356 = vmatprep.subr.mxu0 %v1118_v41  ;;  %1424 = vmatpush1.msra.mxu1 %v1159_v55  ;;  %v919_v41 = vld [vmem:[#allocation17 + $0x200] sm:$0xff]  ;;  %v1164_v51 = vld [vmem:[#allocation17 + $0x9a8] sm:$0xff] }
  0xf3   :  { %1357 = vmatpush1.msra.mxu0 %v1117_v42  ;;  %1425 = vmatprep.subr.mxu1 %v1140_v57  ;;  %v899_v42 = vld [vmem:[#allocation17 + $0x160] sm:$0xff]  ;;  %v1144_v55 = vld [vmem:[#allocation17 + $0x908] sm:$0xff] }
  0xf4   :  { %1358 = vmatprep.subr.mxu0 %v1098_v46  ;;  %1426 = vmatpush1.msra.mxu1 %v1139_v59  ;;  %v1161_v46 = vld [vmem:[#allocation17 + $0x990] sm:$0xff]  ;;  %v1143_v57 = vld [vmem:[#allocation17 + $0x900] sm:$0xff]  ;;  %v1124_v59 = vld [vmem:[#allocation17 + $0x868] sm:$0xff] }
  0xf5   :  { %1359 = vmatpush1.msra.mxu0 %v1097_v50  ;;  %1427 = vmatprep.subr.mxu1 %v1120_v61  ;;  %v1141_v50 = vld [vmem:[#allocation17 + $0x8f0] sm:$0xff]  ;;  %v1123_v61 = vld [vmem:[#allocation17 + $0x860] sm:$0xff] }
  0xf6   :  { %755 = vmatmul.mubr.bf16.gmra.mxu0 %v379_v52  ;;  %1360 = vmatprep.subr.mxu0 %v1078_v56  ;;  %v1163_v52 = vld [vmem:[#allocation17 + $0x9a0] sm:$0xff]  ;;  %v1121_v56 = vld [vmem:[#allocation17 + $0x850] sm:$0xff] }
  0xf7   :  { %1361 = vmatpush1.msra.mxu0 %v1077_v58  ;;  %1428 = vmatpush1.msra.mxu1 %v1119_v63  ;;  %v1102_v58 = vld [vmem:[#allocation17 + $0x7b8] sm:$0xff]  ;;  %v1104_v63 = vld [vmem:[#allocation17 + $0x7c8] sm:$0xff] }
  0xf8   :  { %1362 = vmatprep.subr.mxu0 %v1058_v60  ;;  %1429 = vmatprep.subr.mxu1 %v1100_v2  ;;  %v1101_v60 = vld [vmem:[#allocation17 + $0x7b0] sm:$0xff]  ;;  %v1103_v2 = vld [vmem:[#allocation17 + $0x7c0] sm:$0xff] }
  0xf9   :  { %1363 = vmatpush1.msra.mxu0 %v1057_v62  ;;  %1430 = vmatpush1.msra.mxu1 %v1099_v4  ;;  %v1082_v62 = vld [vmem:[#allocation17 + $0x718] sm:$0xff]  ;;  %v1084_v4 = vld [vmem:[#allocation17 + $0x728] sm:$0xff] }
  0xfa   :  { %1364 = vmatprep.subr.mxu0 %v1038_v0  ;;  %1431 = vmatprep.subr.mxu1 %v1080_v6  ;;  %v1081_v0 = vld [vmem:[#allocation17 + $0x710] sm:$0xff]  ;;  %v1083_v6 = vld [vmem:[#allocation17 + $0x720] sm:$0xff] }
  0xfb   :  { %1365 = vmatpush1.msra.mxu0 %v1037_v3  ;;  %1432 = vmatpush1.msra.mxu1 %v1079_v8  ;;  %v1062_v3 = vld [vmem:[#allocation17 + $0x678] sm:$0xff]  ;;  %v1064_v8 = vld [vmem:[#allocation17 + $0x688] sm:$0xff] }
  0xfc   :  { %1366 = vmatprep.subr.mxu0 %v1018_v5  ;;  %1433 = vmatprep.subr.mxu1 %v1060_v10  ;;  %v1061_v5 = vld [vmem:[#allocation17 + $0x670] sm:$0xff]  ;;  %v1063_v10 = vld [vmem:[#allocation17 + $0x680] sm:$0xff] }
  0xfd   :  { %1367 = vmatpush1.msra.mxu0 %v1017_v7  ;;  %1434 = vmatpush1.msra.mxu1 %v1059_v12  ;;  %v1042_v7 = vld [vmem:[#allocation17 + $0x5d8] sm:$0xff]  ;;  %v1044_v12 = vld [vmem:[#allocation17 + $0x5e8] sm:$0xff] }
  0xfe   :  { %1368 = vmatprep.subr.mxu0 %v998_v9  ;;  %1435 = vmatprep.subr.mxu1 %v1040_v14  ;;  %v1041_v9 = vld [vmem:[#allocation17 + $0x5d0] sm:$0xff]  ;;  %v1043_v14 = vld [vmem:[#allocation17 + $0x5e0] sm:$0xff] }
  0xff   :  { %1369 = vmatpush1.msra.mxu0 %v997_v11  ;;  %1436 = vmatpush1.msra.mxu1 %v1039_v16  ;;  %v1022_v11 = vld [vmem:[#allocation17 + $0x538] sm:$0xff]  ;;  %v1024_v16 = vld [vmem:[#allocation17 + $0x548] sm:$0xff] }
 0x100   :  { %1370 = vmatprep.subr.mxu0 %v978_v13  ;;  %1437 = vmatprep.subr.mxu1 %v1020_v18  ;;  %v1021_v13 = vld [vmem:[#allocation17 + $0x530] sm:$0xff]  ;;  %v1023_v18 = vld [vmem:[#allocation17 + $0x540] sm:$0xff] }
 0x101   :  { %1371 = vmatpush1.msra.mxu0 %v977_v15  ;;  %1438 = vmatpush1.msra.mxu1 %v1019_v20  ;;  %v1002_v15 = vld [vmem:[#allocation17 + $0x498] sm:$0xff]  ;;  %v1004_v20 = vld [vmem:[#allocation17 + $0x4a8] sm:$0xff] }
 0x102   :  { %1372 = vmatprep.subr.mxu0 %v958_v17  ;;  %1439 = vmatprep.subr.mxu1 %v1000_v23  ;;  %v1001_v17 = vld [vmem:[#allocation17 + $0x490] sm:$0xff]  ;;  %v1003_v23 = vld [vmem:[#allocation17 + $0x4a0] sm:$0xff] }
 0x103   :  { %1373 = vmatpush1.msra.mxu0 %v957_v19  ;;  %1440 = vmatpush1.msra.mxu1 %v999_v25  ;;  %v982_v19 = vld [vmem:[#allocation17 + $0x3f8] sm:$0xff]  ;;  %v984_v25 = vld [vmem:[#allocation17 + $0x408] sm:$0xff] }
 0x104   :  { %1374 = vmatprep.subr.mxu0 %v938_v22  ;;  %1441 = vmatprep.subr.mxu1 %v980_v27  ;;  %v981_v22 = vld [vmem:[#allocation17 + $0x3f0] sm:$0xff]  ;;  %v983_v27 = vld [vmem:[#allocation17 + $0x400] sm:$0xff] }
 0x105   :  { %1375 = vmatpush1.msra.mxu0 %v937_v24  ;;  %1442 = vmatpush1.msra.mxu1 %v979_v28  ;;  %v962_v24 = vld [vmem:[#allocation17 + $0x358] sm:$0xff]  ;;  %v964_v28 = vld [vmem:[#allocation17 + $0x368] sm:$0xff] }
 0x106   :  { %1376 = vmatprep.subr.mxu0 %v918_v26  ;;  %1443 = vmatprep.subr.mxu1 %v960_v30  ;;  %v961_v26 = vld [vmem:[#allocation17 + $0x350] sm:$0xff]  ;;  %v963_v30 = vld [vmem:[#allocation17 + $0x360] sm:$0xff] }
 0x107   :  { %1377 = vmatpush1.msra.mxu0 %v917_v1  ;;  %1444 = vmatpush1.msra.mxu1 %v959_v32  ;;  %v942_v1 = vld [vmem:[#allocation17 + $0x2b8] sm:$0xff]  ;;  %v944_v32 = vld [vmem:[#allocation17 + $0x2c8] sm:$0xff] }
 0x108   :  { %1378 = vmatprep.subr.mxu0 %v898_v29  ;;  %1445 = vmatprep.subr.mxu1 %v940_v34  ;;  %v941_v29 = vld [vmem:[#allocation17 + $0x2b0] sm:$0xff]  ;;  %v943_v34 = vld [vmem:[#allocation17 + $0x2c0] sm:$0xff] }
 0x109   :  { %1379 = vmatpush1.msra.mxu0 %v897_v31  ;;  %1446 = vmatpush1.msra.mxu1 %v939_v36  ;;  %v922_v31 = vld [vmem:[#allocation17 + $0x218] sm:$0xff]  ;;  %v924_v36 = vld [vmem:[#allocation17 + $0x228] sm:$0xff] }
 0x10a   :  { %1380 = vmatprep.subr.mxu0 %v878_v33  ;;  %1447 = vmatprep.subr.mxu1 %v920_v38  ;;  %v921_v33 = vld [vmem:[#allocation17 + $0x210] sm:$0xff]  ;;  %v923_v38 = vld [vmem:[#allocation17 + $0x220] sm:$0xff] }
 0x10b   :  { %1381 = vmatpush1.msra.mxu0 %v877_v35  ;;  %1448 = vmatpush1.msra.mxu1 %v919_v41  ;;  %v902_v35 = vld [vmem:[#allocation17 + $0x178] sm:$0xff]  ;;  %v904_v41 = vld [vmem:[#allocation17 + $0x188] sm:$0xff] }
 0x10c   :  { %1382 = vmatprep.subr.mxu0 %v858_v37  ;;  %1487 = vmatprep.mubr.f32.mxu1 %v13158_v21  ;;  %v901_v37 = vld [vmem:[#allocation17 + $0x170] sm:$0xff] }
 0x10d   :  { %1383 = vmatpush1.msra.mxu0 %v857_v39  ;;  %1449 = vmatprep.subr.mxu1 %v900_v40  ;;  %v882_v39 = vld [vmem:[#allocation17 + $0xd8] sm:$0xff]  ;;  %v881_v40 = vld [vmem:[#allocation17 + $0xd0] sm:$0xff] }
 0x10e   :  { %1416 = vmatprep.mubr.f32.mxu0 %v13158_v21  ;;  %1450 = vmatpush1.msra.mxu1 %v899_v42  ;;  %v903_v42 = vld [vmem:[#allocation17 + $0x180] sm:$0xff] }
 0x10f   :  { %1494 = vmatprep.subr.mxu0 %v1162_v43  ;;  %1451 = vmatprep.subr.mxu1 %v880_v44  ;;  %v862_v43 = vld [vmem:[#allocation17 + $0x38] sm:$0xff]  ;;  %v884_v44 = vld [vmem:[#allocation17 + $0xe8] sm:$0xff] }
 0x110   :  { %1417 = vmatmul.mubr.f32.vlgmr.msra.gmra.mxu0 %v13340_v53  ;;  %1452 = vmatpush1.msra.mxu1 %v879_v45  ;;  %v861_v45 = vld [vmem:[#allocation17 + $0x30] sm:$0xff] }
 0x111   :  { %1495 = vmatpush1.msra.mxu0 %v1161_v46  ;;  %1453 = vmatprep.subr.mxu1 %v860_v47  ;;  %v883_v46 = vld [vmem:[#allocation17 + $0xe0] sm:$0xff]  ;;  %v864_v47 = vld [vmem:[#allocation17 + $0x48] sm:$0xff] }
 0x112   :  { %1496 = vmatprep.subr.mxu0 %v1142_v48  ;;  %1454 = vmatpush1.msra.mxu1 %v859_v49  ;;  %v863_v48 = vld [vmem:[#allocation17 + $0x40] sm:$0xff]  ;;  %v1166_v49 = vld [vmem:[#allocation17 + $0x9b8] sm:$0xff] }
 0x113   :  { %1497 = vmatpush1.msra.mxu0 %v1141_v50  ;;  %1488 = vmatmul.mubr.f32.vlgmr.msra.gmra.mxu1 %v13340_v53  ;;  %v1168_v50 = vld [vmem:[#allocation17 + $0x9c8] sm:$0xff] }
 0x114   :  { %1565 = vmatprep.subr.mxu1 %v1164_v51  ;;  %1498 = vmatprep.subr.mxu0 %v1122_v54  ;;  %v1167_v51 = vld [vmem:[#allocation17 + $0x9c0] sm:$0xff]  ;;  %v1148_v54 = vld [vmem:[#allocation17 + $0x928] sm:$0xff] }
 0x115   :  { %1566 = vmatpush1.msra.mxu1 %v1163_v52  ;;  %1499 = vmatpush1.msra.mxu0 %v1121_v56  ;;  %v1165_v52 = vld [vmem:[#allocation17 + $0x9b0] sm:$0xff]  ;;  %v1147_v56 = vld [vmem:[#allocation17 + $0x920] sm:$0xff] }
 0x116   :  { %1567 = vmatprep.subr.mxu1 %v1144_v55  ;;  %1500 = vmatprep.subr.mxu0 %v1102_v58  ;;  %v1146_v55 = vld [vmem:[#allocation17 + $0x918] sm:$0xff]  ;;  %v1128_v58 = vld [vmem:[#allocation17 + $0x888] sm:$0xff] }
 0x117   :  { %1568 = vmatpush1.msra.mxu1 %v1143_v57  ;;  %1501 = vmatpush1.msra.mxu0 %v1101_v60  ;;  %v1145_v57 = vld [vmem:[#allocation17 + $0x910] sm:$0xff]  ;;  %v1127_v60 = vld [vmem:[#allocation17 + $0x880] sm:$0xff] }
 0x118   :  { %1569 = vmatprep.subr.mxu1 %v1124_v59  ;;  %1502 = vmatprep.subr.mxu0 %v1082_v62  ;;  %v1126_v59 = vld [vmem:[#allocation17 + $0x878] sm:$0xff]  ;;  %v1108_v62 = vld [vmem:[#allocation17 + $0x7e8] sm:$0xff] }
 0x119   :  { %1570 = vmatpush1.msra.mxu1 %v1123_v61  ;;  %1503 = vmatpush1.msra.mxu0 %v1081_v0  ;;  %v1125_v61 = vld [vmem:[#allocation17 + $0x870] sm:$0xff]  ;;  %v1107_v0 = vld [vmem:[#allocation17 + $0x7e0] sm:$0xff] }
 0x11a   :  { %1571 = vmatprep.subr.mxu1 %v1104_v63  ;;  %1504 = vmatprep.subr.mxu0 %v1062_v3  ;;  %v1106_v63 = vld [vmem:[#allocation17 + $0x7d8] sm:$0xff]  ;;  %v1088_v3 = vld [vmem:[#allocation17 + $0x748] sm:$0xff] }
 0x11b   :  { %1572 = vmatpush1.msra.mxu1 %v1103_v2  ;;  %1505 = vmatpush1.msra.mxu0 %v1061_v5  ;;  %v1105_v2 = vld [vmem:[#allocation17 + $0x7d0] sm:$0xff]  ;;  %v1087_v5 = vld [vmem:[#allocation17 + $0x740] sm:$0xff] }
 0x11c   :  { %1573 = vmatprep.subr.mxu1 %v1084_v4  ;;  %1506 = vmatprep.subr.mxu0 %v1042_v7  ;;  %v1086_v4 = vld [vmem:[#allocation17 + $0x738] sm:$0xff]  ;;  %v1068_v7 = vld [vmem:[#allocation17 + $0x6a8] sm:$0xff] }
 0x11d   :  { %1574 = vmatpush1.msra.mxu1 %v1083_v6  ;;  %1507 = vmatpush1.msra.mxu0 %v1041_v9  ;;  %v1085_v6 = vld [vmem:[#allocation17 + $0x730] sm:$0xff]  ;;  %v1067_v9 = vld [vmem:[#allocation17 + $0x6a0] sm:$0xff] }
 0x11e   :  { %1575 = vmatprep.subr.mxu1 %v1064_v8  ;;  %1508 = vmatprep.subr.mxu0 %v1022_v11  ;;  %v1066_v8 = vld [vmem:[#allocation17 + $0x698] sm:$0xff]  ;;  %v1048_v11 = vld [vmem:[#allocation17 + $0x608] sm:$0xff] }
 0x11f   :  { %1576 = vmatpush1.msra.mxu1 %v1063_v10  ;;  %1509 = vmatpush1.msra.mxu0 %v1021_v13  ;;  %v1065_v10 = vld [vmem:[#allocation17 + $0x690] sm:$0xff]  ;;  %v1047_v13 = vld [vmem:[#allocation17 + $0x600] sm:$0xff] }
 0x120   :  { %1577 = vmatprep.subr.mxu1 %v1044_v12  ;;  %1510 = vmatprep.subr.mxu0 %v1002_v15  ;;  %v1046_v12 = vld [vmem:[#allocation17 + $0x5f8] sm:$0xff]  ;;  %v1028_v15 = vld [vmem:[#allocation17 + $0x568] sm:$0xff] }
 0x121   :  { %1578 = vmatpush1.msra.mxu1 %v1043_v14  ;;  %1511 = vmatpush1.msra.mxu0 %v1001_v17  ;;  %v1045_v14 = vld [vmem:[#allocation17 + $0x5f0] sm:$0xff]  ;;  %v1027_v17 = vld [vmem:[#allocation17 + $0x560] sm:$0xff] }
 0x122   :  { %1579 = vmatprep.subr.mxu1 %v1024_v16  ;;  %1512 = vmatprep.subr.mxu0 %v982_v19  ;;  %v1026_v16 = vld [vmem:[#allocation17 + $0x558] sm:$0xff]  ;;  %v1008_v19 = vld [vmem:[#allocation17 + $0x4c8] sm:$0xff] }
 0x123   :  { %1580 = vmatpush1.msra.mxu1 %v1023_v18  ;;  %1513 = vmatpush1.msra.mxu0 %v981_v22  ;;  %v1025_v18 = vld [vmem:[#allocation17 + $0x550] sm:$0xff]  ;;  %v1007_v22 = vld [vmem:[#allocation17 + $0x4c0] sm:$0xff] }
 0x124   :  { %1581 = vmatprep.subr.mxu1 %v1004_v20  ;;  %1514 = vmatprep.subr.mxu0 %v962_v24  ;;  %v1006_v20 = vld [vmem:[#allocation17 + $0x4b8] sm:$0xff]  ;;  %v988_v24 = vld [vmem:[#allocation17 + $0x428] sm:$0xff] }
 0x125   :  { %1582 = vmatpush1.msra.mxu1 %v1003_v23  ;;  %1515 = vmatpush1.msra.mxu0 %v961_v26  ;;  %v1005_v23 = vld [vmem:[#allocation17 + $0x4b0] sm:$0xff]  ;;  %v987_v26 = vld [vmem:[#allocation17 + $0x420] sm:$0xff] }
 0x126   :  { %1583 = vmatprep.subr.mxu1 %v984_v25  ;;  %1516 = vmatprep.subr.mxu0 %v942_v1  ;;  %v986_v25 = vld [vmem:[#allocation17 + $0x418] sm:$0xff]  ;;  %v968_v1 = vld [vmem:[#allocation17 + $0x388] sm:$0xff] }
 0x127   :  { %1584 = vmatpush1.msra.mxu1 %v983_v27  ;;  %1517 = vmatpush1.msra.mxu0 %v941_v29  ;;  %v985_v27 = vld [vmem:[#allocation17 + $0x410] sm:$0xff]  ;;  %v967_v29 = vld [vmem:[#allocation17 + $0x380] sm:$0xff] }
 0x128   :  { %1585 = vmatprep.subr.mxu1 %v964_v28  ;;  %1518 = vmatprep.subr.mxu0 %v922_v31  ;;  %v966_v28 = vld [vmem:[#allocation17 + $0x378] sm:$0xff]  ;;  %v948_v31 = vld [vmem:[#allocation17 + $0x2e8] sm:$0xff] }
 0x129   :  { %1586 = vmatpush1.msra.mxu1 %v963_v30  ;;  %1519 = vmatpush1.msra.mxu0 %v921_v33  ;;  %v965_v30 = vld [vmem:[#allocation17 + $0x370] sm:$0xff]  ;;  %v947_v33 = vld [vmem:[#allocation17 + $0x2e0] sm:$0xff] }
 0x12a   :  { %1587 = vmatprep.subr.mxu1 %v944_v32  ;;  %1520 = vmatprep.subr.mxu0 %v902_v35  ;;  %v946_v32 = vld [vmem:[#allocation17 + $0x2d8] sm:$0xff]  ;;  %v928_v35 = vld [vmem:[#allocation17 + $0x248] sm:$0xff] }
 0x12b   :  { %1588 = vmatpush1.msra.mxu1 %v943_v34  ;;  %1521 = vmatpush1.msra.mxu0 %v901_v37  ;;  %v945_v34 = vld [vmem:[#allocation17 + $0x2d0] sm:$0xff]  ;;  %v927_v37 = vld [vmem:[#allocation17 + $0x240] sm:$0xff] }
 0x12c   :  { %1589 = vmatprep.subr.mxu1 %v924_v36  ;;  %1522 = vmatprep.subr.mxu0 %v882_v39  ;;  %v926_v36 = vld [vmem:[#allocation17 + $0x238] sm:$0xff]  ;;  %v908_v39 = vld [vmem:[#allocation17 + $0x1a8] sm:$0xff] }
 0x12d   :  { %1590 = vmatpush1.msra.mxu1 %v923_v38  ;;  %1523 = vmatpush1.msra.mxu0 %v881_v40  ;;  %v925_v38 = vld [vmem:[#allocation17 + $0x230] sm:$0xff]  ;;  %v907_v40 = vld [vmem:[#allocation17 + $0x1a0] sm:$0xff] }
 0x12e   :  { %1591 = vmatprep.subr.mxu1 %v904_v41  ;;  %1524 = vmatprep.subr.mxu0 %v862_v43  ;;  %v906_v41 = vld [vmem:[#allocation17 + $0x198] sm:$0xff]  ;;  %v888_v43 = vld [vmem:[#allocation17 + $0x108] sm:$0xff] }
 0x12f   :  { %1592 = vmatpush1.msra.mxu1 %v903_v42  ;;  %1525 = vmatpush1.msra.mxu0 %v861_v45  ;;  %v905_v42 = vld [vmem:[#allocation17 + $0x190] sm:$0xff]  ;;  %v887_v45 = vld [vmem:[#allocation17 + $0x100] sm:$0xff] }
 0x130   :  { %1593 = vmatprep.subr.mxu1 %v884_v44  ;;  %1629 = vmatprep.mubr.f32.mxu1 %v13158_v21  ;;  %v886_v44 = vld [vmem:[#allocation17 + $0xf8] sm:$0xff] }
 0x131   :  { %1594 = vmatpush1.msra.mxu1 %v883_v46  ;;  %1558 = vmatprep.mubr.f32.mxu0 %v13158_v21  ;;  %v885_v46 = vld [vmem:[#allocation17 + $0xf0] sm:$0xff] }
 0x132   :  { %1595 = vmatprep.subr.mxu1 %v864_v47  ;;  %1636 = vmatprep.subr.mxu0 %v1166_v49  ;;  %v868_v47 = vld [vmem:[#allocation17 + $0x68] sm:$0xff]  ;;  %v867_v49 = vld [vmem:[#allocation17 + $0x60] sm:$0xff] }
 0x133   :  { %1596 = vmatpush1.msra.mxu1 %v863_v48  ;;  %1559 = vmatmul.mubr.f32.vlgmr.msra.gmra.mxu0 %v13340_v53  ;;  %v866_v48 = vld [vmem:[#allocation17 + $0x58] sm:$0xff] }
 0x134   :  { %1630 = vmatmul.mubr.f32.vlgmr.msra.gmra.mxu1 %v13340_v53  ;;  %1707 = vmatprep.subr.mxu1 %v1168_v50  ;;  %v865_v50 = vld [vmem:[#allocation17 + $0x50] sm:$0xff] }
 0x135   :  { %1708 = vmatpush1.msra.mxu1 %v1167_v51  ;;  %1637 = vmatpush1.msra.mxu0 %v1165_v52  ;;  %v1170_v51 = vld [vmem:[#allocation17 + $0x9d8] sm:$0xff]  ;;  %v1172_v52 = vld [vmem:[#allocation17 + $0x9e8] sm:$0xff] }
 0x136   :  { %1709 = vmatprep.subr.mxu1 %v1148_v54  ;;  %1638 = vmatprep.subr.mxu0 %v1146_v55  ;;  %v1171_v54 = vld [vmem:[#allocation17 + $0x9e0] sm:$0xff]  ;;  %v1169_v55 = vld [vmem:[#allocation17 + $0x9d0] sm:$0xff] }
 0x137   :  { %1710 = vmatpush1.msra.mxu1 %v1147_v56  ;;  %1639 = vmatpush1.msra.mxu0 %v1145_v57  ;;  %v1152_v56 = vld [vmem:[#allocation17 + $0x948] sm:$0xff]  ;;  %v1150_v57 = vld [vmem:[#allocation17 + $0x938] sm:$0xff] }
 0x138   :  { %1711 = vmatprep.subr.mxu1 %v1128_v58  ;;  %1640 = vmatprep.subr.mxu0 %v1126_v59  ;;  %v1151_v58 = vld [vmem:[#allocation17 + $0x940] sm:$0xff]  ;;  %v1149_v59 = vld [vmem:[#allocation17 + $0x930] sm:$0xff] }
 0x139   :  { %1712 = vmatpush1.msra.mxu1 %v1127_v60  ;;  %1641 = vmatpush1.msra.mxu0 %v1125_v61  ;;  %v1132_v60 = vld [vmem:[#allocation17 + $0x8a8] sm:$0xff]  ;;  %v1130_v61 = vld [vmem:[#allocation17 + $0x898] sm:$0xff] }
 0x13a   :  { %1713 = vmatprep.subr.mxu1 %v1108_v62  ;;  %1642 = vmatprep.subr.mxu0 %v1106_v63  ;;  %v1131_v62 = vld [vmem:[#allocation17 + $0x8a0] sm:$0xff]  ;;  %v1129_v63 = vld [vmem:[#allocation17 + $0x890] sm:$0xff] }
 0x13b   :  { %1714 = vmatpush1.msra.mxu1 %v1107_v0  ;;  %1643 = vmatpush1.msra.mxu0 %v1105_v2  ;;  %v1112_v0 = vld [vmem:[#allocation17 + $0x808] sm:$0xff]  ;;  %v1110_v2 = vld [vmem:[#allocation17 + $0x7f8] sm:$0xff] }
 0x13c   :  { %1715 = vmatprep.subr.mxu1 %v1088_v3  ;;  %1644 = vmatprep.subr.mxu0 %v1086_v4  ;;  %v1111_v3 = vld [vmem:[#allocation17 + $0x800] sm:$0xff]  ;;  %v1109_v4 = vld [vmem:[#allocation17 + $0x7f0] sm:$0xff] }
 0x13d   :  { %1716 = vmatpush1.msra.mxu1 %v1087_v5  ;;  %1645 = vmatpush1.msra.mxu0 %v1085_v6  ;;  %v1092_v5 = vld [vmem:[#allocation17 + $0x768] sm:$0xff]  ;;  %v1091_v6 = vld [vmem:[#allocation17 + $0x760] sm:$0xff] }
 0x13e   :  { %1717 = vmatprep.subr.mxu1 %v1068_v7  ;;  %1646 = vmatprep.subr.mxu0 %v1066_v8  ;;  %v1089_v7 = vld [vmem:[#allocation17 + $0x750] sm:$0xff]  ;;  %v1072_v8 = vld [vmem:[#allocation17 + $0x6c8] sm:$0xff] }
 0x13f   :  { %1718 = vmatpush1.msra.mxu1 %v1067_v9  ;;  %1647 = vmatpush1.msra.mxu0 %v1065_v10  ;;  %v1070_v9 = vld [vmem:[#allocation17 + $0x6b8] sm:$0xff]  ;;  %v1071_v10 = vld [vmem:[#allocation17 + $0x6c0] sm:$0xff] }
 0x140   :  { %1719 = vmatprep.subr.mxu1 %v1048_v11  ;;  %1648 = vmatprep.subr.mxu0 %v1046_v12  ;;  %v1069_v11 = vld [vmem:[#allocation17 + $0x6b0] sm:$0xff]  ;;  %v1052_v12 = vld [vmem:[#allocation17 + $0x628] sm:$0xff] }
 0x141   :  { %1720 = vmatpush1.msra.mxu1 %v1047_v13  ;;  %1649 = vmatpush1.msra.mxu0 %v1045_v14  ;;  %v1050_v13 = vld [vmem:[#allocation17 + $0x618] sm:$0xff]  ;;  %v1051_v14 = vld [vmem:[#allocation17 + $0x620] sm:$0xff] }
 0x142   :  { %1721 = vmatprep.subr.mxu1 %v1028_v15  ;;  %1650 = vmatprep.subr.mxu0 %v1026_v16  ;;  %v1049_v15 = vld [vmem:[#allocation17 + $0x610] sm:$0xff]  ;;  %v1032_v16 = vld [vmem:[#allocation17 + $0x588] sm:$0xff] }
 0x143   :  { %1722 = vmatpush1.msra.mxu1 %v1027_v17  ;;  %1651 = vmatpush1.msra.mxu0 %v1025_v18  ;;  %v1030_v17 = vld [vmem:[#allocation17 + $0x578] sm:$0xff]  ;;  %v1031_v18 = vld [vmem:[#allocation17 + $0x580] sm:$0xff] }
 0x144   :  { %1723 = vmatprep.subr.mxu1 %v1008_v19  ;;  %1652 = vmatprep.subr.mxu0 %v1006_v20  ;;  %v1029_v19 = vld [vmem:[#allocation17 + $0x570] sm:$0xff]  ;;  %v1012_v20 = vld [vmem:[#allocation17 + $0x4e8] sm:$0xff] }
 0x145   :  { %1724 = vmatpush1.msra.mxu1 %v1007_v22  ;;  %1653 = vmatpush1.msra.mxu0 %v1005_v23  ;;  %v1010_v22 = vld [vmem:[#allocation17 + $0x4d8] sm:$0xff]  ;;  %v1011_v23 = vld [vmem:[#allocation17 + $0x4e0] sm:$0xff] }
 0x146   :  { %1725 = vmatprep.subr.mxu1 %v988_v24  ;;  %1654 = vmatprep.subr.mxu0 %v986_v25  ;;  %v1009_v24 = vld [vmem:[#allocation17 + $0x4d0] sm:$0xff]  ;;  %v992_v25 = vld [vmem:[#allocation17 + $0x448] sm:$0xff] }
 0x147   :  { %1726 = vmatpush1.msra.mxu1 %v987_v26  ;;  %1655 = vmatpush1.msra.mxu0 %v985_v27  ;;  %v990_v26 = vld [vmem:[#allocation17 + $0x438] sm:$0xff]  ;;  %v991_v27 = vld [vmem:[#allocation17 + $0x440] sm:$0xff] }
 0x148   :  { %1727 = vmatprep.subr.mxu1 %v968_v1  ;;  %1656 = vmatprep.subr.mxu0 %v966_v28  ;;  %v989_v1 = vld [vmem:[#allocation17 + $0x430] sm:$0xff]  ;;  %v972_v28 = vld [vmem:[#allocation17 + $0x3a8] sm:$0xff] }
 0x149   :  { %1728 = vmatpush1.msra.mxu1 %v967_v29  ;;  %1657 = vmatpush1.msra.mxu0 %v965_v30  ;;  %v970_v29 = vld [vmem:[#allocation17 + $0x398] sm:$0xff]  ;;  %v971_v30 = vld [vmem:[#allocation17 + $0x3a0] sm:$0xff] }
 0x14a   :  { %1729 = vmatprep.subr.mxu1 %v948_v31  ;;  %1658 = vmatprep.subr.mxu0 %v946_v32  ;;  %v969_v31 = vld [vmem:[#allocation17 + $0x390] sm:$0xff]  ;;  %v952_v32 = vld [vmem:[#allocation17 + $0x308] sm:$0xff] }
 0x14b   :  { %1730 = vmatpush1.msra.mxu1 %v947_v33  ;;  %1659 = vmatpush1.msra.mxu0 %v945_v34  ;;  %v950_v33 = vld [vmem:[#allocation17 + $0x2f8] sm:$0xff]  ;;  %v951_v34 = vld [vmem:[#allocation17 + $0x300] sm:$0xff] }
 0x14c   :  { %1731 = vmatprep.subr.mxu1 %v928_v35  ;;  %1660 = vmatprep.subr.mxu0 %v926_v36  ;;  %v949_v35 = vld [vmem:[#allocation17 + $0x2f0] sm:$0xff]  ;;  %v932_v36 = vld [vmem:[#allocation17 + $0x268] sm:$0xff] }
 0x14d   :  { %1732 = vmatpush1.msra.mxu1 %v927_v37  ;;  %1661 = vmatpush1.msra.mxu0 %v925_v38  ;;  %v930_v37 = vld [vmem:[#allocation17 + $0x258] sm:$0xff]  ;;  %v931_v38 = vld [vmem:[#allocation17 + $0x260] sm:$0xff] }
 0x14e   :  { %1733 = vmatprep.subr.mxu1 %v908_v39  ;;  %1662 = vmatprep.subr.mxu0 %v906_v41  ;;  %v929_v39 = vld [vmem:[#allocation17 + $0x250] sm:$0xff]  ;;  %v912_v41 = vld [vmem:[#allocation17 + $0x1c8] sm:$0xff] }
 0x14f   :  { %1734 = vmatpush1.msra.mxu1 %v907_v40  ;;  %1663 = vmatpush1.msra.mxu0 %v905_v42  ;;  %v910_v40 = vld [vmem:[#allocation17 + $0x1b8] sm:$0xff]  ;;  %v911_v42 = vld [vmem:[#allocation17 + $0x1c0] sm:$0xff] }
 0x150   :  { %1735 = vmatprep.subr.mxu1 %v888_v43  ;;  %1664 = vmatprep.subr.mxu0 %v886_v44  ;;  %v909_v43 = vld [vmem:[#allocation17 + $0x1b0] sm:$0xff]  ;;  %v892_v44 = vld [vmem:[#allocation17 + $0x128] sm:$0xff] }
 0x151   :  { %1736 = vmatpush1.msra.mxu1 %v887_v45  ;;  %1665 = vmatpush1.msra.mxu0 %v885_v46  ;;  %v890_v45 = vld [vmem:[#allocation17 + $0x118] sm:$0xff]  ;;  %v891_v46 = vld [vmem:[#allocation17 + $0x120] sm:$0xff] }
 0x152   :  { %1737 = vmatprep.subr.mxu1 %v868_v47  ;;  %1666 = vmatprep.subr.mxu0 %v866_v48  ;;  %v889_v47 = vld [vmem:[#allocation17 + $0x110] sm:$0xff]  ;;  %v872_v48 = vld [vmem:[#allocation17 + $0x88] sm:$0xff] }
 0x153   :  { %1738 = vmatpush1.msra.mxu1 %v867_v49  ;;  %1667 = vmatpush1.msra.mxu0 %v865_v50  ;;  %v870_v49 = vld [vmem:[#allocation17 + $0x78] sm:$0xff]  ;;  %v871_v50 = vld [vmem:[#allocation17 + $0x80] sm:$0xff] }
 0x154   :  { %1771 = vmatprep.mubr.f32.mxu1 %v13158_v21  ;;  %1700 = vmatprep.mubr.f32.mxu0 %v13158_v21 }
 0x155   :  { %1772 = vmatmul.mubr.f32.vlgmr.msra.gmra.mxu1 %v13340_v53  ;;  %1778 = vmatprep.subr.mxu0 %v1170_v51  ;;  %v869_v51 = vld [vmem:[#allocation17 + $0x70] sm:$0xff] }
 0x156   :  { %1849 = vmatprep.subr.mxu1 %v1172_v52  ;;  %1701 = vmatmul.mubr.f32.vlgmr.msra.gmra.mxu0 %v13340_v53  ;;  %v1090_v53 = vld [vmem:[#allocation17 + $0x758] sm:$0xff] }
 0x157   :  { %1850 = vmatpush1.msra.mxu1 %v1171_v54  ;;  %1779 = vmatpush1.msra.mxu0 %v1169_v55  ;;  %v1174_v52 = vld [vmem:[#allocation17 + $0x9f8] sm:$0xff] }
 0x158   :  { %1851 = vmatprep.subr.mxu1 %v1152_v56  ;;  %1780 = vmatprep.subr.mxu0 %v1150_v57  ;;  %v2293_v54 = vld [vmem:[#allocation20 + $0x968] sm:$0xff]  ;;  %v2292_v55 = vld [vmem:[#allocation20 + $0x960] sm:$0xff]  ;;  %v13357_v56 = vld [vmem:[#allocation8] sm:$0x3] }
 0x159   :  { %1852 = vmatpush1.msra.mxu1 %v1151_v58  ;;  %1781 = vmatpush1.msra.mxu0 %v1149_v59  ;;  %v1173_v57 = vld [vmem:[#allocation17 + $0x9f0] sm:$0xff]  ;;  %v2273_v58 = vld [vmem:[#allocation20 + $0x8c8] sm:$0xff] }
 0x15a   :  { %1853 = vmatprep.subr.mxu1 %v1132_v60  ;;  %1782 = vmatprep.subr.mxu0 %v1130_v61  ;;  %v1154_v59 = vld [vmem:[#allocation17 + $0x958] sm:$0xff]  ;;  %v1153_v61 = vld [vmem:[#allocation17 + $0x950] sm:$0xff] }
 0x15b   :  { %1854 = vmatpush1.msra.mxu1 %v1131_v62  ;;  %1783 = vmatpush1.msra.mxu0 %v1129_v63  ;;  %v2272_v60 = vld [vmem:[#allocation20 + $0x8c0] sm:$0xff]  ;;  %v2253_v62 = vld [vmem:[#allocation20 + $0x828] sm:$0xff] }
 0x15c   :  { %1855 = vmatprep.subr.mxu1 %v1112_v0  ;;  %1784 = vmatprep.subr.mxu0 %v1110_v2  ;;  %v1134_v63 = vld [vmem:[#allocation17 + $0x8b8] sm:$0xff]  ;;  %v1133_v2 = vld [vmem:[#allocation17 + $0x8b0] sm:$0xff] }
 0x15d   :  { %1856 = vmatpush1.msra.mxu1 %v1111_v3  ;;  %1785 = vmatpush1.msra.mxu0 %v1109_v4  ;;  %v2252_v0 = vld [vmem:[#allocation20 + $0x820] sm:$0xff]  ;;  %v2233_v3 = vld [vmem:[#allocation20 + $0x788] sm:$0xff] }
 0x15e   :  { %1857 = vmatprep.subr.mxu1 %v1092_v5  ;;  %1786 = vmatprep.subr.mxu0 %v1090_v53  ;;  %v1114_v4 = vld [vmem:[#allocation17 + $0x818] sm:$0xff]  ;;  %v1113_v53 = vld [vmem:[#allocation17 + $0x810] sm:$0xff] }
 0x15f   :  { %1858 = vmatpush1.msra.mxu1 %v1091_v6  ;;  %1787 = vmatpush1.msra.mxu0 %v1089_v7  ;;  %v2232_v5 = vld [vmem:[#allocation20 + $0x780] sm:$0xff]  ;;  %v2213_v6 = vld [vmem:[#allocation20 + $0x6e8] sm:$0xff] }
 0x160   :  { %1859 = vmatprep.subr.mxu1 %v1072_v8  ;;  %1788 = vmatprep.subr.mxu0 %v1070_v9  ;;  %v1094_v7 = vld [vmem:[#allocation17 + $0x778] sm:$0xff]  ;;  %v1093_v9 = vld [vmem:[#allocation17 + $0x770] sm:$0xff] }
 0x161   :  { %1860 = vmatpush1.msra.mxu1 %v1071_v10  ;;  %1789 = vmatpush1.msra.mxu0 %v1069_v11  ;;  %v2212_v8 = vld [vmem:[#allocation20 + $0x6e0] sm:$0xff]  ;;  %v2193_v10 = vld [vmem:[#allocation20 + $0x648] sm:$0xff] }
 0x162   :  { %1861 = vmatprep.subr.mxu1 %v1052_v12  ;;  %1790 = vmatprep.subr.mxu0 %v1050_v13  ;;  %v1074_v11 = vld [vmem:[#allocation17 + $0x6d8] sm:$0xff]  ;;  %v1073_v13 = vld [vmem:[#allocation17 + $0x6d0] sm:$0xff] }
 0x163   :  { %1862 = vmatpush1.msra.mxu1 %v1051_v14  ;;  %1791 = vmatpush1.msra.mxu0 %v1049_v15  ;;  %v2192_v12 = vld [vmem:[#allocation20 + $0x640] sm:$0xff]  ;;  %v2173_v14 = vld [vmem:[#allocation20 + $0x5a8] sm:$0xff] }
 0x164   :  { %1863 = vmatprep.subr.mxu1 %v1032_v16  ;;  %1792 = vmatprep.subr.mxu0 %v1030_v17  ;;  %v1054_v15 = vld [vmem:[#allocation17 + $0x638] sm:$0xff]  ;;  %v1053_v17 = vld [vmem:[#allocation17 + $0x630] sm:$0xff] }
 0x165   :  { %1864 = vmatpush1.msra.mxu1 %v1031_v18  ;;  %1793 = vmatpush1.msra.mxu0 %v1029_v19  ;;  %v2172_v16 = vld [vmem:[#allocation20 + $0x5a0] sm:$0xff]  ;;  %v2153_v18 = vld [vmem:[#allocation20 + $0x508] sm:$0xff] }
 0x166   :  { %1865 = vmatprep.subr.mxu1 %v1012_v20  ;;  %1794 = vmatprep.subr.mxu0 %v1010_v22  ;;  %v1034_v19 = vld [vmem:[#allocation17 + $0x598] sm:$0xff]  ;;  %v1033_v22 = vld [vmem:[#allocation17 + $0x590] sm:$0xff] }
 0x167   :  { %1866 = vmatpush1.msra.mxu1 %v1011_v23  ;;  %1795 = vmatpush1.msra.mxu0 %v1009_v24  ;;  %v2152_v20 = vld [vmem:[#allocation20 + $0x500] sm:$0xff]  ;;  %v2133_v23 = vld [vmem:[#allocation20 + $0x468] sm:$0xff] }
 0x168   :  { %1867 = vmatprep.subr.mxu1 %v992_v25  ;;  %1796 = vmatprep.subr.mxu0 %v990_v26  ;;  %v1014_v24 = vld [vmem:[#allocation17 + $0x4f8] sm:$0xff]  ;;  %v1013_v26 = vld [vmem:[#allocation17 + $0x4f0] sm:$0xff] }
 0x169   :  { %1868 = vmatpush1.msra.mxu1 %v991_v27  ;;  %1797 = vmatpush1.msra.mxu0 %v989_v1  ;;  %v2132_v25 = vld [vmem:[#allocation20 + $0x460] sm:$0xff]  ;;  %v2113_v27 = vld [vmem:[#allocation20 + $0x3c8] sm:$0xff] }
 0x16a   :  { %1869 = vmatprep.subr.mxu1 %v972_v28  ;;  %1798 = vmatprep.subr.mxu0 %v970_v29  ;;  %v994_v1 = vld [vmem:[#allocation17 + $0x458] sm:$0xff]  ;;  %v993_v29 = vld [vmem:[#allocation17 + $0x450] sm:$0xff] }
 0x16b   :  { %1870 = vmatpush1.msra.mxu1 %v971_v30  ;;  %1799 = vmatpush1.msra.mxu0 %v969_v31  ;;  %v2112_v28 = vld [vmem:[#allocation20 + $0x3c0] sm:$0xff]  ;;  %v2093_v30 = vld [vmem:[#allocation20 + $0x328] sm:$0xff] }
 0x16c   :  { %1871 = vmatprep.subr.mxu1 %v952_v32  ;;  %1800 = vmatprep.subr.mxu0 %v950_v33  ;;  %v974_v31 = vld [vmem:[#allocation17 + $0x3b8] sm:$0xff]  ;;  %v973_v33 = vld [vmem:[#allocation17 + $0x3b0] sm:$0xff] }
 0x16d   :  { %1872 = vmatpush1.msra.mxu1 %v951_v34  ;;  %1801 = vmatpush1.msra.mxu0 %v949_v35  ;;  %v2092_v32 = vld [vmem:[#allocation20 + $0x320] sm:$0xff]  ;;  %v2073_v34 = vld [vmem:[#allocation20 + $0x288] sm:$0xff] }
 0x16e   :  { %1873 = vmatprep.subr.mxu1 %v932_v36  ;;  %1802 = vmatprep.subr.mxu0 %v930_v37  ;;  %v954_v35 = vld [vmem:[#allocation17 + $0x318] sm:$0xff]  ;;  %v953_v37 = vld [vmem:[#allocation17 + $0x310] sm:$0xff] }
 0x16f   :  { %1874 = vmatpush1.msra.mxu1 %v931_v38  ;;  %1803 = vmatpush1.msra.mxu0 %v929_v39  ;;  %v2072_v36 = vld [vmem:[#allocation20 + $0x280] sm:$0xff]  ;;  %v2053_v38 = vld [vmem:[#allocation20 + $0x1e8] sm:$0xff] }
 0x170   :  { %1875 = vmatprep.subr.mxu1 %v912_v41  ;;  %1804 = vmatprep.subr.mxu0 %v910_v40  ;;  %v934_v39 = vld [vmem:[#allocation17 + $0x278] sm:$0xff]  ;;  %v933_v40 = vld [vmem:[#allocation17 + $0x270] sm:$0xff] }
 0x171   :  { %1876 = vmatpush1.msra.mxu1 %v911_v42  ;;  %1805 = vmatpush1.msra.mxu0 %v909_v43  ;;  %v2052_v41 = vld [vmem:[#allocation20 + $0x1e0] sm:$0xff]  ;;  %v2033_v42 = vld [vmem:[#allocation20 + $0x148] sm:$0xff] }
 0x172   :  { %1877 = vmatprep.subr.mxu1 %v892_v44  ;;  %1806 = vmatprep.subr.mxu0 %v890_v45  ;;  %v914_v43 = vld [vmem:[#allocation17 + $0x1d8] sm:$0xff]  ;;  %v913_v45 = vld [vmem:[#allocation17 + $0x1d0] sm:$0xff] }
 0x173   :  { %1878 = vmatpush1.msra.mxu1 %v891_v46  ;;  %1807 = vmatpush1.msra.mxu0 %v889_v47  ;;  %v2032_v44 = vld [vmem:[#allocation20 + $0x140] sm:$0xff]  ;;  %v2013_v46 = vld [vmem:[#allocation20 + $0xa8] sm:$0xff] }
 0x174   :  { %1879 = vmatprep.subr.mxu1 %v872_v48  ;;  %1808 = vmatprep.subr.mxu0 %v870_v49  ;;  %v894_v47 = vld [vmem:[#allocation17 + $0x138] sm:$0xff]  ;;  %v893_v49 = vld [vmem:[#allocation17 + $0x130] sm:$0xff] }
 0x175   :  { %1880 = vmatpush1.msra.mxu1 %v871_v50  ;;  %1809 = vmatpush1.msra.mxu0 %v869_v51  ;;  %v2012_v48 = vld [vmem:[#allocation20 + $0xa0] sm:$0xff]  ;;  %v1993_v50 = vld [vmem:[#allocation20 + $0x8] sm:$0xff] }
 0x176   :  { %1913 = vmatprep.mubr.f32.mxu1 %v13158_v21  ;;  %1842 = vmatprep.mubr.f32.mxu0 %v13158_v21  ;;  %v874_v51 = vld [vmem:[#allocation17 + $0x98] sm:$0xff] }
 0x177   :  { %1914 = vmatmul.mubr.f32.vlgmr.msra.gmra.mxu1 %v13357_v56  ;;  %1920 = vmatprep.subr.mxu0 %v1174_v52  ;;  %v1992_v52 = vld [vmem:[#allocation20] sm:$0xff] }
 0x178   :  { %2418 = vmatprep.subr.mxu1 %v2293_v54  ;;  %1843 = vmatmul.mubr.f32.vlgmr.msra.gmra.mxu0 %v13357_v56  ;;  %v873_v54 = vld [vmem:[#allocation17 + $0x90] sm:$0xff] }
 0x179   :  { %2419 = vmatpush1.msra.mxu1 %v2292_v55  ;;  %1921 = vmatpush1.msra.mxu0 %v1173_v57  ;;  %v13361_v55 = vld [vmem:[#allocation10] sm:$0x3]  ;;  %v2295_v57 = vld [vmem:[#allocation20 + $0x978] sm:$0xff] }
 0x17a   :  { %2420 = vmatprep.subr.mxu1 %v2273_v58  ;;  %1922 = vmatprep.subr.mxu0 %v1154_v59  ;;  %v2297_v58 = vld [vmem:[#allocation20 + $0x988] sm:$0xff]  ;;  %v2294_v59 = vld [vmem:[#allocation20 + $0x970] sm:$0xff] }
 0x17b   :  { %2421 = vmatpush1.msra.mxu1 %v2272_v60  ;;  %1923 = vmatpush1.msra.mxu0 %v1153_v61  ;;  %v2296_v60 = vld [vmem:[#allocation20 + $0x980] sm:$0xff] }
 0x17c   :  { %2422 = vmatprep.subr.mxu1 %v2253_v62  ;;  %1924 = vmatprep.subr.mxu0 %v1134_v63  ;;  %v2275_v62 = vld [vmem:[#allocation20 + $0x8d8] sm:$0xff]  ;;  %v2277_v63 = vld [vmem:[#allocation20 + $0x8e8] sm:$0xff] }
 0x17d   :  { %2423 = vmatpush1.msra.mxu1 %v2252_v0  ;;  %1925 = vmatpush1.msra.mxu0 %v1133_v2  ;;  %v2274_v0 = vld [vmem:[#allocation20 + $0x8d0] sm:$0xff]  ;;  %v2276_v2 = vld [vmem:[#allocation20 + $0x8e0] sm:$0xff] }
 0x17e   :  { %2424 = vmatprep.subr.mxu1 %v2233_v3  ;;  %1926 = vmatprep.subr.mxu0 %v1114_v4  ;;  %v2255_v3 = vld [vmem:[#allocation20 + $0x838] sm:$0xff]  ;;  %v2257_v4 = vld [vmem:[#allocation20 + $0x848] sm:$0xff] }
 0x17f   :  { %2425 = vmatpush1.msra.mxu1 %v2232_v5  ;;  %1927 = vmatpush1.msra.mxu0 %v1113_v53  ;;  %v2254_v5 = vld [vmem:[#allocation20 + $0x830] sm:$0xff]  ;;  %v2256_v53 = vld [vmem:[#allocation20 + $0x840] sm:$0xff] }
 0x180   :  { %2426 = vmatprep.subr.mxu1 %v2213_v6  ;;  %1928 = vmatprep.subr.mxu0 %v1094_v7  ;;  %v462_v6 = vlaneseq }
 0x181   :  { %2427 = vmatpush1.msra.mxu1 %v2212_v8  ;;  %1929 = vmatpush1.msra.mxu0 %v1093_v9  ;;  %v2235_v8 = vld [vmem:[#allocation20 + $0x798] sm:$0xff]  ;;  %v2237_v9 = vld [vmem:[#allocation20 + $0x7a8] sm:$0xff] }
 0x182   :  { %2428 = vmatprep.subr.mxu1 %v2193_v10  ;;  %1930 = vmatprep.subr.mxu0 %v1074_v11  ;;  %v2234_v10 = vld [vmem:[#allocation20 + $0x790] sm:$0xff]  ;;  %v2236_v11 = vld [vmem:[#allocation20 + $0x7a0] sm:$0xff] }
 0x183   :  { %2429 = vmatpush1.msra.mxu1 %v2192_v12  ;;  %1931 = vmatpush1.msra.mxu0 %v1073_v13  ;;  %v2215_v12 = vld [vmem:[#allocation20 + $0x6f8] sm:$0xff]  ;;  %v2217_v13 = vld [vmem:[#allocation20 + $0x708] sm:$0xff] }
 0x184   :  { %2430 = vmatprep.subr.mxu1 %v2173_v14  ;;  %1932 = vmatprep.subr.mxu0 %v1054_v15  ;;  %v2216_v14 = vld [vmem:[#allocation20 + $0x700] sm:$0xff]  ;;  %v13371_v15 = vshrl.u32 %v462_v6, 7  ;;  %v2035_v6 = vld [vmem:[#allocation20 + $0x158] sm:$0xff] }
 0x185   :  { %2431 = vmatpush1.msra.mxu1 %v2172_v16  ;;  %1933 = vmatpush1.msra.mxu0 %v1053_v17  ;;  %v2195_v17 = vld [vmem:[#allocation20 + $0x658] sm:$0xff] }
 0x186   :  { %2432 = vmatprep.subr.mxu1 %v2153_v18  ;;  %1934 = vmatprep.subr.mxu0 %v1034_v19  ;;  %v2197_v18 = vld [vmem:[#allocation20 + $0x668] sm:$0xff]  ;;  %v2196_v19 = vld [vmem:[#allocation20 + $0x660] sm:$0xff] }
 0x187   :  { %2433 = vmatpush1.msra.mxu1 %v2152_v20  ;;  %1935 = vmatpush1.msra.mxu0 %v1033_v22  ;;  %v2194_v20 = vld [vmem:[#allocation20 + $0x650] sm:$0xff]  ;;  %v2177_v22 = vld [vmem:[#allocation20 + $0x5c8] sm:$0xff] }
 0x188   :  { %2434 = vmatprep.subr.mxu1 %v2133_v23  ;;  %1936 = vmatprep.subr.mxu0 %v1014_v24  ;;  %v2175_v23 = vld [vmem:[#allocation20 + $0x5b8] sm:$0xff]  ;;  %v2176_v24 = vld [vmem:[#allocation20 + $0x5c0] sm:$0xff] }
 0x189   :  { %2435 = vmatpush1.msra.mxu1 %v2132_v25  ;;  %1937 = vmatpush1.msra.mxu0 %v1013_v26  ;;  %v2174_v25 = vld [vmem:[#allocation20 + $0x5b0] sm:$0xff]  ;;  %v2157_v26 = vld [vmem:[#allocation20 + $0x528] sm:$0xff] }
 0x18a   :  { %2436 = vmatprep.subr.mxu1 %v2113_v27  ;;  %1938 = vmatprep.subr.mxu0 %v994_v1  ;;  %v13376_v27 = vsub.s32 0, %v13371_v15 }
 0x18b   :  { %2437 = vmatpush1.msra.mxu1 %v2112_v28  ;;  %1939 = vmatpush1.msra.mxu0 %v993_v29  ;;  %v2155_v28 = vld [vmem:[#allocation20 + $0x518] sm:$0xff]  ;;  %v460_v29 = vld [vmem:[#allocation13] sm:$0x3] }
 0x18c   :  { %2438 = vmatprep.subr.mxu1 %v2093_v30  ;;  %1940 = vmatprep.subr.mxu0 %v974_v31  ;;  %v2154_v30 = vld [vmem:[#allocation20 + $0x510] sm:$0xff]  ;;  %v2156_v31 = vld [vmem:[#allocation20 + $0x520] sm:$0xff] }
 0x18d   :  { %2439 = vmatpush1.msra.mxu1 %v2092_v32  ;;  %1941 = vmatpush1.msra.mxu0 %v973_v33  ;;  %v13381_v32 = vsub.s32 1, %v13371_v15  ;;  %v2135_v33 = vld [vmem:[#allocation20 + $0x478] sm:$0xff] }
 0x18e   :  { %2440 = vmatprep.subr.mxu1 %v2073_v34  ;;  %1942 = vmatprep.subr.mxu0 %v954_v35  ;;  %v2137_v34 = vld [vmem:[#allocation20 + $0x488] sm:$0xff] }
 0x18f   :  { %2441 = vmatpush1.msra.mxu1 %v2072_v36  ;;  %1943 = vmatpush1.msra.mxu0 %v953_v37  ;;  %v13364_v61 = vpop.f32.mrf.mxu1  ;;  %v2134_v36 = vld [vmem:[#allocation20 + $0x470] sm:$0xff]  ;;  %v2136_v37 = vld [vmem:[#allocation20 + $0x480] sm:$0xff] }
 0x190   :  { %2442 = vmatprep.subr.mxu1 %v2053_v38  ;;  %1944 = vmatprep.subr.mxu0 %v934_v39  ;;  %v13386_v38 = vrot.slane %v460_v29, %v13376_v27  ;;  %v2115_v39 = vld [vmem:[#allocation20 + $0x3d8] sm:$0xff] }
 0x191   :  { %2443 = vmatpush1.msra.mxu1 %v2052_v41  ;;  %1945 = vmatpush1.msra.mxu0 %v933_v40  ;;  %v13369_v7 = vpop.f32.mrf.mxu1  ;;  %v2117_v41 = vld [vmem:[#allocation20 + $0x3e8] sm:$0xff]  ;;  %v2114_v40 = vld [vmem:[#allocation20 + $0x3d0] sm:$0xff] }
 0x192   :  { %2444 = vmatprep.subr.mxu1 %v2033_v42  ;;  %1946 = vmatprep.subr.mxu0 %v914_v43  ;;  %v2116_v42 = vld [vmem:[#allocation20 + $0x3e0] sm:$0xff]  ;;  %v13389_v43 = vrot.slane %v460_v29, %v13381_v32  ;;  %v1997_v29 = vld [vmem:[#allocation20 + $0x28] sm:$0xff] }
 0x193   :  { %2445 = vmatpush1.msra.mxu1 %v2032_v44  ;;  %1947 = vmatpush1.msra.mxu0 %v913_v45  ;;  %v13373_v16 = vpop.f32.mrf.mxu1  ;;  %v2095_v44 = vld [vmem:[#allocation20 + $0x338] sm:$0xff]  ;;  %v2097_v45 = vld [vmem:[#allocation20 + $0x348] sm:$0xff] }
 0x194   :  { %2446 = vmatprep.subr.mxu1 %v2013_v46  ;;  %1948 = vmatprep.subr.mxu0 %v894_v47 }
 0x195   :  { %2447 = vmatpush1.msra.mxu1 %v2012_v48  ;;  %1949 = vmatpush1.msra.mxu0 %v893_v49  ;;  %v13378_v1 = vpop.f32.mrf.mxu1  ;;  %v2094_v48 = vld [vmem:[#allocation20 + $0x330] sm:$0xff]  ;;  %v2096_v49 = vld [vmem:[#allocation20 + $0x340] sm:$0xff] }
 0x196   :  { %2448 = vmatprep.subr.mxu1 %v1993_v50  ;;  %1950 = vmatprep.subr.mxu0 %v874_v51  ;;  %v2075_v51 = vld [vmem:[#allocation20 + $0x298] sm:$0xff] }
 0x197   :  { %2449 = vmatpush1.msra.mxu1 %v1992_v52  ;;  %1951 = vmatpush1.msra.mxu0 %v873_v54  ;;  %v2077_v52 = vld [vmem:[#allocation20 + $0x2a8] sm:$0xff] }
 0x198   :  { %2482 = vmatprep.mubr.f32.mxu1 %v13158_v21  ;;  %1984 = vmatprep.mubr.f32.mxu0 %v13158_v21 }
 0x199   :  { %2483 = vmatmul.mubr.f32.vlgmr.msra.gmra.mxu1 %v13361_v55  ;;  %2489 = vmatprep.subr.mxu0 %v2295_v57  ;;  %v13383_v35 = vpop.f32.mrf.mxu1  ;;  %v2074_v57 = vld [vmem:[#allocation20 + $0x290] sm:$0xff] }
 0x19a   :  { %2560 = vmatprep.subr.mxu1 %v2297_v58  ;;  %1985 = vmatmul.mubr.f32.vlgmr.msra.gmra.mxu0 %v13357_v56  ;;  %v2214_v56 = vld [vmem:[#allocation20 + $0x6f0] sm:$0xff]  ;;  %v2076_v58 = vld [vmem:[#allocation20 + $0x2a0] sm:$0xff] }
 0x19b   :  { %2561 = vmatpush1.msra.mxu1 %v2296_v60  ;;  %2490 = vmatpush1.msra.mxu0 %v2294_v59  ;;  %v13391_v46 = vpop.f32.mrf.mxu1  ;;  %v13397_v60 = vld [vmem:[#allocation19] sm:$0xff] }
 0x19c   :  { %2562 = vmatprep.subr.mxu1 %v2277_v63  ;;  %2491 = vmatprep.subr.mxu0 %v2275_v62 }
 0x19d   :  { %2563 = vmatpush1.msra.mxu1 %v2276_v2  ;;  %2492 = vmatpush1.msra.mxu0 %v2274_v0  ;;  %v13400_v63 = vpop.f32.mrf.mxu1  ;;  %v2055_v0 = vld [vmem:[#allocation20 + $0x1f8] sm:$0xff]  ;;  %v2057_v2 = vld [vmem:[#allocation20 + $0x208] sm:$0xff] }
 0x19e   :  { %2564 = vmatprep.subr.mxu1 %v2257_v4  ;;  %2493 = vmatprep.subr.mxu0 %v2255_v3  ;;  %v2054_v4 = vld [vmem:[#allocation20 + $0x1f0] sm:$0xff] }
 0x19f   :  { %2565 = vmatpush1.msra.mxu1 %v2256_v53  ;;  %2494 = vmatpush1.msra.mxu0 %v2254_v5  ;;  %v2056_v5 = vld [vmem:[#allocation20 + $0x200] sm:$0xff] }
 0x1a0   :  { %2566 = vmatprep.subr.mxu1 %v2237_v9  ;;  %2495 = vmatprep.subr.mxu0 %v2235_v8  ;;  %v1184_v8 = vrot.slane %v13397_v60, %v13376_v27 }
 0x1a1   :  { %2567 = vmatpush1.msra.mxu1 %v2236_v11  ;;  %2496 = vmatpush1.msra.mxu0 %v2234_v10  ;;  %v3132_v10 = vld [vmem:[#allocation3] sm:$0x88]  ;;  %v2037_v11 = vld [vmem:[#allocation20 + $0x168] sm:$0xff] }
 0x1a2   :  { %2568 = vmatprep.subr.mxu1 %v2217_v13  ;;  %2497 = vmatprep.subr.mxu0 %v2215_v12  ;;  %v2034_v12 = vld [vmem:[#allocation20 + $0x150] sm:$0xff] }
 0x1a3   :  { %2569 = vmatpush1.msra.mxu1 %v2216_v14  ;;  %2498 = vmatpush1.msra.mxu0 %v2214_v56  ;;  %v13411_v14 = vpop.f32.mrf.mxu1 }
 0x1a4   :  { %2570 = vmatprep.subr.mxu1 %v2197_v18  ;;  %2499 = vmatprep.subr.mxu0 %v2195_v17  ;;  %v2036_v17 = vld [vmem:[#allocation20 + $0x160] sm:$0xff]  ;;  %v2015_v18 = vld [vmem:[#allocation20 + $0xb8] sm:$0xff] }
 0x1a5   :  { %2571 = vmatpush1.msra.mxu1 %v2196_v19  ;;  %2500 = vmatpush1.msra.mxu0 %v2194_v20  ;;  %v2017_v19 = vld [vmem:[#allocation20 + $0xc8] sm:$0xff]  ;;  %v1188_v20 = vrot.slane %v13397_v60, %v13381_v32 }
 0x1a6   :  { %2572 = vmatprep.subr.mxu1 %v2177_v22  ;;  %2501 = vmatprep.subr.mxu0 %v2175_v23 }
 0x1a7   :  { %2573 = vmatpush1.msra.mxu1 %v2176_v24  ;;  %2502 = vmatpush1.msra.mxu0 %v2174_v25 }
 0x1a8   :  { %2574 = vmatprep.subr.mxu1 %v2157_v26  ;;  %2503 = vmatprep.subr.mxu0 %v2155_v28  ;;  %v2014_v28 = vld [vmem:[#allocation20 + $0xb0] sm:$0xff] }
 0x1a9   :  { %2575 = vmatpush1.msra.mxu1 %v2156_v31  ;;  %2504 = vmatpush1.msra.mxu0 %v2154_v30 }
 0x1aa   :  { %2576 = vmatprep.subr.mxu1 %v2137_v34  ;;  %2505 = vmatprep.subr.mxu0 %v2135_v33  ;;  %v1995_v33 = vld [vmem:[#allocation20 + $0x18] sm:$0xff]  ;;  %v1996_v34 = vld [vmem:[#allocation20 + $0x20] sm:$0xff] }
 0x1ab   :  { %2577 = vmatpush1.msra.mxu1 %v2136_v37  ;;  %2506 = vmatpush1.msra.mxu0 %v2134_v36 }
 0x1ac   :  { %2578 = vmatprep.subr.mxu1 %v2117_v41  ;;  %2507 = vmatprep.subr.mxu0 %v2115_v39 }
 0x1ad   :  { %2579 = vmatpush1.msra.mxu1 %v2116_v42  ;;  %2508 = vmatpush1.msra.mxu0 %v2114_v40  ;;  %v1994_v40 = vld [vmem:[#allocation20 + $0x10] sm:$0xff]  ;;  %v2299_v42 = vld [vmem:[#allocation20 + $0x998] sm:$0xff] }
 0x1ae   :  { %v746_v47 = vpop.f32.mrf.mxu0  ;;  %2580 = vmatprep.subr.mxu1 %v2097_v45  ;;  %2509 = vmatprep.subr.mxu0 %v2095_v44 }
 0x1af   :  { %v747_v50 = vadd.f32 %v746_v47, %v13386_v38  ;;  %2581 = vmatpush1.msra.mxu1 %v2096_v49  ;;  %2510 = vmatpush1.msra.mxu0 %v2094_v48  ;;  %v2301_v49 = vld [vmem:[#allocation20 + $0x9a8] sm:$0xff] }
 0x1b0   :  { %v748_v54 = vpop.f32.mrf.mxu0  ;;  %2582 = vmatprep.subr.mxu1 %v2077_v52  ;;  %2511 = vmatprep.subr.mxu0 %v2075_v51  ;;  %v1347_v25 = vpop.f32.mrf.mxu1 }
 0x1b1   :  { %v13395_v59 = vadd.f32 %v13364_v61, %v747_v50  ;;  %v749_v62 = vadd.f32 %v748_v54, %v13389_v43  ;;  %2583 = vmatpush1.msra.mxu1 %v2076_v58  ;;  %2512 = vmatpush1.msra.mxu0 %v2074_v57  ;;  %v13417_v30 = vadd.f32 %v1347_v25, %v1184_v8  ;;  %v2298_v54 = vld [vmem:[#allocation20 + $0x990] sm:$0xff]  ;;  %v2300_v57 = vld [vmem:[#allocation20 + $0x9a0] sm:$0xff] }
 0x1b2   :  { %v750_v3 = vpop.f32.mrf.mxu0  ;;  %2584 = vmatprep.subr.mxu1 %v2057_v2  ;;  %2513 = vmatprep.subr.mxu0 %v2055_v0  ;;  %v2279_v2 = vld [vmem:[#allocation20 + $0x8f8] sm:$0xff] }
 0x1b3   :  { %v802_v53 = vadd.f32 %v13369_v7, %v749_v62  ;;  %v751_v61 = vadd.f32 %v750_v3, %v13386_v38  ;;  %2585 = vmatpush1.msra.mxu1 %v2056_v5  ;;  %2514 = vmatpush1.msra.mxu0 %v2054_v4  ;;  %v2281_v3 = vld [vmem:[#allocation20 + $0x908] sm:$0xff] }
 0x1b4   :  { %v752_v9 = vpop.f32.mrf.mxu0  ;;  %2586 = vmatprep.subr.mxu1 %v2037_v11  ;;  %2515 = vmatprep.subr.mxu0 %v2035_v6  ;;  %v2259_v11 = vld [vmem:[#allocation20 + $0x858] sm:$0xff] }
 0x1b5   :  { %v11642_v13 = vpack.c.bf16 %v802_v53, %v13395_v59  ;;  %v13408_v56 = vadd.f32 %v13373_v16, %v751_v61  ;;  %v753_v7 = vadd.f32 %v752_v9, %v13389_v43  ;;  %v2016_v16 = vld [vmem:[#allocation20 + $0xc0] sm:$0xff]  ;;  %2587 = vmatpush1.msra.mxu1 %v2036_v17  ;;  %2516 = vmatpush1.msra.mxu0 %v2034_v12  ;;  %v2278_v61 = vld [vmem:[#allocation20 + $0x8f0] sm:$0xff]  ;;  %v2261_v12 = vld [vmem:[#allocation20 + $0x868] sm:$0xff] }
 0x1b6   :  { %v756_v23 = vpop.f32.mrf.mxu0  ;;  %2588 = vmatprep.subr.mxu1 %v2017_v19  ;;  %2517 = vmatprep.subr.mxu0 %v2015_v18  ;;  %v2258_v17 = vld [vmem:[#allocation20 + $0x850] sm:$0xff]  ;;  %v2260_v18 = vld [vmem:[#allocation20 + $0x860] sm:$0xff] }
 0x1b7   :  { %v806_v22 = vadd.f32 %v13378_v1, %v753_v7  ;;  %v10894_v24 = vcombine.high %v3132_v10, %v11642_v13  ;;  %v757_v26 = vadd.f32 %v756_v23, %v13386_v38  ;;  %v1349_v1 = vpop.f32.mrf.mxu1  ;;  %v13420_v41 = vcombine.low %v3132_v10, %v11642_v13  ;;  %2589 = vmatpush1.msra.mxu1 %v2016_v16 }
 0x1b8   :  { %v758_v31 = vpop.f32.mrf.mxu0  ;;  %v13422_v44 = vadd.f32 %v1349_v1, %v1188_v20  ;;  %2518 = vmatpush1.msra.mxu0 %v2014_v28  ;;  %2590 = vmatprep.subr.mxu1 %v1997_v29  ;;  %v12781_v7 = vpack.c.bf16 %v13408_v56, %v13408_v56  ;;  %v2239_v20 = vld [vmem:[#allocation20 + $0x7b8] sm:$0xff]  ;;  %v2240_v28 = vld [vmem:[#allocation20 + $0x7c0] sm:$0xff]  ;;  %v2218_v1 = vld [vmem:[#allocation20 + $0x710] sm:$0xff] }
 0x1b9   :  { %v759_v36 = vadd.f32 %v758_v31, %v13389_v43  ;;  %v3238_v37 = vshrl.u32 %v10894_v24, 16  ;;  %v3241_v39 = vshll.u32 %v10894_v24, 16  ;;  %v810_v45 = vadd.f32 %v13383_v35, %v757_v26  ;;  %2519 = vmatprep.subr.mxu0 %v1995_v33  ;;  %2591 = vmatpush1.msra.mxu1 %v1996_v34  ;;  %v2219_v33 = vld [vmem:[#allocation20 + $0x718] sm:$0xff]  ;;  %v2221_v34 = vld [vmem:[#allocation20 + $0x728] sm:$0xff] }
 0x1ba   :  { %v760_v47 = vpop.f32.mrf.mxu0  ;;  %v12779_v48 = vpack.c.bf16 %v806_v22, %v806_v22  ;;  %v13427_v52 = vpack.c.bf16 %v806_v22, %v802_v53  ;;  %2520 = vmatpush1.msra.mxu0 %v1994_v40  ;;  %2624 = vmatprep.mubr.f32.mxu1 %v13158_v21  ;;  %v3221_v9 = vshrl.u32 %v13420_v41, 16  ;;  %v3224_v10 = vshll.u32 %v13420_v41, 16  ;;  %v2241_v22 = vld [vmem:[#allocation20 + $0x7c8] sm:$0xff] }
 0x1bb   :  { %v812_v50 = vadd.f32 %v13391_v46, %v759_v36  ;;  %v761_v51 = vadd.f32 %v760_v47, %v13386_v38  ;;  %v2280_v46 = vld [vmem:[#allocation20 + $0x900] sm:$0xff]  ;;  %v3240_v5 = vrot.slane %v3238_v37, 3  ;;  %v3243_v53 = vrot.slane %v3241_v39, 4  ;;  %2553 = vmatprep.mubr.f32.mxu0 %v13158_v21  ;;  %2625 = vmatmul.mubr.f32.vlgmr.msra.gmra.mxu1 %v13361_v55  ;;  %v2199_v39 = vld [vmem:[#allocation20 + $0x678] sm:$0xff]  ;;  %v2201_v41 = vld [vmem:[#allocation20 + $0x688] sm:$0xff] }
 0x1bc   :  { %v762_v62 = vpop.f32.mrf.mxu0  ;;  %v3246_v35 = vshrl.u32 %v12779_v48, 16  ;;  %v3249_v0 = vshll.u32 %v12779_v48, 16  ;;  %2631 = vmatprep.subr.mxu0 %v2299_v42  ;;  %2702 = vmatprep.subr.mxu1 %v2301_v49  ;;  %v3229_v16 = vshrl.u32 %v12781_v7, 16  ;;  %v3232_v25 = vshll.u32 %v12781_v7, 16  ;;  %v2220_v37 = vld [vmem:[#allocation20 + $0x720] sm:$0xff]  ;;  %v2198_v42 = vld [vmem:[#allocation20 + $0x670] sm:$0xff] }
 0x1bd   :  { %v11644_v4 = vpack.c.bf16 %v812_v50, %v810_v45  ;;  %v763_v38 = vadd.f32 %v762_v62, %v13389_v43  ;;  %v814_v43 = vadd.f32 %v13400_v63, %v761_v51  ;;  %2554 = vmatmul.mubr.f32.vlgmr.msra.gmra.mxu0 %v13361_v55  ;;  %2703 = vmatpush1.msra.mxu1 %v2300_v57  ;;  %v2238_v63 = vld [vmem:[#allocation20 + $0x7b0] sm:$0xff]  ;;  %v3226_v26 = vrot.slane %v3224_v10, 4  ;;  %v2200_v45 = vld [vmem:[#allocation20 + $0x680] sm:$0xff]  ;;  %v2179_v49 = vld [vmem:[#allocation20 + $0x5d8] sm:$0xff] }
 0x1be   :  { %v3248_v6 = vrot.slane %v3246_v35, 3  ;;  %v3251_v8 = vrot.slane %v3249_v0, 4  ;;  %2632 = vmatpush1.msra.mxu0 %v2298_v54  ;;  %2704 = vmatprep.subr.mxu1 %v2281_v3  ;;  %v3244_v24 = vor.u32 %v3243_v53, %v3240_v5  ;;  %v3231_v31 = vrot.slane %v3229_v16, 3  ;;  %v2181_v50 = vld [vmem:[#allocation20 + $0x5e8] sm:$0xff]  ;;  %v2178_v51 = vld [vmem:[#allocation20 + $0x5d0] sm:$0xff]  ;;  %v2160_v35 = vld [vmem:[#allocation20 + $0x540] sm:$0xff] }
 0x1bf   :  { %852 = vst [vmem:[#allocation3 + $0x30] sm:$0xff] %v11644_v4  ;;  %v816_v13 = vadd.f32 %v13411_v14, %v763_v38  ;;  %2633 = vmatprep.subr.mxu0 %v2279_v2  ;;  %2705 = vmatpush1.msra.mxu1 %v2280_v46  ;;  %v3223_v14 = vrot.slane %v3221_v9, 3  ;;  %v3234_v36 = vrot.slane %v3232_v25, 4  ;;  %v13447_v40 = vpack.c.bf16 %v13408_v56, %v13395_v59  ;;  %v2180_v59 = vld [vmem:[#allocation20 + $0x5e0] sm:$0xff]  ;;  %v2159_v56 = vld [vmem:[#allocation20 + $0x538] sm:$0xff]  ;;  %v2161_v57 = vld [vmem:[#allocation20 + $0x548] sm:$0xff] }
 0x1c0   :  { %v3252_v19 = vor.u32 %v3251_v8, %v3248_v6  ;;  %2634 = vmatpush1.msra.mxu0 %v2278_v61  ;;  %2706 = vmatprep.subr.mxu1 %v2261_v12  ;;  %v2158_v62 = vld [vmem:[#allocation20 + $0x530] sm:$0xff]  ;;  %v2139_v0 = vld [vmem:[#allocation20 + $0x498] sm:$0xff]  ;;  %v2141_v2 = vld [vmem:[#allocation20 + $0x4a8] sm:$0xff]  ;;  %v13453_v38 = vsub.s32 2, %v13371_v15  ;;  %v13456_v61 = vsub.s32 3, %v13371_v15 }
 0x1c1   :  { %v11645_v23 = vpack.c.bf16 %v816_v13, %v814_v43  ;;  %2635 = vmatprep.subr.mxu0 %v2259_v11  ;;  %2707 = vmatpush1.msra.mxu1 %v2260_v18  ;;  %v3227_v47 = vor.u32 %v3226_v26, %v3223_v14  ;;  %v3235_v48 = vor.u32 %v3234_v36, %v3231_v31  ;;  %v2138_v3 = vld [vmem:[#allocation20 + $0x490] sm:$0xff]  ;;  %v2140_v46 = vld [vmem:[#allocation20 + $0x4a0] sm:$0xff]  ;;  %v2121_v4 = vld [vmem:[#allocation20 + $0x408] sm:$0xff]  ;;  %v13459_v43 = vsub.s32 4, %v13371_v15 }
 0x1c2   :  { %v13443_v29 = vsel %vm319_vm1, %v3244_v24, %v3252_v19  ;;  %2636 = vmatpush1.msra.mxu0 %v2258_v17  ;;  %2708 = vmatprep.subr.mxu1 %v2241_v22  ;;  %v2119_v5 = vld [vmem:[#allocation20 + $0x3f8] sm:$0xff]  ;;  %v2118_v53 = vld [vmem:[#allocation20 + $0x3f0] sm:$0xff]  ;;  %v2120_v6 = vld [vmem:[#allocation20 + $0x400] sm:$0xff]  ;;  %v1192_v13 = vrot.slane %v13397_v60, %v13453_v38  ;;  %v13464_v18 = vsub.s32 5, %v13371_v15  ;;  %v1196_v19 = vrot.slane %v13397_v60, %v13456_v61 }
 0x1c3   :  { %853 = vst [vmem:[#allocation3 + $0x10] sm:$0xff] %v11645_v23  ;;  %2637 = vmatprep.subr.mxu0 %v2239_v20  ;;  %2709 = vmatpush1.msra.mxu1 %v2240_v28  ;;  %v13450_v54 = vsel %vm319_vm1, %v3227_v47, %v3235_v48  ;;  %v2099_v8 = vld [vmem:[#allocation20 + $0x358] sm:$0xff]  ;;  %v2101_v9 = vld [vmem:[#allocation20 + $0x368] sm:$0xff]  ;;  %v2098_v10 = vld [vmem:[#allocation20 + $0x350] sm:$0xff]  ;;  %v1200_v14 = vrot.slane %v13397_v60, %v13459_v43 }
 0x1c4   :  { %2638 = vmatpush1.msra.mxu0 %v2238_v63  ;;  %2710 = vmatprep.subr.mxu1 %v2221_v34  ;;  %v2100_v11 = vld [vmem:[#allocation20 + $0x360] sm:$0xff]  ;;  %v2081_v12 = vld [vmem:[#allocation20 + $0x2c8] sm:$0xff]  ;;  %v2079_v7 = vld [vmem:[#allocation20 + $0x2b8] sm:$0xff] }
 0x1c5   :  { %2639 = vmatprep.subr.mxu0 %v2219_v33  ;;  %2711 = vmatpush1.msra.mxu1 %v2220_v37  ;;  %v2078_v17 = vld [vmem:[#allocation20 + $0x2b0] sm:$0xff]  ;;  %v2080_v20 = vld [vmem:[#allocation20 + $0x2c0] sm:$0xff]  ;;  %v2059_v22 = vld [vmem:[#allocation20 + $0x218] sm:$0xff]  ;;  %v1204_v33 = vrot.slane %v13397_v60, %v13464_v18 }
 0x1c6   :  { %2640 = vmatpush1.msra.mxu0 %v2218_v1  ;;  %2712 = vmatprep.subr.mxu1 %v2201_v41  ;;  %v2061_v23 = vld [vmem:[#allocation20 + $0x228] sm:$0xff]  ;;  %v2058_v16 = vld [vmem:[#allocation20 + $0x210] sm:$0xff]  ;;  %v2060_v25 = vld [vmem:[#allocation20 + $0x220] sm:$0xff] }
 0x1c7   :  { %2641 = vmatprep.subr.mxu0 %v2199_v39  ;;  %2713 = vmatpush1.msra.mxu1 %v2200_v45  ;;  %v2041_v63 = vld [vmem:[#allocation20 + $0x188] sm:$0xff]  ;;  %v2039_v28 = vld [vmem:[#allocation20 + $0x178] sm:$0xff]  ;;  %v2038_v1 = vld [vmem:[#allocation20 + $0x170] sm:$0xff] }
 0x1c8   :  { %2642 = vmatpush1.msra.mxu0 %v2198_v42  ;;  %2714 = vmatprep.subr.mxu1 %v2181_v50  ;;  %v2040_v36 = vld [vmem:[#allocation20 + $0x180] sm:$0xff]  ;;  %v2019_v37 = vld [vmem:[#allocation20 + $0xd8] sm:$0xff]  ;;  %v2021_v41 = vld [vmem:[#allocation20 + $0xe8] sm:$0xff] }
 0x1c9   :  { %2643 = vmatprep.subr.mxu0 %v2179_v49  ;;  %2715 = vmatpush1.msra.mxu1 %v2180_v59  ;;  %v2018_v42 = vld [vmem:[#allocation20 + $0xd0] sm:$0xff]  ;;  %v2020_v45 = vld [vmem:[#allocation20 + $0xe0] sm:$0xff]  ;;  %v2001_v50 = vld [vmem:[#allocation20 + $0x48] sm:$0xff] }
 0x1ca   :  { %2644 = vmatpush1.msra.mxu0 %v2178_v51  ;;  %2716 = vmatprep.subr.mxu1 %v2161_v57  ;;  %v1999_v59 = vld [vmem:[#allocation20 + $0x38] sm:$0xff]  ;;  %v2000_v57 = vld [vmem:[#allocation20 + $0x40] sm:$0xff] }
 0x1cb   :  { %2645 = vmatprep.subr.mxu0 %v2159_v56  ;;  %2717 = vmatpush1.msra.mxu1 %v2160_v35  ;;  %v1998_v56 = vld [vmem:[#allocation20 + $0x30] sm:$0xff]  ;;  %v2305_v35 = vld [vmem:[#allocation20 + $0x9c8] sm:$0xff] }
 0x1cc   :  { %2646 = vmatpush1.msra.mxu0 %v2158_v62  ;;  %2718 = vmatprep.subr.mxu1 %v2141_v2  ;;  %v2303_v62 = vld [vmem:[#allocation20 + $0x9b8] sm:$0xff]  ;;  %v2302_v2 = vld [vmem:[#allocation20 + $0x9b0] sm:$0xff] }
 0x1cd   :  { %2647 = vmatprep.subr.mxu0 %v2139_v0  ;;  %2719 = vmatpush1.msra.mxu1 %v2140_v46  ;;  %v2283_v46 = vld [vmem:[#allocation20 + $0x918] sm:$0xff] }
 0x1ce   :  { %2648 = vmatpush1.msra.mxu0 %v2138_v3  ;;  %2720 = vmatprep.subr.mxu1 %v2121_v4  ;;  %v2304_v3 = vld [vmem:[#allocation20 + $0x9c0] sm:$0xff]  ;;  %v2285_v4 = vld [vmem:[#allocation20 + $0x928] sm:$0xff] }
 0x1cf   :  { %2649 = vmatprep.subr.mxu0 %v2119_v5  ;;  %2721 = vmatpush1.msra.mxu1 %v2120_v6  ;;  %v2282_v5 = vld [vmem:[#allocation20 + $0x910] sm:$0xff]  ;;  %v2265_v6 = vld [vmem:[#allocation20 + $0x888] sm:$0xff] }
 0x1d0   :  { %2650 = vmatpush1.msra.mxu0 %v2118_v53  ;;  %2722 = vmatprep.subr.mxu1 %v2101_v9  ;;  %v1418_v24 = vpop.f32.mrf.mxu0  ;;  %v2284_v53 = vld [vmem:[#allocation20 + $0x920] sm:$0xff] }
 0x1d1   :  { %2651 = vmatprep.subr.mxu0 %v2099_v8  ;;  %2723 = vmatpush1.msra.mxu1 %v2100_v11  ;;  %v13470_v26 = vadd.f32 %v1418_v24, %v1192_v13  ;;  %v2263_v8 = vld [vmem:[#allocation20 + $0x878] sm:$0xff]  ;;  %v2264_v9 = vld [vmem:[#allocation20 + $0x880] sm:$0xff]  ;;  %v2242_v13 = vld [vmem:[#allocation20 + $0x7d0] sm:$0xff] }
 0x1d2   :  { %2652 = vmatpush1.msra.mxu0 %v2098_v10  ;;  %2724 = vmatprep.subr.mxu1 %v2081_v12  ;;  %v1420_v31 = vpop.f32.mrf.mxu0  ;;  %v2262_v10 = vld [vmem:[#allocation20 + $0x870] sm:$0xff]  ;;  %v2243_v11 = vld [vmem:[#allocation20 + $0x7d8] sm:$0xff]  ;;  %v2245_v12 = vld [vmem:[#allocation20 + $0x7e8] sm:$0xff] }
 0x1d3   :  { %2653 = vmatprep.subr.mxu0 %v2079_v7  ;;  %2725 = vmatpush1.msra.mxu1 %v2080_v20  ;;  %v13474_v34 = vadd.f32 %v1420_v31, %v1196_v19  ;;  %v1489_v39 = vpop.f32.mrf.mxu1  ;;  %v2244_v7 = vld [vmem:[#allocation20 + $0x7e0] sm:$0xff]  ;;  %v2225_v19 = vld [vmem:[#allocation20 + $0x748] sm:$0xff]  ;;  %v2222_v20 = vld [vmem:[#allocation20 + $0x730] sm:$0xff] }
 0x1d4   :  { %2654 = vmatpush1.msra.mxu0 %v2078_v17  ;;  %2726 = vmatprep.subr.mxu1 %v2061_v23  ;;  %v13476_v47 = vadd.f32 %v1489_v39, %v1200_v14  ;;  %v2223_v17 = vld [vmem:[#allocation20 + $0x738] sm:$0xff]  ;;  %v2205_v23 = vld [vmem:[#allocation20 + $0x6a8] sm:$0xff]  ;;  %v2202_v24 = vld [vmem:[#allocation20 + $0x690] sm:$0xff] }
 0x1d5   :  { %2655 = vmatprep.subr.mxu0 %v2059_v22  ;;  %2727 = vmatpush1.msra.mxu1 %v2060_v25  ;;  %v1491_v49 = vpop.f32.mrf.mxu1  ;;  %v2224_v22 = vld [vmem:[#allocation20 + $0x740] sm:$0xff]  ;;  %v2185_v25 = vld [vmem:[#allocation20 + $0x608] sm:$0xff] }
 0x1d6   :  { %2656 = vmatpush1.msra.mxu0 %v2058_v16  ;;  %2728 = vmatprep.subr.mxu1 %v2041_v63  ;;  %v13480_v51 = vadd.f32 %v1491_v49, %v1204_v33  ;;  %v2204_v16 = vld [vmem:[#allocation20 + $0x6a0] sm:$0xff]  ;;  %v2183_v63 = vld [vmem:[#allocation20 + $0x5f8] sm:$0xff]  ;;  %v2165_v31 = vld [vmem:[#allocation20 + $0x568] sm:$0xff] }
 0x1d7   :  { %2657 = vmatprep.subr.mxu0 %v2039_v28  ;;  %2729 = vmatpush1.msra.mxu1 %v2040_v36  ;;  %v2184_v14 = vld [vmem:[#allocation20 + $0x600] sm:$0xff]  ;;  %v2182_v28 = vld [vmem:[#allocation20 + $0x5f0] sm:$0xff]  ;;  %v2163_v33 = vld [vmem:[#allocation20 + $0x558] sm:$0xff] }
 0x1d8   :  { %2658 = vmatpush1.msra.mxu0 %v2038_v1  ;;  %2730 = vmatprep.subr.mxu1 %v2021_v41  ;;  %v2164_v1 = vld [vmem:[#allocation20 + $0x560] sm:$0xff]  ;;  %v2162_v36 = vld [vmem:[#allocation20 + $0x550] sm:$0xff]  ;;  %v2145_v39 = vld [vmem:[#allocation20 + $0x4c8] sm:$0xff] }
 0x1d9   :  { %2659 = vmatprep.subr.mxu0 %v2019_v37  ;;  %2731 = vmatpush1.msra.mxu1 %v2020_v45  ;;  %v2143_v37 = vld [vmem:[#allocation20 + $0x4b8] sm:$0xff]  ;;  %v2142_v41 = vld [vmem:[#allocation20 + $0x4b0] sm:$0xff]  ;;  %v2125_v45 = vld [vmem:[#allocation20 + $0x428] sm:$0xff] }
 0x1da   :  { %2660 = vmatpush1.msra.mxu0 %v2018_v42  ;;  %2732 = vmatprep.subr.mxu1 %v2001_v50  ;;  %v2144_v42 = vld [vmem:[#allocation20 + $0x4c0] sm:$0xff]  ;;  %v2123_v49 = vld [vmem:[#allocation20 + $0x418] sm:$0xff]  ;;  %v2122_v50 = vld [vmem:[#allocation20 + $0x410] sm:$0xff] }
 0x1db   :  { %2661 = vmatprep.subr.mxu0 %v1999_v59  ;;  %2733 = vmatpush1.msra.mxu1 %v2000_v57  ;;  %v2124_v59 = vld [vmem:[#allocation20 + $0x420] sm:$0xff]  ;;  %v2103_v57 = vld [vmem:[#allocation20 + $0x378] sm:$0xff] }
 0x1dc   :  { %2662 = vmatpush1.msra.mxu0 %v1998_v56  ;;  %2766 = vmatprep.mubr.f32.mxu1 %v13158_v21  ;;  %v2105_v56 = vld [vmem:[#allocation20 + $0x388] sm:$0xff] }
 0x1dd   :  { %2695 = vmatprep.mubr.f32.mxu0 %v13158_v21  ;;  %2767 = vmatmul.mubr.f32.vlgmr.msra.gmra.mxu1 %v13361_v55 }
 0x1de   :  { %2773 = vmatprep.subr.mxu0 %v2303_v62  ;;  %2844 = vmatprep.subr.mxu1 %v2305_v35  ;;  %v2104_v62 = vld [vmem:[#allocation20 + $0x380] sm:$0xff]  ;;  %v13488_v35 = vld [vmem:[#allocation19 + $0x8] sm:$0xff] }
 0x1df   :  { %2696 = vmatmul.mubr.f32.vlgmr.msra.gmra.mxu0 %v13361_v55  ;;  %2845 = vmatpush1.msra.mxu1 %v2304_v3  ;;  %v2203_v55 = vld [vmem:[#allocation20 + $0x698] sm:$0xff]  ;;  %v2102_v3 = vld [vmem:[#allocation20 + $0x370] sm:$0xff] }
 0x1e0   :  { %2774 = vmatpush1.msra.mxu0 %v2302_v2  ;;  %2846 = vmatprep.subr.mxu1 %v2285_v4  ;;  %v13491_v2 = vsub.s32 6, %v13371_v15  ;;  %v2083_v4 = vld [vmem:[#allocation20 + $0x2d8] sm:$0xff] }
 0x1e1   :  { %2775 = vmatprep.subr.mxu0 %v2283_v46  ;;  %2847 = vmatpush1.msra.mxu1 %v2284_v53  ;;  %v2085_v46 = vld [vmem:[#allocation20 + $0x2e8] sm:$0xff]  ;;  %v2082_v53 = vld [vmem:[#allocation20 + $0x2d0] sm:$0xff] }
 0x1e2   :  { %2776 = vmatpush1.msra.mxu0 %v2282_v5  ;;  %2848 = vmatprep.subr.mxu1 %v2265_v6  ;;  %v13494_v5 = vsub.s32 7, %v13371_v15  ;;  %v2084_v6 = vld [vmem:[#allocation20 + $0x2e0] sm:$0xff] }
 0x1e3   :  { %2777 = vmatprep.subr.mxu0 %v2263_v8  ;;  %2849 = vmatpush1.msra.mxu1 %v2264_v9  ;;  %v2065_v8 = vld [vmem:[#allocation20 + $0x248] sm:$0xff]  ;;  %v1216_v9 = vrot.slane %v13488_v35, %v13376_v27 }
 0x1e4   :  { %2778 = vmatpush1.msra.mxu0 %v2262_v10  ;;  %2850 = vmatprep.subr.mxu1 %v2245_v12  ;;  %v2063_v10 = vld [vmem:[#allocation20 + $0x238] sm:$0xff]  ;;  %v1208_v12 = vrot.slane %v13397_v60, %v13491_v2 }
 0x1e5   :  { %2779 = vmatprep.subr.mxu0 %v2243_v11  ;;  %2851 = vmatpush1.msra.mxu1 %v2244_v7  ;;  %v2064_v11 = vld [vmem:[#allocation20 + $0x240] sm:$0xff]  ;;  %v2045_v7 = vld [vmem:[#allocation20 + $0x1a8] sm:$0xff] }
 0x1e6   :  { %2780 = vmatpush1.msra.mxu0 %v2242_v13  ;;  %2852 = vmatprep.subr.mxu1 %v2225_v19  ;;  %v2062_v13 = vld [vmem:[#allocation20 + $0x230] sm:$0xff]  ;;  %v2043_v19 = vld [vmem:[#allocation20 + $0x198] sm:$0xff] }
 0x1e7   :  { %2781 = vmatprep.subr.mxu0 %v2223_v17  ;;  %2853 = vmatpush1.msra.mxu1 %v2224_v22  ;;  %v1220_v17 = vrot.slane %v13488_v35, %v13381_v32  ;;  %v1212_v22 = vrot.slane %v13397_v60, %v13494_v5 }
 0x1e8   :  { %2782 = vmatpush1.msra.mxu0 %v2222_v20  ;;  %2854 = vmatprep.subr.mxu1 %v2205_v23  ;;  %v2044_v23 = vld [vmem:[#allocation20 + $0x1a0] sm:$0xff] }
 0x1e9   :  { %2783 = vmatprep.subr.mxu0 %v2203_v55  ;;  %2855 = vmatpush1.msra.mxu1 %v2204_v16  ;;  %v2042_v55 = vld [vmem:[#allocation20 + $0x190] sm:$0xff] }
 0x1ea   :  { %2784 = vmatpush1.msra.mxu0 %v2202_v24  ;;  %2856 = vmatprep.subr.mxu1 %v2185_v25  ;;  %v2025_v24 = vld [vmem:[#allocation20 + $0x108] sm:$0xff] }
 0x1eb   :  { %2785 = vmatprep.subr.mxu0 %v2183_v63  ;;  %2857 = vmatpush1.msra.mxu1 %v2184_v14  ;;  %v2023_v63 = vld [vmem:[#allocation20 + $0xf8] sm:$0xff]  ;;  %v2024_v14 = vld [vmem:[#allocation20 + $0x100] sm:$0xff] }
 0x1ec   :  { %2786 = vmatpush1.msra.mxu0 %v2182_v28  ;;  %2858 = vmatprep.subr.mxu1 %v2165_v31 }
 0x1ed   :  { %2787 = vmatprep.subr.mxu0 %v2163_v33  ;;  %2859 = vmatpush1.msra.mxu1 %v2164_v1  ;;  %v2022_v33 = vld [vmem:[#allocation20 + $0xf0] sm:$0xff] }
 0x1ee   :  { %2788 = vmatpush1.msra.mxu0 %v2162_v36  ;;  %2860 = vmatprep.subr.mxu1 %v2145_v39  ;;  %v2005_v39 = vld [vmem:[#allocation20 + $0x68] sm:$0xff] }
 0x1ef   :  { %2789 = vmatprep.subr.mxu0 %v2143_v37  ;;  %2861 = vmatpush1.msra.mxu1 %v2144_v42  ;;  %v2003_v37 = vld [vmem:[#allocation20 + $0x58] sm:$0xff] }
 0x1f0   :  { %2790 = vmatpush1.msra.mxu0 %v2142_v41  ;;  %2862 = vmatprep.subr.mxu1 %v2125_v45  ;;  %v2002_v41 = vld [vmem:[#allocation20 + $0x50] sm:$0xff]  ;;  %v2004_v45 = vld [vmem:[#allocation20 + $0x60] sm:$0xff] }
 0x1f1   :  { %2791 = vmatprep.subr.mxu0 %v2123_v49  ;;  %2863 = vmatpush1.msra.mxu1 %v2124_v59  ;;  %v2309_v59 = vld [vmem:[#allocation20 + $0x9e8] sm:$0xff] }
 0x1f2   :  { %2792 = vmatpush1.msra.mxu0 %v2122_v50  ;;  %2864 = vmatprep.subr.mxu1 %v2105_v56  ;;  %v2307_v50 = vld [vmem:[#allocation20 + $0x9d8] sm:$0xff]  ;;  %v2306_v56 = vld [vmem:[#allocation20 + $0x9d0] sm:$0xff] }
 0x1f3   :  { %2793 = vmatprep.subr.mxu0 %v2103_v57  ;;  %2865 = vmatpush1.msra.mxu1 %v2104_v62  ;;  %v1560_v25 = vpop.f32.mrf.mxu0  ;;  %v2308_v57 = vld [vmem:[#allocation20 + $0x9e0] sm:$0xff]  ;;  %v2289_v62 = vld [vmem:[#allocation20 + $0x948] sm:$0xff] }
 0x1f4   :  { %2794 = vmatpush1.msra.mxu0 %v2102_v3  ;;  %2866 = vmatprep.subr.mxu1 %v2085_v46  ;;  %v1631_v20 = vpop.f32.mrf.mxu1  ;;  %v13506_v31 = vadd.f32 %v1560_v25, %v1208_v12  ;;  %v2287_v3 = vld [vmem:[#allocation20 + $0x938] sm:$0xff]  ;;  %v2288_v46 = vld [vmem:[#allocation20 + $0x940] sm:$0xff]  ;;  %v2206_v25 = vld [vmem:[#allocation20 + $0x6b0] sm:$0xff] }
 0x1f5   :  { %2795 = vmatprep.subr.mxu0 %v2083_v4  ;;  %2867 = vmatpush1.msra.mxu1 %v2084_v6  ;;  %v13504_v16 = vadd.f32 %v1631_v20, %v1216_v9  ;;  %v1562_v60 = vpop.f32.mrf.mxu0  ;;  %v13518_v4 = vld [vmem:[#allocation10] sm:$0x3]  ;;  %v2269_v6 = vld [vmem:[#allocation20 + $0x8a8] sm:$0xff]  ;;  %v2268_v9 = vld [vmem:[#allocation20 + $0x8a0] sm:$0xff] }
 0x1f6   :  { %2796 = vmatpush1.msra.mxu0 %v2082_v53  ;;  %2868 = vmatprep.subr.mxu1 %v2065_v8  ;;  %v1633_v28 = vpop.f32.mrf.mxu1  ;;  %v13510_v36 = vadd.f32 %v1562_v60, %v1212_v22  ;;  %v2286_v53 = vld [vmem:[#allocation20 + $0x930] sm:$0xff]  ;;  %v2267_v8 = vld [vmem:[#allocation20 + $0x898] sm:$0xff]  ;;  %v2228_v20 = vld [vmem:[#allocation20 + $0x760] sm:$0xff] }
 0x1f7   :  { %2797 = vmatprep.subr.mxu0 %v2063_v10  ;;  %2869 = vmatpush1.msra.mxu1 %v2064_v11  ;;  %v13508_v1 = vadd.f32 %v1633_v28, %v1220_v17  ;;  %v2266_v10 = vld [vmem:[#allocation20 + $0x890] sm:$0xff]  ;;  %v2249_v11 = vld [vmem:[#allocation20 + $0x808] sm:$0xff]  ;;  %v2247_v12 = vld [vmem:[#allocation20 + $0x7f8] sm:$0xff] }
 0x1f8   :  { %2798 = vmatpush1.msra.mxu0 %v2062_v13  ;;  %2870 = vmatprep.subr.mxu1 %v2045_v7  ;;  %v2248_v13 = vld [vmem:[#allocation20 + $0x800] sm:$0xff]  ;;  %v2246_v7 = vld [vmem:[#allocation20 + $0x7f0] sm:$0xff]  ;;  %v2229_v17 = vld [vmem:[#allocation20 + $0x768] sm:$0xff] }
 0x1f9   :  { %2799 = vmatprep.subr.mxu0 %v2043_v19  ;;  %2871 = vmatpush1.msra.mxu1 %v2044_v23  ;;  %v2227_v19 = vld [vmem:[#allocation20 + $0x758] sm:$0xff]  ;;  %v2226_v22 = vld [vmem:[#allocation20 + $0x750] sm:$0xff]  ;;  %v2209_v23 = vld [vmem:[#allocation20 + $0x6c8] sm:$0xff] }
 0x1fa   :  { %2800 = vmatpush1.msra.mxu0 %v2042_v55  ;;  %2872 = vmatprep.subr.mxu1 %v2025_v24  ;;  %v2207_v55 = vld [vmem:[#allocation20 + $0x6b8] sm:$0xff]  ;;  %v2208_v24 = vld [vmem:[#allocation20 + $0x6c0] sm:$0xff]  ;;  %v2169_v60 = vld [vmem:[#allocation20 + $0x588] sm:$0xff] }
 0x1fb   :  { %2801 = vmatprep.subr.mxu0 %v2023_v63  ;;  %2873 = vmatpush1.msra.mxu1 %v2024_v14  ;;  %v2189_v63 = vld [vmem:[#allocation20 + $0x628] sm:$0xff]  ;;  %v2187_v14 = vld [vmem:[#allocation20 + $0x618] sm:$0xff]  ;;  %v2188_v28 = vld [vmem:[#allocation20 + $0x620] sm:$0xff] }
 0x1fc   :  { %2802 = vmatpush1.msra.mxu0 %v2022_v33  ;;  %2874 = vmatprep.subr.mxu1 %v2005_v39  ;;  %v2186_v33 = vld [vmem:[#allocation20 + $0x610] sm:$0xff]  ;;  %v2168_v39 = vld [vmem:[#allocation20 + $0x580] sm:$0xff] }
 0x1fd   :  { %2803 = vmatprep.subr.mxu0 %v2003_v37  ;;  %2875 = vmatpush1.msra.mxu1 %v2004_v45  ;;  %v2167_v37 = vld [vmem:[#allocation20 + $0x578] sm:$0xff]  ;;  %v2149_v45 = vld [vmem:[#allocation20 + $0x4e8] sm:$0xff] }
 0x1fe   :  { %2804 = vmatpush1.msra.mxu0 %v2002_v41  ;;  %2908 = vmatprep.mubr.f32.mxu1 %v13158_v21  ;;  %v2166_v41 = vld [vmem:[#allocation20 + $0x570] sm:$0xff] }
 0x1ff   :  { %2837 = vmatprep.mubr.f32.mxu0 %v13158_v21  ;;  %2909 = vmatmul.mubr.f32.vlgmr.msra.gmra.mxu1 %v13518_v4 }
 0x200   :  { %2915 = vmatprep.subr.mxu0 %v2307_v50  ;;  %2986 = vmatprep.subr.mxu1 %v2309_v59  ;;  %v2147_v50 = vld [vmem:[#allocation20 + $0x4d8] sm:$0xff]  ;;  %v2146_v59 = vld [vmem:[#allocation20 + $0x4d0] sm:$0xff] }
 0x201   :  { %2838 = vmatmul.mubr.f32.vlgmr.msra.gmra.mxu0 %v13518_v4  ;;  %2987 = vmatpush1.msra.mxu1 %v2308_v57  ;;  %v2129_v57 = vld [vmem:[#allocation20 + $0x448] sm:$0xff] }
 0x202   :  { %2916 = vmatpush1.msra.mxu0 %v2306_v56  ;;  %2988 = vmatprep.subr.mxu1 %v2289_v62  ;;  %v2148_v56 = vld [vmem:[#allocation20 + $0x4e0] sm:$0xff]  ;;  %v2127_v62 = vld [vmem:[#allocation20 + $0x438] sm:$0xff] }
 0x203   :  { %2917 = vmatprep.subr.mxu0 %v2287_v3  ;;  %2989 = vmatpush1.msra.mxu1 %v2288_v46  ;;  %v2128_v3 = vld [vmem:[#allocation20 + $0x440] sm:$0xff]  ;;  %v2126_v46 = vld [vmem:[#allocation20 + $0x430] sm:$0xff] }
 0x204   :  { %2918 = vmatpush1.msra.mxu0 %v2286_v53  ;;  %2990 = vmatprep.subr.mxu1 %v2269_v6  ;;  %v2109_v53 = vld [vmem:[#allocation20 + $0x3a8] sm:$0xff]  ;;  %v2107_v6 = vld [vmem:[#allocation20 + $0x398] sm:$0xff] }
 0x205   :  { %2919 = vmatprep.subr.mxu0 %v2267_v8  ;;  %2991 = vmatpush1.msra.mxu1 %v2268_v9  ;;  %v2106_v8 = vld [vmem:[#allocation20 + $0x390] sm:$0xff]  ;;  %v2108_v9 = vld [vmem:[#allocation20 + $0x3a0] sm:$0xff] }
 0x206   :  { %2920 = vmatpush1.msra.mxu0 %v2266_v10  ;;  %2992 = vmatprep.subr.mxu1 %v2249_v11  ;;  %v2089_v10 = vld [vmem:[#allocation20 + $0x308] sm:$0xff]  ;;  %v2087_v11 = vld [vmem:[#allocation20 + $0x2f8] sm:$0xff] }
 0x207   :  { %2921 = vmatprep.subr.mxu0 %v2247_v12  ;;  %2993 = vmatpush1.msra.mxu1 %v2248_v13  ;;  %v2088_v12 = vld [vmem:[#allocation20 + $0x300] sm:$0xff]  ;;  %v1232_v13 = vrot.slane %v13488_v35, %v13459_v43 }
 0x208   :  { %2922 = vmatpush1.msra.mxu0 %v2246_v7  ;;  %2994 = vmatprep.subr.mxu1 %v2229_v17  ;;  %v2086_v7 = vld [vmem:[#allocation20 + $0x2f0] sm:$0xff]  ;;  %v2069_v17 = vld [vmem:[#allocation20 + $0x268] sm:$0xff] }
 0x209   :  { %2923 = vmatprep.subr.mxu0 %v2227_v19  ;;  %2995 = vmatpush1.msra.mxu1 %v2228_v20  ;;  %v2067_v19 = vld [vmem:[#allocation20 + $0x258] sm:$0xff]  ;;  %v1236_v20 = vrot.slane %v13488_v35, %v13464_v18 }
 0x20a   :  { %2924 = vmatpush1.msra.mxu0 %v2226_v22  ;;  %2996 = vmatprep.subr.mxu1 %v2209_v23  ;;  %v1224_v22 = vrot.slane %v13488_v35, %v13453_v38  ;;  %v2068_v23 = vld [vmem:[#allocation20 + $0x260] sm:$0xff] }
 0x20b   :  { %2925 = vmatprep.subr.mxu0 %v2207_v55  ;;  %2997 = vmatpush1.msra.mxu1 %v2208_v24  ;;  %v2066_v55 = vld [vmem:[#allocation20 + $0x250] sm:$0xff]  ;;  %v2049_v24 = vld [vmem:[#allocation20 + $0x1c8] sm:$0xff] }
 0x20c   :  { %2926 = vmatpush1.msra.mxu0 %v2206_v25  ;;  %2998 = vmatprep.subr.mxu1 %v2189_v63  ;;  %v2047_v63 = vld [vmem:[#allocation20 + $0x1b8] sm:$0xff] }
 0x20d   :  { %2927 = vmatprep.subr.mxu0 %v2187_v14  ;;  %2999 = vmatpush1.msra.mxu1 %v2188_v28  ;;  %v2048_v14 = vld [vmem:[#allocation20 + $0x1c0] sm:$0xff] }
 0x20e   :  { %2928 = vmatpush1.msra.mxu0 %v2186_v33  ;;  %3000 = vmatprep.subr.mxu1 %v2169_v60  ;;  %v1228_v33 = vrot.slane %v13488_v35, %v13456_v61  ;;  %v2046_v60 = vld [vmem:[#allocation20 + $0x1b0] sm:$0xff] }
 0x20f   :  { %2929 = vmatprep.subr.mxu0 %v2167_v37  ;;  %3001 = vmatpush1.msra.mxu1 %v2168_v39  ;;  %v2029_v37 = vld [vmem:[#allocation20 + $0x128] sm:$0xff] }
 0x210   :  { %2930 = vmatpush1.msra.mxu0 %v2166_v41  ;;  %3002 = vmatprep.subr.mxu1 %v2149_v45  ;;  %v2027_v45 = vld [vmem:[#allocation20 + $0x118] sm:$0xff] }
 0x211   :  { %2931 = vmatprep.subr.mxu0 %v2147_v50  ;;  %3003 = vmatpush1.msra.mxu1 %v2148_v56  ;;  %v2026_v56 = vld [vmem:[#allocation20 + $0x110] sm:$0xff] }
 0x212   :  { %2932 = vmatpush1.msra.mxu0 %v2146_v59  ;;  %3004 = vmatprep.subr.mxu1 %v2129_v57  ;;  %v2028_v57 = vld [vmem:[#allocation20 + $0x120] sm:$0xff] }
 0x213   :  { %2933 = vmatprep.subr.mxu0 %v2127_v62  ;;  %3005 = vmatpush1.msra.mxu1 %v2128_v3  ;;  %v2009_v62 = vld [vmem:[#allocation20 + $0x88] sm:$0xff] }
 0x214   :  { %2934 = vmatpush1.msra.mxu0 %v2126_v46  ;;  %3006 = vmatprep.subr.mxu1 %v2109_v53  ;;  %v2007_v46 = vld [vmem:[#allocation20 + $0x78] sm:$0xff]  ;;  %v2008_v53 = vld [vmem:[#allocation20 + $0x80] sm:$0xff] }
 0x215   :  { %2935 = vmatprep.subr.mxu0 %v2107_v6  ;;  %3007 = vmatpush1.msra.mxu1 %v2108_v9  ;;  %v1773_v25 = vpop.f32.mrf.mxu1  ;;  %v2006_v9 = vld [vmem:[#allocation20 + $0x70] sm:$0xff]  ;;  %v11866_v6 = vld [vmem:[#allocation14 + $0x80] ss:$8 sps:$4 sm:$0xff]  }
 0x216   :  { %2936 = vmatpush1.msra.mxu0 %v2106_v8  ;;  %3008 = vmatprep.subr.mxu1 %v2089_v10  ;;  %v13528_v28 = vadd.f32 %v1773_v25, %v1232_v13  ;;  %v1702_v41 = vpop.f32.mrf.mxu0  ;;  %v11802_v13 = vld [vmem:[#allocation14 + $0x74] ss:$8 sps:$4 sm:$0xff]   ;;  %v2251_v25 = vld [vmem:[#allocation20 + $0x818] sm:$0xff] }
 0x217   :  { %2937 = vmatprep.subr.mxu0 %v2087_v11  ;;  %3009 = vmatpush1.msra.mxu1 %v2088_v12  ;;  %v1775_v39 = vpop.f32.mrf.mxu1  ;;  %v13534_v59 = vadd.f32 %v1702_v41, %v1224_v22  ;;  %v2311_v11 = vld [vmem:[#allocation20 + $0x9f8] sm:$0xff]  ;;  %v11800_v12 = vld [vmem:[#allocation14 + $0x70] ss:$8 sps:$4 sm:$0xff]  }
 0x218   :  { %14104 = vst [vmem:[#allocation38_spill] sm:$0xff] %v13528_v28  ;;  %2938 = vmatpush1.msra.mxu0 %v2086_v7  ;;  %3010 = vmatprep.subr.mxu1 %v2069_v17  ;;  %v13532_v50 = vadd.f32 %v1775_v39, %v1236_v20  ;;  %v1704_v3 = vpop.f32.mrf.mxu0  ;;  %v2310_v7 = vld [vmem:[#allocation20 + $0x9f0] sm:$0xff]  ;;  %v11805_v17 = vld [vmem:[#allocation14 + $0x64] ss:$8 sps:$4 sm:$0xff]   ;;  %v11803_v22 = vld [vmem:[#allocation14 + $0x60] ss:$8 sps:$4 sm:$0xff]  }
 0x219   :  { %2939 = vmatprep.subr.mxu0 %v2067_v19  ;;  %3011 = vmatpush1.msra.mxu1 %v2068_v23  ;;  %v13538_v8 = vadd.f32 %v1704_v3, %v1228_v33  ;;  %v2291_v19 = vld [vmem:[#allocation20 + $0x958] sm:$0xff]  ;;  %v2290_v20 = vld [vmem:[#allocation20 + $0x950] sm:$0xff] }
 0x21a   :  { %14105 = vst [vmem:[#allocation39_spill] sm:$0xff] %v13532_v50  ;;  %2940 = vmatpush1.msra.mxu0 %v2066_v55  ;;  %3012 = vmatprep.subr.mxu1 %v2049_v24  ;;  %v2271_v55 = vld [vmem:[#allocation20 + $0x8b8] sm:$0xff]  ;;  %v11808_v23 = vld [vmem:[#allocation14 + $0x54] ss:$8 sps:$4 sm:$0xff]   ;;  %v11812_v3 = vld [vmem:[#allocation14 + $0x30] ss:$8 sps:$4 sm:$0xff]  }
 0x21b   :  { %14106 = vst [vmem:[#allocation40_spill] sm:$0xff] %v13538_v8  ;;  %2941 = vmatprep.subr.mxu0 %v2047_v63  ;;  %3013 = vmatpush1.msra.mxu1 %v2048_v14  ;;  %v2270_v24 = vld [vmem:[#allocation20 + $0x8b0] sm:$0xff]  ;;  %v2231_v33 = vld [vmem:[#allocation20 + $0x778] sm:$0xff] }
 0x21c   :  { %2942 = vmatpush1.msra.mxu0 %v2046_v60  ;;  %3014 = vmatprep.subr.mxu1 %v2029_v37  ;;  %v2250_v63 = vld [vmem:[#allocation20 + $0x810] sm:$0xff]  ;;  %v11811_v60 = vld [vmem:[#allocation14 + $0x44] ss:$8 sps:$4 sm:$0xff]   ;;  %v11869_v10 = vld [vmem:[#allocation14 + $0x100] ss:$8 sps:$4 sm:$0xff]  }
 0x21d   :  { %2943 = vmatprep.subr.mxu0 %v2027_v45  ;;  %3015 = vmatpush1.msra.mxu1 %v2028_v57  ;;  %v11806_v14 = vld [vmem:[#allocation14 + $0x50] ss:$8 sps:$4 sm:$0xff]   ;;  %v2211_v39 = vld [vmem:[#allocation20 + $0x6d8] sm:$0xff] }
 0x21e   :  { %2944 = vmatpush1.msra.mxu0 %v2026_v56  ;;  %3016 = vmatprep.subr.mxu1 %v2009_v62  ;;  %v2230_v37 = vld [vmem:[#allocation20 + $0x770] sm:$0xff]  ;;  %v11809_v45 = vld [vmem:[#allocation14 + $0x40] ss:$8 sps:$4 sm:$0xff]  }
 0x21f   :  { %2945 = vmatprep.subr.mxu0 %v2007_v46  ;;  %3017 = vmatpush1.msra.mxu1 %v2008_v53  ;;  %v2210_v41 = vld [vmem:[#allocation20 + $0x6d0] sm:$0xff]  ;;  %v2171_v62 = vld [vmem:[#allocation20 + $0x598] sm:$0xff] }
 0x220   :  { %2946 = vmatpush1.msra.mxu0 %v2006_v9  ;;  %3050 = vmatprep.mubr.f32.mxu1 %v13158_v21  ;;  %v11814_v56 = vld [vmem:[#allocation14 + $0x34] ss:$8 sps:$4 sm:$0xff]   ;;  %v2151_v46 = vld [vmem:[#allocation20 + $0x4f8] sm:$0xff] }
 0x221   :  { %2979 = vmatprep.mubr.f32.mxu0 %v13158_v21  ;;  %3051 = vmatmul.mubr.f32.vlgmr.msra.gmra.mxu1 %v13518_v4  ;;  %v2190_v57 = vld [vmem:[#allocation20 + $0x630] sm:$0xff]  ;;  %v11817_v53 = vld [vmem:[#allocation14 + $0x24] ss:$8 sps:$4 sm:$0xff]  }
 0x222   :  { %3057 = vmatprep.subr.mxu0 %v2311_v11  ;;  %3992 = vmatprep.subr.bf16.mxu1 %v11802_v13  ;;  %v2150_v9 = vld [vmem:[#allocation20 + $0x4f0] sm:$0xff]  ;;  %v13548_v11 = vld [vmem:[#allocation19 + $0x10] sm:$0xf]  ;;  %v3178_v13 = vshll.u32 %v13427_v52, 16 }
 0x223   :  { %2980 = vmatmul.mubr.f32.vlgmr.msra.gmra.mxu0 %v13518_v4  ;;  %3993 = vmatpush1.bf16.msra.mxu1 %v11800_v12  ;;  %v3175_v12 = vshrl.u32 %v13427_v52, 16 }
 0x224   :  { %3058 = vmatpush1.msra.mxu0 %v2310_v7  ;;  %4024 = vmatprep.mubr.bf16.mxu1 %v13443_v29  ;;  %v2191_v29 = vld [vmem:[#allocation20 + $0x638] sm:$0xff] }
 0x225   :  { %3059 = vmatprep.subr.mxu0 %v2291_v19  ;;  %3994 = vmatprep.subr.bf16.mxu1 %v11805_v17  ;;  %v2131_v7 = vld [vmem:[#allocation20 + $0x458] sm:$0xff]  ;;  %v2130_v17 = vld [vmem:[#allocation20 + $0x450] sm:$0xff] }
 0x226   :  { %3060 = vmatpush1.msra.mxu0 %v2290_v20  ;;  %3121 = vmatprep.mubr.f32.mxu0 %v13158_v21  ;;  %v2170_v21 = vld [vmem:[#allocation20 + $0x590] sm:$0xff]  ;;  %v11815_v19 = vld [vmem:[#allocation14 + $0x20] ss:$8 sps:$4 sm:$0xff]  }
 0x227   :  { %3061 = vmatprep.subr.mxu0 %v2271_v55  ;;  %3995 = vmatpush1.bf16.msra.mxu1 %v11803_v22  ;;  %v2111_v20 = vld [vmem:[#allocation20 + $0x3b8] sm:$0xff]  ;;  %v11820_v22 = vld [vmem:[#allocation14 + $0x14] ss:$8 sps:$4 sm:$0xff]  }
 0x228   :  { %3062 = vmatpush1.msra.mxu0 %v2270_v24  ;;  %3996 = vmatprep.subr.bf16.mxu1 %v11808_v23  ;;  %v2110_v55 = vld [vmem:[#allocation20 + $0x3b0] sm:$0xff]  ;;  %v3177_v23 = vrot.slane %v3175_v12, 4  ;;  %v3180_v24 = vrot.slane %v3178_v13, 5  ;;  %v2031_v12 = vld [vmem:[#allocation20 + $0x138] sm:$0xff] }
 0x229   :  { %3063 = vmatprep.subr.mxu0 %v2251_v25  ;;  %v2091_v25 = vld [vmem:[#allocation20 + $0x318] sm:$0xff]  ;;  %v11826_v13 = vld [vmem:[#allocation14 + $0xf4] ss:$8 sps:$4 sm:$0xff]  }
 0x22a   :  { %3064 = vmatpush1.msra.mxu0 %v2250_v63  ;;  %v1248_v63 = vrot.slane %v13548_v11, %v13376_v27 }
 0x22b   :  { %3065 = vmatprep.subr.mxu0 %v2231_v33  ;;  %3997 = vmatpush1.bf16.msra.mxu1 %v11806_v14  ;;  %v2090_v14 = vld [vmem:[#allocation20 + $0x310] sm:$0xff] }
 0x22c   :  { %3066 = vmatpush1.msra.mxu0 %v2230_v37  ;;  %3998 = vmatprep.subr.bf16.mxu1 %v11811_v60  ;;  %v11818_v33 = vld [vmem:[#allocation14 + $0x10] ss:$8 sps:$4 sm:$0xff]   ;;  %v2071_v60 = vld [vmem:[#allocation20 + $0x278] sm:$0xff] }
 0x22d   :  { %3067 = vmatprep.subr.mxu0 %v2211_v39  ;;  %v11823_v37 = vld [vmem:[#allocation14 + $0x4] ss:$8 sps:$4 sm:$0xff]   ;;  %v1252_v39 = vrot.slane %v13548_v11, %v13381_v32 }
 0x22e   :  { %3068 = vmatpush1.msra.mxu0 %v2210_v41  ;;  %v1240_v41 = vrot.slane %v13488_v35, %v13491_v2 }
 0x22f   :  { %3069 = vmatprep.subr.mxu0 %v2191_v29  ;;  %3999 = vmatpush1.bf16.msra.mxu1 %v11809_v45  ;;  %v2070_v45 = vld [vmem:[#allocation20 + $0x270] sm:$0xff] }
 0x230   :  { %3070 = vmatpush1.msra.mxu0 %v2190_v57  ;;  %4000 = vmatprep.subr.bf16.mxu1 %v11814_v56  ;;  %v3181_v56 = vor.u32 %v3180_v24, %v3177_v23  ;;  %v2051_v57 = vld [vmem:[#allocation20 + $0x1d8] sm:$0xff] }
 0x231   :  { %3071 = vmatprep.subr.mxu0 %v2171_v62 }
 0x232   :  { %3072 = vmatpush1.msra.mxu0 %v2170_v21  ;;  %v1244_v21 = vrot.slane %v13488_v35, %v13494_v5  ;;  %v2011_v35 = vld [vmem:[#allocation20 + $0x98] sm:$0xff] }
 0x233   :  { %3073 = vmatprep.subr.mxu0 %v2151_v46  ;;  %4001 = vmatpush1.bf16.msra.mxu1 %v11812_v3  ;;  %v2050_v3 = vld [vmem:[#allocation20 + $0x1d0] sm:$0xff]  ;;  %v11821_v46 = vld [vmem:[#allocation14] ss:$8 sps:$4 sm:$0xff]  }
 0x234   :  { %3074 = vmatpush1.msra.mxu0 %v2150_v9  ;;  %4002 = vmatprep.subr.bf16.mxu1 %v11817_v53 }
 0x235   :  { %3075 = vmatprep.subr.mxu0 %v2131_v7 }
 0x236   :  { %3076 = vmatpush1.msra.mxu0 %v2130_v17 }
 0x237   :  { %3077 = vmatprep.subr.mxu0 %v2111_v20  ;;  %4003 = vmatpush1.bf16.msra.mxu1 %v11815_v19  ;;  %v1915_v29 = vpop.f32.mrf.mxu1  ;;  %v2030_v19 = vld [vmem:[#allocation20 + $0x130] sm:$0xff]  ;;  %v3264_v20 = vshrl.u32 %v3181_v56, 16 }
 0x238   :  { %3078 = vmatpush1.msra.mxu0 %v2110_v55  ;;  %4004 = vmatprep.subr.bf16.mxu1 %v11820_v22  ;;  %v13558_v62 = vadd.f32 %v1915_v29, %v1248_v63  ;;  %v1844_v9 = vpop.f32.mrf.mxu0  ;;  %v3267_v22 = vshll.u32 %v3181_v56, 16  ;;  %v11829_v63 = vld [vmem:[#allocation14 + $0x174] ss:$8 sps:$4 sm:$0xff]   ;;  %v11830_v29 = vld [vmem:[#allocation14 + $0xe0] ss:$8 sps:$4 sm:$0xff]  }
 0x239   :  { %3079 = vmatprep.subr.mxu0 %v2091_v25  ;;  %v1917_v53 = vpop.f32.mrf.mxu1  ;;  %v13564_v17 = vadd.f32 %v1844_v9, %v1240_v41  ;;  %v2010_v25 = vld [vmem:[#allocation20 + $0x90] sm:$0xff]  ;;  %v11833_v56 = vld [vmem:[#allocation14 + $0x160] ss:$8 sps:$4 sm:$0xff]   ;;  %v11844_v9 = vld [vmem:[#allocation14 + $0xc4] ss:$8 sps:$4 sm:$0xff]  }
 0x23a   :  { %14107 = vst [vmem:[#allocation41_spill] sm:$0xff] %v13558_v62  ;;  %3080 = vmatpush1.msra.mxu0 %v2090_v14  ;;  %v13562_v7 = vadd.f32 %v1917_v53, %v1252_v39  ;;  %v1846_v55 = vpop.f32.mrf.mxu0  ;;  %v11824_v14 = vld [vmem:[#allocation14 + $0xf0] ss:$8 sps:$4 sm:$0xff]   ;;  %v3269_v41 = vrot.slane %v3267_v22, 4 }
 0x23b   :  { %14109 = vst [vmem:[#allocation43_spill] sm:$0xff] %v13564_v17  ;;  %3081 = vmatprep.subr.mxu0 %v2071_v60  ;;  %4005 = vmatpush1.bf16.msra.mxu1 %v11818_v33  ;;  %v13568_v24 = vadd.f32 %v1846_v55, %v1244_v21  ;;  %v11827_v39 = vld [vmem:[#allocation14 + $0x170] ss:$8 sps:$4 sm:$0xff]   ;;  %v3266_v60 = vrot.slane %v3264_v20, 3  ;;  %v11838_v21 = vld [vmem:[#allocation14 + $0xd4] ss:$8 sps:$4 sm:$0xff]  }
 0x23c   :  { %14108 = vst [vmem:[#allocation42_spill] sm:$0xff] %v13562_v7  ;;  %3082 = vmatpush1.msra.mxu0 %v2070_v45  ;;  %4006 = vmatprep.subr.bf16.mxu1 %v11823_v37  ;;  %v11832_v37 = vld [vmem:[#allocation14 + $0xe4] ss:$8 sps:$4 sm:$0xff]   ;;  %v11839_v53 = vld [vmem:[#allocation14 + $0x150] ss:$8 sps:$4 sm:$0xff]  }
 0x23d   :  { %14110 = vst [vmem:[#allocation44_spill] sm:$0xff] %v13568_v24  ;;  %3083 = vmatprep.subr.mxu0 %v2051_v57  ;;  %v11835_v45 = vld [vmem:[#allocation14 + $0x164] ss:$8 sps:$4 sm:$0xff]   ;;  %v3270_v57 = vor.u32 %v3269_v41, %v3266_v60  ;;  %v11853_v20 = vld [vmem:[#allocation14 + $0x134] ss:$8 sps:$4 sm:$0xff]  }
 0x23e   :  { %3084 = vmatpush1.msra.mxu0 %v2050_v3  ;;  %v11841_v3 = vld [vmem:[#allocation14 + $0x154] ss:$8 sps:$4 sm:$0xff]   ;;  %v11848_v22 = vld [vmem:[#allocation14 + $0xb0] ss:$8 sps:$4 sm:$0xff]   ;;  %v13579_v41 = vld [vmem:[#allocation22] sm:$0xff] }
 0x23f   :  { %3085 = vmatprep.subr.mxu0 %v2031_v12  ;;  %4007 = vmatpush1.bf16.msra.mxu1 %v11821_v46  ;;  %v11836_v46 = vld [vmem:[#allocation14 + $0xd0] ss:$8 sps:$4 sm:$0xff]   ;;  %v11847_v12 = vld [vmem:[#allocation14 + $0x144] ss:$8 sps:$4 sm:$0xff]  }
 0x240   :  { %3086 = vmatpush1.msra.mxu0 %v2030_v19  ;;  %4008 = vmatprep.subr.bf16.mxu1 %v11826_v13  ;;  %v11842_v13 = vld [vmem:[#allocation14 + $0xc0] ss:$8 sps:$4 sm:$0xff]   ;;  %v11851_v55 = vld [vmem:[#allocation14 + $0x130] ss:$8 sps:$4 sm:$0xff]  }
 0x241   :  { %3087 = vmatprep.subr.mxu0 %v2011_v35  ;;  %v11845_v19 = vld [vmem:[#allocation14 + $0x140] ss:$8 sps:$4 sm:$0xff]   ;;  %v3133_v60 = vld [vmem:[#allocation3 + $0x38] sm:$0x88] }
 0x242   :  { %3088 = vmatpush1.msra.mxu0 %v2010_v25  ;;  %v13573_v35 = vld [vmem:[#allocation3 + $0x10] sm:$0xff] }
 0x243   :  { %3122 = vmatmul.mubr.f32.vlgmr.msra.gmra.mxu0 %v13518_v4  ;;  %4045 = vmatprep.subr.bf16.mxu0 %v11829_v63  ;;  %v11850_v4 = vld [vmem:[#allocation14 + $0xb4] ss:$8 sps:$4 sm:$0xff]   ;;  %v11856_v25 = vld [vmem:[#allocation14 + $0xa4] ss:$8 sps:$4 sm:$0xff]  }
 0x244   :  { %4009 = vmatpush2.bf16.msra.mxu1 %v11824_v14  ;;  %4046 = vmatpush1.bf16.msra.mxu0 %v11827_v39  ;;  %v11859_v63 = vld [vmem:[#allocation14 + $0x124] ss:$8 sps:$4 sm:$0xff]   ;;  %v13575_v14 = vld [vmem:[#allocation3 + $0x40] sm:$0x11] }
 0x245   :  { %4077 = vmatprep.mubr.bf16.mxu0 %v3270_v57  ;;  %4010 = vmatprep.subr.bf16.mxu1 %v11832_v37  ;;  %v13577_v39 = vld [vmem:[#allocation3 + $0x30] sm:$0xff]  ;;  %v10900_v57 = vcombine.high %v13573_v35, %v13573_v35 }
 0x246   :  { %4047 = vmatprep.subr.bf16.mxu0 %v11835_v45  ;;  %v11854_v37 = vld [vmem:[#allocation14 + $0xa0] ss:$8 sps:$4 sm:$0xff]  }
 0x247   :  { %v11857_v45 = vld [vmem:[#allocation14 + $0x120] ss:$8 sps:$4 sm:$0xff]  }
 0x248   :  { %4011 = vmatpush2.bf16.msra.mxu1 %v11830_v29  ;;  %4048 = vmatpush1.bf16.msra.mxu0 %v11833_v56  ;;  %v11862_v29 = vld [vmem:[#allocation14 + $0x94] ss:$8 sps:$4 sm:$0xff]  }
 0x249   :  { %4012 = vmatprep.subr.bf16.mxu1 %v11838_v21  ;;  %4049 = vmatprep.subr.bf16.mxu0 %v11841_v3  ;;  %v11865_v56 = vld [vmem:[#allocation14 + $0x114] ss:$8 sps:$4 sm:$0xff]   ;;  %v10906_v21 = vcombine.high %v13575_v14, %v13575_v14  ;;  %v10898_v3 = vcombine.high %v3133_v60, %v13577_v39 }
 0x24b   :  { %v3324_v23 = vshrl.u32 %v10898_v3, 16  ;;  %v3327_v33 = vshll.u32 %v10898_v3, 16 }
 0x24c   :  { %4013 = vmatpush2.bf16.msra.mxu1 %v11836_v46  ;;  %4050 = vmatpush1.bf16.msra.mxu0 %v11839_v53  ;;  %v11860_v46 = vld [vmem:[#allocation14 + $0x90] ss:$8 sps:$4 sm:$0xff]  }
 0x24d   :  { %4014 = vmatprep.subr.bf16.mxu1 %v11844_v9  ;;  %4051 = vmatprep.subr.bf16.mxu0 %v11847_v12  ;;  %v11863_v53 = vld [vmem:[#allocation14 + $0x110] ss:$8 sps:$4 sm:$0xff]   ;;  %v2321_v9 = vrot.slane %v13579_v41, %v13376_v27  ;;  %v11868_v12 = vld [vmem:[#allocation14 + $0x84] ss:$8 sps:$4 sm:$0xff]   ;;  %v3326_v48 = vrot.slane %v3324_v23, 3 }
 0x24e   :  { %v11885_v23 = vld [vmem:[#allocation14 + $0x264] ss:$8 sps:$4 sm:$0xff]  }
 0x250   :  { %4015 = vmatpush2.bf16.msra.mxu1 %v11842_v13  ;;  %4052 = vmatpush1.bf16.msra.mxu0 %v11845_v19  ;;  %v11871_v13 = vld [vmem:[#allocation14 + $0x104] ss:$8 sps:$4 sm:$0xff]   ;;  %v3332_v19 = vshrl.u32 %v10900_v57, 16 }
 0x251   :  { %4016 = vmatprep.subr.bf16.mxu1 %v11850_v4  ;;  %4053 = vmatprep.subr.bf16.mxu0 %v11853_v20  ;;  %v3335_v4 = vshll.u32 %v10900_v57, 16  ;;  %v2325_v20 = vrot.slane %v13579_v41, %v13381_v32  ;;  %v11877_v57 = vld [vmem:[#allocation14 + $0x274] ss:$8 sps:$4 sm:$0xff]  }
 0x253   :  { %v3337_v49 = vrot.slane %v3335_v4, 4 }
 0x254   :  { %4017 = vmatpush2.bf16.msra.mxu1 %v11848_v22  ;;  %4054 = vmatpush1.bf16.msra.mxu0 %v11851_v55  ;;  %v3209_v22 = vrot.slane %v13427_v52, 5  ;;  %v3212_v55 = vrot.slane %v10906_v21, 5  ;;  %v11874_v52 = vld [vmem:[#allocation14 + $0x1f4] ss:$8 sps:$4 sm:$0xff]   ;;  %v3334_v21 = vrot.slane %v3332_v19, 3 }
 0x255   :  { %4018 = vmatprep.subr.bf16.mxu1 %v11856_v25  ;;  %4055 = vmatprep.subr.bf16.mxu0 %v11859_v63  ;;  %v1256_v25 = vrot.slane %v13548_v11, %v13453_v38  ;;  %v11872_v19 = vld [vmem:[#allocation14 + $0x1f0] ss:$8 sps:$4 sm:$0xff]  }
 0x256   :  { %v3290_v58 = vshrl.u32 %v3209_v22, 16 }
 0x258   :  { %4019 = vmatpush2.bf16.msra.mxu1 %v11854_v37  ;;  %4056 = vmatpush1.bf16.msra.mxu0 %v11857_v45  ;;  %v10899_v37 = vcombine.low %v13573_v35, %v13573_v35  ;;  %v1260_v45 = vrot.slane %v13548_v11, %v13456_v61  ;;  %v3329_v11 = vrot.slane %v3327_v33, 4  ;;  %v3292_v24 = vrot.slane %v3290_v58, 3  ;;  %v11891_v58 = vld [vmem:[#allocation14 + $0x250] ss:$8 sps:$4 sm:$0xff]  }
 0x259   :  { %4020 = vmatprep.subr.bf16.mxu1 %v11862_v29  ;;  %4057 = vmatprep.subr.bf16.mxu0 %v11865_v56  ;;  %v2484_v63 = vpop.f32.mrf.mxu1  ;;  %v10897_v29 = vcombine.low %v3133_v60, %v13577_v39 }
 0x25a   :  { %v13593_v42 = vadd.f32 %v2484_v63, %v2321_v9  ;;  %v1986_v56 = vpop.f32.mrf.mxu0  ;;  %v3213_v9 = vsel %vm312_vm0, %v3209_v22, %v3212_v55  ;;  %v3315_v60 = vshrl.u32 %v10899_v37, 16  ;;  %v3318_v62 = vshll.u32 %v10899_v37, 16  ;;  %v11880_v37 = vld [vmem:[#allocation14 + $0x1e0] ss:$8 sps:$4 sm:$0xff]  }
 0x25b   :  { %v2486_v0 = vpop.f32.mrf.mxu1  ;;  %v13603_v63 = vadd.f32 %v1986_v56, %v1256_v25  ;;  %v3293_v55 = vshll.u32 %v3209_v22, 16  ;;  %v3298_v25 = vshrl.u32 %v3213_v9, 16  ;;  %v3301_v56 = vshll.u32 %v3213_v9, 16  ;;  %v11883_v22 = vld [vmem:[#allocation14 + $0x260] ss:$8 sps:$4 sm:$0xff]  }
 0x25c   :  { %4021 = vmatpush2.bf16.msra.mxu1 %v11860_v46  ;;  %4058 = vmatpush1.bf16.msra.mxu0 %v11863_v53  ;;  %v13600_v3 = vadd.f32 %v2486_v0, %v2325_v20  ;;  %v1988_v7 = vpop.f32.mrf.mxu0  ;;  %v11875_v0 = vld [vmem:[#allocation14 + $0x270] ss:$8 sps:$4 sm:$0xff]   ;;  %v3338_v53 = vor.u32 %v3337_v49, %v3334_v21  ;;  %v11882_v20 = vld [vmem:[#allocation14 + $0x1e4] ss:$8 sps:$4 sm:$0xff]   ;;  %v3307_v33 = vshrl.u32 %v10897_v29, 16  ;;  %v3330_v4 = vor.u32 %v3329_v11, %v3326_v48 }
 0x25d   :  { %14111 = vst [vmem:[#allocation45_spill] sm:$0xff] %v13603_v63  ;;  %4022 = vmatprep.subr.bf16.mxu1 %v11868_v12  ;;  %4059 = vmatprep.subr.bf16.mxu0 %v11871_v13  ;;  %v13607_v46 = vadd.f32 %v1988_v7, %v1260_v45  ;;  %v3310_v12 = vshll.u32 %v10897_v29, 16  ;;  %v3317_v7 = vrot.slane %v3315_v60, 3  ;;  %v3320_v45 = vrot.slane %v3318_v62, 4  ;;  %v11888_v62 = vld [vmem:[#allocation14 + $0x1d0] ss:$8 sps:$4 sm:$0xff]  }
 0x25e   :  { %v3339_v49 = vsel %vm319_vm1, %v3330_v4, %v3338_v53  ;;  %v3300_v21 = vrot.slane %v3298_v25, 3  ;;  %v3303_v9 = vrot.slane %v3301_v56, 4  ;;  %v3309_v29 = vrot.slane %v3307_v33, 3  ;;  %v11898_v11 = vld [vmem:[#allocation14 + $0x1c4] ss:$8 sps:$4 sm:$0xff]  }
 0x25f   :  { %14112 = vst [vmem:[#allocation46_spill] sm:$0xff] %v13607_v46  ;;  %v3312_v13 = vrot.slane %v3310_v12, 4  ;;  %v3321_v48 = vor.u32 %v3320_v45, %v3317_v7  ;;  %v11901_v60 = vld [vmem:[#allocation14 + $0x244] ss:$8 sps:$4 sm:$0xff]   ;;  %v11907_v25 = vld [vmem:[#allocation14 + $0x234] ss:$8 sps:$4 sm:$0xff]  }
 0x260   :  { %4023 = vmatpush2.bf16.msra.mxu1 %v11866_v6  ;;  %4060 = vmatpush1.bf16.msra.mxu0 %v11869_v10  ;;  %v11890_v6 = vld [vmem:[#allocation14 + $0x1d4] ss:$8 sps:$4 sm:$0xff]   ;;  %v3295_v10 = vrot.slane %v3293_v55, 4  ;;  %v11899_v55 = vld [vmem:[#allocation14 + $0x240] ss:$8 sps:$4 sm:$0xff]   ;;  %v3167_v56 = vshrl.u32 %v13447_v40, 16 }
 0x261   :  { %4061 = vmatprep.subr.bf16.mxu0 %v11874_v52  ;;  %4098 = vmatprep.subr.bf16.mxu1 %v11877_v57  ;;  %v11893_v52 = vld [vmem:[#allocation14 + $0x254] ss:$8 sps:$4 sm:$0xff]   ;;  %v3313_v4 = vor.u32 %v3312_v13, %v3309_v29  ;;  %v11902_v33 = vld [vmem:[#allocation14 + $0x1b0] ss:$8 sps:$4 sm:$0xff]   ;;  %v11910_v7 = vld [vmem:[#allocation14 + $0x1a4] ss:$8 sps:$4 sm:$0xff]  }
 0x262   :  { %v3296_v57 = vor.u32 %v3295_v10, %v3292_v24  ;;  %v11904_v24 = vld [vmem:[#allocation14 + $0x1b4] ss:$8 sps:$4 sm:$0xff]   ;;  %v11913_v45 = vld [vmem:[#allocation14 + $0x224] ss:$8 sps:$4 sm:$0xff]   ;;  %v11908_v10 = vld [vmem:[#allocation14 + $0x1a0] ss:$8 sps:$4 sm:$0xff]  }
 0x263   :  { %4025 = vmatmul.mubr.bf16.vlgmr.msra.gmra.mxu1 %v13450_v54  ;;  %v3304_v54 = vor.u32 %v3303_v9, %v3300_v21  ;;  %v3322_v53 = vsel %vm319_vm1, %v3313_v4, %v3321_v48  ;;  %v11911_v29 = vld [vmem:[#allocation14 + $0x220] ss:$8 sps:$4 sm:$0xff]   ;;  %v11919_v48 = vld [vmem:[#allocation14 + $0x214] ss:$8 sps:$4 sm:$0xff]   ;;  %v11925_v4 = vld [vmem:[#allocation14 + $0x204] ss:$8 sps:$4 sm:$0xff]  }
 0x264   :  { %4034 = vmatprep.mubr.bf16.mxu1 %v3339_v49  ;;  %4062 = vmatpush2.bf16.msra.mxu0 %v11872_v19  ;;  %v11896_v19 = vld [vmem:[#allocation14 + $0x1c0] ss:$8 sps:$4 sm:$0xff]   ;;  %v13625_v49 = vcombine.low %v13577_v39, %v13573_v35 }
 0x265   :  { %4099 = vmatpush1.bf16.msra.mxu1 %v11875_v0  ;;  %4063 = vmatprep.subr.bf16.mxu0 %v11882_v20  ;;  %v13616_v0 = vcombine.high %v13577_v39, %v13573_v35  ;;  %v3305_v20 = vsel %vm319_vm1, %v3296_v57, %v3304_v54  ;;  %v11914_v39 = vld [vmem:[#allocation14 + $0x190] ss:$8 sps:$4 sm:$0xff]  }
 0x266   :  { %4100 = vmatprep.subr.bf16.mxu1 %v11885_v23  ;;  %v3170_v23 = vshll.u32 %v13447_v40, 16  ;;  %v3186_v35 = vshll.u32 %v13625_v49, 16  ;;  %v11917_v54 = vld [vmem:[#allocation14 + $0x210] ss:$8 sps:$4 sm:$0xff]  }
 0x267   :  { %v3191_v12 = vshrl.u32 %v13616_v0, 16  ;;  %v3194_v13 = vshll.u32 %v13616_v0, 16 }
 0x268   :  { %4064 = vmatpush2.bf16.msra.mxu0 %v11880_v37  ;;  %v11905_v37 = vld [vmem:[#allocation14 + $0x230] ss:$8 sps:$4 sm:$0xff]  }
 0x269   :  { %4101 = vmatpush1.bf16.msra.mxu1 %v11883_v22  ;;  %4065 = vmatprep.subr.bf16.mxu0 %v11890_v6  ;;  %v3169_v22 = vrot.slane %v3167_v56, 4  ;;  %v3172_v6 = vrot.slane %v3170_v23, 5  ;;  %v3193_v21 = vrot.slane %v3191_v12, 4  ;;  %v3196_v9 = vrot.slane %v3194_v13, 5  ;;  %v11923_v12 = vld [vmem:[#allocation14 + $0x200] ss:$8 sps:$4 sm:$0xff]  }
 0x26a   :  { %4102 = vmatprep.subr.bf16.mxu1 %v11893_v52  ;;  %v11916_v52 = vld [vmem:[#allocation14 + $0x194] ss:$8 sps:$4 sm:$0xff]   ;;  %v2341_v23 = vrot.slane %v13579_v41, %v13464_v18 }
 0x26b   :  { %4035 = vmatmul.mubr.bf16.gmra.mxu1 %v3322_v53  ;;  %v3197_v57 = vor.u32 %v3196_v9, %v3193_v21 }
 0x26c   :  { %4066 = vmatpush2.bf16.msra.mxu0 %v11888_v62  ;;  %4130 = vmatprep.mubr.bf16.mxu1 %v3305_v20  ;;  %v3183_v62 = vshrl.u32 %v13625_v49, 16 }
 0x26d   :  { %4103 = vmatpush1.bf16.msra.mxu1 %v11891_v58  ;;  %4067 = vmatprep.subr.bf16.mxu0 %v11898_v11  ;;  %v3173_v58 = vor.u32 %v3172_v6, %v3169_v22  ;;  %v11922_v11 = vld [vmem:[#allocation14 + $0x184] ss:$8 sps:$4 sm:$0xff]   ;;  %v3353_v56 = vshll.u32 %v3197_v57, 16 }
 0x26e   :  { %4104 = vmatprep.subr.bf16.mxu1 %v11901_v60  ;;  %v2337_v60 = vrot.slane %v13579_v41, %v13459_v43  ;;  %v3185_v53 = vrot.slane %v3183_v62, 4 }
 0x26f   :  { %v3258_v20 = vshll.u32 %v3173_v58, 16 }
 0x270   :  { %4068 = vmatpush2.bf16.msra.mxu0 %v11896_v19  ;;  %v3255_v19 = vshrl.u32 %v3173_v58, 16  ;;  %v11926_v58 = vld [vmem:[#allocation14 + $0x2f0] ss:$8 sps:$4 sm:$0xff]  }
 0x271   :  { %4105 = vmatpush1.bf16.msra.mxu1 %v11899_v55  ;;  %4069 = vmatprep.subr.bf16.mxu0 %v11904_v24  ;;  %v3188_v55 = vrot.slane %v3186_v35, 5  ;;  %v11920_v24 = vld [vmem:[#allocation14 + $0x180] ss:$8 sps:$4 sm:$0xff]   ;;  %v3260_v6 = vrot.slane %v3258_v20, 4 }
 0x272   :  { %4106 = vmatprep.subr.bf16.mxu1 %v11907_v25  ;;  %v3350_v25 = vshrl.u32 %v3197_v57, 16  ;;  %v3257_v22 = vrot.slane %v3255_v19, 3  ;;  %v11931_v57 = vld [vmem:[#allocation14 + $0x2e4] ss:$8 sps:$4 sm:$0xff]   ;;  %v11929_v20 = vld [vmem:[#allocation14 + $0x2e0] ss:$8 sps:$4 sm:$0xff]  }
 0x273   :  { %v3189_v21 = vor.u32 %v3188_v55, %v3185_v53  ;;  %v11934_v55 = vld [vmem:[#allocation14 + $0x2d4] ss:$8 sps:$4 sm:$0xff]  }
 0x274   :  { %4070 = vmatpush2.bf16.msra.mxu0 %v11902_v33  ;;  %v2329_v33 = vrot.slane %v13579_v41, %v13453_v38 }
 0x275   :  { %4107 = vmatpush1.bf16.msra.mxu1 %v11905_v37  ;;  %4071 = vmatprep.subr.bf16.mxu0 %v11910_v7  ;;  %v11928_v7 = vld [vmem:[#allocation14 + $0x2f4] ss:$8 sps:$4 sm:$0xff]   ;;  %v3344_v53 = vshll.u32 %v3189_v21, 16 }
 0x276   :  { %4108 = vmatprep.subr.bf16.mxu1 %v11913_v45  ;;  %v2333_v45 = vrot.slane %v13579_v41, %v13456_v61 }
 0x278   :  { %4072 = vmatpush2.bf16.msra.mxu0 %v11908_v10 }
 0x279   :  { %4109 = vmatpush1.bf16.msra.mxu1 %v11911_v29  ;;  %4073 = vmatprep.subr.bf16.mxu0 %v11916_v52  ;;  %v3352_v29 = vrot.slane %v3350_v25, 3  ;;  %v3355_v52 = vrot.slane %v3353_v56, 4  ;;  %v3346_v25 = vrot.slane %v3344_v53, 4  ;;  %v11932_v56 = vld [vmem:[#allocation14 + $0x2d0] ss:$8 sps:$4 sm:$0xff]  }
 0x27a   :  { %4110 = vmatprep.subr.bf16.mxu1 %v11919_v48 }
 0x27b   :  { %v2626_v13 = vpop.f32.mrf.mxu1 }
 0x27c   :  { %4074 = vmatpush2.bf16.msra.mxu0 %v11914_v39  ;;  %v13635_v37 = vadd.f32 %v2626_v13, %v2337_v60  ;;  %v3341_v60 = vshrl.u32 %v3189_v21, 16  ;;  %v10905_v13 = vcombine.low %v13575_v14, %v13575_v14  ;;  %v3208_v21 = vrot.slane %v13447_v40, 5  ;;  %v11946_v14 = vld [vmem:[#allocation14 + $0x294] ss:$8 sps:$4 sm:$0xff]  }
 0x27d   :  { %4111 = vmatpush1.bf16.msra.mxu1 %v11917_v54  ;;  %4075 = vmatprep.subr.bf16.mxu0 %v11922_v11  ;;  %v2628_v10 = vpop.f32.mrf.mxu1  ;;  %v2555_v9 = vpop.f32.mrf.mxu0  ;;  %v3261_v11 = vor.u32 %v3260_v6, %v3257_v22  ;;  %v11940_v22 = vld [vmem:[#allocation14 + $0x2b4] ss:$8 sps:$4 sm:$0xff]  }
 0x27e   :  { %4112 = vmatprep.subr.bf16.mxu1 %v11925_v4  ;;  %v13639_v48 = vadd.f32 %v2628_v10, %v2341_v23  ;;  %v13641_v62 = vadd.f32 %v2555_v9, %v2329_v33  ;;  %v3356_v4 = vor.u32 %v3355_v52, %v3352_v29  ;;  %v3135_v23 = vld [vmem:[#allocation3 + $0x8] sm:$0x11]  ;;  %v3210_v6 = vrot.slane %v10905_v13, 5  ;;  %v11938_v10 = vld [vmem:[#allocation14 + $0x2b0] ss:$8 sps:$4 sm:$0xff]  }
 0x27f   :  { %v2557_v35 = vpop.f32.mrf.mxu0  ;;  %v11937_v33 = vld [vmem:[#allocation14 + $0x2c4] ss:$8 sps:$4 sm:$0xff]   ;;  %v3215_v29 = vrot.slane %v13616_v0, 5  ;;  %v3273_v53 = vshrl.u32 %v3208_v21, 16 }
 0x280   :  { %4076 = vmatpush2.bf16.msra.mxu0 %v11920_v24  ;;  %v13645_v54 = vadd.f32 %v2557_v35, %v2333_v45  ;;  %v3343_v24 = vrot.slane %v3341_v60, 3  ;;  %v10908_v45 = vcombine.high %v3135_v23, %v3135_v23  ;;  %v11943_v9 = vld [vmem:[#allocation14 + $0x2a4] ss:$8 sps:$4 sm:$0xff]   ;;  %v3211_v35 = vsel %vm312_vm0, %v3208_v21, %v3210_v6  ;;  %v13655_v60 = vld [vmem:[#allocation22 + $0x8] sm:$0xff] }
 0x281   :  { %4113 = vmatpush1.bf16.msra.mxu1 %v11923_v12  ;;  %v3281_v40 = vshrl.u32 %v3211_v35, 16  ;;  %v3379_v0 = vshll.u32 %v3215_v29, 16  ;;  %v3275_v13 = vrot.slane %v3273_v53, 3 }
 0x282   :  { %4114 = vmatprep.subr.bf16.mxu1 %v11928_v7  ;;  %v3347_v12 = vor.u32 %v3346_v25, %v3343_v24  ;;  %v11935_v7 = vld [vmem:[#allocation14 + $0x2c0] ss:$8 sps:$4 sm:$0xff]   ;;  %v3218_v52 = vrot.slane %v10908_v45, 5 }
 0x283   :  { %4078 = vmatmul.mubr.bf16.vlgmr.msra.gmra.mxu0 %v3261_v11  ;;  %v10907_v11 = vcombine.low %v3135_v23, %v3135_v23  ;;  %v11949_v23 = vld [vmem:[#allocation14 + $0x284] ss:$8 sps:$4 sm:$0xff]  }
 0x284   :  { %4087 = vmatprep.mubr.bf16.mxu0 %v3356_v4  ;;  %v3276_v4 = vshll.u32 %v3208_v21, 16  ;;  %v3381_v21 = vrot.slane %v3379_v0, 4 }
 0x285   :  { %4115 = vmatpush2.bf16.msra.mxu1 %v11926_v58  ;;  %v11941_v58 = vld [vmem:[#allocation14 + $0x2a0] ss:$8 sps:$4 sm:$0xff]  }
 0x286   :  { %4116 = vmatprep.subr.bf16.mxu1 %v11931_v57  ;;  %v3219_v57 = vsel %vm312_vm0, %v3215_v29, %v3218_v52  ;;  %v3278_v45 = vrot.slane %v3276_v4, 4  ;;  %v2357_v52 = vrot.slane %v13655_v60, %v13381_v32  ;;  %v2349_v4 = vrot.slane %v13579_v41, %v13494_v5 }
 0x287   :  { %v3384_v24 = vshrl.u32 %v3219_v57, 16  ;;  %v3387_v25 = vshll.u32 %v3219_v57, 16 }
 0x289   :  { %4117 = vmatpush2.bf16.msra.mxu1 %v11929_v20  ;;  %v3284_v20 = vshll.u32 %v3211_v35, 16  ;;  %v11947_v35 = vld [vmem:[#allocation14 + $0x280] ss:$8 sps:$4 sm:$0xff]  }
 0x28a   :  { %4118 = vmatprep.subr.bf16.mxu1 %v11934_v55  ;;  %v3376_v55 = vshrl.u32 %v3215_v29, 16  ;;  %v3389_v29 = vrot.slane %v3387_v25, 4 }
 0x28b   :  { %4088 = vmatmul.mubr.bf16.gmra.mxu0 %v3347_v12  ;;  %v11944_v12 = vld [vmem:[#allocation14 + $0x290] ss:$8 sps:$4 sm:$0xff]   ;;  %v3286_v6 = vrot.slane %v3284_v20, 4 }
 0x28d   :  { %4119 = vmatpush2.bf16.msra.mxu1 %v11932_v56  ;;  %v3214_v56 = vrot.slane %v13625_v49, 5 }
 0x28e   :  { %4120 = vmatprep.subr.bf16.mxu1 %v11937_v33  ;;  %v3216_v33 = vrot.slane %v10907_v11, 5  ;;  %v3279_v11 = vor.u32 %v3278_v45, %v3275_v13 }
 0x28f   :  { %v3359_v20 = vshrl.u32 %v3214_v56, 16 }
 0x290   :  { %v3217_v49 = vsel %vm312_vm0, %v3214_v56, %v3216_v33 }
 0x291   :  { %4121 = vmatpush2.bf16.msra.mxu1 %v11935_v7  ;;  %v2353_v7 = vrot.slane %v13655_v60, %v13376_v27  ;;  %v3367_v0 = vshrl.u32 %v3217_v49, 16  ;;  %v3361_v45 = vrot.slane %v3359_v20, 3 }
 0x292   :  { %4122 = vmatprep.subr.bf16.mxu1 %v11940_v22  ;;  %v3283_v22 = vrot.slane %v3281_v40, 3 }
 0x294   :  { %v3287_v53 = vor.u32 %v3286_v6, %v3283_v22  ;;  %v3369_v22 = vrot.slane %v3367_v0, 3 }
 0x295   :  { %4123 = vmatpush2.bf16.msra.mxu1 %v11938_v10  ;;  %v3378_v10 = vrot.slane %v3376_v55, 3  ;;  %v3362_v55 = vshll.u32 %v3214_v56, 16 }
 0x296   :  { %4124 = vmatprep.subr.bf16.mxu1 %v11943_v9  ;;  %v3386_v9 = vrot.slane %v3384_v24, 3  ;;  %v3370_v24 = vshll.u32 %v3217_v49, 16  ;;  %v3288_v13 = vsel %vm319_vm1, %v3279_v11, %v3287_v53  ;;  %v2369_v49 = vrot.slane %v13655_v60, %v13459_v43 }
 0x297   :  { %v3382_v33 = vor.u32 %v3381_v21, %v3378_v10  ;;  %v3364_v56 = vrot.slane %v3362_v55, 4  ;;  %v2365_v11 = vrot.slane %v13655_v60, %v13456_v61 }
 0x298   :  { %v3390_v39 = vor.u32 %v3389_v29, %v3386_v9  ;;  %v3372_v6 = vrot.slane %v3370_v24, 4  ;;  %v2314_v24 = vld [vmem:[#allocation22 + $0x10] sm:$0xf] }
 0x299   :  { %4125 = vmatpush2.bf16.msra.mxu1 %v11941_v58  ;;  %v2345_v58 = vrot.slane %v13579_v41, %v13491_v2  ;;  %v3365_v9 = vor.u32 %v3364_v56, %v3361_v45  ;;  %v2381_v56 = vrot.slane %v13655_v60, %v13494_v5  ;;  %v2397_v5 = vrot.slane %v2314_v24, %v13456_v61  ;;  %v11955_v61 = vld [vmem:[#allocation14 + $0x370] ss:$8 sps:$4 sm:$0xff]  }
 0x29a   :  { %4126 = vmatprep.subr.bf16.mxu1 %v11946_v14  ;;  %v3391_v10 = vsel %vm319_vm1, %v3382_v33, %v3390_v39  ;;  %v3373_v29 = vor.u32 %v3372_v6, %v3369_v22  ;;  %v2389_v33 = vrot.slane %v2314_v24, %v13381_v32 }
 0x29d   :  { %4127 = vmatpush2.bf16.msra.mxu1 %v11944_v12  ;;  %v2768_v14 = vpop.f32.mrf.mxu1 }
 0x29e   :  { %4128 = vmatprep.subr.bf16.mxu1 %v11949_v23  ;;  %v13665_v57 = vadd.f32 %v2768_v14, %v2353_v7 }
 0x29f   :  { %v2770_v40 = vpop.f32.mrf.mxu1  ;;  %v2697_v25 = vpop.f32.mrf.mxu0 }
 0x2a0   :  { %v13669_v19 = vadd.f32 %v2770_v40, %v2357_v52  ;;  %v13671_v12 = vadd.f32 %v2697_v25, %v2345_v58  ;;  %v3374_v52 = vsel %vm319_vm1, %v3365_v9, %v3373_v29  ;;  %v2373_v58 = vrot.slane %v13655_v60, %v13464_v18 }
 0x2a1   :  { %4129 = vmatpush2.bf16.msra.mxu1 %v11947_v35  ;;  %v2699_v23 = vpop.f32.mrf.mxu0  ;;  %v2361_v35 = vrot.slane %v13655_v60, %v13453_v38  ;;  %v2385_v25 = vrot.slane %v2314_v24, %v13376_v27 }
 0x2a2   :  { %v13676_v41 = vadd.f32 %v2699_v23, %v2349_v4  ;;  %v2377_v23 = vrot.slane %v13655_v60, %v13491_v2  ;;  %v11952_v60 = vld [vmem:[#allocation14 + $0x470] ss:$8 sps:$4 sm:$0xff]  }
 0x2a4   :  { %4131 = vmatmul.mubr.bf16.vlgmr.msra.gmra.mxu1 %v3288_v13 }
 0x2a5   :  { %4140 = vmatprep.mubr.bf16.mxu1 %v3391_v10 }
 0x2ac   :  { %4141 = vmatmul.mubr.bf16.gmra.mxu1 %v3374_v52 }
 0x2bf   :  { %v2910_v14 = vpop.f32.mrf.mxu1 }
 0x2c0   :  { %v13688_v39 = vadd.f32 %v2910_v14, %v2369_v49 }
 0x2c1   :  { %v2912_v53 = vpop.f32.mrf.mxu1  ;;  %v2839_v4 = vpop.f32.mrf.mxu0 }
 0x2c2   :  { %14113 = vst [vmem:[#allocation47_spill] sm:$0xff] %v13688_v39  ;;  %v13692_v40 = vadd.f32 %v2912_v53, %v2373_v58  ;;  %v13694_v20 = vadd.f32 %v2839_v4, %v2361_v35  ;;  %v2393_v58 = vrot.slane %v2314_v24, %v13453_v38  ;;  %v11954_v35 = vld [vmem:[#allocation14 + $0x474] ss:$8 sps:$4 sm:$0xff]   ;;  %v11960_v4 = vld [vmem:[#allocation14 + $0x464] ss:$8 sps:$4 sm:$0xff]  }
 0x2c3   :  { %v2841_v55 = vpop.f32.mrf.mxu0  ;;  %5135 = vmatprep.subr.bf16.mxu1 %v11954_v35  ;;  %v11966_v38 = vld [vmem:[#allocation14 + $0x454] ss:$8 sps:$4 sm:$0xff]   ;;  %v11972_v24 = vld [vmem:[#allocation14 + $0x444] ss:$8 sps:$4 sm:$0xff]  }
 0x2c4   :  { %14114 = vst [vmem:[#allocation48_spill] sm:$0xff] %v13692_v40  ;;  %14115 = vst [vmem:[#allocation49_spill] sm:$0xff] %v13694_v20  ;;  %v13698_v18 = vadd.f32 %v2841_v55, %v2365_v11  ;;  %5136 = vmatpush1.bf16.msra.mxu1 %v11952_v60  ;;  %v11969_v35 = vld [vmem:[#allocation14 + $0x354] ss:$8 sps:$4 sm:$0xff]   ;;  %v11984_v60 = vld [vmem:[#allocation14 + $0x424] ss:$8 sps:$4 sm:$0xff]  }
 0x2c5   :  { %5137 = vmatprep.subr.bf16.mxu1 %v11960_v4  ;;  %v11973_v4 = vld [vmem:[#allocation14 + $0x340] ss:$8 sps:$4 sm:$0xff]  }
 0x2c6   :  { %14116 = vst [vmem:[#allocation50_spill] sm:$0xff] %v13698_v18 }
 0x2e1   :  { %v3052_v13 = vpop.f32.mrf.mxu1 }
 0x2e2   :  { %v13706_v45 = vadd.f32 %v3052_v13, %v2385_v25  ;;  %v11958_v25 = vld [vmem:[#allocation14 + $0x460] ss:$8 sps:$4 sm:$0xff]   ;;  %v11957_v13 = vld [vmem:[#allocation14 + $0x374] ss:$8 sps:$4 sm:$0xff]  }
 0x2e3   :  { %v3054_v22 = vpop.f32.mrf.mxu1  ;;  %v2981_v6 = vpop.f32.mrf.mxu0  ;;  %5138 = vmatpush1.bf16.msra.mxu1 %v11958_v25  ;;  %5082 = vmatprep.subr.bf16.mxu0 %v11957_v13  ;;  %v11990_v25 = vld [vmem:[#allocation14 + $0x414] ss:$8 sps:$4 sm:$0xff]   ;;  %v11979_v13 = vld [vmem:[#allocation14 + $0x330] ss:$8 sps:$4 sm:$0xff]  }
 0x2e4   :  { %14117 = vst [vmem:[#allocation51_spill] sm:$0xff] %v13706_v45  ;;  %v13710_v10 = vadd.f32 %v3054_v22, %v2389_v33  ;;  %v13712_v9 = vadd.f32 %v2981_v6, %v2377_v23  ;;  %v11964_v23 = vld [vmem:[#allocation14 + $0x450] ss:$8 sps:$4 sm:$0xff]   ;;  %5139 = vmatprep.subr.bf16.mxu1 %v11966_v38  ;;  %5083 = vmatpush1.bf16.msra.mxu0 %v11955_v61  ;;  %v11963_v22 = vld [vmem:[#allocation14 + $0x364] ss:$8 sps:$4 sm:$0xff]  }
 0x2e5   :  { %v2983_v29 = vpop.f32.mrf.mxu0  ;;  %v11961_v6 = vld [vmem:[#allocation14 + $0x360] ss:$8 sps:$4 sm:$0xff]   ;;  %5084 = vmatprep.subr.bf16.mxu0 %v11963_v22  ;;  %v11988_v38 = vld [vmem:[#allocation14 + $0x410] ss:$8 sps:$4 sm:$0xff]   ;;  %v11996_v61 = vld [vmem:[#allocation14 + $0x404] ss:$8 sps:$4 sm:$0xff]  }
 0x2e6   :  { %14118 = vst [vmem:[#allocation52_spill] sm:$0xff] %v13710_v10  ;;  %14119 = vst [vmem:[#allocation53_spill] sm:$0xff] %v13712_v9  ;;  %v13716_v49 = vadd.f32 %v2983_v29, %v2381_v56  ;;  %v11970_v56 = vld [vmem:[#allocation14 + $0x440] ss:$8 sps:$4 sm:$0xff]   ;;  %v11978_v29 = vld [vmem:[#allocation14 + $0x434] ss:$8 sps:$4 sm:$0xff]  }
 0x2e7   :  { %5140 = vmatpush1.bf16.msra.mxu1 %v11964_v23  ;;  %v11981_v23 = vld [vmem:[#allocation14 + $0x334] ss:$8 sps:$4 sm:$0xff]   ;;  %v11985_v22 = vld [vmem:[#allocation14 + $0x320] ss:$8 sps:$4 sm:$0xff]  }
 0x2e8   :  { %14120 = vst [vmem:[#allocation54_spill] sm:$0xff] %v13716_v49  ;;  %5141 = vmatprep.subr.bf16.mxu1 %v11972_v24  ;;  %5085 = vmatpush1.bf16.msra.mxu0 %v11961_v6  ;;  %v11994_v24 = vld [vmem:[#allocation14 + $0x400] ss:$8 sps:$4 sm:$0xff]   ;;  %v12002_v6 = vld [vmem:[#allocation14 + $0x4f4] ss:$8 sps:$4 sm:$0xff]  }
 0x2e9   :  { %5086 = vmatprep.subr.bf16.mxu0 %v11969_v35  ;;  %v11991_v35 = vld [vmem:[#allocation14 + $0x310] ss:$8 sps:$4 sm:$0xff]  }
 0x2eb   :  { %5142 = vmatpush1.bf16.msra.mxu1 %v11970_v56  ;;  %v11987_v56 = vld [vmem:[#allocation14 + $0x324] ss:$8 sps:$4 sm:$0xff]  }
 0x2ec   :  { %5143 = vmatprep.subr.bf16.mxu1 %v11978_v29  ;;  %v12000_v29 = vld [vmem:[#allocation14 + $0x4f0] ss:$8 sps:$4 sm:$0xff]  }
 0x303   :  { %v3123_v14 = vpop.f32.mrf.mxu0 }
 0x304   :  { %v13722_v11 = vadd.f32 %v3123_v14, %v2393_v58  ;;  %v11976_v58 = vld [vmem:[#allocation14 + $0x430] ss:$8 sps:$4 sm:$0xff]   ;;  %v11982_v14 = vld [vmem:[#allocation14 + $0x420] ss:$8 sps:$4 sm:$0xff]  }
 0x305   :  { %v3125_v53 = vpop.f32.mrf.mxu0  ;;  %5144 = vmatpush1.bf16.msra.mxu1 %v11976_v58  ;;  %v11993_v58 = vld [vmem:[#allocation14 + $0x314] ss:$8 sps:$4 sm:$0xff]  }
 0x306   :  { %14121 = vst [vmem:[#allocation55_spill] sm:$0xff] %v13722_v11  ;;  %v13724_v55 = vadd.f32 %v3125_v53, %v2397_v5  ;;  %v11967_v5 = vld [vmem:[#allocation14 + $0x350] ss:$8 sps:$4 sm:$0xff]   ;;  %v11975_v53 = vld [vmem:[#allocation14 + $0x344] ss:$8 sps:$4 sm:$0xff]   ;;  %5145 = vmatprep.subr.bf16.mxu1 %v11984_v60 }
 0x307   :  { %5087 = vmatpush1.bf16.msra.mxu0 %v11967_v5  ;;  %v12008_v5 = vld [vmem:[#allocation14 + $0x4e4] ss:$8 sps:$4 sm:$0xff]   ;;  %v12006_v60 = vld [vmem:[#allocation14 + $0x4e0] ss:$8 sps:$4 sm:$0xff]  }
 0x308   :  { %14122 = vst [vmem:[#allocation56_spill] sm:$0xff] %v13724_v55  ;;  %5088 = vmatprep.subr.bf16.mxu0 %v11975_v53  ;;  %v11997_v53 = vld [vmem:[#allocation14 + $0x300] ss:$8 sps:$4 sm:$0xff]  }
 0x309   :  { %5146 = vmatpush1.bf16.msra.mxu1 %v11982_v14  ;;  %v11999_v14 = vld [vmem:[#allocation14 + $0x304] ss:$8 sps:$4 sm:$0xff]  }
 0x30a   :  { %5147 = vmatprep.subr.bf16.mxu1 %v11990_v25  ;;  %v12012_v25 = vld [vmem:[#allocation14 + $0x4d0] ss:$8 sps:$4 sm:$0xff]  }
 0x30b   :  { %5089 = vmatpush1.bf16.msra.mxu0 %v11973_v4  ;;  %v12014_v4 = vld [vmem:[#allocation14 + $0x4d4] ss:$8 sps:$4 sm:$0xff]  }
 0x30c   :  { %5090 = vmatprep.subr.bf16.mxu0 %v11981_v23  ;;  %v12003_v23 = vld [vmem:[#allocation14 + $0x3f0] ss:$8 sps:$4 sm:$0xff]  }
 0x30d   :  { %5148 = vmatpush1.bf16.msra.mxu1 %v11988_v38  ;;  %v12005_v38 = vld [vmem:[#allocation14 + $0x3f4] ss:$8 sps:$4 sm:$0xff]  }
 0x30e   :  { %5149 = vmatprep.subr.bf16.mxu1 %v11996_v61  ;;  %v12018_v61 = vld [vmem:[#allocation14 + $0x4c0] ss:$8 sps:$4 sm:$0xff]  }
 0x30f   :  { %5091 = vmatpush1.bf16.msra.mxu0 %v11979_v13  ;;  %v12020_v13 = vld [vmem:[#allocation14 + $0x4c4] ss:$8 sps:$4 sm:$0xff]  }
 0x310   :  { %5092 = vmatprep.subr.bf16.mxu0 %v11987_v56  ;;  %v12009_v56 = vld [vmem:[#allocation14 + $0x3e0] ss:$8 sps:$4 sm:$0xff]  }
 0x311   :  { %5150 = vmatpush1.bf16.msra.mxu1 %v11994_v24  ;;  %v12011_v24 = vld [vmem:[#allocation14 + $0x3e4] ss:$8 sps:$4 sm:$0xff]  }
 0x312   :  { %5151 = vmatprep.subr.bf16.mxu1 %v12002_v6  ;;  %v12024_v6 = vld [vmem:[#allocation14 + $0x4b0] ss:$8 sps:$4 sm:$0xff]  }
 0x313   :  { %5093 = vmatpush1.bf16.msra.mxu0 %v11985_v22  ;;  %v12026_v22 = vld [vmem:[#allocation14 + $0x4b4] ss:$8 sps:$4 sm:$0xff]  }
 0x314   :  { %5094 = vmatprep.subr.bf16.mxu0 %v11993_v58  ;;  %v12015_v58 = vld [vmem:[#allocation14 + $0x3d0] ss:$8 sps:$4 sm:$0xff]  }
 0x315   :  { %5152 = vmatpush2.bf16.msra.mxu1 %v12000_v29  ;;  %v12017_v29 = vld [vmem:[#allocation14 + $0x3d4] ss:$8 sps:$4 sm:$0xff]  }
 0x316   :  { %5153 = vmatprep.subr.bf16.mxu1 %v12008_v5  ;;  %v12030_v5 = vld [vmem:[#allocation14 + $0x4a0] ss:$8 sps:$4 sm:$0xff]  }
 0x317   :  { %5095 = vmatpush1.bf16.msra.mxu0 %v11991_v35  ;;  %v12032_v35 = vld [vmem:[#allocation14 + $0x4a4] ss:$8 sps:$4 sm:$0xff]  }
 0x318   :  { %5096 = vmatprep.subr.bf16.mxu0 %v11999_v14  ;;  %v12021_v14 = vld [vmem:[#allocation14 + $0x3c0] ss:$8 sps:$4 sm:$0xff]  }
 0x319   :  { %5154 = vmatpush2.bf16.msra.mxu1 %v12006_v60  ;;  %v12023_v60 = vld [vmem:[#allocation14 + $0x3c4] ss:$8 sps:$4 sm:$0xff]  }
 0x31a   :  { %5155 = vmatprep.subr.bf16.mxu1 %v12014_v4  ;;  %v12036_v4 = vld [vmem:[#allocation14 + $0x490] ss:$8 sps:$4 sm:$0xff]  }
 0x31b   :  { %5097 = vmatpush1.bf16.msra.mxu0 %v11997_v53  ;;  %v12029_v53 = vld [vmem:[#allocation14 + $0x3b4] ss:$8 sps:$4 sm:$0xff]  }
 0x31c   :  { %5098 = vmatprep.subr.bf16.mxu0 %v12005_v38  ;;  %v12038_v38 = vld [vmem:[#allocation14 + $0x494] ss:$8 sps:$4 sm:$0xff]  }
 0x31d   :  { %5156 = vmatpush2.bf16.msra.mxu1 %v12012_v25  ;;  %v12027_v25 = vld [vmem:[#allocation14 + $0x3b0] ss:$8 sps:$4 sm:$0xff]  }
 0x31e   :  { %5157 = vmatprep.subr.bf16.mxu1 %v12020_v13  ;;  %v12044_v13 = vld [vmem:[#allocation14 + $0x484] ss:$8 sps:$4 sm:$0xff]  }
 0x31f   :  { %5099 = vmatpush2.bf16.msra.mxu0 %v12003_v23  ;;  %v12035_v23 = vld [vmem:[#allocation14 + $0x3a4] ss:$8 sps:$4 sm:$0xff]  }
 0x320   :  { %5100 = vmatprep.subr.bf16.mxu0 %v12011_v24  ;;  %v12033_v24 = vld [vmem:[#allocation14 + $0x3a0] ss:$8 sps:$4 sm:$0xff]  }
 0x321   :  { %5158 = vmatpush2.bf16.msra.mxu1 %v12018_v61  ;;  %v12042_v61 = vld [vmem:[#allocation14 + $0x480] ss:$8 sps:$4 sm:$0xff]  }
 0x322   :  { %5159 = vmatprep.subr.bf16.mxu1 %v12026_v22  ;;  %v12039_v22 = vld [vmem:[#allocation14 + $0x390] ss:$8 sps:$4 sm:$0xff]  }
 0x323   :  { %5101 = vmatpush2.bf16.msra.mxu0 %v12009_v56  ;;  %v12041_v56 = vld [vmem:[#allocation14 + $0x394] ss:$8 sps:$4 sm:$0xff]  }
 0x324   :  { %5102 = vmatprep.subr.bf16.mxu0 %v12017_v29  ;;  %v4026_v29 = vpop.f32.mrf.mxu1 }
 0x325   :  { %5160 = vmatpush2.bf16.msra.mxu1 %v12024_v6  ;;  %v12047_v6 = vld [vmem:[#allocation14 + $0x384] ss:$8 sps:$4 sm:$0xff]  }
 0x326   :  { %5161 = vmatprep.subr.bf16.mxu1 %v12032_v35  ;;  %v12051_v35 = vld [vmem:[#allocation14 + $0x574] ss:$8 sps:$4 sm:$0xff]  }
 0x327   :  { %5103 = vmatpush2.bf16.msra.mxu0 %v12015_v58  ;;  %v12045_v58 = vld [vmem:[#allocation14 + $0x380] ss:$8 sps:$4 sm:$0xff]  }
 0x328   :  { %5104 = vmatprep.subr.bf16.mxu0 %v12023_v60 }
 0x329   :  { %5162 = vmatpush2.bf16.msra.mxu1 %v12030_v5  ;;  %v4028_v5 = vpop.f32.mrf.mxu1 }
 0x32a   :  { %5163 = vmatprep.subr.bf16.mxu1 %v12038_v38 }
 0x32b   :  { %5105 = vmatpush2.bf16.msra.mxu0 %v12021_v14  ;;  %v4030_v60 = vpop.f32.mrf.mxu1 }
 0x32c   :  { %5106 = vmatprep.subr.bf16.mxu0 %v12029_v53 }
 0x32d   :  { %5164 = vmatpush2.bf16.msra.mxu1 %v12036_v4  ;;  %v4032_v14 = vpop.f32.mrf.mxu1 }
 0x32e   :  { %5165 = vmatprep.subr.bf16.mxu1 %v12044_v13 }
 0x32f   :  { %5107 = vmatpush2.bf16.msra.mxu0 %v12027_v25  ;;  %v4036_v4 = vpop.f32.mrf.mxu1 }
 0x330   :  { %5108 = vmatprep.subr.bf16.mxu0 %v12035_v23 }
 0x331   :  { %5166 = vmatpush2.bf16.msra.mxu1 %v12042_v61  ;;  %v4038_v38 = vpop.f32.mrf.mxu1 }
 0x333   :  { %5109 = vmatpush2.bf16.msra.mxu0 %v12033_v24  ;;  %v4040_v13 = vpop.f32.mrf.mxu1  ;;  %v3500_v24 = vld [vmem:[#allocation16] sm:$0x3] }
 0x334   :  { %5110 = vmatprep.subr.bf16.mxu0 %v12041_v56 }
 0x335   :  { %v4042_v56 = vpop.f32.mrf.mxu1 }
 0x337   :  { %5111 = vmatpush2.bf16.msra.mxu0 %v12039_v22  ;;  %v3505_v22 = vrot.slane %v3500_v24, %v13376_v27 }
 0x338   :  { %5112 = vmatprep.subr.bf16.mxu0 %v12047_v6  ;;  %v3509_v6 = vrot.slane %v3500_v24, %v13381_v32 }
 0x339   :  { %v4027_v0 = vadd.f32 %v4026_v29, %v3505_v22  ;;  %v4037_v21 = vadd.f32 %v4036_v4, %v3505_v22  ;;  %v4041_v40 = vadd.f32 %v4040_v13, %v3505_v22 }
 0x33a   :  { %v4033_v7 = vadd.f32 %v4032_v14, %v3509_v6  ;;  %v4029_v11 = vadd.f32 %v4028_v5, %v3509_v6  ;;  %v4039_v46 = vadd.f32 %v4038_v38, %v3509_v6  ;;  %v4043_v20 = vadd.f32 %v4042_v56, %v3509_v6 }
 0x33b   :  { %5113 = vmatpush2.bf16.msra.mxu0 %v12045_v58 }
 0x33c   :  { %5188 = vmatprep.subr.bf16.mxu0 %v12051_v35  ;;  %v4031_v35 = vadd.f32 %v4030_v60, %v3505_v22 }
 0x343   :  { %v4079_v53 = vpop.f32.mrf.mxu0 }
 0x344   :  { %v4080_v45 = vadd.f32 %v4079_v53, %v4027_v0 }
 0x345   :  { %v4081_v25 = vpop.f32.mrf.mxu0 }
 0x346   :  { %v4082_v39 = vadd.f32 %v4081_v25, %v4029_v11 }
 0x347   :  { %v4083_v23 = vpop.f32.mrf.mxu0 }
 0x348   :  { %v4084_v55 = vadd.f32 %v4083_v23, %v4031_v35 }
 0x349   :  { %v4085_v61 = vpop.f32.mrf.mxu0 }
 0x34a   :  { %v4086_v49 = vadd.f32 %v4085_v61, %v4033_v7 }
 0x34b   :  { %v4089_v33 = vpop.f32.mrf.mxu0 }
 0x34c   :  { %v4090_v9 = vadd.f32 %v4089_v33, %v4037_v21 }
 0x34d   :  { %v4091_v2 = vpop.f32.mrf.mxu0 }
 0x34e   :  { %v4092_v24 = vadd.f32 %v4091_v2, %v4039_v46 }
 0x34f   :  { %v4093_v63 = vpop.f32.mrf.mxu0 }
 0x350   :  { %v4094_v4 = vadd.f32 %v4093_v63, %v4041_v40 }
 0x351   :  { %v4095_v29 = vpop.f32.mrf.mxu0 }
 0x352   :  { %v4096_v8 = vadd.f32 %v4095_v29, %v4043_v20 }
 0x364   :  { %v4132_v52 = vpop.f32.mrf.mxu1 }
 0x365   :  { %v4133_v28 = vadd.f32 %v4132_v52, %v4080_v45 }
 0x366   :  { %v4134_v58 = vpop.f32.mrf.mxu1 }
 0x367   :  { %v4135_v23 = vadd.f32 %v4134_v58, %v4082_v39 }
 0x368   :  { %v4136_v43 = vpop.f32.mrf.mxu1 }
 0x369   :  { %v4137_v17 = vadd.f32 %v4136_v43, %v4084_v55 }
 0x36a   :  { %v4138_v10 = vpop.f32.mrf.mxu1 }
 0x36b   :  { %v4139_v18 = vadd.f32 %v4138_v10, %v4086_v49  ;;  %v4151_v5 = vadd.f32 %v4137_v17, %v4133_v28 }
 0x36c   :  { %v4142_v50 = vpop.f32.mrf.mxu1 }
 0x36d   :  { %v4143_v60 = vadd.f32 %v4142_v50, %v4090_v9  ;;  %v4160_v0 = vadd.f32 %v4139_v18, %v4135_v23 }
 0x36e   :  { %v4144_v14 = vpop.f32.mrf.mxu1 }
 0x36f   :  { %v4145_v38 = vadd.f32 %v4144_v14, %v4092_v24  ;;  %v4152_v7 = vadd.f32 %v4151_v5, %v4143_v60 }
 0x370   :  { %v4146_v35 = vpop.f32.mrf.mxu1 }
 0x371   :  { %v4147_v21 = vadd.f32 %v4146_v35, %v4094_v4  ;;  %v4161_v55 = vadd.f32 %v4160_v0, %v4145_v38 }
 0x372   :  { %v4148_v43 = vpop.f32.mrf.mxu1 }
 0x373   :  { %v4153_v11 = vadd.f32 %v4152_v7, %v4147_v21  ;;  %v4149_v33 = vadd.f32 %v4148_v43, %v4096_v8 }
 0x375   :  { %v4154_v46 = vrot.slane %v4153_v11, 4  ;;  %v4162_v45 = vadd.f32 %v4161_v55, %v4149_v33 }
 0x377   :  { %v4155_v10 = vadd.f32 %v4154_v46, %v4153_v11  ;;  %v4163_v50 = vrot.slane %v4162_v45, 4 }
 0x379   :  { %v4156_v9 = vrot.slane %v4155_v10, 2  ;;  %v4164_v52 = vadd.f32 %v4163_v50, %v4162_v45  ;;  %v13159_v45 = vmov 1966171168  }
 0x37b   :  { %v4157_v49 = vadd.f32 %v4156_v9, %v4155_v10  ;;  %v4165_v63 = vrot.slane %v4164_v52, 2  ;;  %v4224_v10 = vunpack.c.l.s4 %v13159_v45 }
 0x37d   :  { %v4158_v39 = vrot.slane %v4157_v49, 1  ;;  %v4166_v40 = vadd.f32 %v4165_v63, %v4164_v52  ;;  %v4225_v63 = vunpack.c.0.s8 %v4224_v10 }
 0x37f   :  { %v4159_v2 = vadd.f32 %v4158_v39, %v4157_v49  ;;  %v4167_v53 = vrot.slane %v4166_v40, 1 }
 0x381   :  { %v4170_v20 = vmul.f32 0.03125, %v4159_v2  ;;  %v4168_v25 = vadd.f32 %v4167_v53, %v4166_v40 }
 0x383   :  { %v4172_v13 = vsub.f32 %v4133_v28, %v4170_v20  ;;  %v4174_v61 = vsub.f32 %v4137_v17, %v4170_v20  ;;  %v4176_v56 = vsub.f32 %v4143_v60, %v4170_v20  ;;  %v4171_v22 = vmul.f32 0.03125, %v4168_v25 }
 0x384   :  { %v4178_v6 = vsub.f32 %v4147_v21, %v4170_v20  ;;  %v13743_v20 = vsub.s32 %v4225_v63, %v13371_v15 }
 0x385   :  { %v4180_v8 = vmul.f32 %v4172_v13, %v4172_v13  ;;  %v4182_v58 = vmul.f32 %v4174_v61, %v4174_v61  ;;  %v13730_v24 = vsub.f32 %v4135_v23, %v4171_v22  ;;  %v13732_v29 = vsub.f32 %v4139_v18, %v4171_v22 }
 0x386   :  { %v13734_v14 = vsub.f32 %v4145_v38, %v4171_v22  ;;  %v4184_v4 = vmul.f32 %v4176_v56, %v4176_v56  ;;  %v4179_v35 = vsub.f32 %v4149_v33, %v4171_v22  ;;  %v4186_v17 = vmul.f32 %v4178_v6, %v4178_v6 }
 0x387   :  { %v4188_v5 = vadd.f32 %v4182_v58, %v4180_v8  ;;  %v4181_v0 = vmul.f32 %v13730_v24, %v13730_v24  ;;  %v4183_v28 = vmul.f32 %v13732_v29, %v13732_v29  ;;  %v14123_v58 = vcombine.low %v13417_v30, %v13422_v44 }
 0x388   :  { %v4185_v7 = vmul.f32 %v13734_v14, %v13734_v14  ;;  %v4187_v18 = vmul.f32 %v4179_v35, %v4179_v35 }
 0x389   :  { %v4189_v60 = vadd.f32 %v4188_v5, %v4184_v4  ;;  %v4197_v23 = vadd.f32 %v4183_v28, %v4181_v0  ;;  %v4229_v4 = vrot.slane %v14123_v58, %v13743_v20  ;;  %v14124_v0 = vcombine.low %v13593_v42, %v13600_v3 }
 0x38b   :  { %v4190_v21 = vadd.f32 %v4189_v60, %v4186_v17  ;;  %v4198_v43 = vadd.f32 %v4197_v23, %v4185_v7  ;;  %v4254_v28 = vrot.slane %v14124_v0, %v13743_v20  ;;  %v4230_v17 = vcombine.high %v4229_v4, %v4229_v4 }
 0x38c   :  { %v4237_v15 = vrot.slane %v4229_v4, %v13743_v20 }
 0x38d   :  { %v4191_v38 = vrot.slane %v4190_v21, 4  ;;  %v4199_v55 = vadd.f32 %v4198_v43, %v4187_v18  ;;  %v4255_v60 = vcombine.high %v4254_v28, %v4254_v28  ;;  %v4244_v7 = vrot.slane %v4230_v17, %v13743_v20 }
 0x38e   :  { %v4262_v23 = vrot.slane %v4254_v28, %v13743_v20  ;;  %v4273_v30 = vrot.slane %v4237_v15, %v13376_v27  ;;  %v4277_v44 = vrot.slane %v4237_v15, %v13381_v32 }
 0x38f   :  { %v4192_v11 = vadd.f32 %v4191_v38, %v4190_v21  ;;  %v4200_v46 = vrot.slane %v4199_v55, 4  ;;  %v4269_v21 = vrot.slane %v4255_v60, %v13743_v20  ;;  %v4281_v43 = vrot.slane %v4244_v7, %v13376_v27 }
 0x390   :  { %v4285_v42 = vrot.slane %v4244_v7, %v13381_v32 }
 0x391   :  { %v4193_v33 = vrot.slane %v4192_v11, 2  ;;  %v4201_v50 = vadd.f32 %v4200_v46, %v4199_v55  ;;  %v4301_v46 = vrot.slane %v4262_v23, %v13376_v27  ;;  %v4309_v45 = vrot.slane %v4269_v21, %v13376_v27 }
 0x392   :  { %v4313_v10 = vrot.slane %v4269_v21, %v13381_v32 }
 0x393   :  { %v4194_v9 = vadd.f32 %v4193_v33, %v4192_v11  ;;  %v4202_v52 = vrot.slane %v4201_v50, 2  ;;  %v4305_v33 = vrot.slane %v4262_v23, %v13381_v32 }
 0x395   :  { %v4195_v49 = vrot.slane %v4194_v9, 1  ;;  %v4203_v39 = vadd.f32 %v4202_v52, %v4201_v50 }
 0x397   :  { %v4196_v40 = vadd.f32 %v4195_v49, %v4194_v9  ;;  %v4204_v2 = vrot.slane %v4203_v39, 1 }
 0x399   :  { %v4206_v53 = vmul.f32 0.03125, %v4196_v40  ;;  %v4205_v25 = vadd.f32 %v4204_v2, %v4203_v39 }
 0x39b   :  { %v4208_v22 = vadd.f32 1e-05, %v4206_v53  ;;  %v4207_v8 = vmul.f32 0.03125, %v4205_v25 }
 0x39d   :  { %12736 = vrsqrt.f32 %v4208_v22  ;;  %v4209_v5 = vadd.f32 1e-05, %v4207_v8 }
 0x39f   :  { %12738 = vrsqrt.f32 %v4209_v5 }
 0x3aa   :  { %v12737_v18 = vpop.eup %12736 }
 0x3ab   :  { %v4212_v3 = vmul.f32 %v12737_v18, %v4172_v13  ;;  %v4214_v38 = vmul.f32 %v12737_v18, %v4174_v61  ;;  %v4216_v55 = vmul.f32 %v12737_v18, %v4176_v56  ;;  %v4218_v11 = vmul.f32 %v12737_v18, %v4178_v6 }
 0x3ac   :  { %v12739_v50 = vpop.eup %12738 }
 0x3ad   :  { %v4290_v9 = vmul.f32 %v4273_v30, %v4212_v3  ;;  %v4292_v52 = vmul.f32 %v4273_v30, %v4214_v38  ;;  %v4294_v49 = vmul.f32 %v4281_v43, %v4216_v55  ;;  %v4296_v63 = vmul.f32 %v4281_v43, %v4218_v11  ;;  %v4373_v43 = vld [vmem:[#allocation3 + $0x8] sm:$0x11]  ;;  %v4366_v55 = vld [vmem:[#allocation3] sm:$0x88] }
 0x3ae   :  { %v4213_v39 = vmul.f32 %v12739_v50, %v13730_v24  ;;  %v4215_v13 = vmul.f32 %v12739_v50, %v13732_v29  ;;  %v4217_v61 = vmul.f32 %v12739_v50, %v13734_v14  ;;  %v4219_v56 = vmul.f32 %v12739_v50, %v4179_v35 }
 0x3af   :  { %v4318_v6 = vadd.f32 %v4301_v46, %v4290_v9  ;;  %v4320_v40 = vadd.f32 %v4301_v46, %v4292_v52  ;;  %v4322_v2 = vadd.f32 %v4309_v45, %v4294_v49  ;;  %v4324_v53 = vadd.f32 %v4309_v45, %v4296_v63  ;;  %v13771_v9 = vld [vmem:[#allocation3 + $0x38] sm:$0x88] }
 0x3b0   :  { %v4291_v25 = vmul.f32 %v4277_v44, %v4213_v39  ;;  %v4293_v22 = vmul.f32 %v4277_v44, %v4215_v13  ;;  %v4295_v8 = vmul.f32 %v4285_v42, %v4217_v61  ;;  %v4297_v58 = vmul.f32 %v4285_v42, %v4219_v56  ;;  %v4371_v44 = vld [vmem:[#allocation3 + $0x40] sm:$0x11] }
 0x3b1   :  { %v4326_v17 = vmax.f32 %v4318_v6, 0.0  ;;  %v4328_v60 = vmax.f32 %v4320_v40, 0.0  ;;  %v4330_v24 = vmax.f32 %v4322_v2, 0.0  ;;  %v4332_v15 = vmax.f32 %v4324_v53, 0.0 }
 0x3b2   :  { %v4319_v4 = vadd.f32 %v4305_v33, %v4291_v25  ;;  %v4321_v5 = vadd.f32 %v4305_v33, %v4293_v22  ;;  %v4323_v0 = vadd.f32 %v4313_v10, %v4295_v8  ;;  %v4325_v28 = vadd.f32 %v4313_v10, %v4297_v58 }
 0x3b3   :  { %v12784_v3 = vpack.c.bf16 %v4328_v60, %v4326_v17  ;;  %v12786_v11 = vpack.c.bf16 %v4332_v15, %v4330_v24  ;;  %v11023_v46 = vcombine.low %v4371_v44, %v4371_v44  ;;  %v11024_v33 = vcombine.high %v4371_v44, %v4371_v44 }
 0x3b4   :  { %v4327_v29 = vmax.f32 %v4319_v4, 0.0  ;;  %v4329_v7 = vmax.f32 %v4321_v5, 0.0  ;;  %v4331_v14 = vmax.f32 %v4323_v0, 0.0  ;;  %v4333_v35 = vmax.f32 %v4325_v28, 0.0 }
 0x3b5   :  { %v11028_v45 = vcombine.high %v4373_v43, %v4373_v43  ;;  %v11027_v10 = vcombine.low %v4373_v43, %v4373_v43  ;;  %v4437_v52 = vrot.slane %v11023_v46, 6  ;;  %v4439_v49 = vrot.slane %v11024_v33, 6 }
 0x3b6   :  { %v11646_v23 = vpack.c.bf16 %v4327_v29, %v4326_v17  ;;  %v11647_v21 = vpack.c.bf16 %v4329_v7, %v4328_v60  ;;  %v13768_v18 = vpack.c.bf16 %v4331_v14, %v4330_v24  ;;  %v11649_v30 = vpack.c.bf16 %v4333_v35, %v4332_v15  ;;  %v12049_v15 = vld [vmem:[#allocation14 + $0x570] ss:$8 sps:$4 sm:$0xff]  }
 0x3b7   :  { %v12783_v42 = vpack.c.bf16 %v4329_v7, %v4327_v29  ;;  %v12785_v38 = vpack.c.bf16 %v4333_v35, %v4331_v14  ;;  %v4445_v39 = vrot.slane %v11028_v45, 6  ;;  %v4443_v13 = vrot.slane %v11027_v10, 6  ;;  %v12054_v45 = vld [vmem:[#allocation14 + $0x560] ss:$8 sps:$4 sm:$0xff]  }
 0x3b8   :  { %4358 = vst [vmem:[#allocation3 + $0x28] sm:$0xff] %v11646_v23  ;;  %4359 = vst [vmem:[#allocation3 + $0x18] sm:$0xff] %v11647_v21  ;;  %v11009_v50 = vcombine.low %v4366_v55, %v11646_v23  ;;  %v11010_v63 = vcombine.high %v4366_v55, %v11646_v23  ;;  %v11014_v6 = vcombine.high %v13771_v9, %v13768_v18 }
 0x3b9   :  { %4360 = vst [vmem:[#allocation3 + $0x30] sm:$0xff] %v13768_v18  ;;  %4361 = vst [vmem:[#allocation3 + $0x10] sm:$0xff] %v11649_v30  ;;  %5167 = vmatprep.mubr.bf16.mxu1 %v12783_v42  ;;  %v12056_v42 = vld [vmem:[#allocation14 + $0x564] ss:$8 sps:$4 sm:$0xff]  }
 0x3ba   :  { %5168 = vmatmul.mubr.bf16.vlgmr.msra.gmra.mxu1 %v12784_v3  ;;  %v4448_v53 = vrot.slane %v11009_v50, 3  ;;  %v4451_v28 = vrot.slane %v11010_v63, 3  ;;  %v4467_v43 = vrot.slane %v11014_v6, 3 }
 0x3bb   :  { %5177 = vmatprep.mubr.bf16.mxu1 %v12785_v38 }
 0x3bf   :  { %v4367_v61 = vld [vmem:[#allocation3 + $0x18] sm:$0x77]  ;;  %v4370_v40 = vld [vmem:[#allocation3 + $0x28] sm:$0xee] }
 0x3c0   :  { %v4369_v56 = vld [vmem:[#allocation3 + $0x10] sm:$0x77]  ;;  %v11012_v2 = vcombine.high %v4367_v61, %v4367_v61  ;;  %v11011_v25 = vcombine.low %v4367_v61, %v4367_v61  ;;  %v11022_v58 = vcombine.high %v4370_v40, %v11647_v21  ;;  %v11021_v4 = vcombine.low %v4370_v40, %v11647_v21 }
 0x3c1   :  { %v11016_v22 = vcombine.high %v4369_v56, %v4369_v56  ;;  %v4372_v8 = vld [vmem:[#allocation3 + $0x30] sm:$0xee]  ;;  %v11013_v21 = vcombine.low %v13771_v9, %v13768_v18  ;;  %v12059_v9 = vld [vmem:[#allocation14 + $0x554] ss:$8 sps:$4 sm:$0xff]  }
 0x3c2   :  { %v11026_v5 = vcombine.high %v4372_v8, %v11649_v30  ;;  %v11025_v0 = vcombine.low %v4372_v8, %v11649_v30  ;;  %v4452_v17 = vrot.slane %v11012_v2, 3  ;;  %v4449_v60 = vrot.slane %v11011_v25, 3  ;;  %5178 = vmatmul.mubr.bf16.gmra.mxu1 %v12786_v11  ;;  %v12063_v8 = vld [vmem:[#allocation14 + $0x540] ss:$8 sps:$4 sm:$0xff]  }
 0x3c3   :  { %v4468_v24 = vrot.slane %v11016_v22, 3  ;;  %v4436_v29 = vrot.slane %v11022_v58, 6  ;;  %v4435_v7 = vrot.slane %v11021_v4, 6  ;;  %v11015_v30 = vcombine.low %v4369_v56, %v4369_v56  ;;  %v12068_v58 = vld [vmem:[#allocation14 + $0x534] ss:$8 sps:$4 sm:$0xff]  }
 0x3c4   :  { %v4442_v14 = vrot.slane %v11026_v5, 6  ;;  %v4441_v35 = vrot.slane %v11025_v0, 6  ;;  %v4453_v23 = vsel %vm4447_vm2, %v4451_v28, %v4452_v17  ;;  %v4450_v44 = vsel %vm4447_vm2, %v4448_v53, %v4449_v60  ;;  %v12066_v4 = vld [vmem:[#allocation14 + $0x530] ss:$8 sps:$4 sm:$0xff]   ;;  %v12071_v5 = vld [vmem:[#allocation14 + $0x524] ss:$8 sps:$4 sm:$0xff]  }
 0x3c5   :  { %5114 = vmatprep.mubr.bf16.mxu0 %v4453_v23  ;;  %v4438_v3 = vsel %vm4434_vm3, %v4435_v7, %v4437_v52  ;;  %v4458_v38 = vrot.slane %v4435_v7, 3  ;;  %v4469_v55 = vsel %vm4447_vm2, %v4467_v43, %v4468_v24  ;;  %v4440_v10 = vsel %vm4434_vm3, %v4436_v29, %v4439_v49  ;;  %v12057_v49 = vld [vmem:[#allocation14 + $0x550] ss:$8 sps:$4 sm:$0xff]   ;;  %v12069_v0 = vld [vmem:[#allocation14 + $0x520] ss:$8 sps:$4 sm:$0xff]  }
 0x3c6   :  { %5115 = vmatmul.mubr.bf16.vlgmr.msra.gmra.mxu0 %v4450_v44  ;;  %v4459_v11 = vrot.slane %v4438_v3, 3  ;;  %v4446_v46 = vsel %vm4434_vm3, %v4442_v14, %v4445_v39  ;;  %v4477_v33 = vrot.slane %v4442_v14, 3  ;;  %v4444_v63 = vsel %vm4434_vm3, %v4441_v35, %v4443_v13  ;;  %v12065_v13 = vld [vmem:[#allocation14 + $0x544] ss:$8 sps:$4 sm:$0xff]   ;;  %v12074_v28 = vld [vmem:[#allocation14 + $0x514] ss:$8 sps:$4 sm:$0xff]  }
 0x3c7   :  { %5189 = vmatpush1.bf16.msra.mxu0 %v12049_v15  ;;  %5124 = vmatprep.mubr.bf16.mxu0 %v4469_v55  ;;  %v4478_v50 = vrot.slane %v4446_v46, 3  ;;  %v4474_v18 = vrot.slane %v4441_v35, 3  ;;  %v4475_v61 = vrot.slane %v4444_v63, 3  ;;  %v4465_v56 = vrot.slane %v11015_v30, 3  ;;  %v12072_v17 = vld [vmem:[#allocation14 + $0x510] ss:$8 sps:$4 sm:$0xff]  }
 0x3c8   :  { %5190 = vmatprep.subr.bf16.mxu0 %v12056_v42  ;;  %v13785_v52 = vsel %vm4447_vm2, %v4458_v38, %v4459_v11  ;;  %v4461_v39 = vrot.slane %v4436_v29, 3  ;;  %v4462_v40 = vrot.slane %v4440_v10, 3  ;;  %v4464_v53 = vrot.slane %v11013_v21, 3  ;;  %v12077_v60 = vld [vmem:[#allocation14 + $0x504] ss:$8 sps:$4 sm:$0xff]  }
 0x3c9   :  { %v13788_v6 = vsel %vm4447_vm2, %v4477_v33, %v4478_v50  ;;  %v13791_v2 = vsel %vm4447_vm2, %v4474_v18, %v4475_v61  ;;  %v12075_v24 = vld [vmem:[#allocation14 + $0x500] ss:$8 sps:$4 sm:$0xff]   ;;  %v12080_v15 = vld [vmem:[#allocation14 + $0x5f4] ss:$8 sps:$4 sm:$0xff]   ;;  %v12078_v29 = vld [vmem:[#allocation14 + $0x5f0] ss:$8 sps:$4 sm:$0xff]  }
 0x3ca   :  { %v4466_v25 = vsel %vm4447_vm2, %v4464_v53, %v4465_v56  ;;  %v4463_v22 = vsel %vm4447_vm2, %v4461_v39, %v4462_v40  ;;  %v12083_v7 = vld [vmem:[#allocation14 + $0x5e4] ss:$8 sps:$4 sm:$0xff]   ;;  %v12081_v14 = vld [vmem:[#allocation14 + $0x5e0] ss:$8 sps:$4 sm:$0xff]   ;;  %v12086_v35 = vld [vmem:[#allocation14 + $0x5d4] ss:$8 sps:$4 sm:$0xff]  }
 0x3cb   :  { %5191 = vmatpush1.bf16.msra.mxu0 %v12054_v45  ;;  %v12084_v23 = vld [vmem:[#allocation14 + $0x5d0] ss:$8 sps:$4 sm:$0xff]   ;;  %v12089_v44 = vld [vmem:[#allocation14 + $0x5c4] ss:$8 sps:$4 sm:$0xff]   ;;  %v12087_v43 = vld [vmem:[#allocation14 + $0x5c0] ss:$8 sps:$4 sm:$0xff]  }
 0x3cc   :  { %5192 = vmatprep.subr.bf16.mxu0 %v12059_v9  ;;  %v12092_v42 = vld [vmem:[#allocation14 + $0x5b4] ss:$8 sps:$4 sm:$0xff]   ;;  %v12090_v21 = vld [vmem:[#allocation14 + $0x5b0] ss:$8 sps:$4 sm:$0xff]   ;;  %v12095_v30 = vld [vmem:[#allocation14 + $0x5a4] ss:$8 sps:$4 sm:$0xff]  }
 0x3cd   :  { %v12093_v3 = vld [vmem:[#allocation14 + $0x5a0] ss:$8 sps:$4 sm:$0xff]   ;;  %v12098_v38 = vld [vmem:[#allocation14 + $0x594] ss:$8 sps:$4 sm:$0xff]   ;;  %v12096_v55 = vld [vmem:[#allocation14 + $0x590] ss:$8 sps:$4 sm:$0xff]  }
 0x3ce   :  { %5125 = vmatmul.mubr.bf16.gmra.mxu0 %v4466_v25  ;;  %v12101_v11 = vld [vmem:[#allocation14 + $0x584] ss:$8 sps:$4 sm:$0xff]   ;;  %v12099_v46 = vld [vmem:[#allocation14 + $0x580] ss:$8 sps:$4 sm:$0xff]   ;;  %v12106_v33 = vld [vmem:[#allocation14 + $0x774] ss:$8 sps:$4 sm:$0xff]  }
 0x3cf   :  { %5193 = vmatpush1.bf16.msra.mxu0 %v12057_v49  ;;  %5220 = vmatprep.mubr.bf16.mxu0 %v4463_v22  ;;  %v12104_v45 = vld [vmem:[#allocation14 + $0x770] ss:$8 sps:$4 sm:$0xff]   ;;  %v12112_v10 = vld [vmem:[#allocation14 + $0x764] ss:$8 sps:$4 sm:$0xff]   ;;  %v12110_v50 = vld [vmem:[#allocation14 + $0x760] ss:$8 sps:$4 sm:$0xff]  }
 0x3d0   :  { %5194 = vmatprep.subr.bf16.mxu0 %v12065_v13  ;;  %v12118_v63 = vld [vmem:[#allocation14 + $0x754] ss:$8 sps:$4 sm:$0xff]   ;;  %v12116_v18 = vld [vmem:[#allocation14 + $0x750] ss:$8 sps:$4 sm:$0xff]   ;;  %v12122_v56 = vld [vmem:[#allocation14 + $0x740] ss:$8 sps:$4 sm:$0xff]  }
 0x3d1   :  { %v12109_v9 = vld [vmem:[#allocation14 + $0x674] ss:$8 sps:$4 sm:$0xff]   ;;  %v12107_v61 = vld [vmem:[#allocation14 + $0x670] ss:$8 sps:$4 sm:$0xff]   ;;  %v12113_v39 = vld [vmem:[#allocation14 + $0x660] ss:$8 sps:$4 sm:$0xff]  }
 0x3d2   :  { %6158 = vmatprep.subr.bf16.mxu1 %v12109_v9  ;;  %v12130_v40 = vld [vmem:[#allocation14 + $0x734] ss:$8 sps:$4 sm:$0xff]   ;;  %v12119_v53 = vld [vmem:[#allocation14 + $0x650] ss:$8 sps:$4 sm:$0xff]   ;;  %v12136_v13 = vld [vmem:[#allocation14 + $0x724] ss:$8 sps:$4 sm:$0xff]  }
 0x3d3   :  { %5195 = vmatpush1.bf16.msra.mxu0 %v12063_v8  ;;  %6159 = vmatpush1.bf16.msra.mxu1 %v12107_v61  ;;  %v12121_v49 = vld [vmem:[#allocation14 + $0x654] ss:$8 sps:$4 sm:$0xff]   ;;  %v12134_v25 = vld [vmem:[#allocation14 + $0x720] ss:$8 sps:$4 sm:$0xff]   ;;  %v12127_v22 = vld [vmem:[#allocation14 + $0x644] ss:$8 sps:$4 sm:$0xff]  }
 0x3d4   :  { %5196 = vmatprep.subr.bf16.mxu0 %v12068_v58  ;;  %v12125_v8 = vld [vmem:[#allocation14 + $0x640] ss:$8 sps:$4 sm:$0xff]   ;;  %v12142_v58 = vld [vmem:[#allocation14 + $0x714] ss:$8 sps:$4 sm:$0xff]   ;;  %v12175_v9 = vld [vmem:[#allocation14 + $0x6c4] ss:$8 sps:$4 sm:$0xff]  }
 0x3d5   :  { %v12173_v61 = vld [vmem:[#allocation14 + $0x6c0] ss:$8 sps:$4 sm:$0xff]  }
 0x3d7   :  { %5197 = vmatpush1.bf16.msra.mxu0 %v12066_v4  ;;  %v12140_v4 = vld [vmem:[#allocation14 + $0x710] ss:$8 sps:$4 sm:$0xff]  }
 0x3d8   :  { %5198 = vmatprep.subr.bf16.mxu0 %v12071_v5  ;;  %v12133_v5 = vld [vmem:[#allocation14 + $0x634] ss:$8 sps:$4 sm:$0xff]  }
 0x3db   :  { %5199 = vmatpush1.bf16.msra.mxu0 %v12069_v0  ;;  %v12131_v0 = vld [vmem:[#allocation14 + $0x630] ss:$8 sps:$4 sm:$0xff]  }
 0x3dc   :  { %5200 = vmatprep.subr.bf16.mxu0 %v12074_v28  ;;  %v12148_v28 = vld [vmem:[#allocation14 + $0x704] ss:$8 sps:$4 sm:$0xff]  }
 0x3df   :  { %5201 = vmatpush1.bf16.msra.mxu0 %v12072_v17  ;;  %v12146_v17 = vld [vmem:[#allocation14 + $0x700] ss:$8 sps:$4 sm:$0xff]  }
 0x3e0   :  { %5202 = vmatprep.subr.bf16.mxu0 %v12077_v60  ;;  %v12139_v60 = vld [vmem:[#allocation14 + $0x624] ss:$8 sps:$4 sm:$0xff]  }
 0x3e3   :  { %5203 = vmatpush1.bf16.msra.mxu0 %v12075_v24  ;;  %v12137_v24 = vld [vmem:[#allocation14 + $0x620] ss:$8 sps:$4 sm:$0xff]  }
 0x3e4   :  { %5204 = vmatprep.subr.bf16.mxu0 %v12080_v15  ;;  %v12154_v15 = vld [vmem:[#allocation14 + $0x7f4] ss:$8 sps:$4 sm:$0xff]  }
 0x3e7   :  { %5205 = vmatpush2.bf16.msra.mxu0 %v12078_v29  ;;  %v12152_v29 = vld [vmem:[#allocation14 + $0x7f0] ss:$8 sps:$4 sm:$0xff]  }
 0x3e8   :  { %5206 = vmatprep.subr.bf16.mxu0 %v12083_v7  ;;  %v12145_v7 = vld [vmem:[#allocation14 + $0x614] ss:$8 sps:$4 sm:$0xff]  }
 0x3eb   :  { %5207 = vmatpush2.bf16.msra.mxu0 %v12081_v14  ;;  %v12143_v14 = vld [vmem:[#allocation14 + $0x610] ss:$8 sps:$4 sm:$0xff]  }
 0x3ec   :  { %5208 = vmatprep.subr.bf16.mxu0 %v12086_v35  ;;  %v12160_v35 = vld [vmem:[#allocation14 + $0x7e4] ss:$8 sps:$4 sm:$0xff]  }
 0x3ef   :  { %5209 = vmatpush2.bf16.msra.mxu0 %v12084_v23  ;;  %v12158_v23 = vld [vmem:[#allocation14 + $0x7e0] ss:$8 sps:$4 sm:$0xff]  }
 0x3f0   :  { %5210 = vmatprep.subr.bf16.mxu0 %v12089_v44  ;;  %v12151_v44 = vld [vmem:[#allocation14 + $0x604] ss:$8 sps:$4 sm:$0xff]  }
 0x3f3   :  { %5211 = vmatpush2.bf16.msra.mxu0 %v12087_v43  ;;  %v12149_v43 = vld [vmem:[#allocation14 + $0x600] ss:$8 sps:$4 sm:$0xff]  }
 0x3f4   :  { %5212 = vmatprep.subr.bf16.mxu0 %v12092_v42  ;;  %v12166_v42 = vld [vmem:[#allocation14 + $0x7d4] ss:$8 sps:$4 sm:$0xff]  }
 0x3f7   :  { %5213 = vmatpush2.bf16.msra.mxu0 %v12090_v21  ;;  %v12164_v21 = vld [vmem:[#allocation14 + $0x7d0] ss:$8 sps:$4 sm:$0xff]  }
 0x3f8   :  { %5214 = vmatprep.subr.bf16.mxu0 %v12095_v30  ;;  %v12157_v30 = vld [vmem:[#allocation14 + $0x6f4] ss:$8 sps:$4 sm:$0xff]  }
 0x3fb   :  { %5215 = vmatpush2.bf16.msra.mxu0 %v12093_v3  ;;  %v12155_v3 = vld [vmem:[#allocation14 + $0x6f0] ss:$8 sps:$4 sm:$0xff]  }
 0x3fc   :  { %5216 = vmatprep.subr.bf16.mxu0 %v12098_v38  ;;  %v12172_v38 = vld [vmem:[#allocation14 + $0x7c4] ss:$8 sps:$4 sm:$0xff]  }
 0x3ff   :  { %5217 = vmatpush2.bf16.msra.mxu0 %v12096_v55  ;;  %v12170_v55 = vld [vmem:[#allocation14 + $0x7c0] ss:$8 sps:$4 sm:$0xff]  }
 0x400   :  { %5218 = vmatprep.subr.bf16.mxu0 %v12101_v11  ;;  %v12163_v11 = vld [vmem:[#allocation14 + $0x6e4] ss:$8 sps:$4 sm:$0xff]  }
 0x403   :  { %5219 = vmatpush2.bf16.msra.mxu0 %v12099_v46  ;;  %v12161_v46 = vld [vmem:[#allocation14 + $0x6e0] ss:$8 sps:$4 sm:$0xff]  }
 0x404   :  { %6211 = vmatprep.subr.bf16.mxu0 %v12106_v33  ;;  %v12178_v33 = vld [vmem:[#allocation14 + $0x7b4] ss:$8 sps:$4 sm:$0xff]  }
 0x406   :  { %5221 = vmatmul.mubr.bf16.vlgmr.msra.gmra.mxu0 %v13785_v52  ;;  %v12124_v52 = vld [vmem:[#allocation14 + $0x744] ss:$8 sps:$4 sm:$0xff]  }
 0x407   :  { %5230 = vmatprep.mubr.bf16.mxu0 %v13788_v6  ;;  %6212 = vmatpush1.bf16.msra.mxu0 %v12104_v45  ;;  %v12115_v6 = vld [vmem:[#allocation14 + $0x664] ss:$8 sps:$4 sm:$0xff]   ;;  %v12176_v45 = vld [vmem:[#allocation14 + $0x7b0] ss:$8 sps:$4 sm:$0xff]  }
 0x408   :  { %6213 = vmatprep.subr.bf16.mxu0 %v12112_v10  ;;  %6160 = vmatprep.subr.bf16.mxu1 %v12115_v6  ;;  %v12169_v10 = vld [vmem:[#allocation14 + $0x6d4] ss:$8 sps:$4 sm:$0xff]  }
 0x409   :  { %6161 = vmatpush1.bf16.msra.mxu1 %v12113_v39  ;;  %v12181_v6 = vld [vmem:[#allocation14 + $0x6b4] ss:$8 sps:$4 sm:$0xff]   ;;  %v12187_v39 = vld [vmem:[#allocation14 + $0x6a4] ss:$8 sps:$4 sm:$0xff]  }
 0x40a   :  { %6162 = vmatprep.subr.bf16.mxu1 %v12121_v49  ;;  %v12194_v49 = vld [vmem:[#allocation14 + $0x780] ss:$8 sps:$4 sm:$0xff]  }
 0x40b   :  { %6214 = vmatpush1.bf16.msra.mxu0 %v12110_v50  ;;  %v12167_v50 = vld [vmem:[#allocation14 + $0x6d0] ss:$8 sps:$4 sm:$0xff]  }
 0x40c   :  { %6215 = vmatprep.subr.bf16.mxu0 %v12118_v63  ;;  %v12184_v63 = vld [vmem:[#allocation14 + $0x7a4] ss:$8 sps:$4 sm:$0xff]  }
 0x40d   :  { %6163 = vmatpush1.bf16.msra.mxu1 %v12119_v53  ;;  %v12185_v53 = vld [vmem:[#allocation14 + $0x6a0] ss:$8 sps:$4 sm:$0xff]  }
 0x40e   :  { %5231 = vmatmul.mubr.bf16.gmra.mxu0 %v13791_v2  ;;  %v12128_v2 = vld [vmem:[#allocation14 + $0x730] ss:$8 sps:$4 sm:$0xff]   ;;  %6164 = vmatprep.subr.bf16.mxu1 %v12127_v22  ;;  %v12199_v22 = vld [vmem:[#allocation14 + $0x684] ss:$8 sps:$4 sm:$0xff]  }
 0x40f   :  { %6216 = vmatpush1.bf16.msra.mxu0 %v12116_v18  ;;  %v12182_v18 = vld [vmem:[#allocation14 + $0x7a0] ss:$8 sps:$4 sm:$0xff]  }
 0x410   :  { %6217 = vmatprep.subr.bf16.mxu0 %v12124_v52  ;;  %v12190_v52 = vld [vmem:[#allocation14 + $0x794] ss:$8 sps:$4 sm:$0xff]  }
 0x411   :  { %6165 = vmatpush1.bf16.msra.mxu1 %v12125_v8  ;;  %v12197_v8 = vld [vmem:[#allocation14 + $0x680] ss:$8 sps:$4 sm:$0xff]  }
 0x412   :  { %6166 = vmatprep.subr.bf16.mxu1 %v12133_v5 }
 0x413   :  { %6218 = vmatpush1.bf16.msra.mxu0 %v12122_v56  ;;  %v12179_v56 = vld [vmem:[#allocation14 + $0x6b0] ss:$8 sps:$4 sm:$0xff]  }
 0x414   :  { %6219 = vmatprep.subr.bf16.mxu0 %v12130_v40  ;;  %v12188_v40 = vld [vmem:[#allocation14 + $0x790] ss:$8 sps:$4 sm:$0xff]  }
 0x415   :  { %6167 = vmatpush1.bf16.msra.mxu1 %v12131_v0 }
 0x416   :  { %6168 = vmatprep.subr.bf16.mxu1 %v12139_v60 }
 0x417   :  { %6220 = vmatpush1.bf16.msra.mxu0 %v12128_v2  ;;  %v12196_v2 = vld [vmem:[#allocation14 + $0x784] ss:$8 sps:$4 sm:$0xff]  }
 0x418   :  { %6221 = vmatprep.subr.bf16.mxu0 %v12136_v13  ;;  %v12193_v13 = vld [vmem:[#allocation14 + $0x694] ss:$8 sps:$4 sm:$0xff]  }
 0x419   :  { %6169 = vmatpush1.bf16.msra.mxu1 %v12137_v24 }
 0x41a   :  { %6170 = vmatprep.subr.bf16.mxu1 %v12145_v7 }
 0x41b   :  { %6222 = vmatpush1.bf16.msra.mxu0 %v12134_v25  ;;  %v12191_v25 = vld [vmem:[#allocation14 + $0x690] ss:$8 sps:$4 sm:$0xff]  }
 0x41c   :  { %6223 = vmatprep.subr.bf16.mxu0 %v12142_v58  ;;  %v12203_v58 = vld [vmem:[#allocation14 + $0x874] ss:$8 sps:$4 sm:$0xff]  }
 0x41d   :  { %6171 = vmatpush1.bf16.msra.mxu1 %v12143_v14  ;;  %v4590_v14 = vld [vmem:[#allocation16 + $0x2] sm:$0x3] }
 0x41e   :  { %6172 = vmatprep.subr.bf16.mxu1 %v12151_v44 }
 0x41f   :  { %6224 = vmatpush1.bf16.msra.mxu0 %v12140_v4 }
 0x420   :  { %6225 = vmatprep.subr.bf16.mxu0 %v12148_v28 }
 0x421   :  { %6173 = vmatpush1.bf16.msra.mxu1 %v12149_v43  ;;  %v4599_v43 = vrot.slane %v4590_v14, %v13381_v32 }
 0x422   :  { %6174 = vmatprep.subr.bf16.mxu1 %v12157_v30 }
 0x423   :  { %6226 = vmatpush1.bf16.msra.mxu0 %v12146_v17 }
 0x424   :  { %6227 = vmatprep.subr.bf16.mxu0 %v12154_v15 }
 0x425   :  { %6175 = vmatpush2.bf16.msra.mxu1 %v12155_v3 }
 0x426   :  { %6176 = vmatprep.subr.bf16.mxu1 %v12163_v11 }
 0x427   :  { %6228 = vmatpush2.bf16.msra.mxu0 %v12152_v29 }
 0x428   :  { %6229 = vmatprep.subr.bf16.mxu0 %v12160_v35 }
 0x429   :  { %6177 = vmatpush2.bf16.msra.mxu1 %v12161_v46 }
 0x42a   :  { %6178 = vmatprep.subr.bf16.mxu1 %v12169_v10 }
 0x42b   :  { %6230 = vmatpush2.bf16.msra.mxu0 %v12158_v23  ;;  %v4595_v23 = vrot.slane %v4590_v14, %v13376_v27 }
 0x42c   :  { %6231 = vmatprep.subr.bf16.mxu0 %v12166_v42 }
 0x42d   :  { %6179 = vmatpush2.bf16.msra.mxu1 %v12167_v50 }
 0x42e   :  { %6180 = vmatprep.subr.bf16.mxu1 %v12175_v9 }
 0x42f   :  { %6232 = vmatpush2.bf16.msra.mxu0 %v12164_v21 }
 0x430   :  { %6233 = vmatprep.subr.bf16.mxu0 %v12172_v38 }
 0x431   :  { %6181 = vmatpush2.bf16.msra.mxu1 %v12173_v61 }
 0x432   :  { %6182 = vmatprep.subr.bf16.mxu1 %v12181_v6 }
 0x433   :  { %6234 = vmatpush2.bf16.msra.mxu0 %v12170_v55 }
 0x434   :  { %6235 = vmatprep.subr.bf16.mxu0 %v12178_v33 }
 0x435   :  { %6183 = vmatpush2.bf16.msra.mxu1 %v12179_v56 }
 0x436   :  { %6184 = vmatprep.subr.bf16.mxu1 %v12187_v39 }
 0x437   :  { %6236 = vmatpush2.bf16.msra.mxu0 %v12176_v45 }
 0x438   :  { %6237 = vmatprep.subr.bf16.mxu0 %v12184_v63 }
 0x439   :  { %6185 = vmatpush2.bf16.msra.mxu1 %v12185_v53 }
 0x43a   :  { %6186 = vmatprep.subr.bf16.mxu1 %v12193_v13 }
 0x43b   :  { %6238 = vmatpush2.bf16.msra.mxu0 %v12182_v18 }
 0x43c   :  { %6239 = vmatprep.subr.bf16.mxu0 %v12190_v52 }
 0x43d   :  { %6187 = vmatpush2.bf16.msra.mxu1 %v12191_v25 }
 0x43e   :  { %6188 = vmatprep.subr.bf16.mxu1 %v12199_v22 }
 0x43f   :  { %6240 = vmatpush2.bf16.msra.mxu0 %v12188_v40 }
 0x440   :  { %6241 = vmatprep.subr.bf16.mxu0 %v12196_v2 }
 0x441   :  { %6189 = vmatpush2.bf16.msra.mxu1 %v12197_v8 }
 0x442   :  { %6264 = vmatprep.subr.bf16.mxu1 %v12203_v58 }
 0x443   :  { %6242 = vmatpush2.bf16.msra.mxu0 %v12194_v49 }
 0x47a   :  { %v5169_v17 = vpop.f32.mrf.mxu1 }
 0x47c   :  { %v5171_v24 = vpop.f32.mrf.mxu1 }
 0x47e   :  { %v5173_v29 = vpop.f32.mrf.mxu1 }
 0x480   :  { %v5175_v35 = vpop.f32.mrf.mxu1 }
 0x482   :  { %v5179_v42 = vpop.f32.mrf.mxu1 }
 0x484   :  { %v5181_v33 = vpop.f32.mrf.mxu1 }
 0x486   :  { %v5116_v4 = vpop.f32.mrf.mxu0  ;;  %v5183_v6 = vpop.f32.mrf.mxu1 }
 0x487   :  { %v5117_v3 = vadd.f32 %v5116_v4, %v4595_v23 }
 0x488   :  { %v5118_v5 = vpop.f32.mrf.mxu0 }
 0x489   :  { %v5119_v46 = vadd.f32 %v5118_v5, %v4599_v43  ;;  %v5170_v63 = vadd.f32 %v5169_v17, %v5117_v3 }
 0x48a   :  { %v5120_v0 = vpop.f32.mrf.mxu0 }
 0x48b   :  { %v5121_v30 = vadd.f32 %v5120_v0, %v4595_v23  ;;  %v5172_v39 = vadd.f32 %v5171_v24, %v5119_v46  ;;  %v5185_v0 = vpop.f32.mrf.mxu1 }
 0x48c   :  { %v5122_v28 = vpop.f32.mrf.mxu0 }
 0x48d   :  { %v5123_v55 = vadd.f32 %v5122_v28, %v4599_v43  ;;  %v5174_v50 = vadd.f32 %v5173_v29, %v5121_v30 }
 0x48e   :  { %v5126_v60 = vpop.f32.mrf.mxu0 }
 0x48f   :  { %v5127_v11 = vadd.f32 %v5126_v60, %v4595_v23  ;;  %v5176_v52 = vadd.f32 %v5175_v35, %v5123_v55 }
 0x490   :  { %v5128_v15 = vpop.f32.mrf.mxu0 }
 0x491   :  { %v5129_v45 = vadd.f32 %v5128_v15, %v4599_v43  ;;  %v5180_v56 = vadd.f32 %v5179_v42, %v5127_v11 }
 0x492   :  { %v5130_v7 = vpop.f32.mrf.mxu0 }
 0x493   :  { %v5131_v9 = vadd.f32 %v5130_v7, %v4595_v23  ;;  %v5182_v2 = vadd.f32 %v5181_v33, %v5129_v45 }
 0x494   :  { %v5132_v44 = vpop.f32.mrf.mxu0 }
 0x495   :  { %v5133_v49 = vadd.f32 %v5132_v44, %v4599_v43  ;;  %v5184_v5 = vadd.f32 %v5183_v6, %v5131_v9 }
 0x497   :  { %v5186_v29 = vadd.f32 %v5185_v0, %v5133_v49 }
 0x4c6   :  { %v5222_v21 = vpop.f32.mrf.mxu0 }
 0x4c7   :  { %v5223_v53 = vadd.f32 %v5222_v21, %v5170_v63 }
 0x4c8   :  { %v5224_v38 = vpop.f32.mrf.mxu0 }
 0x4c9   :  { %v5225_v8 = vadd.f32 %v5224_v38, %v5172_v39 }
 0x4ca   :  { %v5226_v10 = vpop.f32.mrf.mxu0 }
 0x4cb   :  { %v5227_v61 = vadd.f32 %v5226_v10, %v5174_v50 }
 0x4cc   :  { %v5228_v18 = vpop.f32.mrf.mxu0 }
 0x4cd   :  { %v5229_v13 = vadd.f32 %v5228_v18, %v5176_v52  ;;  %v5241_v58 = vadd.f32 %v5227_v61, %v5223_v53 }
 0x4ce   :  { %v5232_v40 = vpop.f32.mrf.mxu0 }
 0x4cf   :  { %v5233_v25 = vadd.f32 %v5232_v40, %v5180_v56  ;;  %v5250_v17 = vadd.f32 %v5229_v13, %v5225_v8 }
 0x4d0   :  { %v5234_v22 = vpop.f32.mrf.mxu0 }
 0x4d1   :  { %v5235_v4 = vadd.f32 %v5234_v22, %v5182_v2  ;;  %v5242_v60 = vadd.f32 %v5241_v58, %v5233_v25 }
 0x4d2   :  { %v5236_v28 = vpop.f32.mrf.mxu0 }
 0x4d3   :  { %v5237_v15 = vadd.f32 %v5236_v28, %v5184_v5  ;;  %v5251_v14 = vadd.f32 %v5250_v17, %v5235_v4 }
 0x4d4   :  { %v5238_v7 = vpop.f32.mrf.mxu0 }
 0x4d5   :  { %v5243_v24 = vadd.f32 %v5242_v60, %v5237_v15  ;;  %v5239_v35 = vadd.f32 %v5238_v7, %v5186_v29 }
 0x4d7   :  { %v5244_v23 = vrot.slane %v5243_v24, 4  ;;  %v5252_v44 = vadd.f32 %v5251_v14, %v5239_v35 }
 0x4d9   :  { %v5245_v43 = vadd.f32 %v5244_v23, %v5243_v24  ;;  %v5253_v42 = vrot.slane %v5252_v44, 4 }
 0x4db   :  { %v5246_v21 = vrot.slane %v5245_v43, 2  ;;  %v5254_v30 = vadd.f32 %v5253_v42, %v5252_v44 }
 0x4dd   :  { %v5247_v3 = vadd.f32 %v5246_v21, %v5245_v43  ;;  %v5255_v38 = vrot.slane %v5254_v30, 2 }
 0x4df   :  { %v5248_v55 = vrot.slane %v5247_v3, 1  ;;  %v5256_v11 = vadd.f32 %v5255_v38, %v5254_v30 }
 0x4e1   :  { %v5249_v46 = vadd.f32 %v5248_v55, %v5247_v3  ;;  %v5257_v33 = vrot.slane %v5256_v11, 1  ;;  %v14125_v55 = vcombine.low %v13470_v26, %v13474_v34 }
 0x4e3   :  { %v5259_v45 = vmul.f32 0.03125, %v5249_v46  ;;  %v5258_v10 = vadd.f32 %v5257_v33, %v5256_v11  ;;  %v5318_v11 = vrot.slane %v14125_v55, %v13743_v20  ;;  %v14126_v33 = vcombine.low %v13641_v62, %v13645_v54 }
 0x4e5   :  { %v5261_v50 = vsub.f32 %v5223_v53, %v5259_v45  ;;  %v5263_v63 = vsub.f32 %v5227_v61, %v5259_v45  ;;  %v5265_v18 = vsub.f32 %v5233_v25, %v5259_v45  ;;  %v5260_v9 = vmul.f32 0.03125, %v5258_v10 }
 0x4e6   :  { %v5267_v52 = vsub.f32 %v5237_v15, %v5259_v45  ;;  %v5343_v45 = vrot.slane %v14126_v33, %v13743_v20  ;;  %v5319_v10 = vcombine.high %v5318_v11, %v5318_v11 }
 0x4e7   :  { %v5269_v56 = vmul.f32 %v5261_v50, %v5261_v50  ;;  %v5271_v6 = vmul.f32 %v5263_v63, %v5263_v63  ;;  %v5262_v39 = vsub.f32 %v5225_v8, %v5260_v9  ;;  %v5264_v40 = vsub.f32 %v5229_v13, %v5260_v9 }
 0x4e8   :  { %v5266_v2 = vsub.f32 %v5235_v4, %v5260_v9  ;;  %v5273_v49 = vmul.f32 %v5265_v18, %v5265_v18  ;;  %v5268_v58 = vsub.f32 %v5239_v35, %v5260_v9  ;;  %v5275_v28 = vmul.f32 %v5267_v52, %v5267_v52 }
 0x4e9   :  { %v5277_v22 = vadd.f32 %v5271_v6, %v5269_v56  ;;  %v5270_v5 = vmul.f32 %v5262_v39, %v5262_v39  ;;  %v5272_v0 = vmul.f32 %v5264_v40, %v5264_v40  ;;  %v5344_v9 = vcombine.high %v5343_v45, %v5343_v45 }
 0x4ea   :  { %v5274_v60 = vmul.f32 %v5266_v2, %v5266_v2  ;;  %v5276_v53 = vmul.f32 %v5268_v58, %v5268_v58  ;;  %v5326_v56 = vrot.slane %v5318_v11, %v13743_v20  ;;  %v5333_v6 = vrot.slane %v5319_v10, %v13743_v20 }
 0x4eb   :  { %v5278_v17 = vadd.f32 %v5277_v22, %v5273_v49  ;;  %v5286_v29 = vadd.f32 %v5272_v0, %v5270_v5  ;;  %v5351_v49 = vrot.slane %v5343_v45, %v13743_v20  ;;  %v5358_v22 = vrot.slane %v5344_v9, %v13743_v20 }
 0x4ec   :  { %v5362_v26 = vrot.slane %v5326_v56, %v13376_v27  ;;  %v5366_v34 = vrot.slane %v5326_v56, %v13381_v32  ;;  %v5370_v0 = vrot.slane %v5333_v6, %v13376_v27  ;;  %v5374_v62 = vrot.slane %v5333_v6, %v13381_v32 }
 0x4ed   :  { %v5279_v7 = vadd.f32 %v5278_v17, %v5275_v28  ;;  %v5287_v61 = vadd.f32 %v5286_v29, %v5274_v60  ;;  %v5390_v29 = vrot.slane %v5351_v49, %v13376_v27 }
 0x4ef   :  { %v5280_v25 = vrot.slane %v5279_v7, 4  ;;  %v5288_v14 = vadd.f32 %v5287_v61, %v5276_v53  ;;  %v5398_v53 = vrot.slane %v5358_v22, %v13376_v27  ;;  %v5402_v61 = vrot.slane %v5358_v22, %v13381_v32  ;;  %v5462_v22 = vld [vmem:[#allocation3 + $0x8] sm:$0x33] }
 0x4f1   :  { %v5281_v15 = vadd.f32 %v5280_v25, %v5279_v7  ;;  %v5289_v24 = vrot.slane %v5288_v14, 4  ;;  %v5394_v7 = vrot.slane %v5351_v49, %v13381_v32  ;;  %v13824_v49 = vld [vmem:[#allocation3 + $0x40] sm:$0x33] }
 0x4f3   :  { %v5282_v23 = vrot.slane %v5281_v15, 2  ;;  %v5290_v8 = vadd.f32 %v5289_v24, %v5288_v14 }
 0x4f5   :  { %v5283_v13 = vadd.f32 %v5282_v23, %v5281_v15  ;;  %v5291_v4 = vrot.slane %v5290_v8, 2 }
 0x4f7   :  { %v5284_v44 = vrot.slane %v5283_v13, 1  ;;  %v5292_v43 = vadd.f32 %v5291_v4, %v5290_v8 }
 0x4f9   :  { %v5285_v35 = vadd.f32 %v5284_v44, %v5283_v13  ;;  %v5293_v42 = vrot.slane %v5292_v43, 1 }
 0x4fb   :  { %v5295_v21 = vmul.f32 0.03125, %v5285_v35  ;;  %v5294_v30 = vadd.f32 %v5293_v42, %v5292_v43 }
 0x4fd   :  { %v5297_v3 = vadd.f32 1e-05, %v5295_v21  ;;  %v5296_v38 = vmul.f32 0.03125, %v5294_v30 }
 0x4ff   :  { %12740 = vrsqrt.f32 %v5297_v3  ;;  %v5298_v46 = vadd.f32 1e-05, %v5296_v38 }
 0x501   :  { %12742 = vrsqrt.f32 %v5298_v46 }
 0x50c   :  { %v12741_v5 = vpop.eup %12740 }
 0x50d   :  { %v5301_v54 = vmul.f32 %v12741_v5, %v5261_v50  ;;  %v5303_v28 = vmul.f32 %v12741_v5, %v5263_v63  ;;  %v5305_v17 = vmul.f32 %v12741_v5, %v5265_v18  ;;  %v5307_v60 = vmul.f32 %v12741_v5, %v5267_v52 }
 0x50e   :  { %v12743_v25 = vpop.eup %12742 }
 0x50f   :  { %v5379_v14 = vmul.f32 %v5362_v26, %v5301_v54  ;;  %v5381_v15 = vmul.f32 %v5362_v26, %v5303_v28  ;;  %v5383_v24 = vmul.f32 %v5370_v0, %v5305_v17  ;;  %v5385_v23 = vmul.f32 %v5370_v0, %v5307_v60 }
 0x510   :  { %v5302_v8 = vmul.f32 %v12743_v25, %v5262_v39  ;;  %v5304_v13 = vmul.f32 %v12743_v25, %v5264_v40  ;;  %v5306_v4 = vmul.f32 %v12743_v25, %v5266_v2  ;;  %v5308_v50 = vmul.f32 %v12743_v25, %v5268_v58 }
 0x511   :  { %v5407_v63 = vadd.f32 %v5390_v29, %v5379_v14  ;;  %v5409_v18 = vadd.f32 %v5390_v29, %v5381_v15  ;;  %v5411_v52 = vadd.f32 %v5398_v53, %v5383_v24  ;;  %v5413_v44 = vadd.f32 %v5398_v53, %v5385_v23  ;;  %v5457_v29 = vld [vmem:[#allocation3 + $0x38] sm:$0xcc] }
 0x512   :  { %v5380_v43 = vmul.f32 %v5366_v34, %v5302_v8  ;;  %v5382_v35 = vmul.f32 %v5366_v34, %v5304_v13  ;;  %v5384_v42 = vmul.f32 %v5374_v62, %v5306_v4  ;;  %v5386_v21 = vmul.f32 %v5374_v62, %v5308_v50  ;;  %v5455_v62 = vld [vmem:[#allocation3] sm:$0xcc] }
 0x513   :  { %v5415_v11 = vmax.f32 %v5407_v63, 0.0  ;;  %v5417_v46 = vmax.f32 %v5409_v18, 0.0  ;;  %v5419_v33 = vmax.f32 %v5411_v52, 0.0  ;;  %v5421_v45 = vmax.f32 %v5413_v44, 0.0 }
 0x514   :  { %v5408_v30 = vadd.f32 %v5394_v7, %v5380_v43  ;;  %v5410_v3 = vadd.f32 %v5394_v7, %v5382_v35  ;;  %v5412_v38 = vadd.f32 %v5402_v61, %v5384_v42  ;;  %v5414_v55 = vadd.f32 %v5402_v61, %v5386_v21 }
 0x515   :  { %v12788_v26 = vpack.c.bf16 %v5417_v46, %v5415_v11  ;;  %v12790_v0 = vpack.c.bf16 %v5421_v45, %v5419_v33  ;;  %v11147_v54 = vcombine.low %v13824_v49, %v13824_v49  ;;  %v11152_v28 = vcombine.high %v5462_v22, %v5462_v22 }
 0x516   :  { %v5416_v39 = vmax.f32 %v5408_v30, 0.0  ;;  %v5418_v40 = vmax.f32 %v5410_v3, 0.0  ;;  %v5420_v2 = vmax.f32 %v5412_v38, 0.0  ;;  %v5422_v58 = vmax.f32 %v5414_v55, 0.0  ;;  %v12201_v30 = vld [vmem:[#allocation14 + $0x870] ss:$8 sps:$4 sm:$0xff]  }
 0x517   :  { %v11151_v17 = vcombine.low %v5462_v22, %v5462_v22  ;;  %v5535_v53 = vrot.slane %v11147_v54, 2  ;;  %v5554_v61 = vrot.slane %v11152_v28, 2  ;;  %v11148_v22 = vcombine.high %v13824_v49, %v13824_v49  ;;  %v12209_v28 = vld [vmem:[#allocation14 + $0x850] ss:$8 sps:$4 sm:$0xff]  }
 0x518   :  { %v11650_v10 = vpack.c.bf16 %v5416_v39, %v5415_v11  ;;  %v13820_v9 = vpack.c.bf16 %v5418_v40, %v5417_v46  ;;  %v13822_v56 = vpack.c.bf16 %v5420_v2, %v5419_v33  ;;  %v11653_v6 = vpack.c.bf16 %v5422_v58, %v5421_v45  ;;  %v12208_v45 = vld [vmem:[#allocation14 + $0x864] ss:$8 sps:$4 sm:$0xff]  }
 0x519   :  { %v12787_v5 = vpack.c.bf16 %v5418_v40, %v5416_v39  ;;  %v12789_v34 = vpack.c.bf16 %v5422_v58, %v5420_v2  ;;  %v5551_v25 = vrot.slane %v11151_v17, 2  ;;  %v5538_v54 = vrot.slane %v11148_v22, 2  ;;  %v12273_v22 = vld [vmem:[#allocation14 + $0xa54] ss:$8 sps:$4 sm:$0xff]  }
 0x51a   :  { %5447 = vst [vmem:[#allocation3 + $0x28] sm:$0xff] %v11650_v10  ;;  %5448 = vst [vmem:[#allocation3 + $0x18] sm:$0xff] %v13820_v9  ;;  %v11133_v60 = vcombine.low %v5455_v62, %v11650_v10  ;;  %v11134_v7 = vcombine.high %v5455_v62, %v11650_v10  ;;  %v11138_v13 = vcombine.high %v5457_v29, %v13822_v56 }
 0x51b   :  { %5449 = vst [vmem:[#allocation3 + $0x30] sm:$0xff] %v13822_v56  ;;  %5450 = vst [vmem:[#allocation3 + $0x10] sm:$0xff] %v11653_v6  ;;  %6243 = vmatprep.mubr.bf16.mxu0 %v12787_v5  ;;  %v12206_v5 = vld [vmem:[#allocation14 + $0x860] ss:$8 sps:$4 sm:$0xff]  }
 0x51c   :  { %6244 = vmatmul.mubr.bf16.vlgmr.msra.gmra.mxu0 %v12788_v26  ;;  %v5524_v63 = vrot.slane %v11133_v60, 2  ;;  %v5527_v43 = vrot.slane %v11134_v7, 2  ;;  %v5543_v33 = vrot.slane %v11138_v13, 2  ;;  %v11137_v26 = vcombine.low %v5457_v29, %v13822_v56  ;;  %v12217_v60 = vld [vmem:[#allocation14 + $0x844] ss:$8 sps:$4 sm:$0xff]  }
 0x51d   :  { %6253 = vmatprep.mubr.bf16.mxu0 %v12789_v34  ;;  %v12211_v34 = vld [vmem:[#allocation14 + $0x854] ss:$8 sps:$4 sm:$0xff]   ;;  %v12215_v7 = vld [vmem:[#allocation14 + $0x840] ss:$8 sps:$4 sm:$0xff]   ;;  %v12218_v29 = vld [vmem:[#allocation14 + $0x830] ss:$8 sps:$4 sm:$0xff]  }
 0x51e   :  { %v5540_v17 = vrot.slane %v11137_v26, 2  ;;  %v12220_v56 = vld [vmem:[#allocation14 + $0x834] ss:$8 sps:$4 sm:$0xff]   ;;  %v12235_v13 = vld [vmem:[#allocation14 + $0x8e4] ss:$8 sps:$4 sm:$0xff]  }
 0x51f   :  { %v12274_v26 = vld [vmem:[#allocation14 + $0x940] ss:$8 sps:$4 sm:$0xff]  }
 0x521   :  { %v5456_v14 = vld [vmem:[#allocation3 + $0x18] sm:$0x33]  ;;  %v5459_v24 = vld [vmem:[#allocation3 + $0x28] sm:$0xcc] }
 0x522   :  { %v5458_v15 = vld [vmem:[#allocation3 + $0x10] sm:$0x33]  ;;  %v11136_v23 = vcombine.high %v5456_v14, %v5456_v14  ;;  %v11135_v8 = vcombine.low %v5456_v14, %v5456_v14  ;;  %v5461_v50 = vld [vmem:[#allocation3 + $0x30] sm:$0xcc]  ;;  %v11145_v18 = vcombine.low %v5459_v24, %v13820_v9 }
 0x523   :  { %v11140_v4 = vcombine.high %v5458_v15, %v5458_v15  ;;  %v11150_v52 = vcombine.high %v5461_v50, %v11653_v6  ;;  %v11149_v44 = vcombine.low %v5461_v50, %v11653_v6  ;;  %v11139_v39 = vcombine.low %v5458_v15, %v5458_v15  ;;  %v12224_v14 = vld [vmem:[#allocation14 + $0x810] ss:$8 sps:$4 sm:$0xff]   ;;  %v12229_v15 = vld [vmem:[#allocation14 + $0x804] ss:$8 sps:$4 sm:$0xff]   ;;  %v12238_v50 = vld [vmem:[#allocation14 + $0x8d4] ss:$8 sps:$4 sm:$0xff]  }
 0x524   :  { %v5528_v35 = vrot.slane %v11136_v23, 2  ;;  %v5525_v42 = vrot.slane %v11135_v8, 2  ;;  %6254 = vmatmul.mubr.bf16.gmra.mxu0 %v12790_v0  ;;  %v5534_v3 = vrot.slane %v11145_v18, 2  ;;  %v11146_v6 = vcombine.high %v5459_v24, %v13820_v9  ;;  %v12227_v24 = vld [vmem:[#allocation14 + $0x800] ss:$8 sps:$4 sm:$0xff]  }
 0x525   :  { %v5544_v21 = vrot.slane %v11140_v4, 2  ;;  %v5553_v38 = vrot.slane %v11150_v52, 2  ;;  %v5550_v55 = vrot.slane %v11149_v44, 2  ;;  %v5541_v0 = vrot.slane %v11139_v39, 2  ;;  %v12232_v23 = vld [vmem:[#allocation14 + $0x8f4] ss:$8 sps:$4 sm:$0xff]  }
 0x526   :  { %v5529_v11 = vsel %vm5523_vm4, %v5527_v43, %v5528_v35  ;;  %v5526_v46 = vsel %vm5523_vm4, %v5524_v63, %v5525_v42  ;;  %v13835_v40 = vsel %vm5523_vm4, %v5534_v3, %v5535_v53  ;;  %v5537_v62 = vrot.slane %v11146_v6, 2  ;;  %v12223_v53 = vld [vmem:[#allocation14 + $0x824] ss:$8 sps:$4 sm:$0xff]   ;;  %v12230_v8 = vld [vmem:[#allocation14 + $0x8f0] ss:$8 sps:$4 sm:$0xff]  }
 0x527   :  { %6190 = vmatprep.mubr.bf16.mxu1 %v5529_v11  ;;  %v13838_v2 = vsel %vm5523_vm4, %v5553_v38, %v5554_v61  ;;  %v13841_v58 = vsel %vm5523_vm4, %v5550_v55, %v5551_v25  ;;  %v5545_v10 = vsel %vm5523_vm4, %v5543_v33, %v5544_v21  ;;  %v5542_v9 = vsel %vm5523_vm4, %v5540_v17, %v5541_v0  ;;  %v12221_v61 = vld [vmem:[#allocation14 + $0x820] ss:$8 sps:$4 sm:$0xff]   ;;  %v12226_v25 = vld [vmem:[#allocation14 + $0x814] ss:$8 sps:$4 sm:$0xff]   ;;  %v12236_v63 = vld [vmem:[#allocation14 + $0x8d0] ss:$8 sps:$4 sm:$0xff]  }
 0x528   :  { %6191 = vmatmul.mubr.bf16.vlgmr.msra.gmra.mxu1 %v5526_v46  ;;  %v5539_v49 = vsel %vm5523_vm4, %v5537_v62, %v5538_v54  ;;  %v12233_v4 = vld [vmem:[#allocation14 + $0x8e0] ss:$8 sps:$4 sm:$0xff]   ;;  %v12241_v18 = vld [vmem:[#allocation14 + $0x8c4] ss:$8 sps:$4 sm:$0xff]   ;;  %v12244_v44 = vld [vmem:[#allocation14 + $0x8b4] ss:$8 sps:$4 sm:$0xff]  }
 0x529   :  { %6265 = vmatpush1.bf16.msra.mxu1 %v12201_v30  ;;  %6200 = vmatprep.mubr.bf16.mxu1 %v5545_v10  ;;  %v12239_v52 = vld [vmem:[#allocation14 + $0x8c0] ss:$8 sps:$4 sm:$0xff]   ;;  %v12242_v43 = vld [vmem:[#allocation14 + $0x8b0] ss:$8 sps:$4 sm:$0xff]   ;;  %v12247_v35 = vld [vmem:[#allocation14 + $0x8a4] ss:$8 sps:$4 sm:$0xff]  }
 0x52a   :  { %6266 = vmatprep.subr.bf16.mxu1 %v12208_v45  ;;  %v12245_v42 = vld [vmem:[#allocation14 + $0x8a0] ss:$8 sps:$4 sm:$0xff]   ;;  %v12250_v21 = vld [vmem:[#allocation14 + $0x894] ss:$8 sps:$4 sm:$0xff]   ;;  %v12248_v30 = vld [vmem:[#allocation14 + $0x890] ss:$8 sps:$4 sm:$0xff]  }
 0x52b   :  { %v12253_v3 = vld [vmem:[#allocation14 + $0x884] ss:$8 sps:$4 sm:$0xff]   ;;  %v12251_v38 = vld [vmem:[#allocation14 + $0x880] ss:$8 sps:$4 sm:$0xff]   ;;  %v12258_v55 = vld [vmem:[#allocation14 + $0x974] ss:$8 sps:$4 sm:$0xff]  }
 0x52c   :  { %v12256_v11 = vld [vmem:[#allocation14 + $0x970] ss:$8 sps:$4 sm:$0xff]   ;;  %v12261_v46 = vld [vmem:[#allocation14 + $0xa74] ss:$8 sps:$4 sm:$0xff]   ;;  %7173 = vmatprep.subr.bf16.mxu0 %v12258_v55  ;;  %v12264_v45 = vld [vmem:[#allocation14 + $0x964] ss:$8 sps:$4 sm:$0xff]  }
 0x52d   :  { %6267 = vmatpush1.bf16.msra.mxu1 %v12206_v5  ;;  %v12259_v33 = vld [vmem:[#allocation14 + $0xa70] ss:$8 sps:$4 sm:$0xff]   ;;  %7174 = vmatpush1.bf16.msra.mxu0 %v12256_v11  ;;  %v12262_v39 = vld [vmem:[#allocation14 + $0x960] ss:$8 sps:$4 sm:$0xff]   ;;  %v12267_v10 = vld [vmem:[#allocation14 + $0xa64] ss:$8 sps:$4 sm:$0xff]  }
 0x52e   :  { %6268 = vmatprep.subr.bf16.mxu1 %v12211_v34  ;;  %7175 = vmatprep.subr.bf16.mxu0 %v12264_v45  ;;  %v12265_v6 = vld [vmem:[#allocation14 + $0xa60] ss:$8 sps:$4 sm:$0xff]   ;;  %v12276_v5 = vld [vmem:[#allocation14 + $0x944] ss:$8 sps:$4 sm:$0xff]   ;;  %v12282_v62 = vld [vmem:[#allocation14 + $0x934] ss:$8 sps:$4 sm:$0xff]  }
 0x52f   :  { %v12279_v34 = vld [vmem:[#allocation14 + $0xa44] ss:$8 sps:$4 sm:$0xff]   ;;  %v12277_v0 = vld [vmem:[#allocation14 + $0xa40] ss:$8 sps:$4 sm:$0xff]   ;;  %v12280_v54 = vld [vmem:[#allocation14 + $0x930] ss:$8 sps:$4 sm:$0xff]  }
 0x530   :  { %6201 = vmatmul.mubr.bf16.gmra.mxu1 %v5542_v9  ;;  %v12283_v17 = vld [vmem:[#allocation14 + $0xa30] ss:$8 sps:$4 sm:$0xff]   ;;  %v12286_v9 = vld [vmem:[#allocation14 + $0x920] ss:$8 sps:$4 sm:$0xff]   ;;  %v12330_v55 = vld [vmem:[#allocation14 + $0x9b4] ss:$8 sps:$4 sm:$0xff]  }
 0x531   :  { %6269 = vmatpush1.bf16.msra.mxu1 %v12209_v28  ;;  %6296 = vmatprep.mubr.bf16.mxu1 %v5539_v49  ;;  %v12285_v28 = vld [vmem:[#allocation14 + $0xa34] ss:$8 sps:$4 sm:$0xff]   ;;  %v12291_v49 = vld [vmem:[#allocation14 + $0xa24] ss:$8 sps:$4 sm:$0xff]   ;;  %v12328_v11 = vld [vmem:[#allocation14 + $0x9b0] ss:$8 sps:$4 sm:$0xff]  }
 0x532   :  { %6270 = vmatprep.subr.bf16.mxu1 %v12217_v60  ;;  %7176 = vmatpush1.bf16.msra.mxu0 %v12262_v39  ;;  %v12288_v60 = vld [vmem:[#allocation14 + $0x924] ss:$8 sps:$4 sm:$0xff]   ;;  %v12334_v39 = vld [vmem:[#allocation14 + $0x9a0] ss:$8 sps:$4 sm:$0xff]  }
 0x533   :  { %v12336_v45 = vld [vmem:[#allocation14 + $0x9a4] ss:$8 sps:$4 sm:$0xff]  }
 0x535   :  { %6271 = vmatpush1.bf16.msra.mxu1 %v12215_v7  ;;  %v12289_v7 = vld [vmem:[#allocation14 + $0xa20] ss:$8 sps:$4 sm:$0xff]  }
 0x536   :  { %6272 = vmatprep.subr.bf16.mxu1 %v12220_v56  ;;  %v12294_v56 = vld [vmem:[#allocation14 + $0x914] ss:$8 sps:$4 sm:$0xff]  }
 0x539   :  { %6273 = vmatpush1.bf16.msra.mxu1 %v12218_v29  ;;  %v12292_v29 = vld [vmem:[#allocation14 + $0x910] ss:$8 sps:$4 sm:$0xff]  }
 0x53a   :  { %6274 = vmatprep.subr.bf16.mxu1 %v12223_v53  ;;  %v12297_v53 = vld [vmem:[#allocation14 + $0xa14] ss:$8 sps:$4 sm:$0xff]  }
 0x53d   :  { %6275 = vmatpush1.bf16.msra.mxu1 %v12221_v61  ;;  %v12295_v61 = vld [vmem:[#allocation14 + $0xa10] ss:$8 sps:$4 sm:$0xff]  }
 0x53e   :  { %6276 = vmatprep.subr.bf16.mxu1 %v12226_v25  ;;  %v12300_v25 = vld [vmem:[#allocation14 + $0x904] ss:$8 sps:$4 sm:$0xff]  }
 0x541   :  { %6277 = vmatpush1.bf16.msra.mxu1 %v12224_v14  ;;  %v12298_v14 = vld [vmem:[#allocation14 + $0x900] ss:$8 sps:$4 sm:$0xff]  }
 0x542   :  { %6278 = vmatprep.subr.bf16.mxu1 %v12229_v15  ;;  %v12303_v15 = vld [vmem:[#allocation14 + $0xa04] ss:$8 sps:$4 sm:$0xff]  }
 0x545   :  { %6279 = vmatpush1.bf16.msra.mxu1 %v12227_v24  ;;  %v12301_v24 = vld [vmem:[#allocation14 + $0xa00] ss:$8 sps:$4 sm:$0xff]  }
 0x546   :  { %6280 = vmatprep.subr.bf16.mxu1 %v12232_v23  ;;  %v12306_v23 = vld [vmem:[#allocation14 + $0x9f4] ss:$8 sps:$4 sm:$0xff]  }
 0x549   :  { %6281 = vmatpush2.bf16.msra.mxu1 %v12230_v8  ;;  %v12304_v8 = vld [vmem:[#allocation14 + $0x9f0] ss:$8 sps:$4 sm:$0xff]  }
 0x54a   :  { %6282 = vmatprep.subr.bf16.mxu1 %v12235_v13  ;;  %v12309_v13 = vld [vmem:[#allocation14 + $0xaf4] ss:$8 sps:$4 sm:$0xff]  }
 0x54d   :  { %6283 = vmatpush2.bf16.msra.mxu1 %v12233_v4  ;;  %v12307_v4 = vld [vmem:[#allocation14 + $0xaf0] ss:$8 sps:$4 sm:$0xff]  }
 0x54e   :  { %6284 = vmatprep.subr.bf16.mxu1 %v12238_v50  ;;  %v12312_v50 = vld [vmem:[#allocation14 + $0x9e4] ss:$8 sps:$4 sm:$0xff]  }
 0x551   :  { %6285 = vmatpush2.bf16.msra.mxu1 %v12236_v63  ;;  %v12310_v63 = vld [vmem:[#allocation14 + $0x9e0] ss:$8 sps:$4 sm:$0xff]  }
 0x552   :  { %6286 = vmatprep.subr.bf16.mxu1 %v12241_v18  ;;  %v12315_v18 = vld [vmem:[#allocation14 + $0xae4] ss:$8 sps:$4 sm:$0xff]  }
 0x555   :  { %6287 = vmatpush2.bf16.msra.mxu1 %v12239_v52  ;;  %v12313_v52 = vld [vmem:[#allocation14 + $0xae0] ss:$8 sps:$4 sm:$0xff]  }
 0x556   :  { %6288 = vmatprep.subr.bf16.mxu1 %v12244_v44  ;;  %v12318_v44 = vld [vmem:[#allocation14 + $0x9d4] ss:$8 sps:$4 sm:$0xff]  }
 0x559   :  { %6289 = vmatpush2.bf16.msra.mxu1 %v12242_v43  ;;  %v12316_v43 = vld [vmem:[#allocation14 + $0x9d0] ss:$8 sps:$4 sm:$0xff]  }
 0x55a   :  { %6290 = vmatprep.subr.bf16.mxu1 %v12247_v35  ;;  %v12321_v35 = vld [vmem:[#allocation14 + $0xad4] ss:$8 sps:$4 sm:$0xff]  }
 0x55d   :  { %6291 = vmatpush2.bf16.msra.mxu1 %v12245_v42  ;;  %v12319_v42 = vld [vmem:[#allocation14 + $0xad0] ss:$8 sps:$4 sm:$0xff]  }
 0x55e   :  { %6292 = vmatprep.subr.bf16.mxu1 %v12250_v21  ;;  %v12324_v21 = vld [vmem:[#allocation14 + $0x9c4] ss:$8 sps:$4 sm:$0xff]  }
 0x561   :  { %6293 = vmatpush2.bf16.msra.mxu1 %v12248_v30  ;;  %v12322_v30 = vld [vmem:[#allocation14 + $0x9c0] ss:$8 sps:$4 sm:$0xff]  }
 0x562   :  { %6294 = vmatprep.subr.bf16.mxu1 %v12253_v3  ;;  %v12327_v3 = vld [vmem:[#allocation14 + $0xac4] ss:$8 sps:$4 sm:$0xff]  }
 0x565   :  { %6295 = vmatpush2.bf16.msra.mxu1 %v12251_v38  ;;  %v12325_v38 = vld [vmem:[#allocation14 + $0xac0] ss:$8 sps:$4 sm:$0xff]  }
 0x566   :  { %7226 = vmatprep.subr.bf16.mxu1 %v12261_v46  ;;  %v12333_v46 = vld [vmem:[#allocation14 + $0xab4] ss:$8 sps:$4 sm:$0xff]  }
 0x568   :  { %6297 = vmatmul.mubr.bf16.vlgmr.msra.gmra.mxu1 %v13835_v40  ;;  %v12270_v40 = vld [vmem:[#allocation14 + $0x954] ss:$8 sps:$4 sm:$0xff]  }
 0x569   :  { %6306 = vmatprep.mubr.bf16.mxu1 %v13838_v2  ;;  %7227 = vmatpush1.bf16.msra.mxu1 %v12259_v33  ;;  %v12268_v2 = vld [vmem:[#allocation14 + $0x950] ss:$8 sps:$4 sm:$0xff]  }
 0x56a   :  { %7228 = vmatprep.subr.bf16.mxu1 %v12267_v10  ;;  %7177 = vmatprep.subr.bf16.mxu0 %v12270_v40  ;;  %v12331_v33 = vld [vmem:[#allocation14 + $0xab0] ss:$8 sps:$4 sm:$0xff]   ;;  %v12339_v10 = vld [vmem:[#allocation14 + $0xaa4] ss:$8 sps:$4 sm:$0xff]   ;;  %v12342_v40 = vld [vmem:[#allocation14 + $0x994] ss:$8 sps:$4 sm:$0xff]  }
 0x56b   :  { %7178 = vmatpush1.bf16.msra.mxu0 %v12268_v2  ;;  %v12340_v2 = vld [vmem:[#allocation14 + $0x990] ss:$8 sps:$4 sm:$0xff]  }
 0x56c   :  { %7179 = vmatprep.subr.bf16.mxu0 %v12276_v5  ;;  %v12348_v5 = vld [vmem:[#allocation14 + $0x984] ss:$8 sps:$4 sm:$0xff]  }
 0x56d   :  { %7229 = vmatpush1.bf16.msra.mxu1 %v12265_v6  ;;  %v12337_v6 = vld [vmem:[#allocation14 + $0xaa0] ss:$8 sps:$4 sm:$0xff]  }
 0x56e   :  { %7230 = vmatprep.subr.bf16.mxu1 %v12273_v22  ;;  %v12345_v22 = vld [vmem:[#allocation14 + $0xa94] ss:$8 sps:$4 sm:$0xff]  }
 0x56f   :  { %7180 = vmatpush1.bf16.msra.mxu0 %v12274_v26  ;;  %v12346_v26 = vld [vmem:[#allocation14 + $0x980] ss:$8 sps:$4 sm:$0xff]  }
 0x570   :  { %6307 = vmatmul.mubr.bf16.gmra.mxu1 %v13841_v58  ;;  %v12271_v58 = vld [vmem:[#allocation14 + $0xa50] ss:$8 sps:$4 sm:$0xff]   ;;  %7181 = vmatprep.subr.bf16.mxu0 %v12282_v62  ;;  %v12354_v62 = vld [vmem:[#allocation14 + $0xb74] ss:$8 sps:$4 sm:$0xff]  }
 0x571   :  { %7231 = vmatpush1.bf16.msra.mxu1 %v12271_v58  ;;  %v12343_v58 = vld [vmem:[#allocation14 + $0xa90] ss:$8 sps:$4 sm:$0xff]  }
 0x572   :  { %7232 = vmatprep.subr.bf16.mxu1 %v12279_v34  ;;  %v12351_v34 = vld [vmem:[#allocation14 + $0xa84] ss:$8 sps:$4 sm:$0xff]  }
 0x573   :  { %7182 = vmatpush1.bf16.msra.mxu0 %v12280_v54 }
 0x574   :  { %7183 = vmatprep.subr.bf16.mxu0 %v12288_v60 }
 0x575   :  { %7233 = vmatpush1.bf16.msra.mxu1 %v12277_v0  ;;  %v12349_v0 = vld [vmem:[#allocation14 + $0xa80] ss:$8 sps:$4 sm:$0xff]  }
 0x576   :  { %7234 = vmatprep.subr.bf16.mxu1 %v12285_v28 }
 0x577   :  { %7184 = vmatpush1.bf16.msra.mxu0 %v12286_v9 }
 0x578   :  { %7185 = vmatprep.subr.bf16.mxu0 %v12294_v56 }
 0x579   :  { %7235 = vmatpush1.bf16.msra.mxu1 %v12283_v17 }
 0x57a   :  { %7236 = vmatprep.subr.bf16.mxu1 %v12291_v49 }
 0x57b   :  { %7186 = vmatpush1.bf16.msra.mxu0 %v12292_v29 }
 0x57c   :  { %7187 = vmatprep.subr.bf16.mxu0 %v12300_v25 }
 0x57d   :  { %7237 = vmatpush1.bf16.msra.mxu1 %v12289_v7 }
 0x57e   :  { %7238 = vmatprep.subr.bf16.mxu1 %v12297_v53 }
 0x57f   :  { %7188 = vmatpush1.bf16.msra.mxu0 %v12298_v14 }
 0x580   :  { %7189 = vmatprep.subr.bf16.mxu0 %v12306_v23 }
 0x581   :  { %7239 = vmatpush1.bf16.msra.mxu1 %v12295_v61  ;;  %v5666_v61 = vld [vmem:[#allocation16 + $0x4] sm:$0x3] }
 0x582   :  { %7240 = vmatprep.subr.bf16.mxu1 %v12303_v15  ;;  %v5671_v14 = vrot.slane %v5666_v61, %v13376_v27 }
 0x583   :  { %7190 = vmatpush2.bf16.msra.mxu0 %v12304_v8 }
 0x584   :  { %7191 = vmatprep.subr.bf16.mxu0 %v12312_v50 }
 0x585   :  { %7241 = vmatpush1.bf16.msra.mxu1 %v12301_v24  ;;  %v5675_v24 = vrot.slane %v5666_v61, %v13381_v32 }
 0x586   :  { %7242 = vmatprep.subr.bf16.mxu1 %v12309_v13 }
 0x587   :  { %7192 = vmatpush2.bf16.msra.mxu0 %v12310_v63 }
 0x588   :  { %7193 = vmatprep.subr.bf16.mxu0 %v12318_v44 }
 0x589   :  { %7243 = vmatpush2.bf16.msra.mxu1 %v12307_v4 }
 0x58a   :  { %7244 = vmatprep.subr.bf16.mxu1 %v12315_v18 }
 0x58b   :  { %7194 = vmatpush2.bf16.msra.mxu0 %v12316_v43 }
 0x58c   :  { %7195 = vmatprep.subr.bf16.mxu0 %v12324_v21 }
 0x58d   :  { %7245 = vmatpush2.bf16.msra.mxu1 %v12313_v52 }
 0x58e   :  { %7246 = vmatprep.subr.bf16.mxu1 %v12321_v35 }
 0x58f   :  { %7196 = vmatpush2.bf16.msra.mxu0 %v12322_v30 }
 0x590   :  { %7197 = vmatprep.subr.bf16.mxu0 %v12330_v55 }
 0x591   :  { %7247 = vmatpush2.bf16.msra.mxu1 %v12319_v42 }
 0x592   :  { %7248 = vmatprep.subr.bf16.mxu1 %v12327_v3 }
 0x593   :  { %7198 = vmatpush2.bf16.msra.mxu0 %v12328_v11 }
 0x594   :  { %7199 = vmatprep.subr.bf16.mxu0 %v12336_v45 }
 0x595   :  { %7249 = vmatpush2.bf16.msra.mxu1 %v12325_v38 }
 0x596   :  { %7250 = vmatprep.subr.bf16.mxu1 %v12333_v46 }
 0x597   :  { %7200 = vmatpush2.bf16.msra.mxu0 %v12334_v39 }
 0x598   :  { %7201 = vmatprep.subr.bf16.mxu0 %v12342_v40 }
 0x599   :  { %7251 = vmatpush2.bf16.msra.mxu1 %v12331_v33 }
 0x59a   :  { %7252 = vmatprep.subr.bf16.mxu1 %v12339_v10 }
 0x59b   :  { %7202 = vmatpush2.bf16.msra.mxu0 %v12340_v2 }
 0x59c   :  { %7203 = vmatprep.subr.bf16.mxu0 %v12348_v5 }
 0x59d   :  { %7253 = vmatpush2.bf16.msra.mxu1 %v12337_v6 }
 0x59e   :  { %7254 = vmatprep.subr.bf16.mxu1 %v12345_v22 }
 0x59f   :  { %7204 = vmatpush2.bf16.msra.mxu0 %v12346_v26 }
 0x5a0   :  { %7279 = vmatprep.subr.bf16.mxu0 %v12354_v62 }
 0x5a1   :  { %7255 = vmatpush2.bf16.msra.mxu1 %v12343_v58 }
 0x5a2   :  { %7256 = vmatprep.subr.bf16.mxu1 %v12351_v34 }
 0x5a5   :  { %7257 = vmatpush2.bf16.msra.mxu1 %v12349_v0 }
 0x5dc   :  { %v6245_v9 = vpop.f32.mrf.mxu0 }
 0x5de   :  { %v6247_v7 = vpop.f32.mrf.mxu0 }
 0x5e0   :  { %v6249_v29 = vpop.f32.mrf.mxu0 }
 0x5e2   :  { %v6251_v25 = vpop.f32.mrf.mxu0 }
 0x5e4   :  { %v6255_v23 = vpop.f32.mrf.mxu0 }
 0x5e6   :  { %v6257_v44 = vpop.f32.mrf.mxu0 }
 0x5e8   :  { %v6192_v54 = vpop.f32.mrf.mxu1  ;;  %v6259_v46 = vpop.f32.mrf.mxu0 }
 0x5e9   :  { %v6193_v4 = vadd.f32 %v6192_v54, %v5671_v14 }
 0x5ea   :  { %v6194_v28 = vpop.f32.mrf.mxu1  ;;  %v6261_v0 = vpop.f32.mrf.mxu0 }
 0x5eb   :  { %v6195_v52 = vadd.f32 %v6194_v28, %v5675_v24  ;;  %v6246_v21 = vadd.f32 %v6245_v9, %v6193_v4 }
 0x5ec   :  { %v6196_v17 = vpop.f32.mrf.mxu1 }
 0x5ed   :  { %v6197_v13 = vadd.f32 %v6196_v17, %v5671_v14  ;;  %v6248_v33 = vadd.f32 %v6247_v7, %v6195_v52 }
 0x5ee   :  { %v6198_v60 = vpop.f32.mrf.mxu1 }
 0x5ef   :  { %v6199_v63 = vadd.f32 %v6198_v60, %v5675_v24  ;;  %v6250_v42 = vadd.f32 %v6249_v29, %v6197_v13 }
 0x5f0   :  { %v6202_v49 = vpop.f32.mrf.mxu1 }
 0x5f1   :  { %v6203_v18 = vadd.f32 %v6202_v49, %v5671_v14  ;;  %v6252_v55 = vadd.f32 %v6251_v25, %v6199_v63 }
 0x5f2   :  { %v6204_v56 = vpop.f32.mrf.mxu1 }
 0x5f3   :  { %v6205_v43 = vadd.f32 %v6204_v56, %v5675_v24  ;;  %v6256_v11 = vadd.f32 %v6255_v23, %v6203_v18 }
 0x5f4   :  { %v6206_v53 = vpop.f32.mrf.mxu1 }
 0x5f5   :  { %v6207_v3 = vadd.f32 %v6206_v53, %v5671_v14  ;;  %v6258_v39 = vadd.f32 %v6257_v44, %v6205_v43 }
 0x5f6   :  { %v6208_v15 = vpop.f32.mrf.mxu1 }
 0x5f7   :  { %v6209_v10 = vadd.f32 %v6208_v15, %v5675_v24  ;;  %v6260_v34 = vadd.f32 %v6259_v46, %v6207_v3 }
 0x5f9   :  { %v6262_v60 = vadd.f32 %v6261_v0, %v6209_v10 }
 0x628   :  { %v6298_v8 = vpop.f32.mrf.mxu1 }
 0x629   :  { %v6299_v6 = vadd.f32 %v6298_v8, %v6246_v21 }
 0x62a   :  { %v6300_v50 = vpop.f32.mrf.mxu1 }
 0x62b   :  { %v6301_v58 = vadd.f32 %v6300_v50, %v6248_v33 }
 0x62c   :  { %v6302_v35 = vpop.f32.mrf.mxu1 }
 0x62d   :  { %v6303_v38 = vadd.f32 %v6302_v35, %v6250_v42 }
 0x62e   :  { %v6304_v30 = vpop.f32.mrf.mxu1 }
 0x62f   :  { %v6305_v40 = vadd.f32 %v6304_v30, %v6252_v55  ;;  %v6317_v5 = vadd.f32 %v6303_v38, %v6299_v6 }
 0x630   :  { %v6308_v45 = vpop.f32.mrf.mxu1 }
 0x631   :  { %v6309_v2 = vadd.f32 %v6308_v45, %v6256_v11  ;;  %v6326_v54 = vadd.f32 %v6305_v40, %v6301_v58 }
 0x632   :  { %v6310_v22 = vpop.f32.mrf.mxu1 }
 0x633   :  { %v6311_v26 = vadd.f32 %v6310_v22, %v6258_v39  ;;  %v6318_v28 = vadd.f32 %v6317_v5, %v6309_v2 }
 0x634   :  { %v6312_v62 = vpop.f32.mrf.mxu1 }
 0x635   :  { %v6313_v17 = vadd.f32 %v6312_v62, %v6260_v34  ;;  %v6327_v49 = vadd.f32 %v6326_v54, %v6311_v26 }
 0x636   :  { %v6314_v9 = vpop.f32.mrf.mxu1 }
 0x637   :  { %v6319_v7 = vadd.f32 %v6318_v28, %v6313_v17  ;;  %v6315_v56 = vadd.f32 %v6314_v9, %v6262_v60 }
 0x639   :  { %v6320_v29 = vrot.slane %v6319_v7, 4  ;;  %v6328_v53 = vadd.f32 %v6327_v49, %v6315_v56 }
 0x63b   :  { %v6321_v61 = vadd.f32 %v6320_v29, %v6319_v7  ;;  %v6329_v25 = vrot.slane %v6328_v53, 4 }
 0x63d   :  { %v6322_v14 = vrot.slane %v6321_v61, 2  ;;  %v6330_v15 = vadd.f32 %v6329_v25, %v6328_v53 }
 0x63f   :  { %v6323_v24 = vadd.f32 %v6322_v14, %v6321_v61  ;;  %v6331_v23 = vrot.slane %v6330_v15, 2  ;;  %v14127_v14 = vcombine.low %v13476_v47, %v13480_v51 }
 0x641   :  { %v6324_v8 = vrot.slane %v6323_v24, 1  ;;  %v6332_v13 = vadd.f32 %v6331_v23, %v6330_v15  ;;  %v6394_v15 = vrot.slane %v14127_v14, %v13743_v20  ;;  %v14128_v23 = vcombine.low %v13635_v37, %v13639_v48 }
 0x643   :  { %v6325_v4 = vadd.f32 %v6324_v8, %v6323_v24  ;;  %v6333_v50 = vrot.slane %v6332_v13, 1  ;;  %v6419_v8 = vrot.slane %v14128_v23, %v13743_v20 }
 0x645   :  { %v6335_v63 = vmul.f32 0.03125, %v6325_v4  ;;  %v6334_v18 = vadd.f32 %v6333_v50, %v6332_v13  ;;  %v6395_v13 = vcombine.high %v6394_v15, %v6394_v15  ;;  %v6420_v4 = vcombine.high %v6419_v8, %v6419_v8 }
 0x646   :  { %v6402_v50 = vrot.slane %v6394_v15, %v13743_v20 }
 0x647   :  { %v6337_v52 = vsub.f32 %v6299_v6, %v6335_v63  ;;  %v6339_v44 = vsub.f32 %v6303_v38, %v6335_v63  ;;  %v6341_v43 = vsub.f32 %v6309_v2, %v6335_v63  ;;  %v6336_v35 = vmul.f32 0.03125, %v6334_v18 }
 0x648   :  { %v6343_v42 = vsub.f32 %v6313_v17, %v6335_v63  ;;  %v6409_v63 = vrot.slane %v6395_v13, %v13743_v20  ;;  %v6427_v18 = vrot.slane %v6419_v8, %v13743_v20  ;;  %v6438_v47 = vrot.slane %v6402_v50, %v13376_v27  ;;  %v13879_v13 = vld [vmem:[#allocation3 + $0x50] sm:$0xff] }
 0x649   :  { %v6345_v21 = vmul.f32 %v6337_v52, %v6337_v52  ;;  %v6347_v30 = vmul.f32 %v6339_v44, %v6339_v44  ;;  %v6338_v3 = vsub.f32 %v6301_v58, %v6336_v35  ;;  %v6340_v55 = vsub.f32 %v6305_v40, %v6336_v35 }
 0x64a   :  { %v6342_v11 = vsub.f32 %v6311_v26, %v6336_v35  ;;  %v6349_v46 = vmul.f32 %v6341_v43, %v6341_v43  ;;  %v6344_v45 = vsub.f32 %v6315_v56, %v6336_v35  ;;  %v6351_v22 = vmul.f32 %v6343_v42, %v6343_v42 }
 0x64b   :  { %v6353_v33 = vadd.f32 %v6347_v30, %v6345_v21  ;;  %v6346_v39 = vmul.f32 %v6338_v3, %v6338_v3  ;;  %v6348_v10 = vmul.f32 %v6340_v55, %v6340_v55  ;;  %v6434_v35 = vrot.slane %v6420_v4, %v13743_v20 }
 0x64c   :  { %v6350_v34 = vmul.f32 %v6342_v11, %v6342_v11  ;;  %v6352_v6 = vmul.f32 %v6344_v45, %v6344_v45  ;;  %v6442_v51 = vrot.slane %v6402_v50, %v13381_v32  ;;  %v6446_v30 = vrot.slane %v6409_v63, %v13376_v27 }
 0x64d   :  { %v6354_v5 = vadd.f32 %v6353_v33, %v6349_v46  ;;  %v6362_v0 = vadd.f32 %v6348_v10, %v6346_v39  ;;  %v6450_v37 = vrot.slane %v6409_v63, %v13381_v32  ;;  %v6466_v10 = vrot.slane %v6427_v18, %v13376_v27 }
 0x64f   :  { %v6355_v62 = vadd.f32 %v6354_v5, %v6351_v22  ;;  %v6363_v38 = vadd.f32 %v6362_v0, %v6350_v34  ;;  %v6470_v22 = vrot.slane %v6427_v18, %v13381_v32  ;;  %v6474_v5 = vrot.slane %v6434_v35, %v13376_v27  ;;  %v12352_v18 = vld [vmem:[#allocation14 + $0xb70] ss:$8 sps:$4 sm:$0xff]  }
 0x650   :  { %v6478_v34 = vrot.slane %v6434_v35, %v13381_v32 }
 0x651   :  { %v6356_v2 = vrot.slane %v6355_v62, 4  ;;  %v6364_v54 = vadd.f32 %v6363_v38, %v6352_v6 }
 0x653   :  { %v6357_v28 = vadd.f32 %v6356_v2, %v6355_v62  ;;  %v6365_v17 = vrot.slane %v6364_v54, 4 }
 0x655   :  { %v6358_v60 = vrot.slane %v6357_v28, 2  ;;  %v6366_v58 = vadd.f32 %v6365_v17, %v6364_v54 }
 0x657   :  { %v6359_v40 = vadd.f32 %v6358_v60, %v6357_v28  ;;  %v6367_v26 = vrot.slane %v6366_v58, 2 }
 0x659   :  { %v6360_v9 = vrot.slane %v6359_v40, 1  ;;  %v6368_v49 = vadd.f32 %v6367_v26, %v6366_v58 }
 0x65b   :  { %v6361_v7 = vadd.f32 %v6360_v9, %v6359_v40  ;;  %v6369_v56 = vrot.slane %v6368_v49, 1 }
 0x65d   :  { %v6371_v29 = vmul.f32 0.03125, %v6361_v7  ;;  %v6370_v53 = vadd.f32 %v6369_v56, %v6368_v49 }
 0x65f   :  { %v6373_v61 = vadd.f32 1e-05, %v6371_v29  ;;  %v6372_v25 = vmul.f32 0.03125, %v6370_v53 }
 0x661   :  { %12744 = vrsqrt.f32 %v6373_v61  ;;  %v6374_v24 = vadd.f32 1e-05, %v6372_v25 }
 0x663   :  { %12746 = vrsqrt.f32 %v6374_v24 }
 0x66e   :  { %v12745_v21 = vpop.eup %12744 }
 0x66f   :  { %v6377_v48 = vmul.f32 %v12745_v21, %v6337_v52  ;;  %v6379_v46 = vmul.f32 %v12745_v21, %v6339_v44  ;;  %v6381_v33 = vmul.f32 %v12745_v21, %v6341_v43  ;;  %v6383_v39 = vmul.f32 %v12745_v21, %v6343_v42 }
 0x670   :  { %v12747_v0 = vpop.eup %12746 }
 0x671   :  { %v6455_v62 = vmul.f32 %v6438_v47, %v6377_v48  ;;  %v6457_v6 = vmul.f32 %v6438_v47, %v6379_v46  ;;  %v6459_v38 = vmul.f32 %v6446_v30, %v6381_v33  ;;  %v6461_v2 = vmul.f32 %v6446_v30, %v6383_v39  ;;  %v12357_v47 = vld [vmem:[#allocation14 + $0xb64] ss:$8 sps:$4 sm:$0xff]   ;;  %v12360_v48 = vld [vmem:[#allocation14 + $0xb54] ss:$8 sps:$4 sm:$0xff]   ;;  %v12358_v46 = vld [vmem:[#allocation14 + $0xb50] ss:$8 sps:$4 sm:$0xff]  }
 0x672   :  { %v6378_v54 = vmul.f32 %v12747_v0, %v6338_v3  ;;  %v6380_v28 = vmul.f32 %v12747_v0, %v6340_v55  ;;  %v6382_v17 = vmul.f32 %v12747_v0, %v6342_v11  ;;  %v6384_v52 = vmul.f32 %v12747_v0, %v6344_v45  ;;  %v12363_v39 = vld [vmem:[#allocation14 + $0xb44] ss:$8 sps:$4 sm:$0xff]  }
 0x673   :  { %v6483_v44 = vadd.f32 %v6466_v10, %v6455_v62  ;;  %v6485_v43 = vadd.f32 %v6466_v10, %v6457_v6  ;;  %v6487_v42 = vadd.f32 %v6474_v5, %v6459_v38  ;;  %v6489_v60 = vadd.f32 %v6474_v5, %v6461_v2  ;;  %v12366_v5 = vld [vmem:[#allocation14 + $0xb34] ss:$8 sps:$4 sm:$0xff]   ;;  %v12369_v0 = vld [vmem:[#allocation14 + $0xb24] ss:$8 sps:$4 sm:$0xff]   ;;  %v12367_v62 = vld [vmem:[#allocation14 + $0xb20] ss:$8 sps:$4 sm:$0xff]  }
 0x674   :  { %v6456_v58 = vmul.f32 %v6442_v51, %v6378_v54  ;;  %v6458_v40 = vmul.f32 %v6442_v51, %v6380_v28  ;;  %v6460_v26 = vmul.f32 %v6450_v37, %v6382_v17  ;;  %v6462_v9 = vmul.f32 %v6450_v37, %v6384_v52  ;;  %v12355_v37 = vld [vmem:[#allocation14 + $0xb60] ss:$8 sps:$4 sm:$0xff]   ;;  %v12372_v6 = vld [vmem:[#allocation14 + $0xb14] ss:$8 sps:$4 sm:$0xff]   ;;  %v12370_v38 = vld [vmem:[#allocation14 + $0xb10] ss:$8 sps:$4 sm:$0xff]  }
 0x675   :  { %v6491_v53 = vmax.f32 %v6483_v44, 0.0  ;;  %v6493_v61 = vmax.f32 %v6485_v43, 0.0  ;;  %v6495_v25 = vmax.f32 %v6487_v42, 0.0  ;;  %v6497_v14 = vmax.f32 %v6489_v60, 0.0  ;;  %v12375_v2 = vld [vmem:[#allocation14 + $0xb04] ss:$8 sps:$4 sm:$0xff]  }
 0x676   :  { %v6484_v49 = vadd.f32 %v6470_v22, %v6456_v58  ;;  %v6486_v7 = vadd.f32 %v6470_v22, %v6458_v40  ;;  %v6488_v56 = vadd.f32 %v6478_v34, %v6460_v26  ;;  %v6490_v29 = vadd.f32 %v6478_v34, %v6462_v9  ;;  %v12361_v22 = vld [vmem:[#allocation14 + $0xb40] ss:$8 sps:$4 sm:$0xff]   ;;  %v12364_v34 = vld [vmem:[#allocation14 + $0xb30] ss:$8 sps:$4 sm:$0xff]   ;;  %v12378_v28 = vld [vmem:[#allocation14 + $0xbf4] ss:$8 sps:$4 sm:$0xff]  }
 0x677   :  { %v12792_v35 = vpack.c.bf16 %v6493_v61, %v6491_v53  ;;  %v12794_v51 = vpack.c.bf16 %v6497_v14, %v6495_v25  ;;  %v12373_v54 = vld [vmem:[#allocation14 + $0xb00] ss:$8 sps:$4 sm:$0xff]   ;;  %v12376_v17 = vld [vmem:[#allocation14 + $0xbf0] ss:$8 sps:$4 sm:$0xff]   ;;  %v12381_v52 = vld [vmem:[#allocation14 + $0xbe4] ss:$8 sps:$4 sm:$0xff]  }
 0x678   :  { %v6492_v3 = vmax.f32 %v6484_v49, 0.0  ;;  %v6494_v55 = vmax.f32 %v6486_v7, 0.0  ;;  %v6496_v11 = vmax.f32 %v6488_v56, 0.0  ;;  %v6498_v45 = vmax.f32 %v6490_v29, 0.0  ;;  %v12379_v44 = vld [vmem:[#allocation14 + $0xbe0] ss:$8 sps:$4 sm:$0xff]  }
 0x679   :  { %v12384_v43 = vld [vmem:[#allocation14 + $0xbd4] ss:$8 sps:$4 sm:$0xff]   ;;  %v12382_v42 = vld [vmem:[#allocation14 + $0xbd0] ss:$8 sps:$4 sm:$0xff]   ;;  %v12387_v60 = vld [vmem:[#allocation14 + $0xbc4] ss:$8 sps:$4 sm:$0xff]  }
 0x67a   :  { %v11654_v15 = vpack.c.bf16 %v6492_v3, %v6491_v53  ;;  %v13875_v24 = vpack.c.bf16 %v6494_v55, %v6493_v61  ;;  %v11656_v23 = vpack.c.bf16 %v6496_v11, %v6495_v25  ;;  %v13877_v8 = vpack.c.bf16 %v6498_v45, %v6497_v14  ;;  %v12385_v58 = vld [vmem:[#allocation14 + $0xbc0] ss:$8 sps:$4 sm:$0xff]   ;;  %v12390_v40 = vld [vmem:[#allocation14 + $0xbb4] ss:$8 sps:$4 sm:$0xff]   ;;  %v12388_v26 = vld [vmem:[#allocation14 + $0xbb0] ss:$8 sps:$4 sm:$0xff]  }
 0x67b   :  { %v12791_v63 = vpack.c.bf16 %v6494_v55, %v6492_v3  ;;  %v12793_v21 = vpack.c.bf16 %v6498_v45, %v6496_v11  ;;  %v12393_v9 = vld [vmem:[#allocation14 + $0xba4] ss:$8 sps:$4 sm:$0xff]   ;;  %v12391_v49 = vld [vmem:[#allocation14 + $0xba0] ss:$8 sps:$4 sm:$0xff]   ;;  %v12396_v7 = vld [vmem:[#allocation14 + $0xb94] ss:$8 sps:$4 sm:$0xff]  }
 0x67c   :  { %v11257_v4 = vcombine.low %v13879_v13, %v11654_v15  ;;  %v11258_v50 = vcombine.high %v13879_v13, %v11654_v15  ;;  %v11260_v30 = vcombine.high %v13879_v13, %v11656_v23  ;;  %v11259_v33 = vcombine.low %v13879_v13, %v11656_v23  ;;  %v12394_v56 = vld [vmem:[#allocation14 + $0xb90] ss:$8 sps:$4 sm:$0xff]   ;;  %v12399_v29 = vld [vmem:[#allocation14 + $0xb84] ss:$8 sps:$4 sm:$0xff]   ;;  %v12397_v53 = vld [vmem:[#allocation14 + $0xb80] ss:$8 sps:$4 sm:$0xff]  }
 0x67d   :  { %7258 = vmatprep.mubr.bf16.mxu1 %v12791_v63  ;;  %v11266_v10 = vcombine.high %v13875_v24, %v13879_v13  ;;  %v11265_v61 = vcombine.low %v13875_v24, %v13879_v13  ;;  %v11268_v25 = vcombine.high %v13877_v8, %v13879_v13  ;;  %v11267_v14 = vcombine.low %v13877_v8, %v13879_v13  ;;  %v12402_v3 = vld [vmem:[#allocation14 + $0xd74] ss:$8 sps:$4 sm:$0xff]   ;;  %v12400_v55 = vld [vmem:[#allocation14 + $0xd70] ss:$8 sps:$4 sm:$0xff]   ;;  %v12405_v11 = vld [vmem:[#allocation14 + $0xd64] ss:$8 sps:$4 sm:$0xff]  }
 0x67e   :  { %7205 = vmatprep.mubr.bf16.mxu0 %v11258_v50  ;;  %7259 = vmatmul.mubr.bf16.vlgmr.msra.gmra.mxu1 %v12792_v35  ;;  %v12403_v45 = vld [vmem:[#allocation14 + $0xd60] ss:$8 sps:$4 sm:$0xff]   ;;  %v12408_v15 = vld [vmem:[#allocation14 + $0xd54] ss:$8 sps:$4 sm:$0xff]   ;;  %v12406_v23 = vld [vmem:[#allocation14 + $0xd50] ss:$8 sps:$4 sm:$0xff]  }
 0x67f   :  { %7206 = vmatmul.mubr.bf16.vlgmr.msra.gmra.mxu0 %v11257_v4  ;;  %7268 = vmatprep.mubr.bf16.mxu1 %v12793_v21  ;;  %v12411_v24 = vld [vmem:[#allocation14 + $0xd44] ss:$8 sps:$4 sm:$0xff]   ;;  %v12409_v4 = vld [vmem:[#allocation14 + $0xd40] ss:$8 sps:$4 sm:$0xff]   ;;  %v12414_v50 = vld [vmem:[#allocation14 + $0xd34] ss:$8 sps:$4 sm:$0xff]  }
 0x680   :  { %7280 = vmatpush1.bf16.msra.mxu0 %v12352_v18  ;;  %7215 = vmatprep.mubr.bf16.mxu0 %v11260_v30  ;;  %v12412_v63 = vld [vmem:[#allocation14 + $0xd30] ss:$8 sps:$4 sm:$0xff]   ;;  %v12417_v8 = vld [vmem:[#allocation14 + $0xd24] ss:$8 sps:$4 sm:$0xff]   ;;  %v12415_v13 = vld [vmem:[#allocation14 + $0xd20] ss:$8 sps:$4 sm:$0xff]  }
 0x681   :  { %7281 = vmatprep.subr.bf16.mxu0 %v12357_v47  ;;  %7772 = vmatprep.subr.bf16.mxu1 %v12402_v3  ;;  %v12420_v18 = vld [vmem:[#allocation14 + $0xd14] ss:$8 sps:$4 sm:$0xff]   ;;  %v12418_v35 = vld [vmem:[#allocation14 + $0xd10] ss:$8 sps:$4 sm:$0xff]   ;;  %v12423_v21 = vld [vmem:[#allocation14 + $0xd04] ss:$8 sps:$4 sm:$0xff]  }
 0x682   :  { %7773 = vmatpush1.bf16.msra.mxu1 %v12400_v55  ;;  %v12421_v47 = vld [vmem:[#allocation14 + $0xd00] ss:$8 sps:$4 sm:$0xff]   ;;  %v12424_v30 = vld [vmem:[#allocation14 + $0xdf0] ss:$8 sps:$4 sm:$0xff]  }
 0x683   :  { %7774 = vmatprep.subr.bf16.mxu1 %v12405_v11 }
 0x684   :  { %7282 = vmatpush1.bf16.msra.mxu0 %v12355_v37  ;;  %v12429_v37 = vld [vmem:[#allocation14 + $0xde4] ss:$8 sps:$4 sm:$0xff]  }
 0x685   :  { %7283 = vmatprep.subr.bf16.mxu0 %v12360_v48  ;;  %v12427_v48 = vld [vmem:[#allocation14 + $0xde0] ss:$8 sps:$4 sm:$0xff]  }
 0x686   :  { %7269 = vmatmul.mubr.bf16.gmra.mxu1 %v12794_v51  ;;  %v12426_v51 = vld [vmem:[#allocation14 + $0xdf4] ss:$8 sps:$4 sm:$0xff]  }
 0x687   :  { %7216 = vmatmul.mubr.bf16.gmra.mxu0 %v11259_v33  ;;  %7775 = vmatpush1.bf16.msra.mxu1 %v12403_v45  ;;  %v12430_v33 = vld [vmem:[#allocation14 + $0xdd0] ss:$8 sps:$4 sm:$0xff]  }
 0x688   :  { %7284 = vmatpush1.bf16.msra.mxu0 %v12358_v46  ;;  %7311 = vmatprep.mubr.bf16.mxu0 %v11266_v10  ;;  %v12432_v46 = vld [vmem:[#allocation14 + $0xdd4] ss:$8 sps:$4 sm:$0xff]   ;;  %v12433_v10 = vld [vmem:[#allocation14 + $0xdc0] ss:$8 sps:$4 sm:$0xff]  }
 0x689   :  { %7285 = vmatprep.subr.bf16.mxu0 %v12363_v39  ;;  %7776 = vmatprep.subr.bf16.mxu1 %v12408_v15  ;;  %v12435_v39 = vld [vmem:[#allocation14 + $0xdc4] ss:$8 sps:$4 sm:$0xff]  }
 0x68b   :  { %7777 = vmatpush1.bf16.msra.mxu1 %v12406_v23 }
 0x68c   :  { %7286 = vmatpush1.bf16.msra.mxu0 %v12361_v22  ;;  %7778 = vmatprep.subr.bf16.mxu1 %v12411_v24  ;;  %v12438_v22 = vld [vmem:[#allocation14 + $0xdb4] ss:$8 sps:$4 sm:$0xff]  }
 0x68d   :  { %7287 = vmatprep.subr.bf16.mxu0 %v12366_v5  ;;  %v12436_v5 = vld [vmem:[#allocation14 + $0xdb0] ss:$8 sps:$4 sm:$0xff]  }
 0x68f   :  { %7779 = vmatpush1.bf16.msra.mxu1 %v12409_v4 }
 0x690   :  { %7288 = vmatpush1.bf16.msra.mxu0 %v12364_v34  ;;  %7780 = vmatprep.subr.bf16.mxu1 %v12414_v50  ;;  %v12441_v34 = vld [vmem:[#allocation14 + $0xda4] ss:$8 sps:$4 sm:$0xff]  }
 0x691   :  { %7289 = vmatprep.subr.bf16.mxu0 %v12369_v0  ;;  %v12439_v0 = vld [vmem:[#allocation14 + $0xda0] ss:$8 sps:$4 sm:$0xff]  }
 0x693   :  { %7781 = vmatpush1.bf16.msra.mxu1 %v12412_v63 }
 0x694   :  { %7290 = vmatpush1.bf16.msra.mxu0 %v12367_v62  ;;  %7782 = vmatprep.subr.bf16.mxu1 %v12417_v8  ;;  %v12444_v62 = vld [vmem:[#allocation14 + $0xd94] ss:$8 sps:$4 sm:$0xff]  }
 0x695   :  { %7291 = vmatprep.subr.bf16.mxu0 %v12372_v6  ;;  %v12442_v6 = vld [vmem:[#allocation14 + $0xd90] ss:$8 sps:$4 sm:$0xff]  }
 0x697   :  { %7783 = vmatpush1.bf16.msra.mxu1 %v12415_v13 }
 0x698   :  { %7292 = vmatpush1.bf16.msra.mxu0 %v12370_v38  ;;  %7784 = vmatprep.subr.bf16.mxu1 %v12420_v18  ;;  %v12445_v38 = vld [vmem:[#allocation14 + $0xd80] ss:$8 sps:$4 sm:$0xff]  }
 0x699   :  { %7293 = vmatprep.subr.bf16.mxu0 %v12375_v2  ;;  %v12447_v2 = vld [vmem:[#allocation14 + $0xd84] ss:$8 sps:$4 sm:$0xff]  }
 0x69b   :  { %7785 = vmatpush1.bf16.msra.mxu1 %v12418_v35 }
 0x69c   :  { %7294 = vmatpush1.bf16.msra.mxu0 %v12373_v54  ;;  %7786 = vmatprep.subr.bf16.mxu1 %v12423_v21 }
 0x69d   :  { %7295 = vmatprep.subr.bf16.mxu0 %v12378_v28 }
 0x69f   :  { %7787 = vmatpush1.bf16.msra.mxu1 %v12421_v47 }
 0x6a0   :  { %7296 = vmatpush2.bf16.msra.mxu0 %v12376_v17  ;;  %7788 = vmatprep.subr.bf16.mxu1 %v12426_v51 }
 0x6a1   :  { %7297 = vmatprep.subr.bf16.mxu0 %v12381_v52 }
 0x6a3   :  { %7789 = vmatpush2.bf16.msra.mxu1 %v12424_v30 }
 0x6a4   :  { %7298 = vmatpush2.bf16.msra.mxu0 %v12379_v44  ;;  %7790 = vmatprep.subr.bf16.mxu1 %v12429_v37 }
 0x6a5   :  { %7299 = vmatprep.subr.bf16.mxu0 %v12384_v43 }
 0x6a7   :  { %7791 = vmatpush2.bf16.msra.mxu1 %v12427_v48 }
 0x6a8   :  { %7300 = vmatpush2.bf16.msra.mxu0 %v12382_v42  ;;  %7792 = vmatprep.subr.bf16.mxu1 %v12432_v46 }
 0x6a9   :  { %7301 = vmatprep.subr.bf16.mxu0 %v12387_v60 }
 0x6ab   :  { %7793 = vmatpush2.bf16.msra.mxu1 %v12430_v33 }
 0x6ac   :  { %7302 = vmatpush2.bf16.msra.mxu0 %v12385_v58  ;;  %7794 = vmatprep.subr.bf16.mxu1 %v12435_v39 }
 0x6ad   :  { %7303 = vmatprep.subr.bf16.mxu0 %v12390_v40 }
 0x6af   :  { %7795 = vmatpush2.bf16.msra.mxu1 %v12433_v10 }
 0x6b0   :  { %7304 = vmatpush2.bf16.msra.mxu0 %v12388_v26  ;;  %7796 = vmatprep.subr.bf16.mxu1 %v12438_v22  ;;  %v6681_v26 = vld [vmem:[#allocation16 + $0x6] sm:$0x3] }
 0x6b1   :  { %7305 = vmatprep.subr.bf16.mxu0 %v12393_v9 }
 0x6b3   :  { %7797 = vmatpush2.bf16.msra.mxu1 %v12436_v5 }
 0x6b4   :  { %7306 = vmatpush2.bf16.msra.mxu0 %v12391_v49  ;;  %7798 = vmatprep.subr.bf16.mxu1 %v12441_v34  ;;  %v6686_v49 = vrot.slane %v6681_v26, %v13376_v27 }
 0x6b5   :  { %7307 = vmatprep.subr.bf16.mxu0 %v12396_v7 }
 0x6b7   :  { %7799 = vmatpush2.bf16.msra.mxu1 %v12439_v0 }
 0x6b8   :  { %7308 = vmatpush2.bf16.msra.mxu0 %v12394_v56  ;;  %7800 = vmatprep.subr.bf16.mxu1 %v12444_v62  ;;  %v6690_v56 = vrot.slane %v6681_v26, %v13381_v32 }
 0x6b9   :  { %7309 = vmatprep.subr.bf16.mxu0 %v12399_v29 }
 0x6bb   :  { %7801 = vmatpush2.bf16.msra.mxu1 %v12442_v6 }
 0x6bc   :  { %7310 = vmatpush2.bf16.msra.mxu0 %v12397_v53  ;;  %7802 = vmatprep.subr.bf16.mxu1 %v12447_v2 }
 0x6bf   :  { %7312 = vmatmul.mubr.bf16.vlgmr.msra.gmra.mxu0 %v11265_v61  ;;  %7803 = vmatpush2.bf16.msra.mxu1 %v12445_v38 }
 0x6c0   :  { %7321 = vmatprep.mubr.bf16.mxu0 %v11268_v25 }
 0x6c7   :  { %7322 = vmatmul.mubr.bf16.gmra.mxu0 %v11267_v14 }
 0x73e   :  { %v7260_v44 = vpop.f32.mrf.mxu1 }
 0x73f   :  { %v7207_v54 = vpop.f32.mrf.mxu0 }
 0x740   :  { %v7262_v42 = vpop.f32.mrf.mxu1  ;;  %v7208_v25 = vadd.f32 %v7207_v54, %v6686_v49 }
 0x741   :  { %v7209_v28 = vpop.f32.mrf.mxu0 }
 0x742   :  { %v7264_v58 = vpop.f32.mrf.mxu1  ;;  %v7210_v11 = vadd.f32 %v7209_v28, %v6690_v56  ;;  %v7261_v4 = vadd.f32 %v7260_v44, %v7208_v25 }
 0x743   :  { %v7211_v17 = vpop.f32.mrf.mxu0 }
 0x744   :  { %v7266_v9 = vpop.f32.mrf.mxu1  ;;  %v7212_v61 = vadd.f32 %v7211_v17, %v6686_v49  ;;  %v7263_v35 = vadd.f32 %v7262_v42, %v7210_v11 }
 0x745   :  { %v7213_v52 = vpop.f32.mrf.mxu0 }
 0x746   :  { %v7270_v29 = vpop.f32.mrf.mxu1  ;;  %v7214_v3 = vadd.f32 %v7213_v52, %v6690_v56  ;;  %v7265_v24 = vadd.f32 %v7264_v58, %v7212_v61 }
 0x747   :  { %v7217_v43 = vpop.f32.mrf.mxu0 }
 0x748   :  { %v7218_v55 = vadd.f32 %v7217_v43, %v6686_v49  ;;  %v7272_v15 = vpop.f32.mrf.mxu1  ;;  %v7267_v63 = vadd.f32 %v7266_v9, %v7214_v3 }
 0x749   :  { %v7219_v60 = vpop.f32.mrf.mxu0 }
 0x74a   :  { %v7220_v45 = vadd.f32 %v7219_v60, %v6690_v56  ;;  %v7271_v8 = vadd.f32 %v7270_v29, %v7218_v55  ;;  %v7274_v47 = vpop.f32.mrf.mxu1 }
 0x74b   :  { %v7221_v40 = vpop.f32.mrf.mxu0 }
 0x74c   :  { %v7222_v13 = vadd.f32 %v7221_v40, %v6686_v49  ;;  %v7273_v21 = vadd.f32 %v7272_v15, %v7220_v45  ;;  %v7276_v34 = vpop.f32.mrf.mxu1 }
 0x74d   :  { %v7223_v7 = vpop.f32.mrf.mxu0 }
 0x74e   :  { %v7224_v30 = vadd.f32 %v7223_v7, %v6690_v56  ;;  %v7275_v39 = vadd.f32 %v7274_v47, %v7222_v13 }
 0x750   :  { %v7277_v62 = vadd.f32 %v7276_v34, %v7224_v30 }
 0x77f   :  { %v7313_v53 = vpop.f32.mrf.mxu0 }
 0x780   :  { %v7314_v37 = vadd.f32 %v7313_v53, %v7261_v4 }
 0x781   :  { %v7315_v14 = vpop.f32.mrf.mxu0 }
 0x782   :  { %v7316_v10 = vadd.f32 %v7315_v14, %v7263_v35 }
 0x783   :  { %v7317_v23 = vpop.f32.mrf.mxu0 }
 0x784   :  { %v7318_v18 = vadd.f32 %v7317_v23, %v7265_v24 }
 0x785   :  { %v7319_v50 = vpop.f32.mrf.mxu0 }
 0x786   :  { %v7320_v48 = vadd.f32 %v7319_v50, %v7267_v63  ;;  %v7332_v22 = vadd.f32 %v7318_v18, %v7314_v37 }
 0x787   :  { %v7323_v51 = vpop.f32.mrf.mxu0 }
 0x788   :  { %v7324_v46 = vadd.f32 %v7323_v51, %v7271_v8  ;;  %v7341_v6 = vadd.f32 %v7320_v48, %v7316_v10 }
 0x789   :  { %v7325_v33 = vpop.f32.mrf.mxu0 }
 0x78a   :  { %v7326_v5 = vadd.f32 %v7325_v33, %v7273_v21  ;;  %v7333_v38 = vadd.f32 %v7332_v22, %v7324_v46 }
 0x78b   :  { %v7327_v0 = vpop.f32.mrf.mxu0 }
 0x78c   :  { %v7328_v2 = vadd.f32 %v7327_v0, %v7275_v39  ;;  %v7342_v28 = vadd.f32 %v7341_v6, %v7326_v5 }
 0x78d   :  { %v7329_v54 = vpop.f32.mrf.mxu0 }
 0x78e   :  { %v7334_v17 = vadd.f32 %v7333_v38, %v7328_v2  ;;  %v7330_v52 = vadd.f32 %v7329_v54, %v7277_v62 }
 0x790   :  { %v7335_v44 = vrot.slane %v7334_v17, 4  ;;  %v7343_v43 = vadd.f32 %v7342_v28, %v7330_v52 }
 0x792   :  { %v7336_v42 = vadd.f32 %v7335_v44, %v7334_v17  ;;  %v7344_v60 = vrot.slane %v7343_v43, 4  ;;  %v14129_v44 = vcombine.low %v13506_v31, %v13510_v36 }
 0x794   :  { %v7337_v58 = vrot.slane %v7336_v42, 2  ;;  %v7345_v40 = vadd.f32 %v7344_v60, %v7343_v43  ;;  %v7409_v43 = vrot.slane %v14129_v44, %v13743_v20  ;;  %v14130_v60 = vcombine.low %v13671_v12, %v13676_v41 }
 0x796   :  { %v7338_v26 = vadd.f32 %v7337_v58, %v7336_v42  ;;  %v7346_v9 = vrot.slane %v7345_v40, 2  ;;  %v7434_v58 = vrot.slane %v14130_v60, %v13743_v20  ;;  %v12453_v60 = vld [vmem:[#allocation14 + $0x1064] ss:$8 sps:$4 sm:$0xff]  }
 0x798   :  { %v7339_v49 = vrot.slane %v7338_v26, 1  ;;  %v7347_v7 = vadd.f32 %v7346_v9, %v7345_v40  ;;  %v7410_v40 = vcombine.high %v7409_v43, %v7409_v43  ;;  %v7417_v9 = vrot.slane %v7409_v43, %v13743_v20  ;;  %v12450_v43 = vld [vmem:[#allocation14 + $0x1074] ss:$8 sps:$4 sm:$0xff]  }
 0x799   :  { %8265 = vmatprep.subr.bf16.mxu0 %v12450_v43 }
 0x79a   :  { %v7340_v56 = vadd.f32 %v7339_v49, %v7338_v26  ;;  %v7348_v29 = vrot.slane %v7347_v7, 1  ;;  %v7435_v26 = vcombine.high %v7434_v58, %v7434_v58  ;;  %v7424_v49 = vrot.slane %v7410_v40, %v13743_v20  ;;  %v12456_v40 = vld [vmem:[#allocation14 + $0x1054] ss:$8 sps:$4 sm:$0xff]  }
 0x79b   :  { %v7453_v31 = vrot.slane %v7417_v9, %v13376_v27  ;;  %v7457_v36 = vrot.slane %v7417_v9, %v13381_v32  ;;  %v12459_v9 = vld [vmem:[#allocation14 + $0x1044] ss:$8 sps:$4 sm:$0xff]  }
 0x79c   :  { %v7350_v53 = vmul.f32 0.03125, %v7340_v56  ;;  %v7349_v61 = vadd.f32 %v7348_v29, %v7347_v7  ;;  %v7442_v7 = vrot.slane %v7434_v58, %v13743_v20  ;;  %v7449_v56 = vrot.slane %v7435_v26, %v13743_v20  ;;  %v12451_v58 = vld [vmem:[#allocation14 + $0x1060] ss:$8 sps:$4 sm:$0xff]   ;;  %v12454_v26 = vld [vmem:[#allocation14 + $0x1050] ss:$8 sps:$4 sm:$0xff]  }
 0x79d   :  { %v7465_v12 = vrot.slane %v7424_v49, %v13381_v32 }
 0x79e   :  { %v7352_v25 = vsub.f32 %v7314_v37, %v7350_v53  ;;  %v7354_v14 = vsub.f32 %v7318_v18, %v7350_v53  ;;  %v7356_v3 = vsub.f32 %v7324_v46, %v7350_v53  ;;  %v7351_v55 = vmul.f32 0.03125, %v7349_v61 }
 0x79f   :  { %v7358_v11 = vsub.f32 %v7328_v2, %v7350_v53  ;;  %v7461_v53 = vrot.slane %v7424_v49, %v13376_v27  ;;  %v12457_v49 = vld [vmem:[#allocation14 + $0x1040] ss:$8 sps:$4 sm:$0xff]  }
 0x7a0   :  { %v7360_v45 = vmul.f32 %v7352_v25, %v7352_v25  ;;  %v7362_v15 = vmul.f32 %v7354_v14, %v7354_v14  ;;  %v7353_v23 = vsub.f32 %v7316_v10, %v7351_v55  ;;  %v7355_v24 = vsub.f32 %v7320_v48, %v7351_v55 }
 0x7a1   :  { %v7357_v4 = vsub.f32 %v7326_v5, %v7351_v55  ;;  %v7364_v50 = vmul.f32 %v7356_v3, %v7356_v3  ;;  %v7359_v8 = vsub.f32 %v7330_v52, %v7351_v55  ;;  %v7366_v21 = vmul.f32 %v7358_v11, %v7358_v11 }
 0x7a2   :  { %v7368_v63 = vadd.f32 %v7362_v15, %v7360_v45  ;;  %v7361_v13 = vmul.f32 %v7353_v23, %v7353_v23  ;;  %v7363_v35 = vmul.f32 %v7355_v24, %v7355_v24  ;;  %v7481_v15 = vrot.slane %v7442_v7, %v13376_v27 }
 0x7a3   :  { %v7365_v51 = vmul.f32 %v7357_v4, %v7357_v4  ;;  %v7367_v37 = vmul.f32 %v7359_v8, %v7359_v8 }
 0x7a4   :  { %v7369_v47 = vadd.f32 %v7368_v63, %v7364_v50  ;;  %v7377_v30 = vadd.f32 %v7363_v35, %v7361_v13  ;;  %v7485_v50 = vrot.slane %v7442_v7, %v13381_v32  ;;  %v7489_v63 = vrot.slane %v7449_v56, %v13376_v27  ;;  %v12462_v7 = vld [vmem:[#allocation14 + $0x1034] ss:$8 sps:$4 sm:$0xff]  }
 0x7a5   :  { %v7493_v13 = vrot.slane %v7449_v56, %v13381_v32  ;;  %v12460_v56 = vld [vmem:[#allocation14 + $0x1030] ss:$8 sps:$4 sm:$0xff]  }
 0x7a6   :  { %v7370_v33 = vadd.f32 %v7369_v47, %v7366_v21  ;;  %v7378_v18 = vadd.f32 %v7377_v30, %v7365_v51 }
 0x7a8   :  { %v7371_v46 = vrot.slane %v7370_v33, 4  ;;  %v7379_v39 = vadd.f32 %v7378_v18, %v7367_v37 }
 0x7aa   :  { %v7372_v22 = vadd.f32 %v7371_v46, %v7370_v33  ;;  %v7380_v34 = vrot.slane %v7379_v39, 4 }
 0x7ac   :  { %v7373_v0 = vrot.slane %v7372_v22, 2  ;;  %v7381_v10 = vadd.f32 %v7380_v34, %v7379_v39 }
 0x7ae   :  { %v7374_v48 = vadd.f32 %v7373_v0, %v7372_v22  ;;  %v7382_v5 = vrot.slane %v7381_v10, 2 }
 0x7b0   :  { %v7375_v62 = vrot.slane %v7374_v48, 1  ;;  %v7383_v6 = vadd.f32 %v7382_v5, %v7381_v10 }
 0x7b2   :  { %v7376_v38 = vadd.f32 %v7375_v62, %v7374_v48  ;;  %v7384_v2 = vrot.slane %v7383_v6, 1 }
 0x7b4   :  { %v7386_v54 = vmul.f32 0.03125, %v7376_v38  ;;  %v7385_v28 = vadd.f32 %v7384_v2, %v7383_v6 }
 0x7b6   :  { %v7388_v17 = vadd.f32 1e-05, %v7386_v54  ;;  %v7387_v52 = vmul.f32 0.03125, %v7385_v28 }
 0x7b8   :  { %12748 = vrsqrt.f32 %v7388_v17  ;;  %v7389_v42 = vadd.f32 1e-05, %v7387_v52 }
 0x7ba   :  { %12750 = vrsqrt.f32 %v7389_v42  ;;  %v12448_v42 = vld [vmem:[#allocation14 + $0x1070] ss:$8 sps:$4 sm:$0xff]  }
 0x7bb   :  { %8266 = vmatpush1.bf16.msra.mxu0 %v12448_v42 }
 0x7bc   :  { %8267 = vmatprep.subr.bf16.mxu0 %v12453_v60 }
 0x7bf   :  { %8268 = vmatpush1.bf16.msra.mxu0 %v12451_v58 }
 0x7c0   :  { %8269 = vmatprep.subr.bf16.mxu0 %v12456_v40 }
 0x7c3   :  { %8270 = vmatpush1.bf16.msra.mxu0 %v12454_v26 }
 0x7c4   :  { %8271 = vmatprep.subr.bf16.mxu0 %v12459_v9 }
 0x7c5   :  { %v12749_v29 = vpop.eup %12748 }
 0x7c6   :  { %v7392_v41 = vmul.f32 %v12749_v29, %v7352_v25  ;;  %v7394_v61 = vmul.f32 %v12749_v29, %v7354_v14  ;;  %v7396_v55 = vmul.f32 %v12749_v29, %v7356_v3  ;;  %v7398_v45 = vmul.f32 %v12749_v29, %v7358_v11  ;;  %v12465_v29 = vld [vmem:[#allocation14 + $0x1024] ss:$8 sps:$4 sm:$0xff]  }
 0x7c7   :  { %v12751_v35 = vpop.eup %12750  ;;  %8272 = vmatpush1.bf16.msra.mxu0 %v12457_v49 }
 0x7c8   :  { %v7470_v21 = vmul.f32 %v7453_v31, %v7392_v41  ;;  %v7472_v47 = vmul.f32 %v7453_v31, %v7394_v61  ;;  %v7474_v51 = vmul.f32 %v7461_v53, %v7396_v55  ;;  %v7476_v30 = vmul.f32 %v7461_v53, %v7398_v45  ;;  %8273 = vmatprep.subr.bf16.mxu0 %v12462_v7  ;;  %v12463_v31 = vld [vmem:[#allocation14 + $0x1020] ss:$8 sps:$4 sm:$0xff]   ;;  %v12466_v53 = vld [vmem:[#allocation14 + $0x1010] ss:$8 sps:$4 sm:$0xff]   ;;  %v12474_v61 = vld [vmem:[#allocation14 + $0x10f4] ss:$8 sps:$4 sm:$0xff]  }
 0x7c9   :  { %v7393_v33 = vmul.f32 %v12751_v35, %v7353_v23  ;;  %v7395_v37 = vmul.f32 %v12751_v35, %v7355_v24  ;;  %v7397_v18 = vmul.f32 %v12751_v35, %v7357_v4  ;;  %v7399_v25 = vmul.f32 %v12751_v35, %v7359_v8  ;;  %v12469_v41 = vld [vmem:[#allocation14 + $0x1000] ss:$8 sps:$4 sm:$0xff]   ;;  %v12472_v55 = vld [vmem:[#allocation14 + $0x10f0] ss:$8 sps:$4 sm:$0xff]   ;;  %v12477_v45 = vld [vmem:[#allocation14 + $0x10e4] ss:$8 sps:$4 sm:$0xff]  }
 0x7ca   :  { %v7498_v14 = vadd.f32 %v7481_v15, %v7470_v21  ;;  %v7500_v3 = vadd.f32 %v7481_v15, %v7472_v47  ;;  %v7502_v11 = vadd.f32 %v7489_v63, %v7474_v51  ;;  %v7504_v46 = vadd.f32 %v7489_v63, %v7476_v30  ;;  %v12475_v15 = vld [vmem:[#allocation14 + $0x10e0] ss:$8 sps:$4 sm:$0xff]   ;;  %v12478_v63 = vld [vmem:[#allocation14 + $0x10d0] ss:$8 sps:$4 sm:$0xff]   ;;  %v12486_v21 = vld [vmem:[#allocation14 + $0x10b4] ss:$8 sps:$4 sm:$0xff]  }
 0x7cb   :  { %v7471_v39 = vmul.f32 %v7457_v36, %v7393_v33  ;;  %v7473_v22 = vmul.f32 %v7457_v36, %v7395_v37  ;;  %v7475_v34 = vmul.f32 %v7465_v12, %v7397_v18  ;;  %v7477_v0 = vmul.f32 %v7465_v12, %v7399_v25  ;;  %8274 = vmatpush1.bf16.msra.mxu0 %v12460_v56  ;;  %v12468_v36 = vld [vmem:[#allocation14 + $0x1014] ss:$8 sps:$4 sm:$0xff]   ;;  %v12471_v12 = vld [vmem:[#allocation14 + $0x1004] ss:$8 sps:$4 sm:$0xff]   ;;  %v12481_v35 = vld [vmem:[#allocation14 + $0x10c0] ss:$8 sps:$4 sm:$0xff]  }
 0x7cc   :  { %v7506_v6 = vmax.f32 %v7498_v14, 0.0  ;;  %v7508_v38 = vmax.f32 %v7500_v3, 0.0  ;;  %v7510_v2 = vmax.f32 %v7502_v11, 0.0  ;;  %v7512_v54 = vmax.f32 %v7504_v46, 0.0  ;;  %8275 = vmatprep.subr.bf16.mxu0 %v12465_v29  ;;  %v12484_v47 = vld [vmem:[#allocation14 + $0x10b0] ss:$8 sps:$4 sm:$0xff]  }
 0x7cd   :  { %v7499_v10 = vadd.f32 %v7485_v50, %v7471_v39  ;;  %v7501_v48 = vadd.f32 %v7485_v50, %v7473_v22  ;;  %v7503_v5 = vadd.f32 %v7493_v13, %v7475_v34  ;;  %v7505_v62 = vadd.f32 %v7493_v13, %v7477_v0  ;;  %v12480_v50 = vld [vmem:[#allocation14 + $0x10d4] ss:$8 sps:$4 sm:$0xff]   ;;  %v12483_v13 = vld [vmem:[#allocation14 + $0x10c4] ss:$8 sps:$4 sm:$0xff]   ;;  %v12487_v30 = vld [vmem:[#allocation14 + $0x10a0] ss:$8 sps:$4 sm:$0xff]  }
 0x7ce   :  { %v12795_v28 = vpack.c.bf16 %v7508_v38, %v7506_v6  ;;  %v12798_v44 = vpack.c.bf16 %v7512_v54, %v7510_v2  ;;  %v12489_v51 = vld [vmem:[#allocation14 + $0x10a4] ss:$8 sps:$4 sm:$0xff]   ;;  %v12492_v33 = vld [vmem:[#allocation14 + $0x1094] ss:$8 sps:$4 sm:$0xff]   ;;  %v12490_v37 = vld [vmem:[#allocation14 + $0x1090] ss:$8 sps:$4 sm:$0xff]  }
 0x7cf   :  { %v7507_v23 = vmax.f32 %v7499_v10, 0.0  ;;  %v7509_v24 = vmax.f32 %v7501_v48, 0.0  ;;  %v7511_v4 = vmax.f32 %v7503_v5, 0.0  ;;  %v7513_v8 = vmax.f32 %v7505_v62, 0.0  ;;  %8276 = vmatpush1.bf16.msra.mxu0 %v12463_v31  ;;  %v12493_v18 = vld [vmem:[#allocation14 + $0x1080] ss:$8 sps:$4 sm:$0xff]  }
 0x7d0   :  { %8277 = vmatprep.subr.bf16.mxu0 %v12468_v36  ;;  %v12495_v25 = vld [vmem:[#allocation14 + $0x1084] ss:$8 sps:$4 sm:$0xff]   ;;  %v7580_v3 = vld [vmem:[#allocation16 + $0x8] sm:$0x3] }
 0x7d1   :  { %v12796_v17 = vpack.c.bf16 %v7509_v24, %v7507_v23  ;;  %v12797_v52 = vpack.c.bf16 %v7513_v8, %v7511_v4  ;;  %v7585_v39 = vrot.slane %v7580_v3, %v13376_v27  ;;  %v7589_v34 = vrot.slane %v7580_v3, %v13381_v32 }
 0x7d3   :  { %7804 = vmatprep.mubr.bf16.mxu1 %v12796_v17  ;;  %8278 = vmatpush1.bf16.msra.mxu0 %v12466_v53 }
 0x7d4   :  { %7805 = vmatmul.mubr.bf16.vlgmr.msra.gmra.mxu1 %v12795_v28  ;;  %8279 = vmatprep.subr.bf16.mxu0 %v12471_v12 }
 0x7d5   :  { %7814 = vmatprep.mubr.bf16.mxu1 %v12797_v52 }
 0x7d7   :  { %8280 = vmatpush1.bf16.msra.mxu0 %v12469_v41 }
 0x7d8   :  { %8281 = vmatprep.subr.bf16.mxu0 %v12474_v61 }
 0x7db   :  { %8282 = vmatpush2.bf16.msra.mxu0 %v12472_v55 }
 0x7dc   :  { %7815 = vmatmul.mubr.bf16.gmra.mxu1 %v12798_v44  ;;  %8283 = vmatprep.subr.bf16.mxu0 %v12477_v45 }
 0x7df   :  { %8284 = vmatpush2.bf16.msra.mxu0 %v12475_v15 }
 0x7e0   :  { %8285 = vmatprep.subr.bf16.mxu0 %v12480_v50 }
 0x7e3   :  { %8286 = vmatpush2.bf16.msra.mxu0 %v12478_v63 }
 0x7e4   :  { %8287 = vmatprep.subr.bf16.mxu0 %v12483_v13 }
 0x7e7   :  { %8288 = vmatpush2.bf16.msra.mxu0 %v12481_v35 }
 0x7e8   :  { %8289 = vmatprep.subr.bf16.mxu0 %v12486_v21 }
 0x7eb   :  { %8290 = vmatpush2.bf16.msra.mxu0 %v12484_v47 }
 0x7ec   :  { %8291 = vmatprep.subr.bf16.mxu0 %v12489_v51 }
 0x7ef   :  { %8292 = vmatpush2.bf16.msra.mxu0 %v12487_v30 }
 0x7f0   :  { %8293 = vmatprep.subr.bf16.mxu0 %v12492_v33 }
 0x7f3   :  { %8294 = vmatpush2.bf16.msra.mxu0 %v12490_v37 }
 0x7f4   :  { %8295 = vmatprep.subr.bf16.mxu0 %v12495_v25 }
 0x7f7   :  { %8296 = vmatpush2.bf16.msra.mxu0 %v12493_v18 }
 0x894   :  { %v7806_v14 = vpop.f32.mrf.mxu1 }
 0x895   :  { %v7807_v48 = vadd.f32 %v7806_v14, %v7585_v39 }
 0x896   :  { %v7808_v11 = vpop.f32.mrf.mxu1 }
 0x897   :  { %v7809_v38 = vadd.f32 %v7808_v11, %v7589_v34 }
 0x898   :  { %v7810_v46 = vpop.f32.mrf.mxu1 }
 0x899   :  { %v7811_v0 = vadd.f32 %v7810_v46, %v7585_v39 }
 0x89a   :  { %v7812_v22 = vpop.f32.mrf.mxu1 }
 0x89b   :  { %v7813_v5 = vadd.f32 %v7812_v22, %v7589_v34  ;;  %v7825_v2 = vadd.f32 %v7811_v0, %v7807_v48 }
 0x89c   :  { %v7816_v10 = vpop.f32.mrf.mxu1 }
 0x89d   :  { %v7817_v62 = vadd.f32 %v7816_v10, %v7585_v39  ;;  %v7834_v24 = vadd.f32 %v7813_v5, %v7809_v38 }
 0x89e   :  { %v7818_v6 = vpop.f32.mrf.mxu1 }
 0x89f   :  { %v7819_v54 = vadd.f32 %v7818_v6, %v7589_v34  ;;  %v7826_v4 = vadd.f32 %v7825_v2, %v7817_v62 }
 0x8a0   :  { %v7820_v23 = vpop.f32.mrf.mxu1 }
 0x8a1   :  { %v7821_v8 = vadd.f32 %v7820_v23, %v7585_v39  ;;  %v7835_v17 = vadd.f32 %v7834_v24, %v7819_v54 }
 0x8a2   :  { %v7822_v28 = vpop.f32.mrf.mxu1 }
 0x8a3   :  { %v7827_v52 = vadd.f32 %v7826_v4, %v7821_v8  ;;  %v7823_v44 = vadd.f32 %v7822_v28, %v7589_v34  ;;  %v14131_v28 = vcombine.low %v13504_v16, %v13508_v1 }
 0x8a5   :  { %v7828_v43 = vrot.slane %v7827_v52, 4  ;;  %v7836_v42 = vadd.f32 %v7835_v17, %v7823_v44  ;;  %v7902_v17 = vrot.slane %v14131_v28, %v13743_v20  ;;  %v12499_v28 = vld [vmem:[#allocation14 + $0x1360] ss:$8 sps:$4 sm:$0xff]  }
 0x8a7   :  { %v7829_v60 = vadd.f32 %v7828_v43, %v7827_v52  ;;  %v7837_v58 = vrot.slane %v7836_v42, 4 }
 0x8a9   :  { %v7830_v40 = vrot.slane %v7829_v60, 2  ;;  %v7838_v26 = vadd.f32 %v7837_v58, %v7836_v42  ;;  %v7903_v42 = vcombine.high %v7902_v17, %v7902_v17  ;;  %v7910_v58 = vrot.slane %v7902_v17, %v13743_v20  ;;  %v12504_v17 = vld [vmem:[#allocation14 + $0x1354] ss:$8 sps:$4 sm:$0xff]  }
 0x8ab   :  { %v7831_v9 = vadd.f32 %v7830_v40, %v7829_v60  ;;  %v7839_v49 = vrot.slane %v7838_v26, 2  ;;  %v7917_v40 = vrot.slane %v7903_v42, %v13743_v20  ;;  %v7946_v16 = vrot.slane %v7910_v58, %v13376_v27  ;;  %v12510_v42 = vld [vmem:[#allocation14 + $0x1334] ss:$8 sps:$4 sm:$0xff]  }
 0x8ac   :  { %v7950_v1 = vrot.slane %v7910_v58, %v13381_v32  ;;  %v12513_v58 = vld [vmem:[#allocation14 + $0x1324] ss:$8 sps:$4 sm:$0xff]  }
 0x8ad   :  { %v7832_v7 = vrot.slane %v7831_v9, 1  ;;  %v7840_v56 = vadd.f32 %v7839_v49, %v7838_v26 }
 0x8af   :  { %v7833_v29 = vadd.f32 %v7832_v7, %v7831_v9  ;;  %v7841_v31 = vrot.slane %v7840_v56, 1  ;;  %v7954_v7 = vrot.slane %v7917_v40, %v13376_v27 }
 0x8b1   :  { %v7843_v36 = vmul.f32 0.03125, %v7833_v29  ;;  %v7842_v53 = vadd.f32 %v7841_v31, %v7840_v56 }
 0x8b3   :  { %v7845_v12 = vsub.f32 %v7807_v48, %v7843_v36  ;;  %v7847_v41 = vsub.f32 %v7811_v0, %v7843_v36  ;;  %v7849_v61 = vsub.f32 %v7817_v62, %v7843_v36  ;;  %v7844_v55 = vmul.f32 0.03125, %v7842_v53 }
 0x8b4   :  { %v7851_v45 = vsub.f32 %v7821_v8, %v7843_v36 }
 0x8b5   :  { %v7853_v15 = vmul.f32 %v7845_v12, %v7845_v12  ;;  %v7855_v50 = vmul.f32 %v7847_v41, %v7847_v41  ;;  %v7846_v63 = vsub.f32 %v7809_v38, %v7844_v55  ;;  %v7848_v13 = vsub.f32 %v7813_v5, %v7844_v55 }
 0x8b6   :  { %v7850_v35 = vsub.f32 %v7819_v54, %v7844_v55  ;;  %v7857_v21 = vmul.f32 %v7849_v61, %v7849_v61  ;;  %v7852_v51 = vsub.f32 %v7823_v44, %v7844_v55  ;;  %v7859_v37 = vmul.f32 %v7851_v45, %v7851_v45 }
 0x8b7   :  { %v7861_v47 = vadd.f32 %v7855_v50, %v7853_v15  ;;  %v7854_v30 = vmul.f32 %v7846_v63, %v7846_v63  ;;  %v7856_v33 = vmul.f32 %v7848_v13, %v7848_v13  ;;  %v14132_v44 = vcombine.low %v13665_v57, %v13669_v19 }
 0x8b8   :  { %v7858_v25 = vmul.f32 %v7850_v35, %v7850_v35  ;;  %v7860_v11 = vmul.f32 %v7852_v51, %v7852_v51  ;;  %v7958_v19 = vrot.slane %v7917_v40, %v13381_v32  ;;  %v12511_v40 = vld [vmem:[#allocation14 + $0x1320] ss:$8 sps:$4 sm:$0xff]  }
 0x8b9   :  { %v7862_v18 = vadd.f32 %v7861_v47, %v7857_v21  ;;  %v7870_v14 = vadd.f32 %v7856_v33, %v7854_v30  ;;  %v7927_v43 = vrot.slane %v14132_v44, %v13743_v20  ;;  %v12507_v44 = vld [vmem:[#allocation14 + $0x1344] ss:$8 sps:$4 sm:$0xff]  }
 0x8bb   :  { %v7863_v3 = vadd.f32 %v7862_v18, %v7859_v37  ;;  %v7871_v46 = vadd.f32 %v7870_v14, %v7858_v25  ;;  %v7928_v60 = vcombine.high %v7927_v43, %v7927_v43  ;;  %v7935_v26 = vrot.slane %v7927_v43, %v13743_v20  ;;  %v12505_v43 = vld [vmem:[#allocation14 + $0x1340] ss:$8 sps:$4 sm:$0xff]  }
 0x8bd   :  { %v7864_v39 = vrot.slane %v7863_v3, 4  ;;  %v7872_v22 = vadd.f32 %v7871_v46, %v7860_v11  ;;  %v7942_v9 = vrot.slane %v7928_v60, %v13743_v20  ;;  %v7974_v36 = vrot.slane %v7935_v26, %v13376_v27  ;;  %v12508_v60 = vld [vmem:[#allocation14 + $0x1330] ss:$8 sps:$4 sm:$0xff]  }
 0x8be   :  { %v7978_v53 = vrot.slane %v7935_v26, %v13381_v32  ;;  %v12516_v26 = vld [vmem:[#allocation14 + $0x1314] ss:$8 sps:$4 sm:$0xff]  }
 0x8bf   :  { %v7865_v34 = vadd.f32 %v7864_v39, %v7863_v3  ;;  %v7873_v0 = vrot.slane %v7872_v22, 4  ;;  %v7982_v55 = vrot.slane %v7942_v9, %v13376_v27  ;;  %v7986_v15 = vrot.slane %v7942_v9, %v13381_v32  ;;  %v12514_v9 = vld [vmem:[#allocation14 + $0x1310] ss:$8 sps:$4 sm:$0xff]  }
 0x8c1   :  { %v7866_v10 = vrot.slane %v7865_v34, 2  ;;  %v7874_v48 = vadd.f32 %v7873_v0, %v7872_v22 }
 0x8c3   :  { %v7867_v5 = vadd.f32 %v7866_v10, %v7865_v34  ;;  %v7875_v62 = vrot.slane %v7874_v48, 2 }
 0x8c5   :  { %v7868_v6 = vrot.slane %v7867_v5, 1  ;;  %v7876_v38 = vadd.f32 %v7875_v62, %v7874_v48 }
 0x8c7   :  { %v7869_v2 = vadd.f32 %v7868_v6, %v7867_v5  ;;  %v7877_v54 = vrot.slane %v7876_v38, 1 }
 0x8c9   :  { %v7879_v23 = vmul.f32 0.03125, %v7869_v2  ;;  %v7878_v24 = vadd.f32 %v7877_v54, %v7876_v38 }
 0x8cb   :  { %v7881_v4 = vadd.f32 1e-05, %v7879_v23  ;;  %v7880_v8 = vmul.f32 0.03125, %v7878_v24  ;;  %v12498_v24 = vld [vmem:[#allocation14 + $0x1374] ss:$8 sps:$4 sm:$0xff]  }
 0x8cc   :  { %8758 = vmatprep.subr.bf16.mxu1 %v12498_v24 }
 0x8cd   :  { %12752 = vrsqrt.f32 %v7881_v4  ;;  %v7882_v52 = vadd.f32 1e-05, %v7880_v8  ;;  %v12496_v4 = vld [vmem:[#allocation14 + $0x1370] ss:$8 sps:$4 sm:$0xff]   ;;  %v12501_v8 = vld [vmem:[#allocation14 + $0x1364] ss:$8 sps:$4 sm:$0xff]  }
 0x8ce   :  { %8759 = vmatpush1.bf16.msra.mxu1 %v12496_v4 }
 0x8cf   :  { %12754 = vrsqrt.f32 %v7882_v52  ;;  %8760 = vmatprep.subr.bf16.mxu1 %v12501_v8  ;;  %v12502_v52 = vld [vmem:[#allocation14 + $0x1350] ss:$8 sps:$4 sm:$0xff]  }
 0x8d2   :  { %8761 = vmatpush1.bf16.msra.mxu1 %v12499_v28 }
 0x8d3   :  { %8762 = vmatprep.subr.bf16.mxu1 %v12504_v17 }
 0x8d6   :  { %8763 = vmatpush1.bf16.msra.mxu1 %v12502_v52 }
 0x8d7   :  { %8764 = vmatprep.subr.bf16.mxu1 %v12507_v44 }
 0x8da   :  { %v12753_v49 = vpop.eup %12752  ;;  %8765 = vmatpush1.bf16.msra.mxu1 %v12505_v43 }
 0x8db   :  { %v7885_v57 = vmul.f32 %v12753_v49, %v7845_v12  ;;  %v7887_v56 = vmul.f32 %v12753_v49, %v7847_v41  ;;  %v7889_v29 = vmul.f32 %v12753_v49, %v7849_v61  ;;  %v7891_v31 = vmul.f32 %v12753_v49, %v7851_v45  ;;  %8766 = vmatprep.subr.bf16.mxu1 %v12510_v42  ;;  %v12519_v49 = vld [vmem:[#allocation14 + $0x1304] ss:$8 sps:$4 sm:$0xff]  }
 0x8dc   :  { %v12755_v50 = vpop.eup %12754 }
 0x8dd   :  { %v7963_v21 = vmul.f32 %v7946_v16, %v7885_v57  ;;  %v7965_v47 = vmul.f32 %v7946_v16, %v7887_v56  ;;  %v7967_v30 = vmul.f32 %v7954_v7, %v7889_v29  ;;  %v7969_v33 = vmul.f32 %v7954_v7, %v7891_v31  ;;  %v12517_v16 = vld [vmem:[#allocation14 + $0x1300] ss:$8 sps:$4 sm:$0xff]   ;;  %v12520_v7 = vld [vmem:[#allocation14 + $0x13f0] ss:$8 sps:$4 sm:$0xff]   ;;  %v12528_v56 = vld [vmem:[#allocation14 + $0x13d4] ss:$8 sps:$4 sm:$0xff]  }
 0x8de   :  { %v7886_v37 = vmul.f32 %v12755_v50, %v7846_v63  ;;  %v7888_v18 = vmul.f32 %v12755_v50, %v7848_v13  ;;  %v7890_v25 = vmul.f32 %v12755_v50, %v7850_v35  ;;  %v7892_v12 = vmul.f32 %v12755_v50, %v7852_v51  ;;  %8767 = vmatpush1.bf16.msra.mxu1 %v12508_v60  ;;  %v12523_v57 = vld [vmem:[#allocation14 + $0x13e0] ss:$8 sps:$4 sm:$0xff]   ;;  %v12526_v29 = vld [vmem:[#allocation14 + $0x13d0] ss:$8 sps:$4 sm:$0xff]   ;;  %v12531_v31 = vld [vmem:[#allocation14 + $0x13c4] ss:$8 sps:$4 sm:$0xff]  }
 0x8df   :  { %v7991_v41 = vadd.f32 %v7974_v36, %v7963_v21  ;;  %v7993_v61 = vadd.f32 %v7974_v36, %v7965_v47  ;;  %v7995_v45 = vadd.f32 %v7982_v55, %v7967_v30  ;;  %v7997_v14 = vadd.f32 %v7982_v55, %v7969_v33  ;;  %8768 = vmatprep.subr.bf16.mxu1 %v12513_v58  ;;  %v12529_v36 = vld [vmem:[#allocation14 + $0x13c0] ss:$8 sps:$4 sm:$0xff]   ;;  %v12532_v55 = vld [vmem:[#allocation14 + $0x13b0] ss:$8 sps:$4 sm:$0xff]   ;;  %v12540_v21 = vld [vmem:[#allocation14 + $0x1394] ss:$8 sps:$4 sm:$0xff]  }
 0x8e0   :  { %v7964_v3 = vmul.f32 %v7950_v1, %v7886_v37  ;;  %v7966_v11 = vmul.f32 %v7950_v1, %v7888_v18  ;;  %v7968_v46 = vmul.f32 %v7958_v19, %v7890_v25  ;;  %v7970_v39 = vmul.f32 %v7958_v19, %v7892_v12  ;;  %v12522_v1 = vld [vmem:[#allocation14 + $0x13f4] ss:$8 sps:$4 sm:$0xff]   ;;  %v12525_v19 = vld [vmem:[#allocation14 + $0x13e4] ss:$8 sps:$4 sm:$0xff]   ;;  %v12535_v50 = vld [vmem:[#allocation14 + $0x13a0] ss:$8 sps:$4 sm:$0xff]  }
 0x8e1   :  { %v7999_v48 = vmax.f32 %v7991_v41, 0.0  ;;  %v8001_v5 = vmax.f32 %v7993_v61, 0.0  ;;  %v8003_v62 = vmax.f32 %v7995_v45, 0.0  ;;  %v8005_v6 = vmax.f32 %v7997_v14, 0.0  ;;  %v12538_v47 = vld [vmem:[#allocation14 + $0x1390] ss:$8 sps:$4 sm:$0xff]  }
 0x8e2   :  { %v7992_v22 = vadd.f32 %v7978_v53, %v7964_v3  ;;  %v7994_v34 = vadd.f32 %v7978_v53, %v7966_v11  ;;  %v7996_v0 = vadd.f32 %v7986_v15, %v7968_v46  ;;  %v7998_v10 = vadd.f32 %v7986_v15, %v7970_v39  ;;  %8769 = vmatpush1.bf16.msra.mxu1 %v12511_v40  ;;  %v12534_v53 = vld [vmem:[#allocation14 + $0x13b4] ss:$8 sps:$4 sm:$0xff]   ;;  %v12537_v15 = vld [vmem:[#allocation14 + $0x13a4] ss:$8 sps:$4 sm:$0xff]   ;;  %v12541_v33 = vld [vmem:[#allocation14 + $0x1380] ss:$8 sps:$4 sm:$0xff]  }
 0x8e3   :  { %v12799_v38 = vpack.c.bf16 %v8001_v5, %v7999_v48  ;;  %v12802_v23 = vpack.c.bf16 %v8005_v6, %v8003_v62  ;;  %8770 = vmatprep.subr.bf16.mxu1 %v12516_v26  ;;  %v12543_v30 = vld [vmem:[#allocation14 + $0x1384] ss:$8 sps:$4 sm:$0xff]   ;;  %v8073_v18 = vld [vmem:[#allocation16 + $0xa] sm:$0x3] }
 0x8e4   :  { %v8000_v63 = vmax.f32 %v7992_v22, 0.0  ;;  %v8002_v13 = vmax.f32 %v7994_v34, 0.0  ;;  %v8004_v35 = vmax.f32 %v7996_v0, 0.0  ;;  %v8006_v51 = vmax.f32 %v7998_v10, 0.0 }
 0x8e5   :  { %v8078_v41 = vrot.slane %v8073_v18, %v13376_v27  ;;  %v8082_v45 = vrot.slane %v8073_v18, %v13381_v32 }
 0x8e6   :  { %v12800_v2 = vpack.c.bf16 %v8002_v13, %v8000_v63  ;;  %v12801_v54 = vpack.c.bf16 %v8006_v51, %v8004_v35  ;;  %8771 = vmatpush1.bf16.msra.mxu1 %v12514_v9 }
 0x8e7   :  { %8772 = vmatprep.subr.bf16.mxu1 %v12519_v49 }
 0x8e8   :  { %8297 = vmatprep.mubr.bf16.mxu0 %v12800_v2 }
 0x8e9   :  { %8298 = vmatmul.mubr.bf16.vlgmr.msra.gmra.mxu0 %v12799_v38 }
 0x8ea   :  { %8307 = vmatprep.mubr.bf16.mxu0 %v12801_v54  ;;  %8773 = vmatpush1.bf16.msra.mxu1 %v12517_v16 }
 0x8eb   :  { %8774 = vmatprep.subr.bf16.mxu1 %v12522_v1 }
 0x8ee   :  { %8775 = vmatpush2.bf16.msra.mxu1 %v12520_v7 }
 0x8ef   :  { %8776 = vmatprep.subr.bf16.mxu1 %v12525_v19 }
 0x8f1   :  { %8308 = vmatmul.mubr.bf16.gmra.mxu0 %v12802_v23 }
 0x8f2   :  { %8777 = vmatpush2.bf16.msra.mxu1 %v12523_v57 }
 0x8f3   :  { %8778 = vmatprep.subr.bf16.mxu1 %v12528_v56 }
 0x8f6   :  { %8779 = vmatpush2.bf16.msra.mxu1 %v12526_v29 }
 0x8f7   :  { %8780 = vmatprep.subr.bf16.mxu1 %v12531_v31 }
 0x8fa   :  { %8781 = vmatpush2.bf16.msra.mxu1 %v12529_v36 }
 0x8fb   :  { %8782 = vmatprep.subr.bf16.mxu1 %v12534_v53 }
 0x8fe   :  { %8783 = vmatpush2.bf16.msra.mxu1 %v12532_v55 }
 0x8ff   :  { %8784 = vmatprep.subr.bf16.mxu1 %v12537_v15 }
 0x902   :  { %8785 = vmatpush2.bf16.msra.mxu1 %v12535_v50 }
 0x903   :  { %8786 = vmatprep.subr.bf16.mxu1 %v12540_v21 }
 0x906   :  { %8787 = vmatpush2.bf16.msra.mxu1 %v12538_v47 }
 0x907   :  { %8788 = vmatprep.subr.bf16.mxu1 %v12543_v30 }
 0x90a   :  { %8789 = vmatpush2.bf16.msra.mxu1 %v12541_v33 }
 0x9a9   :  { %v8299_v37 = vpop.f32.mrf.mxu0 }
 0x9aa   :  { %v8300_v11 = vadd.f32 %v8299_v37, %v8078_v41 }
 0x9ab   :  { %v8301_v25 = vpop.f32.mrf.mxu0 }
 0x9ac   :  { %v8302_v34 = vadd.f32 %v8301_v25, %v8082_v45 }
 0x9ad   :  { %v8303_v12 = vpop.f32.mrf.mxu0 }
 0x9ae   :  { %v8304_v14 = vadd.f32 %v8303_v12, %v8078_v41 }
 0x9af   :  { %v8305_v61 = vpop.f32.mrf.mxu0 }
 0x9b0   :  { %v8306_v46 = vadd.f32 %v8305_v61, %v8082_v45  ;;  %v8318_v0 = vadd.f32 %v8304_v14, %v8300_v11 }
 0x9b1   :  { %v8309_v3 = vpop.f32.mrf.mxu0 }
 0x9b2   :  { %v8310_v39 = vadd.f32 %v8309_v3, %v8078_v41  ;;  %v8327_v5 = vadd.f32 %v8306_v46, %v8302_v34 }
 0x9b3   :  { %v8311_v22 = vpop.f32.mrf.mxu0 }
 0x9b4   :  { %v8312_v10 = vadd.f32 %v8311_v22, %v8082_v45  ;;  %v8319_v62 = vadd.f32 %v8318_v0, %v8310_v39 }
 0x9b5   :  { %v8313_v48 = vpop.f32.mrf.mxu0 }
 0x9b6   :  { %v8314_v6 = vadd.f32 %v8313_v48, %v8078_v41  ;;  %v8328_v13 = vadd.f32 %v8327_v5, %v8312_v10  ;;  %v14133_v48 = vld [vmem:[#allocation40_spill] sm:$0xff] }
 0x9b7   :  { %v8315_v63 = vpop.f32.mrf.mxu0  ;;  %v14134_v5 = vcombine.low %v13534_v59, %v14133_v48  ;;  %v12544_v48 = vld [vmem:[#allocation14 + $0x1670] ss:$8 sps:$4 sm:$0xff]  }
 0x9b8   :  { %v8320_v35 = vadd.f32 %v8319_v62, %v8314_v6  ;;  %v8316_v51 = vadd.f32 %v8315_v63, %v8082_v45  ;;  %v14135_v63 = vld [vmem:[#allocation49_spill] sm:$0xff] }
 0x9b9   :  { %v8395_v62 = vrot.slane %v14134_v5, %v13743_v20  ;;  %v12549_v5 = vld [vmem:[#allocation14 + $0x1664] ss:$8 sps:$4 sm:$0xff]  }
 0x9ba   :  { %v8321_v38 = vrot.slane %v8320_v35, 4  ;;  %v8329_v2 = vadd.f32 %v8328_v13, %v8316_v51  ;;  %v14136_v13 = vld [vmem:[#allocation50_spill] sm:$0xff] }
 0x9bc   :  { %v8322_v54 = vadd.f32 %v8321_v38, %v8320_v35  ;;  %v8330_v23 = vrot.slane %v8329_v2, 4  ;;  %v14137_v35 = vcombine.low %v14135_v63, %v14136_v13  ;;  %v8396_v38 = vcombine.high %v8395_v62, %v8395_v62  ;;  %v12550_v63 = vld [vmem:[#allocation14 + $0x1650] ss:$8 sps:$4 sm:$0xff]   ;;  %v12555_v13 = vld [vmem:[#allocation14 + $0x1644] ss:$8 sps:$4 sm:$0xff]  }
 0x9be   :  { %v8323_v24 = vrot.slane %v8322_v54, 2  ;;  %v8331_v4 = vadd.f32 %v8330_v23, %v8329_v2  ;;  %v8410_v23 = vrot.slane %v8396_v38, %v13743_v20  ;;  %v12556_v38 = vld [vmem:[#allocation14 + $0x1630] ss:$8 sps:$4 sm:$0xff]  }
 0x9c0   :  { %v8324_v8 = vadd.f32 %v8323_v24, %v8322_v54  ;;  %v8332_v28 = vrot.slane %v8331_v4, 2  ;;  %v8403_v54 = vrot.slane %v8395_v62, %v13743_v20  ;;  %v12547_v62 = vld [vmem:[#allocation14 + $0x1660] ss:$8 sps:$4 sm:$0xff]  }
 0x9c2   :  { %v8325_v17 = vrot.slane %v8324_v8, 1  ;;  %v8333_v52 = vadd.f32 %v8332_v28, %v8331_v4  ;;  %v8439_v59 = vrot.slane %v8403_v54, %v13376_v27  ;;  %v8443_v28 = vrot.slane %v8403_v54, %v13381_v32  ;;  %v12559_v54 = vld [vmem:[#allocation14 + $0x1620] ss:$8 sps:$4 sm:$0xff]  }
 0x9c4   :  { %v8326_v44 = vadd.f32 %v8325_v17, %v8324_v8  ;;  %v8334_v43 = vrot.slane %v8333_v52, 1  ;;  %v8447_v17 = vrot.slane %v8410_v23, %v13376_v27 }
 0x9c6   :  { %v8336_v42 = vmul.f32 0.03125, %v8326_v44  ;;  %v8335_v60 = vadd.f32 %v8334_v43, %v8333_v52  ;;  %v8451_v52 = vrot.slane %v8410_v23, %v13381_v32  ;;  %v12564_v23 = vld [vmem:[#allocation14 + $0x1614] ss:$8 sps:$4 sm:$0xff]  }
 0x9c8   :  { %v8338_v58 = vsub.f32 %v8300_v11, %v8336_v42  ;;  %v8340_v40 = vsub.f32 %v8304_v14, %v8336_v42  ;;  %v8342_v26 = vsub.f32 %v8310_v39, %v8336_v42  ;;  %v8337_v9 = vmul.f32 0.03125, %v8335_v60 }
 0x9c9   :  { %v8344_v49 = vsub.f32 %v8314_v6, %v8336_v42 }
 0x9ca   :  { %v8346_v16 = vmul.f32 %v8338_v58, %v8338_v58  ;;  %v8348_v1 = vmul.f32 %v8340_v40, %v8340_v40  ;;  %v8339_v7 = vsub.f32 %v8302_v34, %v8337_v9  ;;  %v8341_v19 = vsub.f32 %v8306_v46, %v8337_v9 }
 0x9cb   :  { %v8343_v57 = vsub.f32 %v8312_v10, %v8337_v9  ;;  %v8350_v56 = vmul.f32 %v8342_v26, %v8342_v26  ;;  %v8345_v31 = vsub.f32 %v8316_v51, %v8337_v9  ;;  %v8352_v55 = vmul.f32 %v8344_v49, %v8344_v49 }
 0x9cc   :  { %v8354_v29 = vadd.f32 %v8348_v1, %v8346_v16  ;;  %v8347_v36 = vmul.f32 %v8339_v7, %v8339_v7  ;;  %v8349_v53 = vmul.f32 %v8341_v19, %v8341_v19  ;;  %v8420_v51 = vrot.slane %v14137_v35, %v13743_v20  ;;  %v12553_v35 = vld [vmem:[#allocation14 + $0x1640] ss:$8 sps:$4 sm:$0xff]  }
 0x9cd   :  { %v8351_v50 = vmul.f32 %v8343_v57, %v8343_v57  ;;  %v8353_v30 = vmul.f32 %v8345_v31, %v8345_v31 }
 0x9ce   :  { %v8355_v15 = vadd.f32 %v8354_v29, %v8350_v56  ;;  %v8363_v21 = vadd.f32 %v8349_v53, %v8347_v36  ;;  %v8421_v2 = vcombine.high %v8420_v51, %v8420_v51  ;;  %v8428_v24 = vrot.slane %v8420_v51, %v13743_v20  ;;  %v12558_v51 = vld [vmem:[#allocation14 + $0x1634] ss:$8 sps:$4 sm:$0xff]  }
 0x9d0   :  { %v8356_v47 = vadd.f32 %v8355_v15, %v8352_v55  ;;  %v8364_v33 = vadd.f32 %v8363_v21, %v8351_v50  ;;  %v8435_v4 = vrot.slane %v8421_v2, %v13743_v20  ;;  %v8467_v9 = vrot.slane %v8428_v24, %v13376_v27  ;;  %v12561_v2 = vld [vmem:[#allocation14 + $0x1624] ss:$8 sps:$4 sm:$0xff]  }
 0x9d1   :  { %v8471_v16 = vrot.slane %v8428_v24, %v13381_v32  ;;  %v12562_v24 = vld [vmem:[#allocation14 + $0x1610] ss:$8 sps:$4 sm:$0xff]  }
 0x9d2   :  { %v8357_v37 = vrot.slane %v8356_v47, 4  ;;  %v8365_v18 = vadd.f32 %v8364_v33, %v8353_v30  ;;  %v8475_v1 = vrot.slane %v8435_v4, %v13376_v27  ;;  %v8479_v56 = vrot.slane %v8435_v4, %v13381_v32  ;;  %v12567_v4 = vld [vmem:[#allocation14 + $0x1604] ss:$8 sps:$4 sm:$0xff]  }
 0x9d4   :  { %v8358_v25 = vadd.f32 %v8357_v37, %v8356_v47  ;;  %v8366_v12 = vrot.slane %v8365_v18, 4 }
 0x9d6   :  { %v8359_v41 = vrot.slane %v8358_v25, 2  ;;  %v8367_v61 = vadd.f32 %v8366_v12, %v8365_v18 }
 0x9d8   :  { %v8360_v45 = vadd.f32 %v8359_v41, %v8358_v25  ;;  %v8368_v14 = vrot.slane %v8367_v61, 2 }
 0x9da   :  { %v8361_v3 = vrot.slane %v8360_v45, 1  ;;  %v8369_v11 = vadd.f32 %v8368_v14, %v8367_v61 }
 0x9dc   :  { %v8362_v46 = vadd.f32 %v8361_v3, %v8360_v45  ;;  %v8370_v39 = vrot.slane %v8369_v11, 1 }
 0x9de   :  { %v8372_v22 = vmul.f32 0.03125, %v8362_v46  ;;  %v8371_v34 = vadd.f32 %v8370_v39, %v8369_v11 }
 0x9e0   :  { %v8374_v0 = vadd.f32 1e-05, %v8372_v22  ;;  %v8373_v10 = vmul.f32 0.03125, %v8371_v34 }
 0x9e2   :  { %12756 = vrsqrt.f32 %v8374_v0  ;;  %v8375_v6 = vadd.f32 1e-05, %v8373_v10  ;;  %v12546_v10 = vld [vmem:[#allocation14 + $0x1674] ss:$8 sps:$4 sm:$0xff]  }
 0x9e3   :  { %9251 = vmatprep.subr.bf16.mxu0 %v12546_v10 }
 0x9e4   :  { %12758 = vrsqrt.f32 %v8375_v6  ;;  %9252 = vmatpush1.bf16.msra.mxu0 %v12544_v48  ;;  %v12552_v6 = vld [vmem:[#allocation14 + $0x1654] ss:$8 sps:$4 sm:$0xff]  }
 0x9e5   :  { %9253 = vmatprep.subr.bf16.mxu0 %v12549_v5 }
 0x9e8   :  { %9254 = vmatpush1.bf16.msra.mxu0 %v12547_v62 }
 0x9e9   :  { %9255 = vmatprep.subr.bf16.mxu0 %v12552_v6 }
 0x9ec   :  { %9256 = vmatpush1.bf16.msra.mxu0 %v12550_v63 }
 0x9ed   :  { %9257 = vmatprep.subr.bf16.mxu0 %v12555_v13 }
 0x9ef   :  { %v12757_v8 = vpop.eup %12756 }
 0x9f0   :  { %v8378_v44 = vmul.f32 %v12757_v8, %v8338_v58  ;;  %v8380_v43 = vmul.f32 %v12757_v8, %v8340_v40  ;;  %v8382_v42 = vmul.f32 %v12757_v8, %v8342_v26  ;;  %v8384_v60 = vmul.f32 %v12757_v8, %v8344_v49  ;;  %9258 = vmatpush1.bf16.msra.mxu0 %v12553_v35  ;;  %v12565_v8 = vld [vmem:[#allocation14 + $0x1600] ss:$8 sps:$4 sm:$0xff]  }
 0x9f1   :  { %v12759_v29 = vpop.eup %12758  ;;  %9259 = vmatprep.subr.bf16.mxu0 %v12558_v51 }
 0x9f2   :  { %v8456_v36 = vmul.f32 %v8439_v59, %v8378_v44  ;;  %v8458_v53 = vmul.f32 %v8439_v59, %v8380_v43  ;;  %v8460_v55 = vmul.f32 %v8447_v17, %v8382_v42  ;;  %v8462_v15 = vmul.f32 %v8447_v17, %v8384_v60  ;;  %v12570_v59 = vld [vmem:[#allocation14 + $0x16f4] ss:$8 sps:$4 sm:$0xff]   ;;  %v12573_v17 = vld [vmem:[#allocation14 + $0x16e4] ss:$8 sps:$4 sm:$0xff]   ;;  %v12574_v43 = vld [vmem:[#allocation14 + $0x16d0] ss:$8 sps:$4 sm:$0xff]  }
 0x9f3   :  { %v8379_v50 = vmul.f32 %v12759_v29, %v8339_v7  ;;  %v8381_v21 = vmul.f32 %v12759_v29, %v8341_v19  ;;  %v8383_v47 = vmul.f32 %v12759_v29, %v8343_v57  ;;  %v8385_v58 = vmul.f32 %v12759_v29, %v8345_v31  ;;  %v12576_v44 = vld [vmem:[#allocation14 + $0x16d4] ss:$8 sps:$4 sm:$0xff]   ;;  %v12579_v42 = vld [vmem:[#allocation14 + $0x16c4] ss:$8 sps:$4 sm:$0xff]   ;;  %v12577_v60 = vld [vmem:[#allocation14 + $0x16c0] ss:$8 sps:$4 sm:$0xff]  }
 0x9f4   :  { %v8484_v40 = vadd.f32 %v8467_v9, %v8456_v36  ;;  %v8486_v26 = vadd.f32 %v8467_v9, %v8458_v53  ;;  %v8488_v49 = vadd.f32 %v8475_v1, %v8460_v55  ;;  %v8490_v30 = vadd.f32 %v8475_v1, %v8462_v15  ;;  %9260 = vmatpush1.bf16.msra.mxu0 %v12556_v38  ;;  %v12582_v9 = vld [vmem:[#allocation14 + $0x16b4] ss:$8 sps:$4 sm:$0xff]   ;;  %v12585_v1 = vld [vmem:[#allocation14 + $0x16a4] ss:$8 sps:$4 sm:$0xff]   ;;  %v12586_v36 = vld [vmem:[#allocation14 + $0x1690] ss:$8 sps:$4 sm:$0xff]  }
 0x9f5   :  { %v8457_v33 = vmul.f32 %v8443_v28, %v8379_v50  ;;  %v8459_v37 = vmul.f32 %v8443_v28, %v8381_v21  ;;  %v8461_v18 = vmul.f32 %v8451_v52, %v8383_v47  ;;  %v8463_v25 = vmul.f32 %v8451_v52, %v8385_v58  ;;  %9261 = vmatprep.subr.bf16.mxu0 %v12561_v2  ;;  %v12568_v28 = vld [vmem:[#allocation14 + $0x16f0] ss:$8 sps:$4 sm:$0xff]   ;;  %v12571_v52 = vld [vmem:[#allocation14 + $0x16e0] ss:$8 sps:$4 sm:$0xff]   ;;  %v12588_v29 = vld [vmem:[#allocation14 + $0x1694] ss:$8 sps:$4 sm:$0xff]  }
 0x9f6   :  { %v8492_v14 = vmax.f32 %v8484_v40, 0.0  ;;  %v8494_v3 = vmax.f32 %v8486_v26, 0.0  ;;  %v8496_v11 = vmax.f32 %v8488_v49, 0.0  ;;  %v8498_v46 = vmax.f32 %v8490_v30, 0.0  ;;  %v12591_v53 = vld [vmem:[#allocation14 + $0x1684] ss:$8 sps:$4 sm:$0xff]  }
 0x9f7   :  { %v8485_v12 = vadd.f32 %v8471_v16, %v8457_v33  ;;  %v8487_v41 = vadd.f32 %v8471_v16, %v8459_v37  ;;  %v8489_v61 = vadd.f32 %v8479_v56, %v8461_v18  ;;  %v8491_v45 = vadd.f32 %v8479_v56, %v8463_v25  ;;  %v12580_v16 = vld [vmem:[#allocation14 + $0x16b0] ss:$8 sps:$4 sm:$0xff]   ;;  %v12583_v56 = vld [vmem:[#allocation14 + $0x16a0] ss:$8 sps:$4 sm:$0xff]   ;;  %v8566_v50 = vld [vmem:[#allocation16 + $0xc] sm:$0x3] }
 0x9f8   :  { %v12803_v39 = vpack.c.bf16 %v8494_v3, %v8492_v14  ;;  %v12806_v0 = vpack.c.bf16 %v8498_v46, %v8496_v11  ;;  %9262 = vmatpush1.bf16.msra.mxu0 %v12559_v54  ;;  %v12589_v55 = vld [vmem:[#allocation14 + $0x1680] ss:$8 sps:$4 sm:$0xff]   ;;  %v8571_v58 = vrot.slane %v8566_v50, %v13376_v27  ;;  %v8575_v26 = vrot.slane %v8566_v50, %v13381_v32 }
 0x9f9   :  { %v8493_v7 = vmax.f32 %v8485_v12, 0.0  ;;  %v8495_v19 = vmax.f32 %v8487_v41, 0.0  ;;  %v8497_v57 = vmax.f32 %v8489_v61, 0.0  ;;  %v8499_v31 = vmax.f32 %v8491_v45, 0.0  ;;  %9263 = vmatprep.subr.bf16.mxu0 %v12564_v23 }
 0x9fb   :  { %v12804_v22 = vpack.c.bf16 %v8495_v19, %v8493_v7  ;;  %v12805_v34 = vpack.c.bf16 %v8499_v31, %v8497_v57 }
 0x9fc   :  { %9264 = vmatpush1.bf16.msra.mxu0 %v12562_v24 }
 0x9fd   :  { %8790 = vmatprep.mubr.bf16.mxu1 %v12804_v22  ;;  %9265 = vmatprep.subr.bf16.mxu0 %v12567_v4 }
 0x9fe   :  { %8791 = vmatmul.mubr.bf16.vlgmr.msra.gmra.mxu1 %v12803_v39 }
 0x9ff   :  { %8800 = vmatprep.mubr.bf16.mxu1 %v12805_v34 }
 0xa00   :  { %9266 = vmatpush1.bf16.msra.mxu0 %v12565_v8 }
 0xa01   :  { %9267 = vmatprep.subr.bf16.mxu0 %v12570_v59 }
 0xa04   :  { %9268 = vmatpush2.bf16.msra.mxu0 %v12568_v28 }
 0xa05   :  { %9269 = vmatprep.subr.bf16.mxu0 %v12573_v17 }
 0xa06   :  { %8801 = vmatmul.mubr.bf16.gmra.mxu1 %v12806_v0 }
 0xa08   :  { %9270 = vmatpush2.bf16.msra.mxu0 %v12571_v52 }
 0xa09   :  { %9271 = vmatprep.subr.bf16.mxu0 %v12576_v44 }
 0xa0c   :  { %9272 = vmatpush2.bf16.msra.mxu0 %v12574_v43 }
 0xa0d   :  { %9273 = vmatprep.subr.bf16.mxu0 %v12579_v42 }
 0xa10   :  { %9274 = vmatpush2.bf16.msra.mxu0 %v12577_v60 }
 0xa11   :  { %9275 = vmatprep.subr.bf16.mxu0 %v12582_v9 }
 0xa14   :  { %9276 = vmatpush2.bf16.msra.mxu0 %v12580_v16 }
 0xa15   :  { %9277 = vmatprep.subr.bf16.mxu0 %v12585_v1 }
 0xa18   :  { %9278 = vmatpush2.bf16.msra.mxu0 %v12583_v56 }
 0xa19   :  { %9279 = vmatprep.subr.bf16.mxu0 %v12588_v29 }
 0xa1c   :  { %9280 = vmatpush2.bf16.msra.mxu0 %v12586_v36 }
 0xa1d   :  { %9281 = vmatprep.subr.bf16.mxu0 %v12591_v53 }
 0xa20   :  { %9282 = vmatpush2.bf16.msra.mxu0 %v12589_v55 }
 0xabe   :  { %v8792_v15 = vpop.f32.mrf.mxu1 }
 0xabf   :  { %v8793_v33 = vadd.f32 %v8792_v15, %v8571_v58 }
 0xac0   :  { %v8794_v21 = vpop.f32.mrf.mxu1 }
 0xac1   :  { %v8795_v12 = vadd.f32 %v8794_v21, %v8575_v26 }
 0xac2   :  { %v8796_v47 = vpop.f32.mrf.mxu1 }
 0xac3   :  { %v8797_v49 = vadd.f32 %v8796_v47, %v8571_v58 }
 0xac4   :  { %v8798_v40 = vpop.f32.mrf.mxu1 }
 0xac5   :  { %v8799_v37 = vadd.f32 %v8798_v40, %v8575_v26  ;;  %v8811_v41 = vadd.f32 %v8797_v49, %v8793_v33 }
 0xac6   :  { %v8802_v30 = vpop.f32.mrf.mxu1 }
 0xac7   :  { %v8803_v18 = vadd.f32 %v8802_v30, %v8571_v58  ;;  %v8820_v14 = vadd.f32 %v8799_v37, %v8795_v12 }
 0xac8   :  { %v8804_v25 = vpop.f32.mrf.mxu1 }
 0xac9   :  { %v8805_v61 = vadd.f32 %v8804_v25, %v8575_v26  ;;  %v8812_v3 = vadd.f32 %v8811_v41, %v8803_v18 }
 0xaca   :  { %v8806_v45 = vpop.f32.mrf.mxu1 }
 0xacb   :  { %v8807_v11 = vadd.f32 %v8806_v45, %v8571_v58  ;;  %v8821_v7 = vadd.f32 %v8820_v14, %v8805_v61  ;;  %v14139_v45 = vld [vmem:[#allocation39_spill] sm:$0xff] }
 0xacc   :  { %v8808_v46 = vpop.f32.mrf.mxu1 }
 0xacd   :  { %v8813_v19 = vadd.f32 %v8812_v3, %v8807_v11  ;;  %v8809_v57 = vadd.f32 %v8808_v46, %v8575_v26  ;;  %v14141_v46 = vld [vmem:[#allocation47_spill] sm:$0xff] }
 0xacf   :  { %v8814_v31 = vrot.slane %v8813_v19, 4  ;;  %v8822_v39 = vadd.f32 %v8821_v7, %v8809_v57  ;;  %v14142_v7 = vld [vmem:[#allocation48_spill] sm:$0xff] }
 0xad1   :  { %v8815_v22 = vadd.f32 %v8814_v31, %v8813_v19  ;;  %v8823_v34 = vrot.slane %v8822_v39, 4  ;;  %v14143_v19 = vcombine.low %v14141_v46, %v14142_v7  ;;  %v12598_v46 = vld [vmem:[#allocation14 + $0x1950] ss:$8 sps:$4 sm:$0xff]   ;;  %v12603_v7 = vld [vmem:[#allocation14 + $0x1944] ss:$8 sps:$4 sm:$0xff]  }
 0xad3   :  { %v8816_v0 = vrot.slane %v8815_v22, 2  ;;  %v8824_v10 = vadd.f32 %v8823_v34, %v8822_v39 }
 0xad5   :  { %v8817_v48 = vadd.f32 %v8816_v0, %v8815_v22  ;;  %v8825_v5 = vrot.slane %v8824_v10, 2 }
 0xad7   :  { %v8818_v62 = vrot.slane %v8817_v48, 1  ;;  %v8826_v6 = vadd.f32 %v8825_v5, %v8824_v10 }
 0xad9   :  { %v8819_v63 = vadd.f32 %v8818_v62, %v8817_v48  ;;  %v8827_v13 = vrot.slane %v8826_v6, 1 }
 0xadb   :  { %v8829_v35 = vmul.f32 0.03125, %v8819_v63  ;;  %v8828_v51 = vadd.f32 %v8827_v13, %v8826_v6 }
 0xadd   :  { %v8831_v38 = vsub.f32 %v8793_v33, %v8829_v35  ;;  %v8833_v2 = vsub.f32 %v8797_v49, %v8829_v35  ;;  %v8835_v54 = vsub.f32 %v8803_v18, %v8829_v35  ;;  %v8830_v23 = vmul.f32 0.03125, %v8828_v51 }
 0xade   :  { %v8837_v24 = vsub.f32 %v8807_v11, %v8829_v35 }
 0xadf   :  { %v8839_v4 = vmul.f32 %v8831_v38, %v8831_v38  ;;  %v8841_v8 = vmul.f32 %v8833_v2, %v8833_v2  ;;  %v8832_v59 = vsub.f32 %v8795_v12, %v8830_v23  ;;  %v8834_v28 = vsub.f32 %v8799_v37, %v8830_v23 }
 0xae0   :  { %v8836_v17 = vsub.f32 %v8805_v61, %v8830_v23  ;;  %v8843_v52 = vmul.f32 %v8835_v54, %v8835_v54  ;;  %v8838_v43 = vsub.f32 %v8809_v57, %v8830_v23  ;;  %v8845_v9 = vmul.f32 %v8837_v24, %v8837_v24  ;;  %v14138_v61 = vld [vmem:[#allocation38_spill] sm:$0xff] }
 0xae1   :  { %v8847_v44 = vadd.f32 %v8841_v8, %v8839_v4  ;;  %v8840_v42 = vmul.f32 %v8832_v59, %v8832_v59  ;;  %v8842_v60 = vmul.f32 %v8834_v28, %v8834_v28  ;;  %v14140_v14 = vcombine.low %v14138_v61, %v14139_v45  ;;  %v12594_v61 = vld [vmem:[#allocation14 + $0x1974] ss:$8 sps:$4 sm:$0xff]   ;;  %v12592_v45 = vld [vmem:[#allocation14 + $0x1970] ss:$8 sps:$4 sm:$0xff]  }
 0xae2   :  { %v8844_v1 = vmul.f32 %v8836_v17, %v8836_v17  ;;  %v8846_v36 = vmul.f32 %v8838_v43, %v8838_v43  ;;  %v8913_v57 = vrot.slane %v14143_v19, %v13743_v20  ;;  %9744 = vmatprep.subr.bf16.mxu1 %v12594_v61  ;;  %v12601_v19 = vld [vmem:[#allocation14 + $0x1940] ss:$8 sps:$4 sm:$0xff]  }
 0xae3   :  { %v8848_v16 = vadd.f32 %v8847_v44, %v8843_v52  ;;  %v8856_v56 = vadd.f32 %v8842_v60, %v8840_v42  ;;  %v8888_v3 = vrot.slane %v14140_v14, %v13743_v20  ;;  %9745 = vmatpush1.bf16.msra.mxu1 %v12592_v45  ;;  %v12597_v14 = vld [vmem:[#allocation14 + $0x1964] ss:$8 sps:$4 sm:$0xff]  }
 0xae4   :  { %v8914_v39 = vcombine.high %v8913_v57, %v8913_v57  ;;  %v8921_v0 = vrot.slane %v8913_v57, %v13743_v20  ;;  %9746 = vmatprep.subr.bf16.mxu1 %v12597_v14  ;;  %v12606_v57 = vld [vmem:[#allocation14 + $0x1934] ss:$8 sps:$4 sm:$0xff]  }
 0xae5   :  { %v8849_v29 = vadd.f32 %v8848_v16, %v8845_v9  ;;  %v8857_v53 = vadd.f32 %v8856_v56, %v8844_v1  ;;  %v8889_v31 = vcombine.high %v8888_v3, %v8888_v3  ;;  %v8896_v22 = vrot.slane %v8888_v3, %v13743_v20  ;;  %v12595_v3 = vld [vmem:[#allocation14 + $0x1960] ss:$8 sps:$4 sm:$0xff]  }
 0xae6   :  { %v8928_v10 = vrot.slane %v8914_v39, %v13743_v20  ;;  %v8960_v4 = vrot.slane %v8921_v0, %v13376_v27  ;;  %v8964_v8 = vrot.slane %v8921_v0, %v13381_v32  ;;  %v12609_v39 = vld [vmem:[#allocation14 + $0x1924] ss:$8 sps:$4 sm:$0xff]   ;;  %v12610_v0 = vld [vmem:[#allocation14 + $0x1910] ss:$8 sps:$4 sm:$0xff]  }
 0xae7   :  { %v8850_v55 = vrot.slane %v8849_v29, 4  ;;  %v8858_v15 = vadd.f32 %v8857_v53, %v8846_v36  ;;  %v8903_v34 = vrot.slane %v8889_v31, %v13743_v20  ;;  %v8932_v5 = vrot.slane %v8896_v22, %v13376_v27  ;;  %9747 = vmatpush1.bf16.msra.mxu1 %v12595_v3  ;;  %v12604_v31 = vld [vmem:[#allocation14 + $0x1930] ss:$8 sps:$4 sm:$0xff]  }
 0xae8   :  { %v8936_v62 = vrot.slane %v8896_v22, %v13381_v32  ;;  %v8968_v52 = vrot.slane %v8928_v10, %v13376_v27  ;;  %v8972_v44 = vrot.slane %v8928_v10, %v13381_v32  ;;  %v12607_v22 = vld [vmem:[#allocation14 + $0x1920] ss:$8 sps:$4 sm:$0xff]   ;;  %v12615_v10 = vld [vmem:[#allocation14 + $0x1904] ss:$8 sps:$4 sm:$0xff]  }
 0xae9   :  { %v8851_v50 = vadd.f32 %v8850_v55, %v8849_v29  ;;  %v8859_v21 = vrot.slane %v8858_v15, 4  ;;  %v8940_v6 = vrot.slane %v8903_v34, %v13376_v27  ;;  %v8944_v63 = vrot.slane %v8903_v34, %v13381_v32  ;;  %v12612_v34 = vld [vmem:[#allocation14 + $0x1914] ss:$8 sps:$4 sm:$0xff]  }
 0xaeb   :  { %v8852_v47 = vrot.slane %v8851_v50, 2  ;;  %v8860_v58 = vadd.f32 %v8859_v21, %v8858_v15 }
 0xaed   :  { %v8853_v40 = vadd.f32 %v8852_v47, %v8851_v50  ;;  %v8861_v26 = vrot.slane %v8860_v58, 2 }
 0xaef   :  { %v8854_v49 = vrot.slane %v8853_v40, 1  ;;  %v8862_v30 = vadd.f32 %v8861_v26, %v8860_v58 }
 0xaf1   :  { %v8855_v33 = vadd.f32 %v8854_v49, %v8853_v40  ;;  %v8863_v37 = vrot.slane %v8862_v30, 1 }
 0xaf3   :  { %v8865_v18 = vmul.f32 0.03125, %v8855_v33  ;;  %v8864_v25 = vadd.f32 %v8863_v37, %v8862_v30 }
 0xaf5   :  { %v8867_v12 = vadd.f32 1e-05, %v8865_v18  ;;  %v8866_v41 = vmul.f32 0.03125, %v8864_v25 }
 0xaf7   :  { %12760 = vrsqrt.f32 %v8867_v12  ;;  %v8868_v11 = vadd.f32 1e-05, %v8866_v41 }
 0xaf9   :  { %12762 = vrsqrt.f32 %v8868_v11  ;;  %v12600_v11 = vld [vmem:[#allocation14 + $0x1954] ss:$8 sps:$4 sm:$0xff]  }
 0xafa   :  { %9748 = vmatprep.subr.bf16.mxu1 %v12600_v11 }
 0xafb   :  { %9749 = vmatpush1.bf16.msra.mxu1 %v12598_v46 }
 0xafc   :  { %9750 = vmatprep.subr.bf16.mxu1 %v12603_v7 }
 0xaff   :  { %9751 = vmatpush1.bf16.msra.mxu1 %v12601_v19 }
 0xb00   :  { %9752 = vmatprep.subr.bf16.mxu1 %v12606_v57 }
 0xb03   :  { %9753 = vmatpush1.bf16.msra.mxu1 %v12604_v31 }
 0xb04   :  { %v12761_v48 = vpop.eup %12760  ;;  %9754 = vmatprep.subr.bf16.mxu1 %v12609_v39 }
 0xb05   :  { %v8871_v13 = vmul.f32 %v12761_v48, %v8831_v38  ;;  %v8873_v35 = vmul.f32 %v12761_v48, %v8833_v2  ;;  %v8875_v51 = vmul.f32 %v12761_v48, %v8835_v54  ;;  %v8877_v23 = vmul.f32 %v12761_v48, %v8837_v24  ;;  %v12613_v48 = vld [vmem:[#allocation14 + $0x1900] ss:$8 sps:$4 sm:$0xff]  }
 0xb06   :  { %v12763_v42 = vpop.eup %12762 }
 0xb07   :  { %v8949_v60 = vmul.f32 %v8932_v5, %v8871_v13  ;;  %v8951_v9 = vmul.f32 %v8932_v5, %v8873_v35  ;;  %v8953_v16 = vmul.f32 %v8940_v6, %v8875_v51  ;;  %v8955_v1 = vmul.f32 %v8940_v6, %v8877_v23  ;;  %9755 = vmatpush1.bf16.msra.mxu1 %v12607_v22  ;;  %v12618_v5 = vld [vmem:[#allocation14 + $0x19f4] ss:$8 sps:$4 sm:$0xff]   ;;  %v12621_v6 = vld [vmem:[#allocation14 + $0x19e4] ss:$8 sps:$4 sm:$0xff]   ;;  %v12622_v35 = vld [vmem:[#allocation14 + $0x19d0] ss:$8 sps:$4 sm:$0xff]  }
 0xb08   :  { %v8872_v56 = vmul.f32 %v12763_v42, %v8832_v59  ;;  %v8874_v29 = vmul.f32 %v12763_v42, %v8834_v28  ;;  %v8876_v36 = vmul.f32 %v12763_v42, %v8836_v17  ;;  %v8878_v38 = vmul.f32 %v12763_v42, %v8838_v43  ;;  %9756 = vmatprep.subr.bf16.mxu1 %v12612_v34  ;;  %v12624_v13 = vld [vmem:[#allocation14 + $0x19d4] ss:$8 sps:$4 sm:$0xff]   ;;  %v12627_v51 = vld [vmem:[#allocation14 + $0x19c4] ss:$8 sps:$4 sm:$0xff]   ;;  %v12625_v23 = vld [vmem:[#allocation14 + $0x19c0] ss:$8 sps:$4 sm:$0xff]  }
 0xb09   :  { %v8977_v2 = vadd.f32 %v8960_v4, %v8949_v60  ;;  %v8979_v54 = vadd.f32 %v8960_v4, %v8951_v9  ;;  %v8981_v24 = vadd.f32 %v8968_v52, %v8953_v16  ;;  %v8983_v53 = vadd.f32 %v8968_v52, %v8955_v1  ;;  %v12630_v4 = vld [vmem:[#allocation14 + $0x19b4] ss:$8 sps:$4 sm:$0xff]   ;;  %v12633_v52 = vld [vmem:[#allocation14 + $0x19a4] ss:$8 sps:$4 sm:$0xff]   ;;  %v12634_v60 = vld [vmem:[#allocation14 + $0x1990] ss:$8 sps:$4 sm:$0xff]  }
 0xb0a   :  { %v8950_v55 = vmul.f32 %v8936_v62, %v8872_v56  ;;  %v8952_v15 = vmul.f32 %v8936_v62, %v8874_v29  ;;  %v8954_v50 = vmul.f32 %v8944_v63, %v8876_v36  ;;  %v8956_v21 = vmul.f32 %v8944_v63, %v8878_v38  ;;  %v12616_v62 = vld [vmem:[#allocation14 + $0x19f0] ss:$8 sps:$4 sm:$0xff]   ;;  %v12619_v63 = vld [vmem:[#allocation14 + $0x19e0] ss:$8 sps:$4 sm:$0xff]   ;;  %v12636_v42 = vld [vmem:[#allocation14 + $0x1994] ss:$8 sps:$4 sm:$0xff]  }
 0xb0b   :  { %v8985_v49 = vmax.f32 %v8977_v2, 0.0  ;;  %v8987_v30 = vmax.f32 %v8979_v54, 0.0  ;;  %v8989_v33 = vmax.f32 %v8981_v24, 0.0  ;;  %v8991_v37 = vmax.f32 %v8983_v53, 0.0  ;;  %9757 = vmatpush1.bf16.msra.mxu1 %v12610_v0  ;;  %v12639_v9 = vld [vmem:[#allocation14 + $0x1984] ss:$8 sps:$4 sm:$0xff]  }
 0xb0c   :  { %v8978_v47 = vadd.f32 %v8964_v8, %v8950_v55  ;;  %v8980_v58 = vadd.f32 %v8964_v8, %v8952_v15  ;;  %v8982_v40 = vadd.f32 %v8972_v44, %v8954_v50  ;;  %v8984_v26 = vadd.f32 %v8972_v44, %v8956_v21  ;;  %9758 = vmatprep.subr.bf16.mxu1 %v12615_v10  ;;  %v12628_v8 = vld [vmem:[#allocation14 + $0x19b0] ss:$8 sps:$4 sm:$0xff]   ;;  %v12631_v44 = vld [vmem:[#allocation14 + $0x19a0] ss:$8 sps:$4 sm:$0xff]   ;;  %v9059_v56 = vld [vmem:[#allocation16 + $0xe] sm:$0x3] }
 0xb0d   :  { %v12807_v18 = vpack.c.bf16 %v8987_v30, %v8985_v49  ;;  %v12810_v41 = vpack.c.bf16 %v8991_v37, %v8989_v33  ;;  %v12637_v16 = vld [vmem:[#allocation14 + $0x1980] ss:$8 sps:$4 sm:$0xff]   ;;  %v9064_v38 = vrot.slane %v9059_v56, %v13376_v27  ;;  %v9068_v54 = vrot.slane %v9059_v56, %v13381_v32 }
 0xb0e   :  { %v8986_v59 = vmax.f32 %v8978_v47, 0.0  ;;  %v8988_v28 = vmax.f32 %v8980_v58, 0.0  ;;  %v8990_v17 = vmax.f32 %v8982_v40, 0.0  ;;  %v8992_v43 = vmax.f32 %v8984_v26, 0.0 }
 0xb0f   :  { %9759 = vmatpush1.bf16.msra.mxu1 %v12613_v48 }
 0xb10   :  { %v12808_v25 = vpack.c.bf16 %v8988_v28, %v8986_v59  ;;  %v12809_v12 = vpack.c.bf16 %v8992_v43, %v8990_v17  ;;  %9760 = vmatprep.subr.bf16.mxu1 %v12618_v5 }
 0xb12   :  { %9283 = vmatprep.mubr.bf16.mxu0 %v12808_v25 }
 0xb13   :  { %9284 = vmatmul.mubr.bf16.vlgmr.msra.gmra.mxu0 %v12807_v18  ;;  %9761 = vmatpush2.bf16.msra.mxu1 %v12616_v62 }
 0xb14   :  { %9293 = vmatprep.mubr.bf16.mxu0 %v12809_v12  ;;  %9762 = vmatprep.subr.bf16.mxu1 %v12621_v6 }
 0xb17   :  { %9763 = vmatpush2.bf16.msra.mxu1 %v12619_v63 }
 0xb18   :  { %9764 = vmatprep.subr.bf16.mxu1 %v12624_v13 }
 0xb1b   :  { %9294 = vmatmul.mubr.bf16.gmra.mxu0 %v12810_v41  ;;  %9765 = vmatpush2.bf16.msra.mxu1 %v12622_v35 }
 0xb1c   :  { %9766 = vmatprep.subr.bf16.mxu1 %v12627_v51 }
 0xb1f   :  { %9767 = vmatpush2.bf16.msra.mxu1 %v12625_v23 }
 0xb20   :  { %9768 = vmatprep.subr.bf16.mxu1 %v12630_v4 }
 0xb23   :  { %9769 = vmatpush2.bf16.msra.mxu1 %v12628_v8 }
 0xb24   :  { %9770 = vmatprep.subr.bf16.mxu1 %v12633_v52 }
 0xb27   :  { %9771 = vmatpush2.bf16.msra.mxu1 %v12631_v44 }
 0xb28   :  { %9772 = vmatprep.subr.bf16.mxu1 %v12636_v42 }
 0xb2b   :  { %9773 = vmatpush2.bf16.msra.mxu1 %v12634_v60 }
 0xb2c   :  { %9774 = vmatprep.subr.bf16.mxu1 %v12639_v9 }
 0xb2f   :  { %9775 = vmatpush2.bf16.msra.mxu1 %v12637_v16 }
 0xbd3   :  { %v9285_v1 = vpop.f32.mrf.mxu0 }
 0xbd4   :  { %v9286_v55 = vadd.f32 %v9285_v1, %v9064_v38 }
 0xbd5   :  { %v9287_v29 = vpop.f32.mrf.mxu0 }
 0xbd6   :  { %v9288_v47 = vadd.f32 %v9287_v29, %v9068_v54 }
 0xbd7   :  { %v9289_v36 = vpop.f32.mrf.mxu0 }
 0xbd8   :  { %v9290_v24 = vadd.f32 %v9289_v36, %v9064_v38 }
 0xbd9   :  { %v9291_v2 = vpop.f32.mrf.mxu0 }
 0xbda   :  { %v9292_v15 = vadd.f32 %v9291_v2, %v9068_v54  ;;  %v9304_v58 = vadd.f32 %v9290_v24, %v9286_v55 }
 0xbdb   :  { %v9295_v53 = vpop.f32.mrf.mxu0 }
 0xbdc   :  { %v9296_v50 = vadd.f32 %v9295_v53, %v9064_v38  ;;  %v9313_v49 = vadd.f32 %v9292_v15, %v9288_v47 }
 0xbdd   :  { %v9297_v21 = vpop.f32.mrf.mxu0 }
 0xbde   :  { %v9298_v40 = vadd.f32 %v9297_v21, %v9068_v54  ;;  %v9305_v30 = vadd.f32 %v9304_v58, %v9296_v50 }
 0xbdf   :  { %v9299_v26 = vpop.f32.mrf.mxu0 }
 0xbe0   :  { %v9300_v33 = vadd.f32 %v9299_v26, %v9064_v38  ;;  %v9314_v59 = vadd.f32 %v9313_v49, %v9298_v40  ;;  %v14145_v26 = vld [vmem:[#allocation44_spill] sm:$0xff] }
 0xbe1   :  { %v9301_v37 = vpop.f32.mrf.mxu0 }
 0xbe2   :  { %v9306_v28 = vadd.f32 %v9305_v30, %v9300_v33  ;;  %v9302_v17 = vadd.f32 %v9301_v37, %v9068_v54  ;;  %v14147_v37 = vld [vmem:[#allocation53_spill] sm:$0xff] }
 0xbe4   :  { %v9307_v43 = vrot.slane %v9306_v28, 4  ;;  %v9315_v18 = vadd.f32 %v9314_v59, %v9302_v17  ;;  %v14148_v59 = vld [vmem:[#allocation54_spill] sm:$0xff] }
 0xbe6   :  { %v9308_v25 = vadd.f32 %v9307_v43, %v9306_v28  ;;  %v9316_v12 = vrot.slane %v9315_v18, 4  ;;  %v14149_v28 = vcombine.low %v14147_v37, %v14148_v59  ;;  %v12646_v37 = vld [vmem:[#allocation14 + $0x1c50] ss:$8 sps:$4 sm:$0xff]   ;;  %v12651_v59 = vld [vmem:[#allocation14 + $0x1c44] ss:$8 sps:$4 sm:$0xff]  }
 0xbe8   :  { %v9309_v41 = vrot.slane %v9308_v25, 2  ;;  %v9317_v61 = vadd.f32 %v9316_v12, %v9315_v18 }
 0xbea   :  { %v9310_v45 = vadd.f32 %v9309_v41, %v9308_v25  ;;  %v9318_v14 = vrot.slane %v9317_v61, 2 }
 0xbec   :  { %v9311_v3 = vrot.slane %v9310_v45, 1  ;;  %v9319_v11 = vadd.f32 %v9318_v14, %v9317_v61 }
 0xbee   :  { %v9312_v46 = vadd.f32 %v9311_v3, %v9310_v45  ;;  %v9320_v7 = vrot.slane %v9319_v11, 1 }
 0xbf0   :  { %v9322_v19 = vmul.f32 0.03125, %v9312_v46  ;;  %v9321_v57 = vadd.f32 %v9320_v7, %v9319_v11 }
 0xbf2   :  { %v9324_v31 = vsub.f32 %v9286_v55, %v9322_v19  ;;  %v9326_v39 = vsub.f32 %v9290_v24, %v9322_v19  ;;  %v9328_v22 = vsub.f32 %v9296_v50, %v9322_v19  ;;  %v9323_v34 = vmul.f32 0.03125, %v9321_v57 }
 0xbf3   :  { %v9330_v0 = vsub.f32 %v9300_v33, %v9322_v19 }
 0xbf4   :  { %v9332_v10 = vmul.f32 %v9324_v31, %v9324_v31  ;;  %v9334_v48 = vmul.f32 %v9326_v39, %v9326_v39  ;;  %v9325_v5 = vsub.f32 %v9288_v47, %v9323_v34  ;;  %v9327_v62 = vsub.f32 %v9292_v15, %v9323_v34 }
 0xbf5   :  { %v9329_v6 = vsub.f32 %v9298_v40, %v9323_v34  ;;  %v9336_v63 = vmul.f32 %v9328_v22, %v9328_v22  ;;  %v9331_v35 = vsub.f32 %v9302_v17, %v9323_v34  ;;  %v9338_v4 = vmul.f32 %v9330_v0, %v9330_v0  ;;  %v14144_v40 = vld [vmem:[#allocation43_spill] sm:$0xff] }
 0xbf6   :  { %v9340_v13 = vadd.f32 %v9334_v48, %v9332_v10  ;;  %v9333_v51 = vmul.f32 %v9325_v5, %v9325_v5  ;;  %v9335_v23 = vmul.f32 %v9327_v62, %v9327_v62  ;;  %v14146_v49 = vcombine.low %v14144_v40, %v14145_v26  ;;  %v12642_v40 = vld [vmem:[#allocation14 + $0x1c74] ss:$8 sps:$4 sm:$0xff]   ;;  %v12640_v26 = vld [vmem:[#allocation14 + $0x1c70] ss:$8 sps:$4 sm:$0xff]  }
 0xbf7   :  { %v9337_v52 = vmul.f32 %v9329_v6, %v9329_v6  ;;  %v9339_v60 = vmul.f32 %v9331_v35, %v9331_v35  ;;  %v9406_v17 = vrot.slane %v14149_v28, %v13743_v20  ;;  %10237 = vmatprep.subr.bf16.mxu0 %v12642_v40  ;;  %v12649_v28 = vld [vmem:[#allocation14 + $0x1c40] ss:$8 sps:$4 sm:$0xff]  }
 0xbf8   :  { %v9341_v8 = vadd.f32 %v9340_v13, %v9336_v63  ;;  %v9349_v44 = vadd.f32 %v9335_v23, %v9333_v51  ;;  %v9381_v30 = vrot.slane %v14146_v49, %v13743_v20  ;;  %10238 = vmatpush1.bf16.msra.mxu0 %v12640_v26  ;;  %v12645_v49 = vld [vmem:[#allocation14 + $0x1c64] ss:$8 sps:$4 sm:$0xff]  }
 0xbf9   :  { %v9407_v18 = vcombine.high %v9406_v17, %v9406_v17  ;;  %v9414_v41 = vrot.slane %v9406_v17, %v13743_v20  ;;  %10239 = vmatprep.subr.bf16.mxu0 %v12645_v49  ;;  %v12654_v17 = vld [vmem:[#allocation14 + $0x1c34] ss:$8 sps:$4 sm:$0xff]  }
 0xbfa   :  { %v9342_v42 = vadd.f32 %v9341_v8, %v9338_v4  ;;  %v9350_v9 = vadd.f32 %v9349_v44, %v9337_v52  ;;  %v9382_v43 = vcombine.high %v9381_v30, %v9381_v30  ;;  %v9389_v25 = vrot.slane %v9381_v30, %v13743_v20  ;;  %v12643_v30 = vld [vmem:[#allocation14 + $0x1c60] ss:$8 sps:$4 sm:$0xff]  }
 0xbfb   :  { %v9421_v61 = vrot.slane %v9407_v18, %v13743_v20  ;;  %v9453_v10 = vrot.slane %v9414_v41, %v13376_v27  ;;  %v9457_v48 = vrot.slane %v9414_v41, %v13381_v32  ;;  %v12657_v18 = vld [vmem:[#allocation14 + $0x1c24] ss:$8 sps:$4 sm:$0xff]   ;;  %v12658_v41 = vld [vmem:[#allocation14 + $0x1c10] ss:$8 sps:$4 sm:$0xff]  }
 0xbfc   :  { %v9343_v16 = vrot.slane %v9342_v42, 4  ;;  %v9351_v1 = vadd.f32 %v9350_v9, %v9339_v60  ;;  %v9396_v12 = vrot.slane %v9382_v43, %v13743_v20  ;;  %v9425_v14 = vrot.slane %v9389_v25, %v13376_v27  ;;  %10240 = vmatpush1.bf16.msra.mxu0 %v12643_v30  ;;  %v12652_v43 = vld [vmem:[#allocation14 + $0x1c30] ss:$8 sps:$4 sm:$0xff]  }
 0xbfd   :  { %v9429_v3 = vrot.slane %v9389_v25, %v13381_v32  ;;  %v9461_v63 = vrot.slane %v9421_v61, %v13376_v27  ;;  %v9465_v13 = vrot.slane %v9421_v61, %v13381_v32  ;;  %v12655_v25 = vld [vmem:[#allocation14 + $0x1c20] ss:$8 sps:$4 sm:$0xff]   ;;  %v12663_v61 = vld [vmem:[#allocation14 + $0x1c04] ss:$8 sps:$4 sm:$0xff]  }
 0xbfe   :  { %v9344_v56 = vadd.f32 %v9343_v16, %v9342_v42  ;;  %v9352_v29 = vrot.slane %v9351_v1, 4  ;;  %v9433_v11 = vrot.slane %v9396_v12, %v13376_v27  ;;  %v9437_v46 = vrot.slane %v9396_v12, %v13381_v32  ;;  %v12660_v12 = vld [vmem:[#allocation14 + $0x1c14] ss:$8 sps:$4 sm:$0xff]  }
 0xc00   :  { %v9345_v36 = vrot.slane %v9344_v56, 2  ;;  %v9353_v38 = vadd.f32 %v9352_v29, %v9351_v1 }
 0xc02   :  { %v9346_v2 = vadd.f32 %v9345_v36, %v9344_v56  ;;  %v9354_v54 = vrot.slane %v9353_v38, 2 }
 0xc04   :  { %v9347_v24 = vrot.slane %v9346_v2, 1  ;;  %v9355_v53 = vadd.f32 %v9354_v54, %v9353_v38 }
 0xc06   :  { %v9348_v55 = vadd.f32 %v9347_v24, %v9346_v2  ;;  %v9356_v15 = vrot.slane %v9355_v53, 1 }
 0xc08   :  { %v9358_v50 = vmul.f32 0.03125, %v9348_v55  ;;  %v9357_v21 = vadd.f32 %v9356_v15, %v9355_v53 }
 0xc0a   :  { %v9360_v47 = vadd.f32 1e-05, %v9358_v50  ;;  %v9359_v58 = vmul.f32 0.03125, %v9357_v21 }
 0xc0c   :  { %12764 = vrsqrt.f32 %v9360_v47  ;;  %v9361_v33 = vadd.f32 1e-05, %v9359_v58 }
 0xc0e   :  { %12766 = vrsqrt.f32 %v9361_v33  ;;  %v12648_v33 = vld [vmem:[#allocation14 + $0x1c54] ss:$8 sps:$4 sm:$0xff]  }
 0xc0f   :  { %10241 = vmatprep.subr.bf16.mxu0 %v12648_v33 }
 0xc10   :  { %10242 = vmatpush1.bf16.msra.mxu0 %v12646_v37 }
 0xc11   :  { %10243 = vmatprep.subr.bf16.mxu0 %v12651_v59 }
 0xc14   :  { %10244 = vmatpush1.bf16.msra.mxu0 %v12649_v28 }
 0xc15   :  { %10245 = vmatprep.subr.bf16.mxu0 %v12654_v17 }
 0xc18   :  { %10246 = vmatpush1.bf16.msra.mxu0 %v12652_v43 }
 0xc19   :  { %v12765_v45 = vpop.eup %12764  ;;  %10247 = vmatprep.subr.bf16.mxu0 %v12657_v18 }
 0xc1a   :  { %v9364_v7 = vmul.f32 %v12765_v45, %v9324_v31  ;;  %v9366_v19 = vmul.f32 %v12765_v45, %v9326_v39  ;;  %v9368_v57 = vmul.f32 %v12765_v45, %v9328_v22  ;;  %v9370_v34 = vmul.f32 %v12765_v45, %v9330_v0  ;;  %v12661_v45 = vld [vmem:[#allocation14 + $0x1c00] ss:$8 sps:$4 sm:$0xff]  }
 0xc1b   :  { %v12767_v51 = vpop.eup %12766 }
 0xc1c   :  { %v9442_v23 = vmul.f32 %v9425_v14, %v9364_v7  ;;  %v9444_v4 = vmul.f32 %v9425_v14, %v9366_v19  ;;  %v9446_v8 = vmul.f32 %v9433_v11, %v9368_v57  ;;  %v9448_v52 = vmul.f32 %v9433_v11, %v9370_v34  ;;  %10248 = vmatpush1.bf16.msra.mxu0 %v12655_v25  ;;  %v12666_v14 = vld [vmem:[#allocation14 + $0x1cf4] ss:$8 sps:$4 sm:$0xff]   ;;  %v12669_v11 = vld [vmem:[#allocation14 + $0x1ce4] ss:$8 sps:$4 sm:$0xff]   ;;  %v12670_v19 = vld [vmem:[#allocation14 + $0x1cd0] ss:$8 sps:$4 sm:$0xff]  }
 0xc1d   :  { %v9365_v44 = vmul.f32 %v12767_v51, %v9325_v5  ;;  %v9367_v42 = vmul.f32 %v12767_v51, %v9327_v62  ;;  %v9369_v60 = vmul.f32 %v12767_v51, %v9329_v6  ;;  %v9371_v31 = vmul.f32 %v12767_v51, %v9331_v35  ;;  %10249 = vmatprep.subr.bf16.mxu0 %v12660_v12  ;;  %v12672_v7 = vld [vmem:[#allocation14 + $0x1cd4] ss:$8 sps:$4 sm:$0xff]   ;;  %v12675_v57 = vld [vmem:[#allocation14 + $0x1cc4] ss:$8 sps:$4 sm:$0xff]   ;;  %v12673_v34 = vld [vmem:[#allocation14 + $0x1cc0] ss:$8 sps:$4 sm:$0xff]  }
 0xc1e   :  { %v9470_v39 = vadd.f32 %v9453_v10, %v9442_v23  ;;  %v9472_v22 = vadd.f32 %v9453_v10, %v9444_v4  ;;  %v9474_v0 = vadd.f32 %v9461_v63, %v9446_v8  ;;  %v9476_v9 = vadd.f32 %v9461_v63, %v9448_v52  ;;  %v12678_v10 = vld [vmem:[#allocation14 + $0x1cb4] ss:$8 sps:$4 sm:$0xff]   ;;  %v12681_v63 = vld [vmem:[#allocation14 + $0x1ca4] ss:$8 sps:$4 sm:$0xff]   ;;  %v12682_v23 = vld [vmem:[#allocation14 + $0x1c90] ss:$8 sps:$4 sm:$0xff]  }
 0xc1f   :  { %v9443_v16 = vmul.f32 %v9429_v3, %v9365_v44  ;;  %v9445_v1 = vmul.f32 %v9429_v3, %v9367_v42  ;;  %v9447_v56 = vmul.f32 %v9437_v46, %v9369_v60  ;;  %v9449_v29 = vmul.f32 %v9437_v46, %v9371_v31  ;;  %v12664_v3 = vld [vmem:[#allocation14 + $0x1cf0] ss:$8 sps:$4 sm:$0xff]   ;;  %v12667_v46 = vld [vmem:[#allocation14 + $0x1ce0] ss:$8 sps:$4 sm:$0xff]   ;;  %v12684_v51 = vld [vmem:[#allocation14 + $0x1c94] ss:$8 sps:$4 sm:$0xff]  }
 0xc20   :  { %v9478_v24 = vmax.f32 %v9470_v39, 0.0  ;;  %v9480_v53 = vmax.f32 %v9472_v22, 0.0  ;;  %v9482_v55 = vmax.f32 %v9474_v0, 0.0  ;;  %v9484_v15 = vmax.f32 %v9476_v9, 0.0  ;;  %10250 = vmatpush1.bf16.msra.mxu0 %v12658_v41  ;;  %v12687_v4 = vld [vmem:[#allocation14 + $0x1c84] ss:$8 sps:$4 sm:$0xff]  }
 0xc21   :  { %v9471_v36 = vadd.f32 %v9457_v48, %v9443_v16  ;;  %v9473_v38 = vadd.f32 %v9457_v48, %v9445_v1  ;;  %v9475_v2 = vadd.f32 %v9465_v13, %v9447_v56  ;;  %v9477_v54 = vadd.f32 %v9465_v13, %v9449_v29  ;;  %10251 = vmatprep.subr.bf16.mxu0 %v12663_v61  ;;  %v12676_v48 = vld [vmem:[#allocation14 + $0x1cb0] ss:$8 sps:$4 sm:$0xff]   ;;  %v12679_v13 = vld [vmem:[#allocation14 + $0x1ca0] ss:$8 sps:$4 sm:$0xff]  }
 0xc22   :  { %v12811_v50 = vpack.c.bf16 %v9480_v53, %v9478_v24  ;;  %v12814_v58 = vpack.c.bf16 %v9484_v15, %v9482_v55  ;;  %v12685_v8 = vld [vmem:[#allocation14 + $0x1c80] ss:$8 sps:$4 sm:$0xff]   ;;  %v9552_v44 = vld [vmem:[#allocation16 + $0x10] sm:$0x3] }
 0xc23   :  { %v9479_v5 = vmax.f32 %v9471_v36, 0.0  ;;  %v9481_v62 = vmax.f32 %v9473_v38, 0.0  ;;  %v9483_v6 = vmax.f32 %v9475_v2, 0.0  ;;  %v9485_v35 = vmax.f32 %v9477_v54, 0.0 }
 0xc24   :  { %10252 = vmatpush1.bf16.msra.mxu0 %v12661_v45  ;;  %v9557_v31 = vrot.slane %v9552_v44, %v13376_v27  ;;  %v9561_v22 = vrot.slane %v9552_v44, %v13381_v32 }
 0xc25   :  { %v12812_v21 = vpack.c.bf16 %v9481_v62, %v9479_v5  ;;  %v12813_v47 = vpack.c.bf16 %v9485_v35, %v9483_v6  ;;  %10253 = vmatprep.subr.bf16.mxu0 %v12666_v14 }
 0xc27   :  { %9776 = vmatprep.mubr.bf16.mxu1 %v12812_v21 }
 0xc28   :  { %9777 = vmatmul.mubr.bf16.vlgmr.msra.gmra.mxu1 %v12811_v50  ;;  %10254 = vmatpush2.bf16.msra.mxu0 %v12664_v3 }
 0xc29   :  { %9786 = vmatprep.mubr.bf16.mxu1 %v12813_v47  ;;  %10255 = vmatprep.subr.bf16.mxu0 %v12669_v11 }
 0xc2c   :  { %10256 = vmatpush2.bf16.msra.mxu0 %v12667_v46 }
 0xc2d   :  { %10257 = vmatprep.subr.bf16.mxu0 %v12672_v7 }
 0xc30   :  { %9787 = vmatmul.mubr.bf16.gmra.mxu1 %v12814_v58  ;;  %10258 = vmatpush2.bf16.msra.mxu0 %v12670_v19 }
 0xc31   :  { %10259 = vmatprep.subr.bf16.mxu0 %v12675_v57 }
 0xc34   :  { %10260 = vmatpush2.bf16.msra.mxu0 %v12673_v34 }
 0xc35   :  { %10261 = vmatprep.subr.bf16.mxu0 %v12678_v10 }
 0xc38   :  { %10262 = vmatpush2.bf16.msra.mxu0 %v12676_v48 }
 0xc39   :  { %10263 = vmatprep.subr.bf16.mxu0 %v12681_v63 }
 0xc3c   :  { %10264 = vmatpush2.bf16.msra.mxu0 %v12679_v13 }
 0xc3d   :  { %10265 = vmatprep.subr.bf16.mxu0 %v12684_v51 }
 0xc40   :  { %10266 = vmatpush2.bf16.msra.mxu0 %v12682_v23 }
 0xc41   :  { %10267 = vmatprep.subr.bf16.mxu0 %v12687_v4 }
 0xc44   :  { %10268 = vmatpush2.bf16.msra.mxu0 %v12685_v8 }
 0xce8   :  { %v9778_v52 = vpop.f32.mrf.mxu1 }
 0xce9   :  { %v9779_v16 = vadd.f32 %v9778_v52, %v9557_v31 }
 0xcea   :  { %v9780_v42 = vpop.f32.mrf.mxu1 }
 0xceb   :  { %v9781_v36 = vadd.f32 %v9780_v42, %v9561_v22 }
 0xcec   :  { %v9782_v60 = vpop.f32.mrf.mxu1 }
 0xced   :  { %v9783_v0 = vadd.f32 %v9782_v60, %v9557_v31 }
 0xcee   :  { %v9784_v39 = vpop.f32.mrf.mxu1 }
 0xcef   :  { %v9785_v1 = vadd.f32 %v9784_v39, %v9561_v22  ;;  %v9797_v38 = vadd.f32 %v9783_v0, %v9779_v16 }
 0xcf0   :  { %v9788_v9 = vpop.f32.mrf.mxu1 }
 0xcf1   :  { %v9789_v56 = vadd.f32 %v9788_v9, %v9557_v31  ;;  %v9806_v24 = vadd.f32 %v9785_v1, %v9781_v36 }
 0xcf2   :  { %v9790_v29 = vpop.f32.mrf.mxu1 }
 0xcf3   :  { %v9791_v2 = vadd.f32 %v9790_v29, %v9561_v22  ;;  %v9798_v53 = vadd.f32 %v9797_v38, %v9789_v56 }
 0xcf4   :  { %v9792_v54 = vpop.f32.mrf.mxu1 }
 0xcf5   :  { %v9793_v55 = vadd.f32 %v9792_v54, %v9557_v31  ;;  %v9807_v5 = vadd.f32 %v9806_v24, %v9791_v2  ;;  %v14151_v54 = vld [vmem:[#allocation42_spill] sm:$0xff] }
 0xcf6   :  { %v9794_v15 = vpop.f32.mrf.mxu1 }
 0xcf7   :  { %v9799_v62 = vadd.f32 %v9798_v53, %v9793_v55  ;;  %v9795_v6 = vadd.f32 %v9794_v15, %v9561_v22  ;;  %v14153_v15 = vld [vmem:[#allocation51_spill] sm:$0xff] }
 0xcf9   :  { %v9800_v35 = vrot.slane %v9799_v62, 4  ;;  %v9808_v50 = vadd.f32 %v9807_v5, %v9795_v6  ;;  %v14154_v5 = vld [vmem:[#allocation52_spill] sm:$0xff] }
 0xcfb   :  { %v9801_v21 = vadd.f32 %v9800_v35, %v9799_v62  ;;  %v9809_v47 = vrot.slane %v9808_v50, 4  ;;  %v14155_v62 = vcombine.low %v14153_v15, %v14154_v5  ;;  %v12688_v15 = vld [vmem:[#allocation23 + $0x70] ss:$8 sps:$4 sm:$0xff]   ;;  %v12693_v5 = vld [vmem:[#allocation23 + $0x64] ss:$8 sps:$4 sm:$0xff]  }
 0xcfd   :  { %v9802_v58 = vrot.slane %v9801_v21, 2  ;;  %v9810_v40 = vadd.f32 %v9809_v47, %v9808_v50 }
 0xcff   :  { %v9803_v26 = vadd.f32 %v9802_v58, %v9801_v21  ;;  %v9811_v49 = vrot.slane %v9810_v40, 2 }
 0xd01   :  { %v9804_v30 = vrot.slane %v9803_v26, 1  ;;  %v9812_v33 = vadd.f32 %v9811_v49, %v9810_v40 }
 0xd03   :  { %v9805_v37 = vadd.f32 %v9804_v30, %v9803_v26  ;;  %v9813_v59 = vrot.slane %v9812_v33, 1 }
 0xd05   :  { %v9815_v28 = vmul.f32 0.03125, %v9805_v37  ;;  %v9814_v17 = vadd.f32 %v9813_v59, %v9812_v33 }
 0xd07   :  { %v9817_v43 = vsub.f32 %v9779_v16, %v9815_v28  ;;  %v9819_v18 = vsub.f32 %v9783_v0, %v9815_v28  ;;  %v9821_v25 = vsub.f32 %v9789_v56, %v9815_v28  ;;  %v9816_v12 = vmul.f32 0.03125, %v9814_v17 }
 0xd08   :  { %v9823_v41 = vsub.f32 %v9793_v55, %v9815_v28 }
 0xd09   :  { %v9825_v61 = vmul.f32 %v9817_v43, %v9817_v43  ;;  %v9827_v45 = vmul.f32 %v9819_v18, %v9819_v18  ;;  %v9818_v14 = vsub.f32 %v9781_v36, %v9816_v12  ;;  %v9820_v3 = vsub.f32 %v9785_v1, %v9816_v12 }
 0xd0a   :  { %v9822_v11 = vsub.f32 %v9791_v2, %v9816_v12  ;;  %v9829_v46 = vmul.f32 %v9821_v25, %v9821_v25  ;;  %v9824_v19 = vsub.f32 %v9795_v6, %v9816_v12  ;;  %v9831_v10 = vmul.f32 %v9823_v41, %v9823_v41  ;;  %v14150_v2 = vld [vmem:[#allocation41_spill] sm:$0xff] }
 0xd0b   :  { %v9833_v7 = vadd.f32 %v9827_v45, %v9825_v61  ;;  %v9826_v57 = vmul.f32 %v9818_v14, %v9818_v14  ;;  %v9828_v34 = vmul.f32 %v9820_v3, %v9820_v3  ;;  %v14152_v24 = vcombine.low %v14150_v2, %v14151_v54 }
 0xd0c   :  { %v9830_v63 = vmul.f32 %v9822_v11, %v9822_v11  ;;  %v9832_v23 = vmul.f32 %v9824_v19, %v9824_v19  ;;  %v9899_v6 = vrot.slane %v14155_v62, %v13743_v20  ;;  %v12691_v62 = vld [vmem:[#allocation23 + $0x60] ss:$8 sps:$4 sm:$0xff]  }
 0xd0d   :  { %v9834_v48 = vadd.f32 %v9833_v7, %v9829_v46  ;;  %v9842_v13 = vadd.f32 %v9828_v34, %v9826_v57  ;;  %v9874_v53 = vrot.slane %v14152_v24, %v13743_v20 }
 0xd0e   :  { %v9900_v50 = vcombine.high %v9899_v6, %v9899_v6  ;;  %v9907_v58 = vrot.slane %v9899_v6, %v13743_v20  ;;  %v12696_v6 = vld [vmem:[#allocation23 + $0x54] ss:$8 sps:$4 sm:$0xff]  }
 0xd0f   :  { %v9835_v51 = vadd.f32 %v9834_v48, %v9831_v10  ;;  %v9843_v4 = vadd.f32 %v9842_v13, %v9830_v63  ;;  %v9875_v35 = vcombine.high %v9874_v53, %v9874_v53  ;;  %v9882_v21 = vrot.slane %v9874_v53, %v13743_v20 }
 0xd10   :  { %v9914_v40 = vrot.slane %v9900_v50, %v13743_v20  ;;  %v9946_v61 = vrot.slane %v9907_v58, %v13376_v27  ;;  %v9950_v45 = vrot.slane %v9907_v58, %v13381_v32  ;;  %v12699_v50 = vld [vmem:[#allocation23 + $0x44] ss:$8 sps:$4 sm:$0xff]   ;;  %v12700_v58 = vld [vmem:[#allocation23 + $0x30] ss:$8 sps:$4 sm:$0xff]  }
 0xd11   :  { %v9836_v8 = vrot.slane %v9835_v51, 4  ;;  %v9844_v52 = vadd.f32 %v9843_v4, %v9832_v23  ;;  %v9889_v47 = vrot.slane %v9875_v35, %v13743_v20  ;;  %v9918_v49 = vrot.slane %v9882_v21, %v13376_v27  ;;  %v12694_v35 = vld [vmem:[#allocation23 + $0x50] ss:$8 sps:$4 sm:$0xff]  }
 0xd12   :  { %v9922_v30 = vrot.slane %v9882_v21, %v13381_v32  ;;  %v9954_v46 = vrot.slane %v9914_v40, %v13376_v27  ;;  %v9958_v7 = vrot.slane %v9914_v40, %v13381_v32  ;;  %v12697_v21 = vld [vmem:[#allocation23 + $0x40] ss:$8 sps:$4 sm:$0xff]   ;;  %v12705_v40 = vld [vmem:[#allocation23 + $0x24] ss:$8 sps:$4 sm:$0xff]  }
 0xd13   :  { %v9837_v44 = vadd.f32 %v9836_v8, %v9835_v51  ;;  %v9845_v42 = vrot.slane %v9844_v52, 4  ;;  %v9926_v33 = vrot.slane %v9889_v47, %v13376_v27  ;;  %v9930_v37 = vrot.slane %v9889_v47, %v13381_v32  ;;  %v12702_v47 = vld [vmem:[#allocation23 + $0x34] ss:$8 sps:$4 sm:$0xff]  }
 0xd15   :  { %v9838_v60 = vrot.slane %v9837_v44, 2  ;;  %v9846_v31 = vadd.f32 %v9845_v42, %v9844_v52 }
 0xd17   :  { %v9839_v39 = vadd.f32 %v9838_v60, %v9837_v44  ;;  %v9847_v22 = vrot.slane %v9846_v31, 2 }
 0xd19   :  { %v9840_v0 = vrot.slane %v9839_v39, 1  ;;  %v9848_v9 = vadd.f32 %v9847_v22, %v9846_v31 }
 0xd1b   :  { %v9841_v16 = vadd.f32 %v9840_v0, %v9839_v39  ;;  %v9849_v1 = vrot.slane %v9848_v9, 1 }
 0xd1d   :  { %v9851_v56 = vmul.f32 0.03125, %v9841_v16  ;;  %v9850_v29 = vadd.f32 %v9849_v1, %v9848_v9 }
 0xd1f   :  { %v9853_v36 = vadd.f32 1e-05, %v9851_v56  ;;  %v9852_v38 = vmul.f32 0.03125, %v9850_v29 }
 0xd21   :  { %12768 = vrsqrt.f32 %v9853_v36  ;;  %v9854_v55 = vadd.f32 1e-05, %v9852_v38 }
 0xd23   :  { %12770 = vrsqrt.f32 %v9854_v55  ;;  %v12690_v55 = vld [vmem:[#allocation23 + $0x74] ss:$8 sps:$4 sm:$0xff]  }
 0xd24   :  { %10688 = vmatprep.subr.bf16.mxu1 %v12690_v55 }
 0xd25   :  { %10689 = vmatpush1.bf16.msra.mxu1 %v12688_v15 }
 0xd26   :  { %10690 = vmatprep.subr.bf16.mxu1 %v12693_v5 }
 0xd29   :  { %10691 = vmatpush1.bf16.msra.mxu1 %v12691_v62 }
 0xd2a   :  { %10692 = vmatprep.subr.bf16.mxu1 %v12696_v6 }
 0xd2d   :  { %10693 = vmatpush1.bf16.msra.mxu1 %v12694_v35 }
 0xd2e   :  { %v12769_v26 = vpop.eup %12768  ;;  %10694 = vmatprep.subr.bf16.mxu1 %v12699_v50 }
 0xd2f   :  { %v9857_v59 = vmul.f32 %v12769_v26, %v9817_v43  ;;  %v9859_v28 = vmul.f32 %v12769_v26, %v9819_v18  ;;  %v9861_v17 = vmul.f32 %v12769_v26, %v9821_v25  ;;  %v9863_v12 = vmul.f32 %v12769_v26, %v9823_v41  ;;  %v12703_v26 = vld [vmem:[#allocation23 + $0x20] ss:$8 sps:$4 sm:$0xff]  }
 0xd30   :  { %v12771_v57 = vpop.eup %12770 }
 0xd31   :  { %v9935_v34 = vmul.f32 %v9918_v49, %v9857_v59  ;;  %v9937_v10 = vmul.f32 %v9918_v49, %v9859_v28  ;;  %v9939_v48 = vmul.f32 %v9926_v33, %v9861_v17  ;;  %v9941_v63 = vmul.f32 %v9926_v33, %v9863_v12  ;;  %10695 = vmatpush1.bf16.msra.mxu1 %v12697_v21  ;;  %v12708_v49 = vld [vmem:[#allocation23 + $0x14] ss:$8 sps:$4 sm:$0xff]   ;;  %v12711_v33 = vld [vmem:[#allocation23 + $0x4] ss:$8 sps:$4 sm:$0xff]   ;;  %v12712_v28 = vld [vmem:[#allocation23 + $0xf0] ss:$8 sps:$4 sm:$0xff]  }
 0xd32   :  { %v9858_v13 = vmul.f32 %v12771_v57, %v9818_v14  ;;  %v9860_v51 = vmul.f32 %v12771_v57, %v9820_v3  ;;  %v9862_v23 = vmul.f32 %v12771_v57, %v9822_v11  ;;  %v9864_v43 = vmul.f32 %v12771_v57, %v9824_v19  ;;  %10696 = vmatprep.subr.bf16.mxu1 %v12702_v47  ;;  %v12714_v59 = vld [vmem:[#allocation23 + $0xf4] ss:$8 sps:$4 sm:$0xff]   ;;  %v12717_v17 = vld [vmem:[#allocation23 + $0xe4] ss:$8 sps:$4 sm:$0xff]   ;;  %v12715_v12 = vld [vmem:[#allocation23 + $0xe0] ss:$8 sps:$4 sm:$0xff]  }
 0xd33   :  { %v9963_v18 = vadd.f32 %v9946_v61, %v9935_v34  ;;  %v9965_v25 = vadd.f32 %v9946_v61, %v9937_v10  ;;  %v9967_v41 = vadd.f32 %v9954_v46, %v9939_v48  ;;  %v9969_v4 = vadd.f32 %v9954_v46, %v9941_v63  ;;  %v12720_v61 = vld [vmem:[#allocation23 + $0xd4] ss:$8 sps:$4 sm:$0xff]   ;;  %v12723_v46 = vld [vmem:[#allocation23 + $0xc4] ss:$8 sps:$4 sm:$0xff]   ;;  %v12724_v34 = vld [vmem:[#allocation23 + $0xb0] ss:$8 sps:$4 sm:$0xff]  }
 0xd34   :  { %v9936_v8 = vmul.f32 %v9922_v30, %v9858_v13  ;;  %v9938_v52 = vmul.f32 %v9922_v30, %v9860_v51  ;;  %v9940_v44 = vmul.f32 %v9930_v37, %v9862_v23  ;;  %v9942_v42 = vmul.f32 %v9930_v37, %v9864_v43  ;;  %v12706_v30 = vld [vmem:[#allocation23 + $0x10] ss:$8 sps:$4 sm:$0xff]   ;;  %v12709_v37 = vld [vmem:[#allocation23] ss:$8 sps:$4 sm:$0xff]   ;;  %v12726_v57 = vld [vmem:[#allocation23 + $0xb4] ss:$8 sps:$4 sm:$0xff]  }
 0xd35   :  { %v9971_v0 = vmax.f32 %v9963_v18, 0.0  ;;  %v9973_v9 = vmax.f32 %v9965_v25, 0.0  ;;  %v9975_v16 = vmax.f32 %v9967_v41, 0.0  ;;  %v9977_v1 = vmax.f32 %v9969_v4, 0.0  ;;  %10697 = vmatpush1.bf16.msra.mxu1 %v12700_v58  ;;  %v12729_v10 = vld [vmem:[#allocation23 + $0xa4] ss:$8 sps:$4 sm:$0xff]  }
 0xd36   :  { %v9964_v60 = vadd.f32 %v9950_v45, %v9936_v8  ;;  %v9966_v31 = vadd.f32 %v9950_v45, %v9938_v52  ;;  %v9968_v39 = vadd.f32 %v9958_v7, %v9940_v44  ;;  %v9970_v22 = vadd.f32 %v9958_v7, %v9942_v42  ;;  %10698 = vmatprep.subr.bf16.mxu1 %v12705_v40  ;;  %v12718_v45 = vld [vmem:[#allocation23 + $0xd0] ss:$8 sps:$4 sm:$0xff]   ;;  %v12721_v7 = vld [vmem:[#allocation23 + $0xc0] ss:$8 sps:$4 sm:$0xff]   ;;  %v12732_v63 = vld [vmem:[#allocation23 + $0x94] ss:$8 sps:$4 sm:$0xff]  }
 0xd37   :  { %v12815_v2 = vpack.c.bf16 %v9973_v9, %v9971_v0  ;;  %v12818_v53 = vpack.c.bf16 %v9977_v1, %v9975_v16  ;;  %v12727_v48 = vld [vmem:[#allocation23 + $0xa0] ss:$8 sps:$4 sm:$0xff]   ;;  %v12730_v13 = vld [vmem:[#allocation23 + $0x90] ss:$8 sps:$4 sm:$0xff]   ;;  %v12735_v51 = vld [vmem:[#allocation23 + $0x84] ss:$8 sps:$4 sm:$0xff]  }
 0xd38   :  { %v9972_v14 = vmax.f32 %v9964_v60, 0.0  ;;  %v9974_v3 = vmax.f32 %v9966_v31, 0.0  ;;  %v9976_v11 = vmax.f32 %v9968_v39, 0.0  ;;  %v9978_v19 = vmax.f32 %v9970_v22, 0.0  ;;  %v12733_v23 = vld [vmem:[#allocation23 + $0x80] ss:$8 sps:$4 sm:$0xff]  }
 0xd39   :  { %10699 = vmatpush1.bf16.msra.mxu1 %v12703_v26  ;;  %v10045_v18 = vld [vmem:[#allocation16 + $0x12] sm:$0x3] }
 0xd3a   :  { %v11678_v56 = vpack.c.bf16 %v9972_v14, %v9971_v0  ;;  %v11679_v29 = vpack.c.bf16 %v9974_v3, %v9973_v9  ;;  %v11680_v36 = vpack.c.bf16 %v9976_v11, %v9975_v16  ;;  %v11681_v38 = vpack.c.bf16 %v9978_v19, %v9977_v1  ;;  %10700 = vmatprep.subr.bf16.mxu1 %v12708_v49 }
 0xd3b   :  { %v12816_v54 = vpack.c.bf16 %v9974_v3, %v9972_v14  ;;  %v12817_v24 = vpack.c.bf16 %v9978_v19, %v9976_v11  ;;  %v10050_v4 = vrot.slane %v10045_v18, %v13376_v27  ;;  %v10054_v52 = vrot.slane %v10045_v18, %v13381_v32 }
 0xd3c   :  { %10005 = vst [vmem:[#allocation3 + $0x30] sm:$0xff] %v11680_v36  ;;  %10006 = vst [vmem:[#allocation3 + $0x10] sm:$0xff] %v11681_v38 }
 0xd3d   :  { %10003 = vst [vmem:[#allocation3 + $0x28] sm:$0xff] %v11678_v56  ;;  %10004 = vst [vmem:[#allocation3 + $0x18] sm:$0xff] %v11679_v29  ;;  %10269 = vmatprep.mubr.bf16.mxu0 %v12816_v54  ;;  %10701 = vmatpush1.bf16.msra.mxu1 %v12706_v30 }
 0xd3e   :  { %10270 = vmatmul.mubr.bf16.vlgmr.msra.gmra.mxu0 %v12815_v2  ;;  %10702 = vmatprep.subr.bf16.mxu1 %v12711_v33 }
 0xd3f   :  { %10279 = vmatprep.mubr.bf16.mxu0 %v12817_v24 }
 0xd41   :  { %10703 = vmatpush1.bf16.msra.mxu1 %v12709_v37 }
 0xd42   :  { %10704 = vmatprep.subr.bf16.mxu1 %v12714_v59 }
 0xd45   :  { %10705 = vmatpush2.bf16.msra.mxu1 %v12712_v28 }
 0xd46   :  { %10280 = vmatmul.mubr.bf16.gmra.mxu0 %v12818_v53  ;;  %10706 = vmatprep.subr.bf16.mxu1 %v12717_v17 }
 0xd49   :  { %10707 = vmatpush2.bf16.msra.mxu1 %v12715_v12 }
 0xd4a   :  { %10708 = vmatprep.subr.bf16.mxu1 %v12720_v61 }
 0xd4d   :  { %10709 = vmatpush2.bf16.msra.mxu1 %v12718_v45 }
 0xd4e   :  { %10710 = vmatprep.subr.bf16.mxu1 %v12723_v46 }
 0xd51   :  { %10711 = vmatpush2.bf16.msra.mxu1 %v12721_v7 }
 0xd52   :  { %10712 = vmatprep.subr.bf16.mxu1 %v12726_v57 }
 0xd55   :  { %10713 = vmatpush2.bf16.msra.mxu1 %v12724_v34 }
 0xd56   :  { %10714 = vmatprep.subr.bf16.mxu1 %v12729_v10 }
 0xd59   :  { %10715 = vmatpush2.bf16.msra.mxu1 %v12727_v48 }
 0xd5a   :  { %10716 = vmatprep.subr.bf16.mxu1 %v12732_v63 }
 0xd5d   :  { %10717 = vmatpush2.bf16.msra.mxu1 %v12730_v13 }
 0xd5e   :  { %10718 = vmatprep.subr.bf16.mxu1 %v12735_v51 }
 0xd61   :  { %10719 = vmatpush2.bf16.msra.mxu1 %v12733_v23 }
 0xdfe   :  { %v10271_v43 = vpop.f32.mrf.mxu0 }
 0xdff   :  { %v10272_v60 = vadd.f32 %v10271_v43, %v10050_v4 }
 0xe00   :  { %v10273_v25 = vpop.f32.mrf.mxu0 }
 0xe01   :  { %v10274_v0 = vadd.f32 %v10273_v25, %v10054_v52 }
 0xe02   :  { %v10275_v41 = vpop.f32.mrf.mxu0 }
 0xe03   :  { %v10276_v44 = vadd.f32 %v10275_v41, %v10050_v4 }
 0xe04   :  { %v10277_v8 = vpop.f32.mrf.mxu0 }
 0xe05   :  { %v10278_v31 = vadd.f32 %v10277_v8, %v10054_v52  ;;  %v10290_v9 = vadd.f32 %v10276_v44, %v10272_v60 }
 0xe06   :  { %v10281_v42 = vpop.f32.mrf.mxu0 }
 0xe07   :  { %v10282_v39 = vadd.f32 %v10281_v42, %v10050_v4  ;;  %v10299_v14 = vadd.f32 %v10278_v31, %v10274_v0 }
 0xe08   :  { %v10283_v22 = vpop.f32.mrf.mxu0 }
 0xe09   :  { %v10284_v16 = vadd.f32 %v10283_v22, %v10054_v52  ;;  %v10291_v3 = vadd.f32 %v10290_v9, %v10282_v39 }
 0xe0a   :  { %v10285_v1 = vpop.f32.mrf.mxu0 }
 0xe0b   :  { %v10286_v11 = vadd.f32 %v10285_v1, %v10050_v4  ;;  %v10300_v56 = vadd.f32 %v10299_v14, %v10284_v16  ;;  %v14157_v1 = vld [vmem:[#allocation46_spill] sm:$0xff] }
 0xe0c   :  { %v10287_v19 = vpop.f32.mrf.mxu0 }
 0xe0d   :  { %v10292_v29 = vadd.f32 %v10291_v3, %v10286_v11  ;;  %v10288_v36 = vadd.f32 %v10287_v19, %v10054_v52  ;;  %v14159_v19 = vld [vmem:[#allocation55_spill] sm:$0xff] }
 0xe0f   :  { %v10293_v38 = vrot.slane %v10292_v29, 4  ;;  %v10301_v2 = vadd.f32 %v10300_v56, %v10288_v36  ;;  %v14160_v56 = vld [vmem:[#allocation56_spill] sm:$0xff] }
 0xe11   :  { %v10294_v54 = vadd.f32 %v10293_v38, %v10292_v29  ;;  %v10302_v24 = vrot.slane %v10301_v2, 4  ;;  %v14161_v29 = vcombine.low %v14159_v19, %v14160_v56 }
 0xe13   :  { %v10295_v53 = vrot.slane %v10294_v54, 2  ;;  %v10303_v55 = vadd.f32 %v10302_v24, %v10301_v2 }
 0xe15   :  { %v10296_v15 = vadd.f32 %v10295_v53, %v10294_v54  ;;  %v10304_v5 = vrot.slane %v10303_v55, 2 }
 0xe17   :  { %v10297_v62 = vrot.slane %v10296_v15, 1  ;;  %v10305_v6 = vadd.f32 %v10304_v5, %v10303_v55 }
 0xe19   :  { %v10298_v35 = vadd.f32 %v10297_v62, %v10296_v15  ;;  %v10306_v50 = vrot.slane %v10305_v6, 1 }
 0xe1b   :  { %v10308_v21 = vmul.f32 0.03125, %v10298_v35  ;;  %v10307_v47 = vadd.f32 %v10306_v50, %v10305_v6 }
 0xe1d   :  { %v10310_v58 = vsub.f32 %v10272_v60, %v10308_v21  ;;  %v10312_v40 = vsub.f32 %v10276_v44, %v10308_v21  ;;  %v10314_v26 = vsub.f32 %v10282_v39, %v10308_v21  ;;  %v10309_v49 = vmul.f32 0.03125, %v10307_v47 }
 0xe1e   :  { %v10316_v30 = vsub.f32 %v10286_v11, %v10308_v21 }
 0xe1f   :  { %v10318_v33 = vmul.f32 %v10310_v58, %v10310_v58  ;;  %v10320_v37 = vmul.f32 %v10312_v40, %v10312_v40  ;;  %v10311_v59 = vsub.f32 %v10274_v0, %v10309_v49  ;;  %v10313_v28 = vsub.f32 %v10278_v31, %v10309_v49 }
 0xe20   :  { %v10315_v17 = vsub.f32 %v10284_v16, %v10309_v49  ;;  %v10322_v12 = vmul.f32 %v10314_v26, %v10314_v26  ;;  %v10317_v45 = vsub.f32 %v10288_v36, %v10309_v49  ;;  %v10324_v57 = vmul.f32 %v10316_v30, %v10316_v30  ;;  %v14156_v16 = vld [vmem:[#allocation45_spill] sm:$0xff] }
 0xe21   :  { %v10326_v61 = vadd.f32 %v10320_v37, %v10318_v33  ;;  %v10319_v46 = vmul.f32 %v10311_v59, %v10311_v59  ;;  %v10321_v7 = vmul.f32 %v10313_v28, %v10313_v28  ;;  %v14158_v14 = vcombine.low %v14156_v16, %v14157_v1 }
 0xe22   :  { %v10323_v10 = vmul.f32 %v10315_v17, %v10315_v17  ;;  %v10325_v13 = vmul.f32 %v10317_v45, %v10317_v45  ;;  %v10392_v36 = vrot.slane %v14161_v29, %v13743_v20 }
 0xe23   :  { %v10327_v34 = vadd.f32 %v10326_v61, %v10322_v12  ;;  %v10335_v48 = vadd.f32 %v10321_v7, %v10319_v46  ;;  %v10367_v3 = vrot.slane %v14158_v14, %v13743_v20 }
 0xe24   :  { %v10393_v2 = vcombine.high %v10392_v36, %v10392_v36  ;;  %v10400_v53 = vrot.slane %v10392_v36, %v13743_v20 }
 0xe25   :  { %v10328_v63 = vadd.f32 %v10327_v34, %v10324_v57  ;;  %v10336_v51 = vadd.f32 %v10335_v48, %v10323_v10  ;;  %v10368_v38 = vcombine.high %v10367_v3, %v10367_v3  ;;  %v10375_v54 = vrot.slane %v10367_v3, %v13743_v20  ;;  %v10749_v3 = vld [vmem:[#allocation26] sm:$0x3] }
 0xe26   :  { %v10407_v55 = vrot.slane %v10393_v2, %v13743_v20  ;;  %v10439_v33 = vrot.slane %v10400_v53, %v13376_v27  ;;  %v10443_v37 = vrot.slane %v10400_v53, %v13381_v32  ;;  %v10754_v36 = vrot.slane %v10749_v3, %v13376_v27 }
 0xe27   :  { %v10329_v23 = vrot.slane %v10328_v63, 4  ;;  %v10337_v43 = vadd.f32 %v10336_v51, %v10325_v13  ;;  %v10382_v24 = vrot.slane %v10368_v38, %v13743_v20  ;;  %v10411_v5 = vrot.slane %v10375_v54, %v13376_v27 }
 0xe28   :  { %v10415_v62 = vrot.slane %v10375_v54, %v13381_v32  ;;  %v10451_v12 = vrot.slane %v10407_v55, %v13381_v32  ;;  %v10447_v20 = vrot.slane %v10407_v55, %v13376_v27  ;;  %v10758_v38 = vrot.slane %v10749_v3, %v13381_v32 }
 0xe29   :  { %v10330_v18 = vadd.f32 %v10329_v23, %v10328_v63  ;;  %v10338_v25 = vrot.slane %v10337_v43, 4  ;;  %v10419_v6 = vrot.slane %v10382_v24, %v13376_v27  ;;  %v10423_v35 = vrot.slane %v10382_v24, %v13381_v32 }
 0xe2b   :  { %v10331_v41 = vrot.slane %v10330_v18, 2  ;;  %v10339_v4 = vadd.f32 %v10338_v25, %v10337_v43 }
 0xe2d   :  { %v10332_v8 = vadd.f32 %v10331_v41, %v10330_v18  ;;  %v10340_v52 = vrot.slane %v10339_v4, 2 }
 0xe2f   :  { %v10333_v44 = vrot.slane %v10332_v8, 1  ;;  %v10341_v42 = vadd.f32 %v10340_v52, %v10339_v4 }
 0xe31   :  { %v10334_v60 = vadd.f32 %v10333_v44, %v10332_v8  ;;  %v10342_v31 = vrot.slane %v10341_v42, 1 }
 0xe33   :  { %v10344_v39 = vmul.f32 0.03125, %v10334_v60  ;;  %v10343_v22 = vadd.f32 %v10342_v31, %v10341_v42 }
 0xe35   :  { %v10346_v0 = vadd.f32 1e-05, %v10344_v39  ;;  %v10345_v9 = vmul.f32 0.03125, %v10343_v22 }
 0xe37   :  { %12772 = vrsqrt.f32 %v10346_v0  ;;  %v10347_v11 = vadd.f32 1e-05, %v10345_v9  ;;  %v10516_v9 = vld [vmem:[#allocation25] sm:$0x3] }
 0xe38   :  { %v10521_v16 = vrot.slane %v10516_v9, %v13376_v27  ;;  %v10525_v1 = vrot.slane %v10516_v9, %v13381_v32 }
 0xe39   :  { %12774 = vrsqrt.f32 %v10347_v11 }
 0xe44   :  { %v12773_v15 = vpop.eup %12772 }
 0xe45   :  { %v10350_v50 = vmul.f32 %v12773_v15, %v10310_v58  ;;  %v10352_v21 = vmul.f32 %v12773_v15, %v10312_v40  ;;  %v10356_v47 = vmul.f32 %v12773_v15, %v10316_v30  ;;  %v10354_v49 = vmul.f32 %v12773_v15, %v10314_v26 }
 0xe46   :  { %v12775_v61 = vpop.eup %12774 }
 0xe47   :  { %v10434_v46 = vmul.f32 %v10419_v6, %v10356_v47  ;;  %v10428_v7 = vmul.f32 %v10411_v5, %v10350_v50  ;;  %v10430_v57 = vmul.f32 %v10411_v5, %v10352_v21  ;;  %v10432_v34 = vmul.f32 %v10419_v6, %v10354_v49 }
 0xe48   :  { %v10357_v10 = vmul.f32 %v12775_v61, %v10317_v45  ;;  %v10351_v48 = vmul.f32 %v12775_v61, %v10311_v59  ;;  %v10353_v63 = vmul.f32 %v12775_v61, %v10313_v28  ;;  %v10355_v58 = vmul.f32 %v12775_v61, %v10315_v17 }
 0xe49   :  { %v10456_v40 = vadd.f32 %v10439_v33, %v10428_v7  ;;  %v10458_v30 = vadd.f32 %v10439_v33, %v10430_v57  ;;  %v10460_v26 = vadd.f32 %v10447_v20, %v10432_v34  ;;  %v10462_v13 = vadd.f32 %v10447_v20, %v10434_v46 }
 0xe4a   :  { %v10435_v51 = vmul.f32 %v10423_v35, %v10357_v10  ;;  %v10429_v23 = vmul.f32 %v10415_v62, %v10351_v48  ;;  %v10431_v43 = vmul.f32 %v10415_v62, %v10353_v63  ;;  %v10433_v18 = vmul.f32 %v10423_v35, %v10355_v58 }
 0xe4b   :  { %v10464_v25 = vmax.f32 %v10456_v40, 0.0  ;;  %v10466_v41 = vmax.f32 %v10458_v30, 0.0  ;;  %v10468_v4 = vmax.f32 %v10460_v26, 0.0  ;;  %v10470_v8 = vmax.f32 %v10462_v13, 0.0 }
 0xe4c   :  { %v10457_v52 = vadd.f32 %v10443_v37, %v10429_v23  ;;  %v10459_v44 = vadd.f32 %v10443_v37, %v10431_v43  ;;  %v10461_v42 = vadd.f32 %v10451_v12, %v10433_v18  ;;  %v10463_v60 = vadd.f32 %v10451_v12, %v10435_v51 }
 0xe4d   :  { %10472 = vst [vmem:[#allocation28] sm:$0xff] %v10464_v25  ;;  %10474 = vst [vmem:[#allocation28 + $0x10] sm:$0xff] %v10466_v41  ;;  %v10480_v59 = vpack.c.bf16 %v10466_v41, %v10464_v25  ;;  %v10482_v28 = vpack.c.bf16 %v10470_v8, %v10468_v4 }
 0xe4e   :  { %10476 = vst [vmem:[#allocation28 + $0x20] sm:$0xff] %v10468_v4  ;;  %10478 = vst [vmem:[#allocation28 + $0x30] sm:$0xff] %v10470_v8  ;;  %v10465_v17 = vmax.f32 %v10457_v52, 0.0  ;;  %v10467_v45 = vmax.f32 %v10459_v44, 0.0  ;;  %v10469_v31 = vmax.f32 %v10461_v42, 0.0  ;;  %v10471_v39 = vmax.f32 %v10463_v60, 0.0 }
 0xe50   :  { %10473 = vst [vmem:[#allocation28 + $0x8] sm:$0xff] %v10465_v17  ;;  %10475 = vst [vmem:[#allocation28 + $0x18] sm:$0xff] %v10467_v45  ;;  %v10481_v22 = vpack.c.bf16 %v10467_v45, %v10465_v17  ;;  %v10483_v0 = vpack.c.bf16 %v10471_v39, %v10469_v31 }
 0xe51   :  { %10477 = vst [vmem:[#allocation28 + $0x28] sm:$0xff] %v10469_v31  ;;  %10479 = vst [vmem:[#allocation28 + $0x38] sm:$0xff] %v10471_v39 }
 0xe52   :  { %10720 = vmatprep.mubr.bf16.mxu1 %v10481_v22 }
 0xe53   :  { %10721 = vmatmul.mubr.bf16.vlgmr.msra.gmra.mxu1 %v10480_v59 }
 0xe54   :  { %10730 = vmatprep.mubr.bf16.mxu1 %v10483_v0 }
 0xe5b   :  { %10731 = vmatmul.mubr.bf16.gmra.mxu1 %v10482_v28 }
 0xf13   :  { %v10722_v14 = vpop.f32.mrf.mxu1 }
 0xf14   :  { %v10723_v11 = vadd.f32 %v10722_v14, %v10521_v16 }
 0xf15   :  { %v10724_v19 = vpop.f32.mrf.mxu1 }
 0xf16   :  { %v10741_v56 = vmax.f32 %v10723_v11, 0.0  ;;  %v10725_v29 = vadd.f32 %v10724_v19, %v10525_v1 }
 0xf17   :  { %v10726_v2 = vpop.f32.mrf.mxu1 }
 0xf18   :  { %v10742_v54 = vmax.f32 %v10725_v29, 0.0  ;;  %v10727_v24 = vadd.f32 %v10726_v2, %v10521_v16  ;;  %v10761_v5 = vmul.f32 %v10754_v36, %v10741_v56 }
 0xf19   :  { %v10728_v53 = vpop.f32.mrf.mxu1 }
 0xf1a   :  { %v10743_v55 = vmax.f32 %v10727_v24, 0.0  ;;  %v10729_v15 = vadd.f32 %v10728_v53, %v10525_v1  ;;  %v10762_v62 = vmul.f32 %v10758_v38, %v10742_v54 }
 0xf1b   :  { %v10732_v6 = vpop.f32.mrf.mxu1 }
 0xf1c   :  { %v10744_v35 = vmax.f32 %v10729_v15, 0.0  ;;  %v10733_v50 = vadd.f32 %v10732_v6, %v10521_v16  ;;  %v10769_v21 = vadd.f32 %v10762_v62, %v10761_v5  ;;  %v10763_v49 = vmul.f32 %v10754_v36, %v10743_v55 }
 0xf1d   :  { %v10734_v47 = vpop.f32.mrf.mxu1 }
 0xf1e   :  { %v10764_v33 = vmul.f32 %v10758_v38, %v10744_v35  ;;  %v10745_v37 = vmax.f32 %v10733_v50, 0.0  ;;  %v10735_v12 = vadd.f32 %v10734_v47, %v10525_v1  ;;  %10770 = vadd.xlane.f32.xlu0 %v10769_v21 }
 0xf1f   :  { %v10736_v27 = vpop.f32.mrf.mxu1 }
 0xf20   :  { %v10746_v32 = vmax.f32 %v10735_v12, 0.0  ;;  %v10737_v20 = vadd.f32 %v10736_v27, %v10521_v16  ;;  %v10772_v61 = vadd.f32 %v10764_v33, %v10763_v49  ;;  %v10765_v34 = vmul.f32 %v10754_v36, %v10745_v37 }
 0xf21   :  { %v10738_v46 = vpop.f32.mrf.mxu1 }
 0xf22   :  { %v10747_v7 = vmax.f32 %v10737_v20, 0.0  ;;  %v10739_v57 = vadd.f32 %v10738_v46, %v10525_v1  ;;  %10773 = vadd.xlane.f32.xlu0 %v10772_v61  ;;  %v10766_v10 = vmul.f32 %v10758_v38, %v10746_v32 }
 0xf24   :  { %v10748_v48 = vmax.f32 %v10739_v57, 0.0  ;;  %v10775_v63 = vadd.f32 %v10766_v10, %v10765_v34  ;;  %v10767_v58 = vmul.f32 %v10754_v36, %v10747_v7 }
 0xf26   :  { %v10768_v40 = vmul.f32 %v10758_v38, %v10748_v48  ;;  %10776 = vadd.xlane.f32.xlu1 %v10775_v63 }
 0xf28   :  { %v10778_v30 = vadd.f32 %v10768_v40, %v10767_v58 }
 0xf2a   :  { %10779 = vadd.xlane.f32.xlu1 %v10778_v30 }
 0xf2b   :  { %13110 = shalt.err (!%p13107_p4)
}
 0xf2c   :  { %s13161_s18 = smov 256   ;;  %s13162_s20 = smov 16   ;;  %v11637_v26 = vld [vmem:[#allocation4] ss:$0 sm:$0xff]  ;;  %vm10796_vm5 = vcmask 7168  }
 0xf2d   :  { %10812 = dma.vmem_to_hbm [thread:$0]  %s10807_s13, 1024, %s14081_s15, [#allocation7], %s13161_s18, %s13161_s18, %s13162_s20  }
 0xfa7   :  { %v10771_v13 = vpop.xlane.xlu0 %10770 }
 0xfa8   :  { %v10788_v51 = vadd.f32 %v11637_v26, %v10771_v13 }
 0xfaa   :  { %v10792_v23 = vmax.f32 %v10788_v51, 0.0 }
 0xfab   :  { %v10774_v43 = vpop.xlane.xlu0 %10773 }
 0xfac   :  { %10797 = vst.msk [vmem:[%s14082_s16] sm:$0xff] %vm10796_vm5, %v10792_v23  ;;  %v10789_v18 = vadd.f32 %v11637_v26, %v10774_v43 }
 0xfae   :  { %v10793_v25 = vmax.f32 %v10789_v18, 0.0 }
 0xfaf   :  { %v10777_v41 = vpop.xlane.xlu1 %10776 }
 0xfb0   :  { %10798 = vst.msk [vmem:[%s14082_s16 + $0x8] sm:$0xff] %vm10796_vm5, %v10793_v25  ;;  %v10790_v4 = vadd.f32 %v11637_v26, %v10777_v41 }
 0xfb2   :  { %v10794_v8 = vmax.f32 %v10790_v4, 0.0 }
 0xfb3   :  { %v10780_v52 = vpop.xlane.xlu1 %10779 }
 0xfb4   :  { %10799 = vst.msk [vmem:[%s14082_s16 + $0x10] sm:$0xff] %vm10796_vm5, %v10794_v8  ;;  %v10791_v44 = vadd.f32 %v11637_v26, %v10780_v52 }
 0xfb6   :  { %v10795_v42 = vmax.f32 %v10791_v44, 0.0 }
 0xfb8   :  { %10800 = vst.msk [vmem:[%s14082_s16 + $0x18] sm:$0xff] %vm10796_vm5, %v10795_v42 }
 0xfb9   :  { %13135 = dma.done.wait [#allocation7], 1024  }
 0xfba   :  { %13136 = vsyncadd [#allocation7], 4294966272 }
 0xfbb   :  { %10820 = vsyncpa [#allocation6], 1 }
 0xfbc   :  { %10821 = vsyncpa [#allocation9], 1 }
 0xfbd   :  { %10822 = vsyncpa [#allocation12], 1 }
 0xfbe   :  { %10823 = vsyncpa [#allocation15], 1 }
 0xfbf   :  { %10824 = vsyncpa [#allocation18], 1 }
 0xfc0   :  { %10825 = vsyncpa [#allocation21], 1 }
 0xfc1   :  { %10826 = vsyncpa [#allocation24], 1 }
 0xfc2   :  { %10827 = vsyncpa [#allocation27], 1 }
 0xfc3   :  { %10828 = vsyncpa [#allocation7], 1 }

</bundles_post_ra>
